<compile_context>
chip_gen: v5e
topology: v5e:2x2
jax: 0.10.0
libtpu: 0.0.40
codegen_flags: <defaults>
</compile_context>

<pallas_src>
import jax
import jax.numpy as jnp
from jax.experimental import pallas as pl
from jax.experimental.pallas import tpu as pltpu

IMG_C, IMG_H, IMG_W = 1, 28, 28
D_IN = IMG_C * IMG_H * IMG_W          # 784
K_PAD = 896                           # 7 * 128, lane-aligned K for the first matmul
D1, D2, D3, D_OUT = 1024, 512, 256, 1


def _round_up(n, m):
    return ((n + m - 1) // m) * m


def _lrelu(h):
    return jnp.where(h > 0, h, 0.2 * h)


def _stable_sigmoid(x):
    # exp() only ever sees a non-positive argument -> no overflow for large |x|.
    z = jnp.exp(-jnp.abs(x))
    return jnp.where(x >= 0, 1.0, z) / (1.0 + z)


def _disc_kernel(x_ref, w1_ref, w2_ref, w3_ref, w4_ref, b4_ref, o_ref):
    # x_ref: (TB, K_PAD) bf16; w1/w2/w3: bf16 (in, out); w4_ref: (1, D3) f32 row;
    # b4_ref: (1,) f32 in SMEM; o_ref: (TB, 1) f32.
    x = x_ref[...]
    h = _lrelu(jnp.dot(x, w1_ref[...], preferred_element_type=jnp.float32))
    h = _lrelu(jnp.dot(h.astype(jnp.bfloat16), w2_ref[...],
                       preferred_element_type=jnp.float32))
    h = _lrelu(jnp.dot(h.astype(jnp.bfloat16), w3_ref[...],
                       preferred_element_type=jnp.float32))
    # 256 -> 1: broadcast multiply + lane reduction (VPU/XLU) instead of an N=1
    # MXU matmul that would run at <1/128 utilization.
    logits = jnp.sum(h * w4_ref[...], axis=-1, keepdims=True) + b4_ref[0]
    o_ref[...] = _stable_sigmoid(logits).astype(o_ref.dtype)


def _build_call(B_pad, TB, weight_pipeline_mode):
    grid = (B_pad // TB,)

    def wspec(shape):
        if weight_pipeline_mode is None:
            return pl.BlockSpec(shape, lambda i: (0, 0))
        return pl.BlockSpec(shape, lambda i: (0, 0),
                            pipeline_mode=weight_pipeline_mode)

    flops = 2 * B_pad * (K_PAD * D1 + D1 * D2 + D2 * D3 + D3 * D_OUT)
    bytes_accessed = (
        B_pad * K_PAD * 2                        # x (bf16)
        + (K_PAD * D1 + D1 * D2 + D2 * D3) * 2   # bf16 weights
        + D3 * 4 + 4                             # w4 row + b4 (f32)
        + B_pad * D_OUT * 4)                     # output
    cost = pl.CostEstimate(flops=flops,
                           transcendentals=B_pad * D_OUT,
                           bytes_accessed=bytes_accessed)

    return pl.pallas_call(
        _disc_kernel,
        out_shape=jax.ShapeDtypeStruct((B_pad, D_OUT), jnp.float32),
        grid=grid,
        in_specs=[
            pl.BlockSpec((TB, K_PAD), lambda i: (i, 0)),       # x: batch-tiled
            wspec((K_PAD, D1)),                                # weights: constant index,
            wspec((D1, D2)),                                   # VMEM-resident
            wspec((D2, D3)),
            wspec((1, D3)),                                    # w4 row (f32)
            pl.BlockSpec(memory_space=pltpu.MemorySpace.SMEM), # b4 scalar in SMEM
        ],
        out_specs=pl.BlockSpec((TB, D_OUT), lambda i: (i, 0)),
        compiler_params=pltpu.CompilerParams(
            dimension_semantics=("parallel",),                 # batch axis -> both TCs on v7x
            vmem_limit_bytes=32 * 1024 * 1024,
        ),
        cost_estimate=cost,
    )


def dcgan_discriminator_mnist(img, params):
    """img: (B, 1, 28, 28) f32. params: dict from init_params (kernel layout)."""
    B = img.shape[0]
    x = img.reshape(B, -1).astype(jnp.float32)        # identical to torch .view flatten
    x = jnp.pad(x, ((0, 0), (0, K_PAD - D_IN)))       # 784 -> 896 zero columns

    TB = min(256, _round_up(B, 8))                    # batch tile (sublane-aligned)
    B_pad = _round_up(B, TB)
    if B_pad != B:
        x = jnp.pad(x, ((0, B_pad - B), (0, 0)))
    x = x.astype(jnp.bfloat16)

    args = (x, params["w1"], params["w2"], params["w3"], params["w4"], params["b4"])
    try:
        # constant-index weight blocks don't benefit from double-buffering
        out = _build_call(B_pad, TB, pl.Buffered(1))(*args)
    except Exception:
        # TODO(synk): pl.Buffered(1) pipeline_mode not accepted by this jax build; fall
        # back to default double-buffered weight blocks (~3 MiB extra VMEM, still fits).
        out = _build_call(B_pad, TB, None)(*args)
    return out[:B]


def init_params(key):
    """Deterministic synthetic parameters, laid out for the kernel.

    PyTorch nn.Linear stores weight as (out, in); we transpose to (in, out), zero-pad
    w1's input dim 784 -> 896, and cast the three large matmul weights to bf16.
    """
    ks = jax.random.split(key, 5)

    def lin_w(k, out_f, in_f):
        bound = 1.0 / float(jnp.sqrt(float(in_f)))
        return jax.random.uniform(k, (out_f, in_f), jnp.float32, -bound, bound)

    w1 = lin_w(ks[0], D1, D_IN)       # fc1 (no bias: norm_layer == BatchNorm2d)
    w2 = lin_w(ks[1], D2, D1)         # fc2 (no bias)
    w3 = lin_w(ks[2], D3, D2)         # fc3 (no bias)
    w4 = lin_w(ks[3], D_OUT, D3)      # fc4 weight, shape (1, 256) -- used as a row
    b4 = jax.random.uniform(ks[4], (D_OUT,), jnp.float32,
                            -1.0 / float(jnp.sqrt(float(D3))),
                            1.0 / float(jnp.sqrt(float(D3))))

    w1_pad = jnp.zeros((K_PAD, D1), jnp.float32).at[:D_IN, :].set(w1.T)
    return {
        "w1": w1_pad.astype(jnp.bfloat16),     # (896, 1024) bf16
        "w2": w2.T.astype(jnp.bfloat16),       # (1024, 512) bf16
        "w3": w3.T.astype(jnp.bfloat16),       # (512, 256)  bf16
        "w4": w4.astype(jnp.float32),          # (1, 256)    f32 row
        "b4": b4.astype(jnp.float32),          # (1,)        f32
    }


def reference_forward(img, params):
    """Pure-JAX reference mirroring the kernel's math (bf16 operands, f32 accum)."""
    B = img.shape[0]
    x = img.reshape(B, -1).astype(jnp.float32)
    x = jnp.pad(x, ((0, 0), (0, K_PAD - D_IN))).astype(jnp.bfloat16)
    h = _lrelu(jnp.dot(x, params["w1"], preferred_element_type=jnp.float32))
    h = _lrelu(jnp.dot(h.astype(jnp.bfloat16), params["w2"],
                       preferred_element_type=jnp.float32))
    h = _lrelu(jnp.dot(h.astype(jnp.bfloat16), params["w3"],
                       preferred_element_type=jnp.float32))
    logits = jnp.sum(h * params["w4"], axis=-1, keepdims=True) + params["b4"][0]
    return jax.nn.sigmoid(logits)


if __name__ == "__main__":
    key = jax.random.PRNGKey(0)
    k_img, k_par = jax.random.split(key)

    B = 2
    img = jax.random.normal(k_img, (B, IMG_C, IMG_H, IMG_W), jnp.float32)
    params = init_params(k_par)

    out = dcgan_discriminator_mnist(img, params)
    out = jax.block_until_ready(out)

    ref = reference_forward(img, params)
    assert out.shape == (B, 1), out.shape
    assert jnp.allclose(out, ref, atol=5e-3, rtol=5e-3), (out, ref)

    print("KERNEL_OK")
</pallas_src>

<mosaic_0001>
module attributes {stable_mosaic.version = 11 : i64} {
  func.func @_disc_kernel(%arg0: i32, %arg1: memref<8x896xbf16, #tpu.memory_space<vmem>>, %arg2: memref<896x1024xbf16, #tpu.memory_space<vmem>>, %arg3: memref<1024x512xbf16, #tpu.memory_space<vmem>>, %arg4: memref<512x256xbf16, #tpu.memory_space<vmem>>, %arg5: memref<1x256xf32, #tpu.memory_space<vmem>>, %arg6: memref<1xf32, #tpu.memory_space<smem>>, %arg7: memref<8x1xf32, #tpu.memory_space<vmem>>) attributes {dimension_semantics = [#tpu.dimension_semantics<parallel>], iteration_bounds = array<i64: 1>, scalar_prefetch = 0 : i64, scratch_operands = 0 : i64, tpu.core_type = #tpu.core_type<tc>, window_params = [{transform_indices = @transform_0, window_bounds = array<i64: 8, 896>}, {pipeline_mode = #tpu.pipeline_mode<synchronous>, transform_indices = @transform_1, window_bounds = array<i64: 896, 1024>}, {pipeline_mode = #tpu.pipeline_mode<synchronous>, transform_indices = @transform_2, window_bounds = array<i64: 1024, 512>}, {pipeline_mode = #tpu.pipeline_mode<synchronous>, transform_indices = @transform_3, window_bounds = array<i64: 512, 256>}, {pipeline_mode = #tpu.pipeline_mode<synchronous>, transform_indices = @transform_4, window_bounds = array<i64: 1, 256>}, {transform_indices = @transform_5, window_bounds = array<i64: 1>}, {transform_indices = @transform_6, window_bounds = array<i64: 8, 1>}]} {
    %c0 = arith.constant 0 : index
    %c0_0 = arith.constant 0 : index
    %0 = vector.load %arg1[%c0, %c0_0] : memref<8x896xbf16, #tpu.memory_space<vmem>>, vector<8x896xbf16>
    %c0_1 = arith.constant 0 : index
    %c0_2 = arith.constant 0 : index
    %1 = vector.load %arg2[%c0_1, %c0_2] : memref<896x1024xbf16, #tpu.memory_space<vmem>>, vector<896x1024xbf16>
    %cst = arith.constant dense<0.000000e+00> : vector<8x1024xf32>
    %2 = tpu.matmul %0, %1, %cst {dimension_numbers = #tpu.dot_dimension_numbers<[1], [0], [0], [1], [0, 0, 1, 1], [], []>} : vector<8x896xbf16>, vector<896x1024xbf16>, vector<8x1024xf32> -> vector<8x1024xf32>
    %cst_3 = arith.constant 0.000000e+00 : f32
    %3 = vector.broadcast %cst_3 : f32 to vector<8x1024xf32>
    %4 = arith.cmpf ogt, %2, %3 : vector<8x1024xf32>
    %cst_4 = arith.constant 2.000000e-01 : f32
    %5 = vector.broadcast %cst_4 : f32 to vector<8x1024xf32>
    %6 = arith.mulf %5, %2 : vector<8x1024xf32>
    %7 = arith.select %4, %2, %6 : vector<8x1024xi1>, vector<8x1024xf32>
    %8 = arith.truncf %7 : vector<8x1024xf32> to vector<8x1024xbf16>
    %c0_5 = arith.constant 0 : index
    %c0_6 = arith.constant 0 : index
    %9 = vector.load %arg3[%c0_5, %c0_6] : memref<1024x512xbf16, #tpu.memory_space<vmem>>, vector<1024x512xbf16>
    %cst_7 = arith.constant dense<0.000000e+00> : vector<8x512xf32>
    %10 = tpu.matmul %8, %9, %cst_7 {dimension_numbers = #tpu.dot_dimension_numbers<[1], [0], [0], [1], [0, 0, 1, 1], [], []>} : vector<8x1024xbf16>, vector<1024x512xbf16>, vector<8x512xf32> -> vector<8x512xf32>
    %cst_8 = arith.constant 0.000000e+00 : f32
    %11 = vector.broadcast %cst_8 : f32 to vector<8x512xf32>
    %12 = arith.cmpf ogt, %10, %11 : vector<8x512xf32>
    %cst_9 = arith.constant 2.000000e-01 : f32
    %13 = vector.broadcast %cst_9 : f32 to vector<8x512xf32>
    %14 = arith.mulf %13, %10 : vector<8x512xf32>
    %15 = arith.select %12, %10, %14 : vector<8x512xi1>, vector<8x512xf32>
    %16 = arith.truncf %15 : vector<8x512xf32> to vector<8x512xbf16>
    %c0_10 = arith.constant 0 : index
    %c0_11 = arith.constant 0 : index
    %17 = vector.load %arg4[%c0_10, %c0_11] : memref<512x256xbf16, #tpu.memory_space<vmem>>, vector<512x256xbf16>
    %cst_12 = arith.constant dense<0.000000e+00> : vector<8x256xf32>
    %18 = tpu.matmul %16, %17, %cst_12 {dimension_numbers = #tpu.dot_dimension_numbers<[1], [0], [0], [1], [0, 0, 1, 1], [], []>} : vector<8x512xbf16>, vector<512x256xbf16>, vector<8x256xf32> -> vector<8x256xf32>
    %cst_13 = arith.constant 0.000000e+00 : f32
    %19 = vector.broadcast %cst_13 : f32 to vector<8x256xf32>
    %20 = arith.cmpf ogt, %18, %19 : vector<8x256xf32>
    %cst_14 = arith.constant 2.000000e-01 : f32
    %21 = vector.broadcast %cst_14 : f32 to vector<8x256xf32>
    %22 = arith.mulf %21, %18 : vector<8x256xf32>
    %23 = arith.select %20, %18, %22 : vector<8x256xi1>, vector<8x256xf32>
    %c0_15 = arith.constant 0 : index
    %c0_16 = arith.constant 0 : index
    %24 = vector.load %arg5[%c0_15, %c0_16] : memref<1x256xf32, #tpu.memory_space<vmem>>, vector<1x256xf32>
    %25 = vector.broadcast %24 : vector<1x256xf32> to vector<8x256xf32>
    %26 = arith.mulf %23, %25 : vector<8x256xf32>
    %cst_17 = arith.constant dense<0.000000e+00> : vector<8xf32>
    %27 = vector.multi_reduction <add>, %26, %cst_17 [1] : vector<8x256xf32> to vector<8xf32>
    %28 = vector.shape_cast %27 : vector<8xf32> to vector<8x1xf32>
    %c0_18 = arith.constant 0 : index
    %29 = memref.load %arg6[%c0_18] : memref<1xf32, #tpu.memory_space<smem>>
    %30 = vector.broadcast %29 : f32 to vector<8x1xf32>
    %31 = arith.addf %28, %30 : vector<8x1xf32>
    %32 = math.absf %31 : vector<8x1xf32>
    %cst_19 = arith.constant 0.000000e+00 : f32
    %33 = vector.broadcast %cst_19 : f32 to vector<8x1xf32>
    %34 = arith.subf %33, %32 : vector<8x1xf32>
    %35 = math.exp %34 : vector<8x1xf32>
    %cst_20 = arith.constant 0.000000e+00 : f32
    %36 = vector.broadcast %cst_20 : f32 to vector<8x1xf32>
    %37 = arith.cmpf oge, %31, %36 : vector<8x1xf32>
    %cst_21 = arith.constant 1.000000e+00 : f32
    %38 = vector.broadcast %cst_21 : f32 to vector<8x1xf32>
    %39 = arith.select %37, %38, %35 : vector<8x1xi1>, vector<8x1xf32>
    %cst_22 = arith.constant 1.000000e+00 : f32
    %40 = vector.broadcast %cst_22 : f32 to vector<8x1xf32>
    %41 = arith.addf %40, %35 : vector<8x1xf32>
    %42 = arith.divf %39, %41 : vector<8x1xf32>
    %c0_23 = arith.constant 0 : index
    %c0_24 = arith.constant 0 : index
    %43 = vector.load %arg7[%c0_23, %c0_24] : memref<8x1xf32, #tpu.memory_space<vmem>>, vector<8x1xf32>
    tpu.vector_store %arg7[%c0_23, %c0_24], %42 {strides = array<i32>} : memref<8x1xf32, #tpu.memory_space<vmem>>, vector<8x1xf32>,
    return
  }
  func.func @transform_0(%arg0: i32) -> (i32, i32) {
    %c0_i32 = arith.constant 0 : i32
    %c0_i32_0 = arith.constant 0 : i32
    return %arg0, %c0_i32 : i32, i32
  }
  func.func @transform_1(%arg0: i32) -> (i32, i32) {
    %c0_i32 = arith.constant 0 : i32
    %c0_i32_0 = arith.constant 0 : i32
    %c0_i32_1 = arith.constant 0 : i32
    return %c0_i32, %c0_i32_0 : i32, i32
  }
  func.func @transform_2(%arg0: i32) -> (i32, i32) {
    %c0_i32 = arith.constant 0 : i32
    %c0_i32_0 = arith.constant 0 : i32
    %c0_i32_1 = arith.constant 0 : i32
    return %c0_i32, %c0_i32_0 : i32, i32
  }
  func.func @transform_3(%arg0: i32) -> (i32, i32) {
    %c0_i32 = arith.constant 0 : i32
    %c0_i32_0 = arith.constant 0 : i32
    %c0_i32_1 = arith.constant 0 : i32
    return %c0_i32, %c0_i32_0 : i32, i32
  }
  func.func @transform_4(%arg0: i32) -> (i32, i32) {
    %c0_i32 = arith.constant 0 : i32
    %c0_i32_0 = arith.constant 0 : i32
    %c0_i32_1 = arith.constant 0 : i32
    return %c0_i32, %c0_i32_0 : i32, i32
  }
  func.func @transform_5(%arg0: i32) -> i32 {
    %c0_i32 = arith.constant 0 : i32
    %c0_i32_0 = arith.constant 0 : i32
    return %c0_i32 : i32
  }
  func.func @transform_6(%arg0: i32) -> (i32, i32) {
    %c0_i32 = arith.constant 0 : i32
    %c0_i32_0 = arith.constant 0 : i32
    return %arg0, %c0_i32 : i32, i32
  }
}

module attributes {stable_mosaic.version = 11 : i64} {
  func.func @_disc_kernel(%arg0: i32, %arg1: memref<8x896xbf16, #tpu.memory_space<vmem>>, %arg2: memref<896x1024xbf16, #tpu.memory_space<vmem>>, %arg3: memref<1024x512xbf16, #tpu.memory_space<vmem>>, %arg4: memref<512x256xbf16, #tpu.memory_space<vmem>>, %arg5: memref<1x256xf32, #tpu.memory_space<vmem>>, %arg6: memref<1xf32, #tpu.memory_space<smem>>, %arg7: memref<8x1xf32, #tpu.memory_space<vmem>>) attributes {dimension_semantics = [#tpu.dimension_semantics<parallel>], iteration_bounds = array<i64: 1>, scalar_prefetch = 0 : i64, scratch_operands = 0 : i64, tpu.core_type = #tpu.core_type<tc>, window_params = [{transform_indices = @transform_0, window_bounds = array<i64: 8, 896>}, {pipeline_mode = #tpu.pipeline_mode<synchronous>, transform_indices = @transform_1, window_bounds = array<i64: 896, 1024>}, {pipeline_mode = #tpu.pipeline_mode<synchronous>, transform_indices = @transform_2, window_bounds = array<i64: 1024, 512>}, {pipeline_mode = #tpu.pipeline_mode<synchronous>, transform_indices = @transform_3, window_bounds = array<i64: 512, 256>}, {pipeline_mode = #tpu.pipeline_mode<synchronous>, transform_indices = @transform_4, window_bounds = array<i64: 1, 256>}, {transform_indices = @transform_5, window_bounds = array<i64: 1>}, {transform_indices = @transform_6, window_bounds = array<i64: 8, 1>}]} {
    %c0 = arith.constant 0 : index
    %c0_0 = arith.constant 0 : index
    %0 = vector.load %arg1[%c0, %c0_0] : memref<8x896xbf16, #tpu.memory_space<vmem>>, vector<8x896xbf16>
    %c0_1 = arith.constant 0 : index
    %c0_2 = arith.constant 0 : index
    %1 = vector.load %arg2[%c0_1, %c0_2] : memref<896x1024xbf16, #tpu.memory_space<vmem>>, vector<896x1024xbf16>
    %cst = arith.constant dense<0.000000e+00> : vector<8x1024xf32>
    %2 = tpu.matmul %0, %1, %cst {dimension_numbers = #tpu.dot_dimension_numbers<[1], [0], [0], [1], [0, 0, 1, 1], [], []>} : vector<8x896xbf16>, vector<896x1024xbf16>, vector<8x1024xf32> -> vector<8x1024xf32>
    %cst_3 = arith.constant 0.000000e+00 : f32
    %3 = vector.broadcast %cst_3 : f32 to vector<8x1024xf32>
    %4 = arith.cmpf ogt, %2, %3 : vector<8x1024xf32>
    %cst_4 = arith.constant 2.000000e-01 : f32
    %5 = vector.broadcast %cst_4 : f32 to vector<8x1024xf32>
    %6 = arith.mulf %5, %2 : vector<8x1024xf32>
    %7 = arith.select %4, %2, %6 : vector<8x1024xi1>, vector<8x1024xf32>
    %8 = arith.truncf %7 : vector<8x1024xf32> to vector<8x1024xbf16>
    %c0_5 = arith.constant 0 : index
    %c0_6 = arith.constant 0 : index
    %9 = vector.load %arg3[%c0_5, %c0_6] : memref<1024x512xbf16, #tpu.memory_space<vmem>>, vector<1024x512xbf16>
    %cst_7 = arith.constant dense<0.000000e+00> : vector<8x512xf32>
    %10 = tpu.matmul %8, %9, %cst_7 {dimension_numbers = #tpu.dot_dimension_numbers<[1], [0], [0], [1], [0, 0, 1, 1], [], []>} : vector<8x1024xbf16>, vector<1024x512xbf16>, vector<8x512xf32> -> vector<8x512xf32>
    %cst_8 = arith.constant 0.000000e+00 : f32
    %11 = vector.broadcast %cst_8 : f32 to vector<8x512xf32>
    %12 = arith.cmpf ogt, %10, %11 : vector<8x512xf32>
    %cst_9 = arith.constant 2.000000e-01 : f32
    %13 = vector.broadcast %cst_9 : f32 to vector<8x512xf32>
    %14 = arith.mulf %13, %10 : vector<8x512xf32>
    %15 = arith.select %12, %10, %14 : vector<8x512xi1>, vector<8x512xf32>
    %16 = arith.truncf %15 : vector<8x512xf32> to vector<8x512xbf16>
    %c0_10 = arith.constant 0 : index
    %c0_11 = arith.constant 0 : index
    %17 = vector.load %arg4[%c0_10, %c0_11] : memref<512x256xbf16, #tpu.memory_space<vmem>>, vector<512x256xbf16>
    %cst_12 = arith.constant dense<0.000000e+00> : vector<8x256xf32>
    %18 = tpu.matmul %16, %17, %cst_12 {dimension_numbers = #tpu.dot_dimension_numbers<[1], [0], [0], [1], [0, 0, 1, 1], [], []>} : vector<8x512xbf16>, vector<512x256xbf16>, vector<8x256xf32> -> vector<8x256xf32>
    %cst_13 = arith.constant 0.000000e+00 : f32
    %19 = vector.broadcast %cst_13 : f32 to vector<8x256xf32>
    %20 = arith.cmpf ogt, %18, %19 : vector<8x256xf32>
    %cst_14 = arith.constant 2.000000e-01 : f32
    %21 = vector.broadcast %cst_14 : f32 to vector<8x256xf32>
    %22 = arith.mulf %21, %18 : vector<8x256xf32>
    %23 = arith.select %20, %18, %22 : vector<8x256xi1>, vector<8x256xf32>
    %c0_15 = arith.constant 0 : index
    %c0_16 = arith.constant 0 : index
    %24 = vector.load %arg5[%c0_15, %c0_16] : memref<1x256xf32, #tpu.memory_space<vmem>>, vector<1x256xf32>
    %25 = vector.broadcast %24 : vector<1x256xf32> to vector<8x256xf32>
    %26 = arith.mulf %23, %25 : vector<8x256xf32>
    %cst_17 = arith.constant dense<0.000000e+00> : vector<8xf32>
    %27 = vector.multi_reduction <add>, %26, %cst_17 [1] : vector<8x256xf32> to vector<8xf32>
    %28 = vector.shape_cast %27 : vector<8xf32> to vector<8x1xf32>
    %c0_18 = arith.constant 0 : index
    %29 = memref.load %arg6[%c0_18] : memref<1xf32, #tpu.memory_space<smem>>
    %30 = vector.broadcast %29 : f32 to vector<8x1xf32>
    %31 = arith.addf %28, %30 : vector<8x1xf32>
    %32 = math.absf %31 : vector<8x1xf32>
    %cst_19 = arith.constant 0.000000e+00 : f32
    %33 = vector.broadcast %cst_19 : f32 to vector<8x1xf32>
    %34 = arith.subf %33, %32 : vector<8x1xf32>
    %35 = math.exp %34 : vector<8x1xf32>
    %cst_20 = arith.constant 0.000000e+00 : f32
    %36 = vector.broadcast %cst_20 : f32 to vector<8x1xf32>
    %37 = arith.cmpf oge, %31, %36 : vector<8x1xf32>
    %cst_21 = arith.constant 1.000000e+00 : f32
    %38 = vector.broadcast %cst_21 : f32 to vector<8x1xf32>
    %39 = arith.select %37, %38, %35 : vector<8x1xi1>, vector<8x1xf32>
    %cst_22 = arith.constant 1.000000e+00 : f32
    %40 = vector.broadcast %cst_22 : f32 to vector<8x1xf32>
    %41 = arith.addf %40, %35 : vector<8x1xf32>
    %42 = arith.divf %39, %41 : vector<8x1xf32>
    %c0_23 = arith.constant 0 : index
    %c0_24 = arith.constant 0 : index
    %43 = vector.load %arg7[%c0_23, %c0_24] : memref<8x1xf32, #tpu.memory_space<vmem>>, vector<8x1xf32>
    tpu.vector_store %arg7[%c0_23, %c0_24], %42 {strides = array<i32>} : memref<8x1xf32, #tpu.memory_space<vmem>>, vector<8x1xf32>,
    return
  }
  func.func @transform_0(%arg0: i32) -> (i32, i32) {
    %c0_i32 = arith.constant 0 : i32
    %c0_i32_0 = arith.constant 0 : i32
    return %arg0, %c0_i32 : i32, i32
  }
  func.func @transform_1(%arg0: i32) -> (i32, i32) {
    %c0_i32 = arith.constant 0 : i32
    %c0_i32_0 = arith.constant 0 : i32
    %c0_i32_1 = arith.constant 0 : i32
    return %c0_i32, %c0_i32_0 : i32, i32
  }
  func.func @transform_2(%arg0: i32) -> (i32, i32) {
    %c0_i32 = arith.constant 0 : i32
    %c0_i32_0 = arith.constant 0 : i32
    %c0_i32_1 = arith.constant 0 : i32
    return %c0_i32, %c0_i32_0 : i32, i32
  }
  func.func @transform_3(%arg0: i32) -> (i32, i32) {
    %c0_i32 = arith.constant 0 : i32
    %c0_i32_0 = arith.constant 0 : i32
    %c0_i32_1 = arith.constant 0 : i32
    return %c0_i32, %c0_i32_0 : i32, i32
  }
  func.func @transform_4(%arg0: i32) -> (i32, i32) {
    %c0_i32 = arith.constant 0 : i32
    %c0_i32_0 = arith.constant 0 : i32
    %c0_i32_1 = arith.constant 0 : i32
    return %c0_i32, %c0_i32_0 : i32, i32
  }
  func.func @transform_5(%arg0: i32) -> i32 {
    %c0_i32 = arith.constant 0 : i32
    %c0_i32_0 = arith.constant 0 : i32
    return %c0_i32 : i32
  }
  func.func @transform_6(%arg0: i32) -> (i32, i32) {
    %c0_i32 = arith.constant 0 : i32
    %c0_i32_0 = arith.constant 0 : i32
    return %arg0, %c0_i32 : i32, i32
  }
}

</mosaic_0001>

<bundles_post_ra>
// kernel: tpu_custom_call.1
= control target key start
LH: loop header
LB: loop body
LE: loop exit
PB: predicated region body
PF: predicated region fallthrough
CT: control target
= control target key end

     0   :  { %12 = vsyncpa [#allocation4], 0  ;;  %s10395_s0 = inlined_call_operand.hbm [shape: bf16[8,896], index: 0, kind: input, shape index: {}]   ;;  %s10396_s1 = inlined_call_operand.hbm [shape: bf16[896,1024], index: 1, kind: input, shape index: {}]   ;;  %s10397_s2 = inlined_call_operand.hbm [shape: bf16[1024,512], index: 2, kind: input, shape index: {}]   ;;  %s10398_s3 = inlined_call_operand.hbm [shape: bf16[512,256], index: 3, kind: input, shape index: {}]   ;;  %s10399_s4 = inlined_call_operand.hbm [shape: f32[1,256], index: 4, kind: input, shape index: {}]   ;;  %s10400_s5 = inlined_call_operand.<no memory space> [shape: f32[1], index: 5, kind: input, shape index: {}]   ;;  %s10401_s6 = inlined_call_operand.vmem [shape: f32[8,1], index: 6, kind: output, shape index: {}]  }
   0x1   :  { %13 = vsyncpa [#allocation6], 0  ;;  %s30_s23 = sshll.u32 %s10396_s1, 4  ;;  %s31_s23 = int_to_ptr.hbm [resolvable:$true] %s30_s23 }
   0x2   :  { %14 = vsyncpa [#allocation9], 0  ;;  %s10063_s24 = smov [#allocation5]   ;;  %s56_s28 = sshll.u32 %s10398_s3, 4  ;;  %s57_s28 = int_to_ptr.hbm [resolvable:$true] %s56_s28 }
   0x3   :  { %s32_s25 = sshll.u32 %s10063_s24, 4  ;;  %s10064_s29 = smov 512   ;;  %s33_s25 = int_to_ptr.vmem [resolvable:$true] %s32_s25 }
   0x4   :  { %s10065_s30 = smov 32   ;;  %s10066_s7 = smov [#allocation8]  }
   0x5   :  { %38 = dma.hbm_to_vmem [thread:$0]  %s31_s23, 57344, %s33_s25, [#allocation6], %s10064_s29, %s10064_s29, %s10065_s30  }
   0x6   :  { %s58_s8 = sshll.u32 %s10066_s7, 4  ;;  %s10067_s9 = smov 128   ;;  %s59_s8 = int_to_ptr.vmem [resolvable:$true] %s58_s8 }
   0x7   :  { %s10068_s10 = smov 8   ;;  %s20_s12 = sshll.u32 %s10395_s0, 4  ;;  %s21_s12 = int_to_ptr.hbm [resolvable:$true] %s20_s12 }
   0x8   :  { %64 = dma.hbm_to_vmem [thread:$0]  %s57_s28, 8192, %s59_s8, [#allocation9], %s10067_s9, %s10067_s9, %s10068_s10  }
   0x9   :  { %s10069_s13 = smov [#allocation3]   ;;  %s43_s16 = sshll.u32 %s10397_s2, 4  ;;  %s44_s16 = int_to_ptr.hbm [resolvable:$true] %s43_s16 }
   0xa   :  { %s22_s14 = sshll.u32 %s10069_s13, 4  ;;  %s10070_s17 = smov [#allocation7]   ;;  %s23_s14 = int_to_ptr.vmem [resolvable:$true] %s22_s14 }
   0xb   :  { %25 = dma.hbm_to_vmem [thread:$0]  %s21_s12, 448, %s23_s14, [#allocation4]  }
   0xc   :  { %s45_s18 = sshll.u32 %s10070_s17, 4  ;;  %s10071_s19 = smov 256   ;;  %s46_s18 = int_to_ptr.vmem [resolvable:$true] %s45_s18 }
   0xd   :  { %s10072_s20 = smov 16   ;;  %s70_s0 = sshll.u32 %s10399_s4, 4  ;;  %s71_s0 = int_to_ptr.hbm [resolvable:$true] %s70_s0 }
   0xe   :  { %51 = dma.hbm_to_vmem [thread:$0]  %s44_s16, 32768, %s46_s18, [#allocation6], %s10071_s19, %s10071_s19, %s10072_s20  }
   0xf   :  { %s10073_s23 = smov [#allocation10]  }
  0x10   :  { %s72_s24 = sshll.u32 %s10073_s23, 4  ;;  %s73_s24 = int_to_ptr.vmem [resolvable:$true] %s72_s24 }
  0x11   :  { %75 = dma.hbm_to_vmem [thread:$0]  %s71_s0, 32, %s73_s24, [#allocation9]  }
  0x12   :  { %10057 = dma.done.wait [#allocation4], 448  }
  0x13   :  { %10058 = vsyncadd [#allocation4], 4294966848 }
  0x14   :  { %10059 = dma.done.wait [#allocation6], 90112  }
  0x15   :  { %10060 = vsyncadd [#allocation6], 4294877184 }
  0x16   :  { %10061 = dma.done.wait [#allocation9], 8224  }
  0x17   :  { %10062 = vsyncadd [#allocation9], 4294959072  ;;  %v6308_v0 = vld [vmem:[#allocation5 + $0x1c0] sm:$0xf] }
  0x18   :  { %v9214_v1 = vld [vmem:[#allocation5 + $0x1dc] sm:$0xf0] }
  0x19   :  { %v6564_v2 = vld [vmem:[#allocation5 + $0x3c0] sm:$0xf]  ;;  %v6309_v3 = vor.u32 %v9214_v1, %v6308_v0 }
  0x1a   :  { %v9278_v4 = vld [vmem:[#allocation5 + $0x3dc] sm:$0xf0] }
  0x1b   :  { %v6820_v5 = vld [vmem:[#allocation5 + $0x5c0] sm:$0xf]  ;;  %v6565_v7 = vor.u32 %v9278_v4, %v6564_v2  ;;  %2815 = vmatpush.bf16.msra.mxu0 %v6309_v3 }
  0x1c   :  { %v9342_v6 = vld [vmem:[#allocation5 + $0x5dc] sm:$0xf0] }
  0x1d   :  { %v6821_v8 = vor.u32 %v9342_v6, %v6820_v5  ;;  %v7076_v9 = vld [vmem:[#allocation5 + $0x7c0] sm:$0xf]  ;;  %2828 = vmatpush.bf16.msra.mxu1 %v6565_v7 }
  0x1e   :  { %v9406_v10 = vld [vmem:[#allocation5 + $0x7dc] sm:$0xf0] }
  0x1f   :  { %v6276_v11 = vld [vmem:[#allocation5 + $0x180] sm:$0xf]  ;;  %v7077_v12 = vor.u32 %v9406_v10, %v7076_v9  ;;  %2841 = vmatpush.bf16.msra.mxu2 %v6821_v8 }
  0x20   :  { %v9206_v13 = vld [vmem:[#allocation5 + $0x19c] sm:$0xf0] }
  0x21   :  { %v6532_v14 = vld [vmem:[#allocation5 + $0x380] sm:$0xf]  ;;  %v6277_v16 = vor.u32 %v9206_v13, %v6276_v11  ;;  %2854 = vmatpush.bf16.msra.mxu3 %v7077_v12 }
  0x22   :  { %v9270_v15 = vld [vmem:[#allocation5 + $0x39c] sm:$0xf0] }
  0x23   :  { %v6533_v17 = vor.u32 %v9270_v15, %v6532_v14  ;;  %v6788_v18 = vld [vmem:[#allocation5 + $0x580] sm:$0xf]  ;;  %2816 = vmatpush.bf16.msra.mxu0 %v6277_v16 }
  0x24   :  { %v9334_v19 = vld [vmem:[#allocation5 + $0x59c] sm:$0xf0] }
  0x25   :  { %v7044_v20 = vld [vmem:[#allocation5 + $0x780] sm:$0xf]  ;;  %v6789_v21 = vor.u32 %v9334_v19, %v6788_v18  ;;  %2829 = vmatpush.bf16.msra.mxu1 %v6533_v17 }
  0x26   :  { %v9398_v22 = vld [vmem:[#allocation5 + $0x79c] sm:$0xf0] }
  0x27   :  { %v6244_v23 = vld [vmem:[#allocation5 + $0x140] sm:$0xf]  ;;  %v7045_v25 = vor.u32 %v9398_v22, %v7044_v20  ;;  %2842 = vmatpush.bf16.msra.mxu2 %v6789_v21 }
  0x28   :  { %v9198_v24 = vld [vmem:[#allocation5 + $0x15c] sm:$0xf0] }
  0x29   :  { %v6500_v26 = vld [vmem:[#allocation5 + $0x340] sm:$0xf]  ;;  %v6245_v29 = vor.u32 %v9198_v24, %v6244_v23  ;;  %2855 = vmatpush.bf16.msra.mxu3 %v7045_v25 }
  0x2a   :  { %v9262_v27 = vld [vmem:[#allocation5 + $0x35c] sm:$0xf0] }
  0x2b   :  { %v6756_v28 = vld [vmem:[#allocation5 + $0x540] sm:$0xf]  ;;  %v6501_v33 = vor.u32 %v9262_v27, %v6500_v26  ;;  %2817 = vmatpush.bf16.msra.mxu0 %v6245_v29 }
  0x2c   :  { %v9326_v30 = vld [vmem:[#allocation5 + $0x55c] sm:$0xf0] }
  0x2d   :  { %v7012_v31 = vld [vmem:[#allocation5 + $0x740] sm:$0xf]  ;;  %v6757_v34 = vor.u32 %v9326_v30, %v6756_v28  ;;  %2830 = vmatpush.bf16.msra.mxu1 %v6501_v33 }
  0x2e   :  { %v9390_v32 = vld [vmem:[#allocation5 + $0x75c] sm:$0xf0] }
  0x2f   :  { %v6212_v35 = vld [vmem:[#allocation5 + $0x100] sm:$0xf]  ;;  %v7013_v38 = vor.u32 %v9390_v32, %v7012_v31  ;;  %2843 = vmatpush.bf16.msra.mxu2 %v6757_v34 }
  0x30   :  { %v9190_v36 = vld [vmem:[#allocation5 + $0x11c] sm:$0xf0] }
  0x31   :  { %v6468_v37 = vld [vmem:[#allocation5 + $0x300] sm:$0xf]  ;;  %v6213_v44 = vor.u32 %v9190_v36, %v6212_v35  ;;  %2856 = vmatpush.bf16.msra.mxu3 %v7013_v38  ;;  %v6310_v38 = vld [vmem:[#allocation5 + $0x1e0] sm:$0xf0] }
  0x32   :  { %v9254_v39 = vld [vmem:[#allocation5 + $0x31c] sm:$0xf0] }
  0x33   :  { %v6724_v40 = vld [vmem:[#allocation5 + $0x500] sm:$0xf]  ;;  %v6469_v45 = vor.u32 %v9254_v39, %v6468_v37  ;;  %2818 = vmatpush.bf16.msra.mxu0 %v6213_v44  ;;  %v9210_v37 = vld [vmem:[#allocation5 + $0x1c4] sm:$0xf] }
  0x34   :  { %v9318_v41 = vld [vmem:[#allocation5 + $0x51c] sm:$0xf0] }
  0x35   :  { %v6980_v42 = vld [vmem:[#allocation5 + $0x700] sm:$0xf]  ;;  %v6725_v46 = vor.u32 %v9318_v41, %v6724_v40  ;;  %2831 = vmatpush.bf16.msra.mxu1 %v6469_v45 }
  0x36   :  { %v9382_v43 = vld [vmem:[#allocation5 + $0x71c] sm:$0xf0] }
  0x37   :  { %v6180_v47 = vld [vmem:[#allocation5 + $0xc0] sm:$0xf]  ;;  %v6981_v50 = vor.u32 %v9382_v43, %v6980_v42  ;;  %2844 = vmatpush.bf16.msra.mxu2 %v6725_v46  ;;  %v6313_v46 = vor.u32 %v9210_v37, %v6310_v38 }
  0x38   :  { %v9182_v48 = vld [vmem:[#allocation5 + $0xdc] sm:$0xf0] }
  0x39   :  { %v6436_v49 = vld [vmem:[#allocation5 + $0x2c0] sm:$0xf]  ;;  %v6181_v56 = vor.u32 %v9182_v48, %v6180_v47  ;;  %2857 = vmatpush.bf16.msra.mxu3 %v6981_v50  ;;  %v9202_v50 = vld [vmem:[#allocation5 + $0x184] sm:$0xf] }
  0x3a   :  { %v9246_v51 = vld [vmem:[#allocation5 + $0x2dc] sm:$0xf0] }
  0x3b   :  { %v6692_v52 = vld [vmem:[#allocation5 + $0x4c0] sm:$0xf]  ;;  %v6437_v57 = vor.u32 %v9246_v51, %v6436_v49  ;;  %2819 = vmatpush.bf16.msra.mxu0 %v6181_v56  ;;  %v6278_v51 = vld [vmem:[#allocation5 + $0x1a0] sm:$0xf0] }
  0x3c   :  { %v9310_v53 = vld [vmem:[#allocation5 + $0x4dc] sm:$0xf0] }
  0x3d   :  { %v6948_v54 = vld [vmem:[#allocation5 + $0x6c0] sm:$0xf]  ;;  %v6693_v58 = vor.u32 %v9310_v53, %v6692_v52  ;;  %2832 = vmatpush.bf16.msra.mxu1 %v6437_v57 }
  0x3e   :  { %v9374_v55 = vld [vmem:[#allocation5 + $0x6dc] sm:$0xf0] }
  0x3f   :  { %v6148_v59 = vld [vmem:[#allocation5 + $0x80] sm:$0xf]  ;;  %v6949_v62 = vor.u32 %v9374_v55, %v6948_v54  ;;  %2845 = vmatpush.bf16.msra.mxu2 %v6693_v58 }
  0x40   :  { %v9174_v60 = vld [vmem:[#allocation5 + $0x9c] sm:$0xf0] }
  0x41   :  { %v6404_v61 = vld [vmem:[#allocation5 + $0x280] sm:$0xf]  ;;  %v6149_v4 = vor.u32 %v9174_v60, %v6148_v59  ;;  %2858 = vmatpush.bf16.msra.mxu3 %v6949_v62  ;;  %v99_v59 = vld [vmem:[#allocation3 + $0x8] sm:$0xff]  ;;  %v6281_v60 = vor.u32 %v9202_v50, %v6278_v51 }
  0x42   :  { %v9238_v63 = vld [vmem:[#allocation5 + $0x29c] sm:$0xf0] }
  0x43   :  { %v6660_v0 = vld [vmem:[#allocation5 + $0x480] sm:$0xf]  ;;  %v6405_v5 = vor.u32 %v9238_v63, %v6404_v61  ;;  %2820 = vmatpush.bf16.msra.mxu0 %v6149_v4  ;;  %v556_v63 = vunpack.c.l.b16 %v99_v59 }
  0x44   :  { %v9302_v1 = vld [vmem:[#allocation5 + $0x49c] sm:$0xf0] }
  0x45   :  { %v6916_v2 = vld [vmem:[#allocation5 + $0x680] sm:$0xf]  ;;  %v6661_v6 = vor.u32 %v9302_v1, %v6660_v0  ;;  %2833 = vmatpush.bf16.msra.mxu1 %v6405_v5  ;;  %v98_v0 = vld [vmem:[#allocation3] sm:$0xff]  ;;  %v557_v1 = vunpack.c.h.b16 %v99_v59 }
  0x46   :  { %v9366_v3 = vld [vmem:[#allocation5 + $0x69c] sm:$0xf0]  ;;  %v554_v4 = vunpack.c.l.b16 %v98_v0  ;;  %v555_v5 = vunpack.c.h.b16 %v98_v0 }
  0x47   :  { %v6116_v7 = vld [vmem:[#allocation5 + $0x40] sm:$0xf]  ;;  %v6917_v10 = vor.u32 %v9366_v3, %v6916_v2  ;;  %2846 = vmatpush.bf16.msra.mxu2 %v6661_v6  ;;  %v9194_v2 = vld [vmem:[#allocation5 + $0x144] sm:$0xf] }
  0x48   :  { %v9166_v8 = vld [vmem:[#allocation5 + $0x5c] sm:$0xf0]  ;;  %v6246_v3 = vld [vmem:[#allocation5 + $0x160] sm:$0xf0] }
  0x49   :  { %v6372_v9 = vld [vmem:[#allocation5 + $0x240] sm:$0xf]  ;;  %v6117_v16 = vor.u32 %v9166_v8, %v6116_v7  ;;  %2859 = vmatpush.bf16.msra.mxu3 %v6917_v10  ;;  %v10124_v7 = vpack.c.b16 %v556_v63, %v556_v63  ;;  %v10126_v8 = vpack.c.b16 %v557_v1, %v557_v1 }
  0x4a   :  { %v9230_v11 = vld [vmem:[#allocation5 + $0x25c] sm:$0xf0] }
  0x4b   :  { %v6628_v12 = vld [vmem:[#allocation5 + $0x440] sm:$0xf]  ;;  %v6373_v19 = vor.u32 %v9230_v11, %v6372_v9  ;;  %2821 = vmatpush.bf16.msra.mxu0 %v6117_v16 }
  0x4c   :  { %v9294_v13 = vld [vmem:[#allocation5 + $0x45c] sm:$0xf0] }
  0x4d   :  { %v6884_v14 = vld [vmem:[#allocation5 + $0x640] sm:$0xf]  ;;  %v6629_v20 = vor.u32 %v9294_v13, %v6628_v12  ;;  %2834 = vmatpush.bf16.msra.mxu1 %v6373_v19  ;;  %v10131_v19 = vpack.c.b16 %v555_v5, %v555_v5  ;;  %v9154_v5 = vld [vmem:[#allocation5 + $0x4] sm:$0xf] }
  0x4e   :  { %v9358_v15 = vld [vmem:[#allocation5 + $0x65c] sm:$0xf0] }
  0x4f   :  { %v6084_v17 = vld [vmem:[#allocation5] sm:$0xf]  ;;  %v6885_v24 = vor.u32 %v9358_v15, %v6884_v14  ;;  %2847 = vmatpush.bf16.msra.mxu2 %v6629_v20  ;;  %v10128_v14 = vpack.c.b16 %v554_v4, %v554_v4  ;;  %v6249_v15 = vor.u32 %v9194_v2, %v6246_v3  ;;  %v9186_v20 = vld [vmem:[#allocation5 + $0x104] sm:$0xf]  ;;  %v101_v3 = vld [vmem:[#allocation3 + $0x18] sm:$0xf] }
  0x50   :  { %v9158_v18 = vld [vmem:[#allocation5 + $0x1c] sm:$0xf0] }
  0x51   :  { %v6340_v21 = vld [vmem:[#allocation5 + $0x200] sm:$0xf]  ;;  %v6085_v31 = vor.u32 %v9158_v18, %v6084_v17  ;;  %2860 = vmatpush.bf16.msra.mxu3 %v6885_v24 }
  0x52   :  { %v9222_v22 = vld [vmem:[#allocation5 + $0x21c] sm:$0xf0] }
  0x53   :  { %v6596_v23 = vld [vmem:[#allocation5 + $0x400] sm:$0xf]  ;;  %v6341_v35 = vor.u32 %v9222_v22, %v6340_v21  ;;  %2822 = vmatpush.bf16.msra.mxu0 %v6085_v31  ;;  %v6214_v21 = vld [vmem:[#allocation5 + $0x120] sm:$0xf0] }
  0x54   :  { %v9286_v25 = vld [vmem:[#allocation5 + $0x41c] sm:$0xf0] }
  0x55   :  { %v6852_v26 = vld [vmem:[#allocation5 + $0x600] sm:$0xf]  ;;  %v6597_v36 = vor.u32 %v9286_v25, %v6596_v23  ;;  %2835 = vmatpush.bf16.msra.mxu1 %v6341_v35 }
  0x56   :  { %v9350_v27 = vld [vmem:[#allocation5 + $0x61c] sm:$0xf0]  ;;  %2823 = vmatmul.bf16.vlgmr.msra.gmra.mxu0 %v10128_v14 }
  0x57   :  { %v7332_v28 = vld [vmem:[#allocation5 + $0x9c0] sm:$0xf]  ;;  %v6853_v39 = vor.u32 %v9350_v27, %v6852_v26  ;;  %2848 = vmatpush.bf16.msra.mxu2 %v6597_v36 }
  0x58   :  { %v9470_v29 = vld [vmem:[#allocation5 + $0x9dc] sm:$0xf0]  ;;  %2836 = vmatmul.bf16.vlgmr.msra.gmra.mxu1 %v10131_v19 }
  0x59   :  { %v7588_v30 = vld [vmem:[#allocation5 + $0xbc0] sm:$0xf]  ;;  %v7333_v40 = vor.u32 %v9470_v29, %v7332_v28  ;;  %2861 = vmatpush.bf16.msra.mxu3 %v6853_v39  ;;  %v6217_v28 = vor.u32 %v9186_v20, %v6214_v21 }
  0x5a   :  { %v9534_v32 = vld [vmem:[#allocation5 + $0xbdc] sm:$0xf0]  ;;  %2849 = vmatmul.bf16.vlgmr.msra.gmra.mxu2 %v10124_v7 }
  0x5b   :  { %v7844_v33 = vld [vmem:[#allocation5 + $0xdc0] sm:$0xf]  ;;  %v7589_v41 = vor.u32 %v9534_v32, %v7588_v30  ;;  %2867 = vmatpush.bf16.msrb.mxu0 %v7333_v40  ;;  %v9178_v32 = vld [vmem:[#allocation5 + $0xc4] sm:$0xf] }
  0x5c   :  { %v9598_v34 = vld [vmem:[#allocation5 + $0xddc] sm:$0xf0]  ;;  %2862 = vmatmul.bf16.vlgmr.msra.gmra.mxu3 %v10126_v8 }
  0x5d   :  { %v7845_v42 = vor.u32 %v9598_v34, %v7844_v33  ;;  %v7300_v43 = vld [vmem:[#allocation5 + $0x980] sm:$0xf]  ;;  %2880 = vmatpush.bf16.msrb.mxu1 %v7589_v41  ;;  %2906 = vmatpush.bf16.msrb.mxu3 %v6313_v46  ;;  %v6182_v33 = vld [vmem:[#allocation5 + $0xe0] sm:$0xf0] }
  0x5e   :  { %v9462_v44 = vld [vmem:[#allocation5 + $0x99c] sm:$0xf0]  ;;  %v6185_v40 = vor.u32 %v9178_v32, %v6182_v33  ;;  %v9330_v32 = vld [vmem:[#allocation5 + $0x584] sm:$0xf] }
  0x5f   :  { %v7556_v45 = vld [vmem:[#allocation5 + $0xb80] sm:$0xf]  ;;  %v7301_v52 = vor.u32 %v9462_v44, %v7300_v43  ;;  %2893 = vmatpush.bf16.msrb.mxu2 %v7845_v42  ;;  %v9170_v44 = vld [vmem:[#allocation5 + $0x84] sm:$0xf] }
  0x60   :  { %v9526_v47 = vld [vmem:[#allocation5 + $0xb9c] sm:$0xf0] }
  0x61   :  { %v7812_v48 = vld [vmem:[#allocation5 + $0xd80] sm:$0xf]  ;;  %v7557_v55 = vor.u32 %v9526_v47, %v7556_v45  ;;  %2868 = vmatpush.bf16.msrb.mxu0 %v7301_v52  ;;  %2907 = vmatpush.bf16.msrb.mxu3 %v6281_v60  ;;  %v6150_v45 = vld [vmem:[#allocation5 + $0xa0] sm:$0xf0] }
  0x62   :  { %v9590_v49 = vld [vmem:[#allocation5 + $0xd9c] sm:$0xf0]  ;;  %v6153_v52 = vor.u32 %v9170_v44, %v6150_v45  ;;  %v9258_v45 = vld [vmem:[#allocation5 + $0x344] sm:$0xf] }
  0x63   :  { %v7268_v53 = vld [vmem:[#allocation5 + $0x940] sm:$0xf]  ;;  %v7813_v56 = vor.u32 %v9590_v49, %v7812_v48  ;;  %2881 = vmatpush.bf16.msrb.mxu1 %v7557_v55 }
  0x64   :  { %v9454_v54 = vld [vmem:[#allocation5 + $0x95c] sm:$0xf0] }
  0x65   :  { %v7524_v57 = vld [vmem:[#allocation5 + $0xb40] sm:$0xf]  ;;  %v7269_v6 = vor.u32 %v9454_v54, %v7268_v53  ;;  %2894 = vmatpush.bf16.msrb.mxu2 %v7813_v56  ;;  %2908 = vmatpush.bf16.msrb.mxu3 %v6249_v15  ;;  %v9162_v56 = vld [vmem:[#allocation5 + $0x44] sm:$0xf] }
  0x66   :  { %v9518_v58 = vld [vmem:[#allocation5 + $0xb5c] sm:$0xf0]  ;;  %v6822_v15 = vld [vmem:[#allocation5 + $0x5e0] sm:$0xf0] }
  0x67   :  { %v7780_v61 = vld [vmem:[#allocation5 + $0xd40] sm:$0xf]  ;;  %v7525_v9 = vor.u32 %v9518_v58, %v7524_v57  ;;  %2869 = vmatpush.bf16.msrb.mxu0 %v7269_v6  ;;  %v6118_v57 = vld [vmem:[#allocation5 + $0x60] sm:$0xf0] }
  0x68   :  { %v9582_v62 = vld [vmem:[#allocation5 + $0xd5c] sm:$0xf0]  ;;  %v6121_v4 = vor.u32 %v9162_v56, %v6118_v57  ;;  %v6086_v6 = vld [vmem:[#allocation5 + $0x20] sm:$0xf0] }
  0x69   :  { %v7781_v10 = vor.u32 %v9582_v62, %v7780_v61  ;;  %v7236_v11 = vld [vmem:[#allocation5 + $0x900] sm:$0xf]  ;;  %2882 = vmatpush.bf16.msrb.mxu1 %v7525_v9  ;;  %2909 = vmatpush.bf16.msrb.mxu3 %v6217_v28  ;;  %v100_v9 = vld [vmem:[#allocation3 + $0x10] sm:$0xff]  ;;  %v9250_v57 = vld [vmem:[#allocation5 + $0x304] sm:$0xf] }
  0x6a   :  { %v9446_v12 = vld [vmem:[#allocation5 + $0x91c] sm:$0xf0] }
  0x6b   :  { %v7492_v13 = vld [vmem:[#allocation5 + $0xb00] sm:$0xf]  ;;  %v7237_v22 = vor.u32 %v9446_v12, %v7236_v11  ;;  %2895 = vmatpush.bf16.msrb.mxu2 %v7781_v10  ;;  %v9274_v10 = vld [vmem:[#allocation5 + $0x3c4] sm:$0xf] }
  0x6c   :  { %v9510_v16 = vld [vmem:[#allocation5 + $0xb1c] sm:$0xf0]  ;;  %v6566_v11 = vld [vmem:[#allocation5 + $0x3e0] sm:$0xf0] }
  0x6d   :  { %v7748_v17 = vld [vmem:[#allocation5 + $0xd00] sm:$0xf]  ;;  %v7493_v23 = vor.u32 %v9510_v16, %v7492_v13  ;;  %2870 = vmatpush.bf16.msrb.mxu0 %v7237_v22  ;;  %2910 = vmatpush.bf16.msrb.mxu3 %v6185_v40  ;;  %v9338_v12 = vld [vmem:[#allocation5 + $0x5c4] sm:$0xf] }
  0x6e   :  { %v9574_v18 = vld [vmem:[#allocation5 + $0xd1c] sm:$0xf0]  ;;  %v9402_v16 = vld [vmem:[#allocation5 + $0x7c4] sm:$0xf]  ;;  %v6825_v28 = vor.u32 %v9338_v12, %v6822_v15 }
  0x6f   :  { %v7749_v24 = vor.u32 %v9574_v18, %v7748_v17  ;;  %v7204_v25 = vld [vmem:[#allocation5 + $0x8c0] sm:$0xf]  ;;  %2883 = vmatpush.bf16.msrb.mxu1 %v7493_v23  ;;  %v7078_v17 = vld [vmem:[#allocation5 + $0x7e0] sm:$0xf0]  ;;  %v560_v18 = vunpack.c.l.b16 %v101_v3 }
  0x70   :  { %v9438_v26 = vld [vmem:[#allocation5 + $0x8dc] sm:$0xf0]  ;;  %v9466_v22 = vld [vmem:[#allocation5 + $0x9c4] sm:$0xf] }
  0x71   :  { %v7460_v27 = vld [vmem:[#allocation5 + $0xac0] sm:$0xf]  ;;  %v7205_v34 = vor.u32 %v9438_v26, %v7204_v25  ;;  %2896 = vmatpush.bf16.msrb.mxu2 %v7749_v24  ;;  %2911 = vmatpush.bf16.msrb.mxu3 %v6153_v52  ;;  %v7334_v23 = vld [vmem:[#allocation5 + $0x9e0] sm:$0xf0]  ;;  %v558_v24 = vunpack.c.l.b16 %v100_v9  ;;  %v559_v25 = vunpack.c.h.b16 %v100_v9  ;;  %v6089_v26 = vor.u32 %v9154_v5, %v6086_v6 }
  0x72   :  { %v9502_v29 = vld [vmem:[#allocation5 + $0xadc] sm:$0xf0]  ;;  %v7337_v33 = vor.u32 %v9466_v22, %v7334_v23  ;;  %v9450_v52 = vld [vmem:[#allocation5 + $0x944] sm:$0xf] }
  0x73   :  { %v7716_v30 = vld [vmem:[#allocation5 + $0xcc0] sm:$0xf]  ;;  %v7461_v35 = vor.u32 %v9502_v29, %v7460_v27  ;;  %2871 = vmatpush.bf16.msrb.mxu0 %v7205_v34  ;;  %v6569_v27 = vor.u32 %v9274_v10, %v6566_v11  ;;  %v7081_v29 = vor.u32 %v9402_v16, %v7078_v17  ;;  %v10136_v34 = vpack.c.b16 %v560_v18, %v560_v18  ;;  %v9242_v5 = vld [vmem:[#allocation5 + $0x2c4] sm:$0xf] }
  0x74   :  { %v9566_v31 = vld [vmem:[#allocation5 + $0xcdc] sm:$0xf0]  ;;  %v10138_v40 = vpack.c.b16 %v558_v24, %v558_v24  ;;  %v6438_v6 = vld [vmem:[#allocation5 + $0x2e0] sm:$0xf0] }
  0x75   :  { %v7717_v36 = vor.u32 %v9566_v31, %v7716_v30  ;;  %v7172_v37 = vld [vmem:[#allocation5 + $0x880] sm:$0xf]  ;;  %2884 = vmatpush.bf16.msrb.mxu1 %v7461_v35  ;;  %2912 = vmatpush.bf16.msrb.mxu3 %v6121_v4  ;;  %v9266_v30 = vld [vmem:[#allocation5 + $0x384] sm:$0xf]  ;;  %v6441_v17 = vor.u32 %v9242_v5, %v6438_v6 }
  0x76   :  { %v9430_v38 = vld [vmem:[#allocation5 + $0x89c] sm:$0xf0]  ;;  %v6534_v31 = vld [vmem:[#allocation5 + $0x3a0] sm:$0xf0] }
  0x77   :  { %v7428_v39 = vld [vmem:[#allocation5 + $0xa80] sm:$0xf]  ;;  %v7173_v46 = vor.u32 %v9430_v38, %v7172_v37  ;;  %2897 = vmatpush.bf16.msrb.mxu2 %v7717_v36  ;;  %v6790_v35 = vld [vmem:[#allocation5 + $0x5a0] sm:$0xf0] }
  0x78   :  { %v9494_v41 = vld [vmem:[#allocation5 + $0xa9c] sm:$0xf0]  ;;  %v9394_v36 = vld [vmem:[#allocation5 + $0x784] sm:$0xf] }
  0x79   :  { %v7684_v42 = vld [vmem:[#allocation5 + $0xc80] sm:$0xf]  ;;  %v7429_v47 = vor.u32 %v9494_v41, %v7428_v39  ;;  %2872 = vmatpush.bf16.msrb.mxu0 %v7173_v46  ;;  %v7046_v37 = vld [vmem:[#allocation5 + $0x7a0] sm:$0xf0]  ;;  %v10140_v41 = vpack.c.b16 %v559_v25, %v559_v25  ;;  %2913 = vmatpush.bf16.msrb.mxu3 %v6089_v26 }
  0x7a   :  { %v9558_v43 = vld [vmem:[#allocation5 + $0xc9c] sm:$0xf0]  ;;  %v9458_v38 = vld [vmem:[#allocation5 + $0x984] sm:$0xf]  ;;  %v7049_v44 = vor.u32 %v9394_v36, %v7046_v37 }
  0x7b   :  { %v7685_v48 = vor.u32 %v9558_v43, %v7684_v42  ;;  %v7140_v49 = vld [vmem:[#allocation5 + $0x840] sm:$0xf]  ;;  %2885 = vmatpush.bf16.msrb.mxu1 %v7429_v47  ;;  %v7302_v39 = vld [vmem:[#allocation5 + $0x9a0] sm:$0xf0]  ;;  %v6537_v42 = vor.u32 %v9266_v30, %v6534_v31  ;;  %v6793_v43 = vor.u32 %v9330_v32, %v6790_v35 }
  0x7c   :  { %v9422_v50 = vld [vmem:[#allocation5 + $0x85c] sm:$0xf0]  ;;  %v6502_v46 = vld [vmem:[#allocation5 + $0x360] sm:$0xf0]  ;;  %2914 = vmatmul.bf16.vlgmr.msrb.gmra.mxu3 %v10128_v14 }
  0x7d   :  { %v7396_v51 = vld [vmem:[#allocation5 + $0xa40] sm:$0xf]  ;;  %v7141_v59 = vor.u32 %v9422_v50, %v7140_v49  ;;  %2898 = vmatpush.bf16.msrb.mxu2 %v7685_v48  ;;  %v9322_v47 = vld [vmem:[#allocation5 + $0x544] sm:$0xf]  ;;  %2958 = vmatpush.bf16.msra.mxu3 %v7337_v33  ;;  %v7305_v48 = vor.u32 %v9458_v38, %v7302_v39 }
  0x7e   :  { %v9486_v53 = vld [vmem:[#allocation5 + $0xa5c] sm:$0xf0]  ;;  %v6758_v49 = vld [vmem:[#allocation5 + $0x560] sm:$0xf0] }
  0x7f   :  { %v7652_v54 = vld [vmem:[#allocation5 + $0xc40] sm:$0xf]  ;;  %v7397_v63 = vor.u32 %v9486_v53, %v7396_v51  ;;  %2873 = vmatpush.bf16.msrb.mxu0 %v7141_v59  ;;  %v9386_v50 = vld [vmem:[#allocation5 + $0x744] sm:$0xf] }
  0x80   :  { %v9550_v55 = vld [vmem:[#allocation5 + $0xc5c] sm:$0xf0]  ;;  %v7014_v51 = vld [vmem:[#allocation5 + $0x760] sm:$0xf0] }
  0x81   :  { %v7108_v58 = vld [vmem:[#allocation5 + $0x800] sm:$0xf]  ;;  %v7653_v0 = vor.u32 %v9550_v55, %v7652_v54  ;;  %2886 = vmatpush.bf16.msrb.mxu1 %v7397_v63  ;;  %v7270_v53 = vld [vmem:[#allocation5 + $0x960] sm:$0xf0]  ;;  %v6505_v54 = vor.u32 %v9258_v45, %v6502_v46  ;;  %v6761_v55 = vor.u32 %v9322_v47, %v6758_v49  ;;  %v7017_v56 = vor.u32 %v9386_v50, %v7014_v51 }
  0x82   :  { %v9414_v60 = vld [vmem:[#allocation5 + $0x81c] sm:$0xf0]  ;;  %v9314_v59 = vld [vmem:[#allocation5 + $0x504] sm:$0xf]  ;;  %2959 = vmatpush.bf16.msra.mxu3 %v7305_v48 }
  0x83   :  { %v7364_v61 = vld [vmem:[#allocation5 + $0xa00] sm:$0xf]  ;;  %v7109_v13 = vor.u32 %v9414_v60, %v7108_v58  ;;  %2899 = vmatpush.bf16.msrb.mxu2 %v7653_v0  ;;  %v6470_v58 = vld [vmem:[#allocation5 + $0x320] sm:$0xf0]  ;;  %v7273_v60 = vor.u32 %v9450_v52, %v7270_v53 }
  0x84   :  { %v9478_v62 = vld [vmem:[#allocation5 + $0xa1c] sm:$0xf0]  ;;  %v6982_v63 = vld [vmem:[#allocation5 + $0x720] sm:$0xf0] }
  0x85   :  { %v7620_v1 = vld [vmem:[#allocation5 + $0xc00] sm:$0xf]  ;;  %v7365_v20 = vor.u32 %v9478_v62, %v7364_v61  ;;  %2874 = vmatpush.bf16.msrb.mxu0 %v7109_v13  ;;  %v6726_v61 = vld [vmem:[#allocation5 + $0x520] sm:$0xf0] }
  0x86   :  { %v9542_v2 = vld [vmem:[#allocation5 + $0xc1c] sm:$0xf0]  ;;  %v9378_v62 = vld [vmem:[#allocation5 + $0x704] sm:$0xf]  ;;  %v6729_v3 = vor.u32 %v9314_v59, %v6726_v61  ;;  %2960 = vmatpush.bf16.msra.mxu3 %v7273_v60 }
  0x87   :  { %v7621_v21 = vor.u32 %v9542_v2, %v7620_v1  ;;  %2887 = vmatpush.bf16.msrb.mxu1 %v7365_v20  ;;  %v9442_v0 = vld [vmem:[#allocation5 + $0x904] sm:$0xf]  ;;  %v6473_v2 = vor.u32 %v9250_v57, %v6470_v58  ;;  %v6985_v4 = vor.u32 %v9378_v62, %v6982_v63  ;;  %v6316_v62 = vld [vmem:[#allocation5 + $0x1c8] sm:$0xf] }
  0x88   :  { %2875 = vmatmul.bf16.vlgmr.msrb.gmra.mxu0 %v10138_v40  ;;  %v7238_v1 = vld [vmem:[#allocation5 + $0x920] sm:$0xf0]  ;;  %v9215_v63 = vld [vmem:[#allocation5 + $0x1e4] sm:$0xf0] }
  0x89   :  { %2900 = vmatpush.bf16.msrb.mxu2 %v7621_v21  ;;  %2919 = vmatpush.bf16.msra.mxu0 %v6569_v27  ;;  %v9306_v9 = vld [vmem:[#allocation5 + $0x4c4] sm:$0xf]  ;;  %v7241_v10 = vor.u32 %v9442_v0, %v7238_v1 }
  0x8a   :  { %2888 = vmatmul.bf16.vlgmr.msrb.gmra.mxu1 %v10140_v41  ;;  %v6694_v11 = vld [vmem:[#allocation5 + $0x4e0] sm:$0xf0] }
  0x8b   :  { %2932 = vmatpush.bf16.msra.mxu1 %v6825_v28  ;;  %v9370_v12 = vld [vmem:[#allocation5 + $0x6c4] sm:$0xf]  ;;  %v6697_v18 = vor.u32 %v9306_v9, %v6694_v11  ;;  %2961 = vmatpush.bf16.msra.mxu3 %v7241_v10  ;;  %v6317_v9 = vor.u32 %v9215_v63, %v6316_v62 }
  0x8c   :  { %2901 = vmatmul.bf16.vlgmr.msrb.gmra.mxu2 %v10136_v34  ;;  %v6950_v13 = vld [vmem:[#allocation5 + $0x6e0] sm:$0xf0] }
  0x8d   :  { %2945 = vmatpush.bf16.msra.mxu2 %v7081_v29  ;;  %2920 = vmatpush.bf16.msra.mxu0 %v6537_v42  ;;  %v9434_v15 = vld [vmem:[#allocation5 + $0x8c4] sm:$0xf]  ;;  %v6953_v20 = vor.u32 %v9370_v12, %v6950_v13 }
  0x8e   :  { %v7206_v16 = vld [vmem:[#allocation5 + $0x8e0] sm:$0xf0] }
  0x8f   :  { %2933 = vmatpush.bf16.msra.mxu1 %v6793_v43  ;;  %v9234_v21 = vld [vmem:[#allocation5 + $0x284] sm:$0xf]  ;;  %v7209_v24 = vor.u32 %v9434_v15, %v7206_v16  ;;  %v6284_v16 = vld [vmem:[#allocation5 + $0x188] sm:$0xf] }
  0x90   :  { %v6406_v22 = vld [vmem:[#allocation5 + $0x2a0] sm:$0xf0] }
  0x91   :  { %2946 = vmatpush.bf16.msra.mxu2 %v7049_v44  ;;  %2921 = vmatpush.bf16.msra.mxu0 %v6505_v54  ;;  %v9298_v23 = vld [vmem:[#allocation5 + $0x484] sm:$0xf]  ;;  %v6409_v30 = vor.u32 %v9234_v21, %v6406_v22 }
  0x92   :  { %v6662_v25 = vld [vmem:[#allocation5 + $0x4a0] sm:$0xf0]  ;;  %2962 = vmatpush.bf16.msra.mxu3 %v7209_v24 }
  0x93   :  { %2934 = vmatpush.bf16.msra.mxu1 %v6761_v55  ;;  %v9362_v26 = vld [vmem:[#allocation5 + $0x684] sm:$0xf]  ;;  %v6665_v31 = vor.u32 %v9298_v23, %v6662_v25 }
  0x94   :  { %v6918_v27 = vld [vmem:[#allocation5 + $0x6a0] sm:$0xf0] }
  0x95   :  { %2947 = vmatpush.bf16.msra.mxu2 %v7017_v56  ;;  %2922 = vmatpush.bf16.msra.mxu0 %v6473_v2  ;;  %v9426_v28 = vld [vmem:[#allocation5 + $0x884] sm:$0xf]  ;;  %v6921_v32 = vor.u32 %v9362_v26, %v6918_v27  ;;  %v6572_v2 = vld [vmem:[#allocation5 + $0x3c8] sm:$0xf] }
  0x96   :  { %v7174_v29 = vld [vmem:[#allocation5 + $0x8a0] sm:$0xf0] }
  0x97   :  { %2935 = vmatpush.bf16.msra.mxu1 %v6729_v3  ;;  %v9226_v33 = vld [vmem:[#allocation5 + $0x244] sm:$0xf]  ;;  %v7177_v37 = vor.u32 %v9426_v28, %v7174_v29  ;;  %v9279_v3 = vld [vmem:[#allocation5 + $0x3e4] sm:$0xf0] }
  0x98   :  { %v6374_v35 = vld [vmem:[#allocation5 + $0x260] sm:$0xf0]  ;;  %v6573_v13 = vor.u32 %v9279_v3, %v6572_v2  ;;  %v6252_v29 = vld [vmem:[#allocation5 + $0x148] sm:$0xf] }
  0x99   :  { %2948 = vmatpush.bf16.msra.mxu2 %v6985_v4  ;;  %2923 = vmatpush.bf16.msra.mxu0 %v6441_v17  ;;  %v9290_v36 = vld [vmem:[#allocation5 + $0x444] sm:$0xf]  ;;  %v6377_v45 = vor.u32 %v9226_v33, %v6374_v35  ;;  %v9207_v17 = vld [vmem:[#allocation5 + $0x1a4] sm:$0xf0] }
  0x9a   :  { %v6630_v38 = vld [vmem:[#allocation5 + $0x460] sm:$0xf0]  ;;  %2963 = vmatpush.bf16.msra.mxu3 %v7177_v37  ;;  %v6285_v23 = vor.u32 %v9207_v17, %v6284_v16 }
  0x9b   :  { %2936 = vmatpush.bf16.msra.mxu1 %v6697_v18  ;;  %v9354_v39 = vld [vmem:[#allocation5 + $0x644] sm:$0xf]  ;;  %v6633_v48 = vor.u32 %v9290_v36, %v6630_v38  ;;  %v6540_v18 = vld [vmem:[#allocation5 + $0x388] sm:$0xf] }
  0x9c   :  { %v6886_v42 = vld [vmem:[#allocation5 + $0x660] sm:$0xf0] }
  0x9d   :  { %2949 = vmatpush.bf16.msra.mxu2 %v6953_v20  ;;  %v9418_v43 = vld [vmem:[#allocation5 + $0x844] sm:$0xf]  ;;  %2924 = vmatpush.bf16.msra.mxu0 %v6409_v30  ;;  %v6889_v49 = vor.u32 %v9354_v39, %v6886_v42  ;;  %v9271_v20 = vld [vmem:[#allocation5 + $0x3a4] sm:$0xf0] }
  0x9e   :  { %v7142_v44 = vld [vmem:[#allocation5 + $0x860] sm:$0xf0]  ;;  %v6541_v27 = vor.u32 %v9271_v20, %v6540_v18  ;;  %v9199_v30 = vld [vmem:[#allocation5 + $0x164] sm:$0xf0] }
  0x9f   :  { %v9218_v46 = vld [vmem:[#allocation5 + $0x204] sm:$0xf]  ;;  %2937 = vmatpush.bf16.msra.mxu1 %v6665_v31  ;;  %v7145_v53 = vor.u32 %v9418_v43, %v7142_v44  ;;  %v6508_v31 = vld [vmem:[#allocation5 + $0x348] sm:$0xf]  ;;  %v6253_v36 = vor.u32 %v9199_v30, %v6252_v29 }
  0xa0   :  { %v6342_v47 = vld [vmem:[#allocation5 + $0x220] sm:$0xf0]  ;;  %v6220_v44 = vld [vmem:[#allocation5 + $0x108] sm:$0xf] }
  0xa1   :  { %2950 = vmatpush.bf16.msra.mxu2 %v6921_v32  ;;  %v9282_v50 = vld [vmem:[#allocation5 + $0x404] sm:$0xf]  ;;  %2925 = vmatpush.bf16.msra.mxu0 %v6377_v45  ;;  %v6345_v60 = vor.u32 %v9218_v46, %v6342_v47  ;;  %v9263_v32 = vld [vmem:[#allocation5 + $0x364] sm:$0xf0] }
  0xa2   :  { %v6598_v51 = vld [vmem:[#allocation5 + $0x420] sm:$0xf0]  ;;  %2964 = vmatpush.bf16.msra.mxu3 %v7145_v53  ;;  %v6509_v42 = vor.u32 %v9263_v32, %v6508_v31  ;;  %v9191_v45 = vld [vmem:[#allocation5 + $0x124] sm:$0xf0] }
  0xa3   :  { %v9346_v52 = vld [vmem:[#allocation5 + $0x604] sm:$0xf]  ;;  %2938 = vmatpush.bf16.msra.mxu1 %v6633_v48  ;;  %v6601_v0 = vor.u32 %v9282_v50, %v6598_v51  ;;  %v6476_v46 = vld [vmem:[#allocation5 + $0x308] sm:$0xf]  ;;  %v6221_v50 = vor.u32 %v9191_v45, %v6220_v44 }
  0xa4   :  { %v6854_v54 = vld [vmem:[#allocation5 + $0x620] sm:$0xf0]  ;;  %v9255_v47 = vld [vmem:[#allocation5 + $0x324] sm:$0xf0] }
  0xa5   :  { %v9410_v55 = vld [vmem:[#allocation5 + $0x804] sm:$0xf]  ;;  %2951 = vmatpush.bf16.msra.mxu2 %v6889_v49  ;;  %v6857_v1 = vor.u32 %v9346_v52, %v6854_v54  ;;  %2926 = vmatpush.bf16.msra.mxu0 %v6345_v60  ;;  %v6477_v54 = vor.u32 %v9255_v47, %v6476_v46  ;;  %v6124_v20 = vld [vmem:[#allocation5 + $0x48] sm:$0xf] }
  0xa6   :  { %v7110_v56 = vld [vmem:[#allocation5 + $0x820] sm:$0xf0]  ;;  %v6092_v31 = vld [vmem:[#allocation5 + $0x8] sm:$0xf] }
  0xa7   :  { %v9530_v57 = vld [vmem:[#allocation5 + $0xbc4] sm:$0xf]  ;;  %v7113_v4 = vor.u32 %v9410_v55, %v7110_v56  ;;  %2939 = vmatpush.bf16.msra.mxu1 %v6601_v0  ;;  %v6188_v56 = vld [vmem:[#allocation5 + $0xc8] sm:$0xf] }
  0xa8   :  { %v7590_v58 = vld [vmem:[#allocation5 + $0xbe0] sm:$0xf0]  ;;  %2927 = vmatmul.bf16.vlgmr.msra.gmra.mxu0 %v10131_v19  ;;  %v7340_v44 = vld [vmem:[#allocation5 + $0x9c8] sm:$0xf] }
  0xa9   :  { %v9594_v59 = vld [vmem:[#allocation5 + $0xdc4] sm:$0xf]  ;;  %v7593_v5 = vor.u32 %v9530_v57, %v7590_v58  ;;  %2952 = vmatpush.bf16.msra.mxu2 %v6857_v1  ;;  %2965 = vmatpush.bf16.msra.mxu3 %v7113_v4  ;;  %v9183_v57 = vld [vmem:[#allocation5 + $0xe4] sm:$0xf0] }
  0xaa   :  { %v7846_v61 = vld [vmem:[#allocation5 + $0xde0] sm:$0xf0]  ;;  %2940 = vmatmul.bf16.vlgmr.msra.gmra.mxu1 %v10124_v7  ;;  %v6444_v58 = vld [vmem:[#allocation5 + $0x2c8] sm:$0xf]  ;;  %v6189_v62 = vor.u32 %v9183_v57, %v6188_v56 }
  0xab   :  { %v7849_v6 = vor.u32 %v9594_v59, %v7846_v61  ;;  %v9522_v10 = vld [vmem:[#allocation5 + $0xb84] sm:$0xf]  ;;  %2971 = vmatpush.bf16.msrb.mxu0 %v7593_v5  ;;  %v9247_v59 = vld [vmem:[#allocation5 + $0x2e4] sm:$0xf0] }
  0xac   :  { %v7558_v11 = vld [vmem:[#allocation5 + $0xba0] sm:$0xf0]  ;;  %2953 = vmatmul.bf16.vlgmr.msra.gmra.mxu2 %v10126_v8  ;;  %2966 = vmatmul.bf16.vlgmr.msra.gmra.mxu3 %v10138_v40  ;;  %v6445_v2 = vor.u32 %v9247_v59, %v6444_v58  ;;  %v6156_v4 = vld [vmem:[#allocation5 + $0x88] sm:$0xf] }
  0xad   :  { %v9586_v12 = vld [vmem:[#allocation5 + $0xd84] sm:$0xf]  ;;  %v7561_v21 = vor.u32 %v9522_v10, %v7558_v11  ;;  %2984 = vmatpush.bf16.msrb.mxu1 %v7849_v6  ;;  %2997 = vmatpush.bf16.msrb.mxu2 %v6317_v9  ;;  %v9175_v5 = vld [vmem:[#allocation5 + $0xa4] sm:$0xf0] }
  0xae   :  { %v7814_v15 = vld [vmem:[#allocation5 + $0xda0] sm:$0xf0]  ;;  %3010 = vmatpush.bf16.msrb.mxu3 %v6573_v13  ;;  %v6412_v6 = vld [vmem:[#allocation5 + $0x288] sm:$0xf] }
  0xaf   :  { %v7817_v22 = vor.u32 %v9586_v12, %v7814_v15  ;;  %v9514_v24 = vld [vmem:[#allocation5 + $0xb44] sm:$0xf]  ;;  %2972 = vmatpush.bf16.msrb.mxu0 %v7561_v21  ;;  %v9239_v9 = vld [vmem:[#allocation5 + $0x2a4] sm:$0xf0]  ;;  %v6157_v12 = vor.u32 %v9175_v5, %v6156_v4 }
  0xb0   :  { %v7526_v25 = vld [vmem:[#allocation5 + $0xb60] sm:$0xf0]  ;;  %v6413_v17 = vor.u32 %v9239_v9, %v6412_v6  ;;  %v9167_v21 = vld [vmem:[#allocation5 + $0x64] sm:$0xf0] }
  0xb1   :  { %v9578_v26 = vld [vmem:[#allocation5 + $0xd44] sm:$0xf]  ;;  %v7529_v33 = vor.u32 %v9514_v24, %v7526_v25  ;;  %2985 = vmatpush.bf16.msrb.mxu1 %v7817_v22  ;;  %2998 = vmatpush.bf16.msrb.mxu2 %v6285_v23  ;;  %v6380_v22 = vld [vmem:[#allocation5 + $0x248] sm:$0xf] }
  0xb2   :  { %v7782_v28 = vld [vmem:[#allocation5 + $0xd60] sm:$0xf0]  ;;  %3011 = vmatpush.bf16.msrb.mxu3 %v6541_v27  ;;  %v9231_v23 = vld [vmem:[#allocation5 + $0x264] sm:$0xf0] }
  0xb3   :  { %v7785_v35 = vor.u32 %v9578_v26, %v7782_v28  ;;  %v9506_v37 = vld [vmem:[#allocation5 + $0xb04] sm:$0xf]  ;;  %2973 = vmatpush.bf16.msrb.mxu0 %v7529_v33  ;;  %v6125_v28 = vor.u32 %v9167_v21, %v6124_v20  ;;  %v6381_v32 = vor.u32 %v9231_v23, %v6380_v22  ;;  %v9159_v33 = vld [vmem:[#allocation5 + $0x24] sm:$0xf0] }
  0xb4   :  { %v7494_v38 = vld [vmem:[#allocation5 + $0xb20] sm:$0xf0]  ;;  %v9471_v45 = vld [vmem:[#allocation5 + $0x9e4] sm:$0xf0]  ;;  %v6093_v47 = vor.u32 %v9159_v33, %v6092_v31 }
  0xb5   :  { %v9570_v39 = vld [vmem:[#allocation5 + $0xd04] sm:$0xf]  ;;  %v7497_v48 = vor.u32 %v9506_v37, %v7494_v38  ;;  %2986 = vmatpush.bf16.msrb.mxu1 %v7785_v35  ;;  %2999 = vmatpush.bf16.msrb.mxu2 %v6253_v36  ;;  %v6348_v35 = vld [vmem:[#allocation5 + $0x208] sm:$0xf] }
  0xb6   :  { %v7750_v43 = vld [vmem:[#allocation5 + $0xd20] sm:$0xf0]  ;;  %3012 = vmatpush.bf16.msrb.mxu3 %v6509_v42  ;;  %v9223_v36 = vld [vmem:[#allocation5 + $0x224] sm:$0xf0] }
  0xb7   :  { %v7753_v49 = vor.u32 %v9570_v39, %v7750_v43  ;;  %v9498_v51 = vld [vmem:[#allocation5 + $0xac4] sm:$0xf]  ;;  %2974 = vmatpush.bf16.msrb.mxu0 %v7497_v48  ;;  %v6828_v37 = vld [vmem:[#allocation5 + $0x5c8] sm:$0xf] }
  0xb8   :  { %v7462_v52 = vld [vmem:[#allocation5 + $0xae0] sm:$0xf0]  ;;  %v9343_v38 = vld [vmem:[#allocation5 + $0x5e4] sm:$0xf0] }
  0xb9   :  { %v9562_v53 = vld [vmem:[#allocation5 + $0xcc4] sm:$0xf]  ;;  %v7465_v60 = vor.u32 %v9498_v51, %v7462_v52  ;;  %2987 = vmatpush.bf16.msrb.mxu1 %v7753_v49  ;;  %3000 = vmatpush.bf16.msrb.mxu2 %v6221_v50  ;;  %v7084_v39 = vld [vmem:[#allocation5 + $0x7c8] sm:$0xf]  ;;  %v6349_v50 = vor.u32 %v9223_v36, %v6348_v35  ;;  %v6829_v51 = vor.u32 %v9343_v38, %v6828_v37 }
  0xba   :  { %v7718_v55 = vld [vmem:[#allocation5 + $0xce0] sm:$0xf0]  ;;  %3013 = vmatpush.bf16.msrb.mxu3 %v6477_v54  ;;  %v9407_v43 = vld [vmem:[#allocation5 + $0x7e4] sm:$0xf0] }
  0xbb   :  { %v7721_v61 = vor.u32 %v9562_v53, %v7718_v55  ;;  %v9490_v63 = vld [vmem:[#allocation5 + $0xa84] sm:$0xf]  ;;  %2975 = vmatpush.bf16.msrb.mxu0 %v7465_v60  ;;  %v7596_v48 = vld [vmem:[#allocation5 + $0xbc8] sm:$0xf]  ;;  %v7085_v52 = vor.u32 %v9407_v43, %v7084_v39  ;;  %v7341_v53 = vor.u32 %v9471_v45, %v7340_v44 }
  0xbc   :  { %v7430_v0 = vld [vmem:[#allocation5 + $0xaa0] sm:$0xf0]  ;;  %v9535_v49 = vld [vmem:[#allocation5 + $0xbe4] sm:$0xf0] }
  0xbd   :  { %v9554_v1 = vld [vmem:[#allocation5 + $0xc84] sm:$0xf]  ;;  %v7433_v10 = vor.u32 %v9490_v63, %v7430_v0  ;;  %2988 = vmatpush.bf16.msrb.mxu1 %v7721_v61  ;;  %3001 = vmatpush.bf16.msrb.mxu2 %v6189_v62  ;;  %v6796_v54 = vld [vmem:[#allocation5 + $0x588] sm:$0xf]  ;;  %v7597_v57 = vor.u32 %v9535_v49, %v7596_v48 }
  0xbe   :  { %v7686_v3 = vld [vmem:[#allocation5 + $0xca0] sm:$0xf0]  ;;  %3014 = vmatpush.bf16.msrb.mxu3 %v6445_v2  ;;  %v9335_v55 = vld [vmem:[#allocation5 + $0x5a4] sm:$0xf0] }
  0xbf   :  { %v7689_v11 = vor.u32 %v9554_v1, %v7686_v3  ;;  %v9482_v13 = vld [vmem:[#allocation5 + $0xa44] sm:$0xf]  ;;  %2976 = vmatpush.bf16.msrb.mxu0 %v7433_v10  ;;  %v7052_v56 = vld [vmem:[#allocation5 + $0x788] sm:$0xf]  ;;  %v6797_v63 = vor.u32 %v9335_v55, %v6796_v54 }
  0xc0   :  { %v7398_v15 = vld [vmem:[#allocation5 + $0xa60] sm:$0xf0]  ;;  %v9399_v58 = vld [vmem:[#allocation5 + $0x7a4] sm:$0xf0] }
  0xc1   :  { %v9546_v16 = vld [vmem:[#allocation5 + $0xc44] sm:$0xf]  ;;  %v7401_v24 = vor.u32 %v9482_v13, %v7398_v15  ;;  %2989 = vmatpush.bf16.msrb.mxu1 %v7689_v11  ;;  %3002 = vmatpush.bf16.msrb.mxu2 %v6157_v12  ;;  %v7308_v59 = vld [vmem:[#allocation5 + $0x988] sm:$0xf]  ;;  %v7053_v0 = vor.u32 %v9399_v58, %v7052_v56 }
  0xc2   :  { %v7654_v18 = vld [vmem:[#allocation5 + $0xc60] sm:$0xf0]  ;;  %3015 = vmatpush.bf16.msrb.mxu3 %v6413_v17  ;;  %v9463_v60 = vld [vmem:[#allocation5 + $0x9a4] sm:$0xf0] }
  0xc3   :  { %v9474_v25 = vld [vmem:[#allocation5 + $0xa04] sm:$0xf]  ;;  %v7657_v27 = vor.u32 %v9546_v16, %v7654_v18  ;;  %2977 = vmatpush.bf16.msrb.mxu0 %v7401_v24  ;;  %v7564_v61 = vld [vmem:[#allocation5 + $0xb88] sm:$0xf]  ;;  %v7309_v1 = vor.u32 %v9463_v60, %v7308_v59 }
  0xc4   :  { %v7366_v26 = vld [vmem:[#allocation5 + $0xa20] sm:$0xf0]  ;;  %v9527_v62 = vld [vmem:[#allocation5 + $0xba4] sm:$0xf0] }
  0xc5   :  { %v9538_v29 = vld [vmem:[#allocation5 + $0xc04] sm:$0xf]  ;;  %v7369_v42 = vor.u32 %v9474_v25, %v7366_v26  ;;  %2990 = vmatpush.bf16.msrb.mxu1 %v7657_v27  ;;  %3003 = vmatpush.bf16.msrb.mxu2 %v6125_v28  ;;  %v6764_v2 = vld [vmem:[#allocation5 + $0x548] sm:$0xf]  ;;  %v7565_v5 = vor.u32 %v9527_v62, %v7564_v61 }
  0xc6   :  { %v7622_v30 = vld [vmem:[#allocation5 + $0xc20] sm:$0xf0]  ;;  %3016 = vmatpush.bf16.msrb.mxu3 %v6381_v32  ;;  %v9327_v3 = vld [vmem:[#allocation5 + $0x564] sm:$0xf0] }
  0xc7   :  { %v7625_v46 = vor.u32 %v9538_v29, %v7622_v30  ;;  %2978 = vmatpush.bf16.msrb.mxu0 %v7369_v42  ;;  %v7020_v4 = vld [vmem:[#allocation5 + $0x748] sm:$0xf]  ;;  %v6765_v13 = vor.u32 %v9327_v3, %v6764_v2 }
  0xc8   :  { %v9391_v6 = vld [vmem:[#allocation5 + $0x764] sm:$0xf0] }
  0xc9   :  { %2991 = vmatpush.bf16.msrb.mxu1 %v7625_v46  ;;  %3004 = vmatpush.bf16.msrb.mxu2 %v6093_v47  ;;  %v7276_v9 = vld [vmem:[#allocation5 + $0x948] sm:$0xf]  ;;  %v7021_v15 = vor.u32 %v9391_v6, %v7020_v4 }
  0xca   :  { %3017 = vmatpush.bf16.msrb.mxu3 %v6349_v50  ;;  %2979 = vmatmul.bf16.vlgmr.msrb.gmra.mxu0 %v10140_v41  ;;  %v9455_v10 = vld [vmem:[#allocation5 + $0x964] sm:$0xf0] }
  0xcb   :  { %3023 = vmatpush.bf16.msra.mxu0 %v6829_v51  ;;  %v7532_v11 = vld [vmem:[#allocation5 + $0xb48] sm:$0xf]  ;;  %v7277_v16 = vor.u32 %v9455_v10, %v7276_v9 }
  0xcc   :  { %2992 = vmatmul.bf16.vlgmr.msrb.gmra.mxu1 %v10136_v34  ;;  %v9519_v12 = vld [vmem:[#allocation5 + $0xb64] sm:$0xf0]  ;;  %3005 = vmatmul.bf16.vlgmr.msrb.gmra.mxu2 %v10128_v14 }
  0xcd   :  { %3036 = vmatpush.bf16.msra.mxu1 %v7085_v52  ;;  %3049 = vmatpush.bf16.msra.mxu2 %v7341_v53  ;;  %v6732_v17 = vld [vmem:[#allocation5 + $0x508] sm:$0xf]  ;;  %v7533_v21 = vor.u32 %v9519_v12, %v7532_v11 }
  0xce   :  { %3062 = vmatpush.bf16.msra.mxu3 %v7597_v57  ;;  %v9319_v18 = vld [vmem:[#allocation5 + $0x524] sm:$0xf0] }
  0xcf   :  { %3024 = vmatpush.bf16.msra.mxu0 %v6797_v63  ;;  %3018 = vmatmul.bf16.vlgmr.msrb.gmra.mxu3 %v10131_v19  ;;  %v6988_v20 = vld [vmem:[#allocation5 + $0x708] sm:$0xf]  ;;  %v6733_v27 = vor.u32 %v9319_v18, %v6732_v17 }
  0xd0   :  { %v9383_v22 = vld [vmem:[#allocation5 + $0x724] sm:$0xf0] }
  0xd1   :  { %3037 = vmatpush.bf16.msra.mxu1 %v7053_v0  ;;  %3050 = vmatpush.bf16.msra.mxu2 %v7309_v1  ;;  %v7244_v23 = vld [vmem:[#allocation5 + $0x908] sm:$0xf]  ;;  %v6989_v28 = vor.u32 %v9383_v22, %v6988_v20  ;;  %v9211_v20 = vld [vmem:[#allocation5 + $0x1cc] sm:$0xf] }
  0xd2   :  { %3063 = vmatpush.bf16.msra.mxu3 %v7565_v5  ;;  %v9447_v24 = vld [vmem:[#allocation5 + $0x924] sm:$0xf0]  ;;  %v6318_v22 = vld [vmem:[#allocation5 + $0x1e8] sm:$0xf0] }
  0xd3   :  { %v7500_v25 = vld [vmem:[#allocation5 + $0xb08] sm:$0xf]  ;;  %3025 = vmatpush.bf16.msra.mxu0 %v6765_v13  ;;  %v7245_v29 = vor.u32 %v9447_v24, %v7244_v23  ;;  %v9275_v23 = vld [vmem:[#allocation5 + $0x3cc] sm:$0xf] }
  0xd4   :  { %v9511_v26 = vld [vmem:[#allocation5 + $0xb24] sm:$0xf0]  ;;  %v6574_v24 = vld [vmem:[#allocation5 + $0x3e8] sm:$0xf0] }
  0xd5   :  { %3038 = vmatpush.bf16.msra.mxu1 %v7021_v15  ;;  %3051 = vmatpush.bf16.msra.mxu2 %v7277_v16  ;;  %v6700_v30 = vld [vmem:[#allocation5 + $0x4c8] sm:$0xf]  ;;  %v7501_v33 = vor.u32 %v9511_v26, %v7500_v25 }
  0xd6   :  { %v9311_v31 = vld [vmem:[#allocation5 + $0x4e4] sm:$0xf0]  ;;  %3064 = vmatpush.bf16.msra.mxu3 %v7533_v21 }
  0xd7   :  { %v6956_v32 = vld [vmem:[#allocation5 + $0x6c8] sm:$0xf]  ;;  %3026 = vmatpush.bf16.msra.mxu0 %v6733_v27  ;;  %v6701_v42 = vor.u32 %v9311_v31, %v6700_v30  ;;  %v9339_v27 = vld [vmem:[#allocation5 + $0x5cc] sm:$0xf]  ;;  %v6321_v31 = vor.u32 %v9211_v20, %v6318_v22  ;;  %v2824_v22 = vpop.f32.mrf.mxu0 }
  0xd8   :  { %v9375_v35 = vld [vmem:[#allocation5 + $0x6e4] sm:$0xf0]  ;;  %v6702_v20 = vld [vmem:[#allocation5 + $0x4e8] sm:$0xf0] }
  0xd9   :  { %v7212_v36 = vld [vmem:[#allocation5 + $0x8c8] sm:$0xf]  ;;  %3039 = vmatpush.bf16.msra.mxu1 %v6989_v28  ;;  %3052 = vmatpush.bf16.msra.mxu2 %v7245_v29  ;;  %v6957_v43 = vor.u32 %v9375_v35, %v6956_v32  ;;  %v6830_v28 = vld [vmem:[#allocation5 + $0x5e8] sm:$0xf0]  ;;  %v6577_v32 = vor.u32 %v9275_v23, %v6574_v24 }
  0xda   :  { %v9439_v37 = vld [vmem:[#allocation5 + $0x8e4] sm:$0xf0]  ;;  %3065 = vmatpush.bf16.msra.mxu3 %v7501_v33 }
  0xdb   :  { %v7468_v38 = vld [vmem:[#allocation5 + $0xac8] sm:$0xf]  ;;  %v7213_v44 = vor.u32 %v9439_v37, %v7212_v36  ;;  %3027 = vmatpush.bf16.msra.mxu0 %v6701_v42  ;;  %v9203_v36 = vld [vmem:[#allocation5 + $0x18c] sm:$0xf]  ;;  %v6833_v37 = vor.u32 %v9339_v27, %v6830_v28  ;;  %v2837_v28 = vpop.f32.mrf.mxu1 }
  0xdc   :  { %v9503_v39 = vld [vmem:[#allocation5 + $0xae4] sm:$0xf0]  ;;  %v6542_v42 = vld [vmem:[#allocation5 + $0x3a8] sm:$0xf0] }
  0xdd   :  { %v6668_v45 = vld [vmem:[#allocation5 + $0x488] sm:$0xf]  ;;  %v7469_v48 = vor.u32 %v9503_v39, %v7468_v38  ;;  %3040 = vmatpush.bf16.msra.mxu1 %v6957_v43  ;;  %3053 = vmatpush.bf16.msra.mxu2 %v7213_v44  ;;  %v6286_v38 = vld [vmem:[#allocation5 + $0x1a8] sm:$0xf0] }
  0xde   :  { %v9303_v46 = vld [vmem:[#allocation5 + $0x4a4] sm:$0xf0]  ;;  %v9267_v39 = vld [vmem:[#allocation5 + $0x38c] sm:$0xf] }
  0xdf   :  { %v6924_v47 = vld [vmem:[#allocation5 + $0x688] sm:$0xf]  ;;  %v6669_v54 = vor.u32 %v9303_v46, %v6668_v45  ;;  %3066 = vmatpush.bf16.msra.mxu3 %v7469_v48  ;;  %v9331_v43 = vld [vmem:[#allocation5 + $0x58c] sm:$0xf]  ;;  %v6289_v46 = vor.u32 %v9203_v36, %v6286_v38 }
  0xe0   :  { %v9367_v49 = vld [vmem:[#allocation5 + $0x6a4] sm:$0xf0]  ;;  %v6798_v44 = vld [vmem:[#allocation5 + $0x5a8] sm:$0xf0] }
  0xe1   :  { %v7180_v50 = vld [vmem:[#allocation5 + $0x888] sm:$0xf]  ;;  %v6925_v55 = vor.u32 %v9367_v49, %v6924_v47  ;;  %3028 = vmatpush.bf16.msra.mxu0 %v6669_v54  ;;  %v6545_v47 = vor.u32 %v9267_v39, %v6542_v42  ;;  %v6510_v54 = vld [vmem:[#allocation5 + $0x368] sm:$0xf0] }
  0xe2   :  { %v9431_v51 = vld [vmem:[#allocation5 + $0x8a4] sm:$0xf0]  ;;  %v9171_v27 = vld [vmem:[#allocation5 + $0x8c] sm:$0xf] }
  0xe3   :  { %v7436_v52 = vld [vmem:[#allocation5 + $0xa88] sm:$0xf]  ;;  %v7181_v56 = vor.u32 %v9431_v51, %v7180_v50  ;;  %3041 = vmatpush.bf16.msra.mxu1 %v6925_v55  ;;  %v9195_v50 = vld [vmem:[#allocation5 + $0x14c] sm:$0xf]  ;;  %v6801_v51 = vor.u32 %v9331_v43, %v6798_v44 }
  0xe4   :  { %v9495_v53 = vld [vmem:[#allocation5 + $0xaa4] sm:$0xf0]  ;;  %v9323_v55 = vld [vmem:[#allocation5 + $0x54c] sm:$0xf] }
  0xe5   :  { %v6636_v57 = vld [vmem:[#allocation5 + $0x448] sm:$0xf]  ;;  %v7437_v60 = vor.u32 %v9495_v53, %v7436_v52  ;;  %3054 = vmatpush.bf16.msra.mxu2 %v7181_v56  ;;  %v6254_v52 = vld [vmem:[#allocation5 + $0x168] sm:$0xf0] }
  0xe6   :  { %v9295_v58 = vld [vmem:[#allocation5 + $0x464] sm:$0xf0]  ;;  %v9259_v53 = vld [vmem:[#allocation5 + $0x34c] sm:$0xf] }
  0xe7   :  { %v6892_v59 = vld [vmem:[#allocation5 + $0x648] sm:$0xf]  ;;  %v6637_v2 = vor.u32 %v9295_v58, %v6636_v57  ;;  %3067 = vmatpush.bf16.msra.mxu3 %v7437_v60  ;;  %v6766_v56 = vld [vmem:[#allocation5 + $0x568] sm:$0xf0]  ;;  %v6257_v58 = vor.u32 %v9195_v50, %v6254_v52 }
  0xe8   :  { %v9359_v61 = vld [vmem:[#allocation5 + $0x664] sm:$0xf0]  ;;  %v6670_v36 = vld [vmem:[#allocation5 + $0x4a8] sm:$0xf0] }
  0xe9   :  { %v7148_v62 = vld [vmem:[#allocation5 + $0x848] sm:$0xf]  ;;  %v6893_v5 = vor.u32 %v9359_v61, %v6892_v59  ;;  %3029 = vmatpush.bf16.msra.mxu0 %v6637_v2  ;;  %v6513_v59 = vor.u32 %v9259_v53, %v6510_v54  ;;  %v6478_v2 = vld [vmem:[#allocation5 + $0x328] sm:$0xf0] }
  0xea   :  { %v9423_v63 = vld [vmem:[#allocation5 + $0x864] sm:$0xf0]  ;;  %v9163_v44 = vld [vmem:[#allocation5 + $0x4c] sm:$0xf] }
  0xeb   :  { %v7404_v0 = vld [vmem:[#allocation5 + $0xa48] sm:$0xf]  ;;  %v7149_v6 = vor.u32 %v9423_v63, %v7148_v62  ;;  %3042 = vmatpush.bf16.msra.mxu1 %v6893_v5  ;;  %v9187_v62 = vld [vmem:[#allocation5 + $0x10c] sm:$0xf]  ;;  %v6769_v63 = vor.u32 %v9323_v55, %v6766_v56 }
  0xec   :  { %v9487_v1 = vld [vmem:[#allocation5 + $0xa64] sm:$0xf0]  ;;  %v9291_v52 = vld [vmem:[#allocation5 + $0x44c] sm:$0xf] }
  0xed   :  { %v6604_v3 = vld [vmem:[#allocation5 + $0x408] sm:$0xf]  ;;  %v7405_v12 = vor.u32 %v9487_v1, %v7404_v0  ;;  %3055 = vmatpush.bf16.msra.mxu2 %v7149_v6  ;;  %v6222_v0 = vld [vmem:[#allocation5 + $0x128] sm:$0xf0] }
  0xee   :  { %v9287_v4 = vld [vmem:[#allocation5 + $0x424] sm:$0xf0]  ;;  %v9251_v1 = vld [vmem:[#allocation5 + $0x30c] sm:$0xf]  ;;  %v6225_v6 = vor.u32 %v9187_v62, %v6222_v0  ;;  %v2839_v0 = vpop.f32.mrf.mxu1 }
  0xef   :  { %v6860_v9 = vld [vmem:[#allocation5 + $0x608] sm:$0xf]  ;;  %v6605_v21 = vor.u32 %v9287_v4, %v6604_v3  ;;  %3068 = vmatpush.bf16.msra.mxu3 %v7405_v12  ;;  %v9315_v3 = vld [vmem:[#allocation5 + $0x50c] sm:$0xf] }
  0xf0   :  { %v9351_v10 = vld [vmem:[#allocation5 + $0x624] sm:$0xf0]  ;;  %v6734_v4 = vld [vmem:[#allocation5 + $0x528] sm:$0xf0] }
  0xf1   :  { %v7116_v11 = vld [vmem:[#allocation5 + $0x808] sm:$0xf]  ;;  %v6861_v25 = vor.u32 %v9351_v10, %v6860_v9  ;;  %3030 = vmatpush.bf16.msra.mxu0 %v6605_v21  ;;  %v6481_v9 = vor.u32 %v9251_v1, %v6478_v2  ;;  %v9179_v12 = vld [vmem:[#allocation5 + $0xcc] sm:$0xf] }
  0xf2   :  { %v9415_v13 = vld [vmem:[#allocation5 + $0x824] sm:$0xf0]  ;;  %v6638_v53 = vld [vmem:[#allocation5 + $0x468] sm:$0xf0] }
  0xf3   :  { %v7372_v15 = vld [vmem:[#allocation5 + $0xa08] sm:$0xf]  ;;  %v7117_v26 = vor.u32 %v9415_v13, %v7116_v11  ;;  %3043 = vmatpush.bf16.msra.mxu1 %v6861_v25  ;;  %v6737_v13 = vor.u32 %v9315_v3, %v6734_v4  ;;  %v6094_v62 = vld [vmem:[#allocation5 + $0x28] sm:$0xf0]  ;;  %v6641_v1 = vor.u32 %v9291_v52, %v6638_v53 }
  0xf4   :  { %v9479_v16 = vld [vmem:[#allocation5 + $0xa24] sm:$0xf0]  ;;  %3031 = vmatmul.bf16.vlgmr.msra.gmra.mxu0 %v10124_v7  ;;  %v6350_v2 = vld [vmem:[#allocation5 + $0x228] sm:$0xf0] }
  0xf5   :  { %v7852_v17 = vld [vmem:[#allocation5 + $0xdc8] sm:$0xf]  ;;  %v7373_v29 = vor.u32 %v9479_v16, %v7372_v15  ;;  %3056 = vmatpush.bf16.msra.mxu2 %v7117_v26  ;;  %v6190_v15 = vld [vmem:[#allocation5 + $0xe8] sm:$0xf0] }
  0xf6   :  { %v9599_v18 = vld [vmem:[#allocation5 + $0xde4] sm:$0xf0]  ;;  %3044 = vmatmul.bf16.vlgmr.msra.gmra.mxu1 %v10126_v8  ;;  %v9243_v16 = vld [vmem:[#allocation5 + $0x2cc] sm:$0xf]  ;;  %v6193_v23 = vor.u32 %v9179_v12, %v6190_v15 }
  0xf7   :  { %v7853_v30 = vor.u32 %v9599_v18, %v7852_v17  ;;  %v7820_v33 = vld [vmem:[#allocation5 + $0xd88] sm:$0xf]  ;;  %3069 = vmatpush.bf16.msra.mxu3 %v7373_v29  ;;  %3088 = vmatpush.bf16.msrb.mxu1 %v6321_v31  ;;  %v6446_v17 = vld [vmem:[#allocation5 + $0x2e8] sm:$0xf0] }
  0xf8   :  { %v9591_v35 = vld [vmem:[#allocation5 + $0xda4] sm:$0xf0]  ;;  %3057 = vmatmul.bf16.vlgmr.msra.gmra.mxu2 %v10138_v40  ;;  %v9307_v18 = vld [vmem:[#allocation5 + $0x4cc] sm:$0xf]  ;;  %v6449_v24 = vor.u32 %v9243_v16, %v6446_v17 }
  0xf9   :  { %3075 = vmatpush.bf16.msrb.mxu0 %v7853_v30  ;;  %v7821_v45 = vor.u32 %v9591_v35, %v7820_v33  ;;  %3101 = vmatpush.bf16.msrb.mxu2 %v6577_v32  ;;  %v7788_v48 = vld [vmem:[#allocation5 + $0xd48] sm:$0xf]  ;;  %v6705_v29 = vor.u32 %v9307_v18, %v6702_v20  ;;  %v6158_v30 = vld [vmem:[#allocation5 + $0xa8] sm:$0xf0]  ;;  %v2838_v33 = vadd.f32 %v2837_v28, %v2824_v22 }
  0xfa   :  { %v9583_v49 = vld [vmem:[#allocation5 + $0xd64] sm:$0xf0]  ;;  %3070 = vmatmul.bf16.vlgmr.msra.gmra.mxu3 %v10140_v41  ;;  %v9235_v31 = vld [vmem:[#allocation5 + $0x28c] sm:$0xf]  ;;  %v6161_v38 = vor.u32 %v9171_v27, %v6158_v30 }
  0xfb   :  { %3114 = vmatpush.bf16.msrb.mxu3 %v6833_v37  ;;  %v7789_v57 = vor.u32 %v9583_v49, %v7788_v48  ;;  %3089 = vmatpush.bf16.msrb.mxu1 %v6289_v46  ;;  %v7756_v60 = vld [vmem:[#allocation5 + $0xd08] sm:$0xf]  ;;  %v6414_v32 = vld [vmem:[#allocation5 + $0x2a8] sm:$0xf0] }
  0xfc   :  { %v9575_v61 = vld [vmem:[#allocation5 + $0xd24] sm:$0xf0]  ;;  %v9299_v35 = vld [vmem:[#allocation5 + $0x48c] sm:$0xf]  ;;  %v6417_v39 = vor.u32 %v9235_v31, %v6414_v32 }
  0xfd   :  { %3076 = vmatpush.bf16.msrb.mxu0 %v7821_v45  ;;  %3102 = vmatpush.bf16.msrb.mxu2 %v6545_v47  ;;  %v7757_v5 = vor.u32 %v9575_v61, %v7756_v60  ;;  %v7724_v10 = vld [vmem:[#allocation5 + $0xcc8] sm:$0xf]  ;;  %v2850_v45 = vpop.f32.mrf.mxu2  ;;  %v6673_v46 = vor.u32 %v9299_v35, %v6670_v36  ;;  %v6126_v47 = vld [vmem:[#allocation5 + $0x68] sm:$0xf0] }
  0xfe   :  { %v9567_v11 = vld [vmem:[#allocation5 + $0xce4] sm:$0xf0]  ;;  %v9227_v48 = vld [vmem:[#allocation5 + $0x24c] sm:$0xf]  ;;  %v2851_v50 = vadd.f32 %v2850_v45, %v2838_v33 }
  0xff   :  { %3115 = vmatpush.bf16.msrb.mxu3 %v6801_v51  ;;  %3090 = vmatpush.bf16.msrb.mxu1 %v6257_v58  ;;  %v7725_v21 = vor.u32 %v9567_v11, %v7724_v10  ;;  %v7692_v25 = vld [vmem:[#allocation5 + $0xc88] sm:$0xf]  ;;  %v6382_v49 = vld [vmem:[#allocation5 + $0x268] sm:$0xf0]  ;;  %v2863_v51 = vpop.f32.mrf.mxu3 }
 0x100   :  { %v9559_v26 = vld [vmem:[#allocation5 + $0xca4] sm:$0xf0]  ;;  %v10158_v58 = vadd.f32 %v2863_v51, %v2851_v50  ;;  %v6385_v60 = vor.u32 %v9227_v48, %v6382_v49  ;;  %v9155_v61 = vld [vmem:[#allocation5 + $0xc] sm:$0xf] }
 0x101   :  { %3077 = vmatpush.bf16.msrb.mxu0 %v7789_v57  ;;  %3103 = vmatpush.bf16.msrb.mxu2 %v6513_v59  ;;  %v7693_v37 = vor.u32 %v9559_v26, %v7692_v25  ;;  %v7660_v42 = vld [vmem:[#allocation5 + $0xc48] sm:$0xf]  ;;  %v2826_v57 = vpop.f32.mrf.mxu0  ;;  %v6129_v59 = vor.u32 %v9163_v44, %v6126_v47  ;;  %v9283_v3 = vld [vmem:[#allocation5 + $0x40c] sm:$0xf]  ;;  %v6097_v15 = vor.u32 %v9155_v61, %v6094_v62 }
 0x102   :  { %v9551_v43 = vld [vmem:[#allocation5 + $0xc64] sm:$0xf0]  ;;  %v6606_v4 = vld [vmem:[#allocation5 + $0x428] sm:$0xf0] }
 0x103   :  { %3116 = vmatpush.bf16.msrb.mxu3 %v6769_v63  ;;  %3091 = vmatpush.bf16.msrb.mxu1 %v6225_v6  ;;  %v7661_v54 = vor.u32 %v9551_v43, %v7660_v42  ;;  %v7628_v55 = vld [vmem:[#allocation5 + $0xc08] sm:$0xf]  ;;  %v9219_v63 = vld [vmem:[#allocation5 + $0x20c] sm:$0xf] }
 0x104   :  { %v9543_v56 = vld [vmem:[#allocation5 + $0xc24] sm:$0xf0]  ;;  %v7086_v6 = vld [vmem:[#allocation5 + $0x7e8] sm:$0xf0]  ;;  %v6353_v16 = vor.u32 %v9219_v63, %v6350_v2 }
 0x105   :  { %3078 = vmatpush.bf16.msrb.mxu0 %v7757_v5  ;;  %3104 = vmatpush.bf16.msrb.mxu2 %v6481_v9  ;;  %v9403_v5 = vld [vmem:[#allocation5 + $0x7cc] sm:$0xf]  ;;  %v7629_v10 = vor.u32 %v9543_v56, %v7628_v55  ;;  %v2852_v20 = vpop.f32.mrf.mxu2 }
 0x106   :  { %v9467_v9 = vld [vmem:[#allocation5 + $0x9cc] sm:$0xf]  ;;  %v7089_v22 = vor.u32 %v9403_v5, %v7086_v6 }
 0x107   :  { %3117 = vmatpush.bf16.msrb.mxu3 %v6737_v13  ;;  %3092 = vmatpush.bf16.msrb.mxu1 %v6193_v23  ;;  %v7342_v11 = vld [vmem:[#allocation5 + $0x9e8] sm:$0xf0]  ;;  %v2865_v23 = vpop.f32.mrf.mxu3 }
 0x108   :  { %v9531_v12 = vld [vmem:[#allocation5 + $0xbcc] sm:$0xf] }
 0x109   :  { %3079 = vmatpush.bf16.msrb.mxu0 %v7725_v21  ;;  %3105 = vmatpush.bf16.msrb.mxu2 %v6449_v24  ;;  %v7598_v13 = vld [vmem:[#allocation5 + $0xbe8] sm:$0xf0]  ;;  %v6609_v21 = vor.u32 %v9283_v3, %v6606_v4  ;;  %v7345_v24 = vor.u32 %v9467_v9, %v7342_v11  ;;  %v2876_v0 = vpop.f32.mrf.mxu0 }
 0x10a   :  { %v9595_v17 = vld [vmem:[#allocation5 + $0xdcc] sm:$0xf]  ;;  %v7601_v25 = vor.u32 %v9531_v12, %v7598_v13  ;;  %v2877_v4 = vadd.f32 %v2876_v0, %v10158_v58  ;;  %v6324_v0 = vld [vmem:[#allocation5 + $0x1d0] sm:$0xf] }
 0x10b   :  { %3118 = vmatpush.bf16.msrb.mxu3 %v6705_v29  ;;  %3093 = vmatpush.bf16.msrb.mxu1 %v6161_v38  ;;  %v7854_v18 = vld [vmem:[#allocation5 + $0xde8] sm:$0xf0] }
 0x10c   :  { %v9395_v26 = vld [vmem:[#allocation5 + $0x78c] sm:$0xf]  ;;  %v7857_v29 = vor.u32 %v9595_v17, %v7854_v18 }
 0x10d   :  { %3080 = vmatpush.bf16.msrb.mxu0 %v7693_v37  ;;  %3106 = vmatpush.bf16.msrb.mxu2 %v6417_v39  ;;  %v7054_v27 = vld [vmem:[#allocation5 + $0x7a8] sm:$0xf0] }
 0x10e   :  { %v9459_v28 = vld [vmem:[#allocation5 + $0x98c] sm:$0xf]  ;;  %v7057_v36 = vor.u32 %v9395_v26, %v7054_v27 }
 0x10f   :  { %3119 = vmatpush.bf16.msrb.mxu3 %v6673_v46  ;;  %3094 = vmatpush.bf16.msrb.mxu1 %v6129_v59  ;;  %v7310_v30 = vld [vmem:[#allocation5 + $0x9a8] sm:$0xf0] }
 0x110   :  { %v9523_v31 = vld [vmem:[#allocation5 + $0xb8c] sm:$0xf]  ;;  %v7313_v37 = vor.u32 %v9459_v28, %v7310_v30 }
 0x111   :  { %3081 = vmatpush.bf16.msrb.mxu0 %v7661_v54  ;;  %3107 = vmatpush.bf16.msrb.mxu2 %v6385_v60  ;;  %v7566_v32 = vld [vmem:[#allocation5 + $0xba8] sm:$0xf0] }
 0x112   :  { %v9587_v33 = vld [vmem:[#allocation5 + $0xd8c] sm:$0xf]  ;;  %v7569_v38 = vor.u32 %v9523_v31, %v7566_v32  ;;  %v10167_v32 = vpop.f32.mrf.mxu3 }
 0x113   :  { %3120 = vmatpush.bf16.msrb.mxu3 %v6641_v1  ;;  %3095 = vmatpush.bf16.msrb.mxu1 %v6097_v15  ;;  %v7822_v35 = vld [vmem:[#allocation5 + $0xda8] sm:$0xf0]  ;;  %v2889_v1 = vpop.f32.mrf.mxu1 }
 0x114   :  { %v9387_v39 = vld [vmem:[#allocation5 + $0x74c] sm:$0xf]  ;;  %v7825_v44 = vor.u32 %v9587_v33, %v7822_v35  ;;  %v2890_v17 = vadd.f32 %v2889_v1, %v2877_v4  ;;  %v2878_v35 = vpop.f32.mrf.mxu0  ;;  %v9216_v1 = vld [vmem:[#allocation5 + $0x1ec] sm:$0xf0] }
 0x115   :  { %3082 = vmatpush.bf16.msrb.mxu0 %v7629_v10  ;;  %3108 = vmatpush.bf16.msrb.mxu2 %v6353_v16  ;;  %v7022_v42 = vld [vmem:[#allocation5 + $0x768] sm:$0xf0]  ;;  %v9200_v35 = vld [vmem:[#allocation5 + $0x16c] sm:$0xf0] }
 0x116   :  { %v9451_v43 = vld [vmem:[#allocation5 + $0x94c] sm:$0xf]  ;;  %v7025_v50 = vor.u32 %v9387_v39, %v7022_v42  ;;  %3096 = vmatmul.bf16.vlgmr.msrb.gmra.mxu1 %v10128_v14 }
 0x117   :  { %3121 = vmatpush.bf16.msrb.mxu3 %v6609_v21  ;;  %3140 = vmatpush.bf16.msra.mxu1 %v7345_v24  ;;  %v7278_v45 = vld [vmem:[#allocation5 + $0x968] sm:$0xf0] }
 0x118   :  { %3083 = vmatmul.bf16.vlgmr.msrb.gmra.mxu0 %v10136_v34  ;;  %v9515_v46 = vld [vmem:[#allocation5 + $0xb4c] sm:$0xf]  ;;  %3109 = vmatmul.bf16.vlgmr.msrb.gmra.mxu2 %v10131_v19  ;;  %v7281_v51 = vor.u32 %v9451_v43, %v7278_v45 }
 0x119   :  { %3127 = vmatpush.bf16.msra.mxu0 %v7089_v22  ;;  %3153 = vmatpush.bf16.msra.mxu2 %v7601_v25  ;;  %v7534_v47 = vld [vmem:[#allocation5 + $0xb68] sm:$0xf0]  ;;  %v2902_v22 = vpop.f32.mrf.mxu2 }
 0x11a   :  { %v9579_v48 = vld [vmem:[#allocation5 + $0xd4c] sm:$0xf]  ;;  %3122 = vmatmul.bf16.vlgmr.msrb.gmra.mxu3 %v10124_v7  ;;  %v7537_v52 = vor.u32 %v9515_v46, %v7534_v47  ;;  %v10165_v26 = vadd.f32 %v2902_v22, %v2890_v17  ;;  %v6548_v22 = vld [vmem:[#allocation5 + $0x390] sm:$0xf] }
 0x11b   :  { %3166 = vmatpush.bf16.msra.mxu3 %v7857_v29  ;;  %v7790_v49 = vld [vmem:[#allocation5 + $0xd68] sm:$0xf0]  ;;  %3141 = vmatpush.bf16.msra.mxu1 %v7313_v37 }
 0x11c   :  { %v9379_v53 = vld [vmem:[#allocation5 + $0x70c] sm:$0xf]  ;;  %v7793_v56 = vor.u32 %v9579_v48, %v7790_v49  ;;  %vm3543_vm0 = vcmp.gt.f32.partialorder %v10165_v26, 0.0 }
 0x11d   :  { %3128 = vmatpush.bf16.msra.mxu0 %v7057_v36  ;;  %3154 = vmatpush.bf16.msra.mxu2 %v7569_v38  ;;  %v6990_v54 = vld [vmem:[#allocation5 + $0x728] sm:$0xf0]  ;;  %v2891_v36 = vpop.f32.mrf.mxu1 }
 0x11e   :  { %v9443_v55 = vld [vmem:[#allocation5 + $0x90c] sm:$0xf]  ;;  %v6993_v63 = vor.u32 %v9379_v53, %v6990_v54  ;;  %v6516_v36 = vld [vmem:[#allocation5 + $0x350] sm:$0xf] }
 0x11f   :  { %3167 = vmatpush.bf16.msra.mxu3 %v7825_v44  ;;  %v7246_v57 = vld [vmem:[#allocation5 + $0x928] sm:$0xf0]  ;;  %3142 = vmatpush.bf16.msra.mxu1 %v7281_v51 }
 0x120   :  { %v9507_v59 = vld [vmem:[#allocation5 + $0xb0c] sm:$0xf]  ;;  %v7249_v2 = vor.u32 %v9443_v55, %v7246_v57 }
 0x121   :  { %v7502_v60 = vld [vmem:[#allocation5 + $0xb28] sm:$0xf0]  ;;  %3129 = vmatpush.bf16.msra.mxu0 %v7025_v50  ;;  %3155 = vmatpush.bf16.msra.mxu2 %v7537_v52 }
 0x122   :  { %v9571_v61 = vld [vmem:[#allocation5 + $0xd0c] sm:$0xf]  ;;  %v7505_v3 = vor.u32 %v9507_v59, %v7502_v60  ;;  %v2904_v59 = vpop.f32.mrf.mxu2 }
 0x123   :  { %v7758_v62 = vld [vmem:[#allocation5 + $0xd28] sm:$0xf0]  ;;  %3168 = vmatpush.bf16.msra.mxu3 %v7793_v56  ;;  %3143 = vmatpush.bf16.msra.mxu1 %v7249_v2  ;;  %v6580_v2 = vld [vmem:[#allocation5 + $0x3d0] sm:$0xf] }
 0x124   :  { %v9371_v5 = vld [vmem:[#allocation5 + $0x6cc] sm:$0xf]  ;;  %v7761_v10 = vor.u32 %v9571_v61, %v7758_v62 }
 0x125   :  { %v6958_v6 = vld [vmem:[#allocation5 + $0x6e8] sm:$0xf0]  ;;  %3130 = vmatpush.bf16.msra.mxu0 %v6993_v63  ;;  %3156 = vmatpush.bf16.msra.mxu2 %v7505_v3  ;;  %v2917_v3 = vpop.f32.mrf.mxu3  ;;  %v2928_v59 = vpop.f32.mrf.mxu0 }
 0x126   :  { %v9435_v9 = vld [vmem:[#allocation5 + $0x8cc] sm:$0xf]  ;;  %v6961_v18 = vor.u32 %v9371_v5, %v6958_v6  ;;  %v9280_v5 = vld [vmem:[#allocation5 + $0x3ec] sm:$0xf0] }
 0x127   :  { %v7214_v11 = vld [vmem:[#allocation5 + $0x8e8] sm:$0xf0]  ;;  %3169 = vmatpush.bf16.msra.mxu3 %v7761_v10  ;;  %v6836_v6 = vld [vmem:[#allocation5 + $0x5d0] sm:$0xf]  ;;  %v6581_v17 = vor.u32 %v9280_v5, %v6580_v2  ;;  %v2941_v2 = vpop.f32.mrf.mxu1 }
 0x128   :  { %v9499_v12 = vld [vmem:[#allocation5 + $0xacc] sm:$0xf]  ;;  %v7217_v20 = vor.u32 %v9435_v9, %v7214_v11  ;;  %v9344_v9 = vld [vmem:[#allocation5 + $0x5ec] sm:$0xf0] }
 0x129   :  { %v7470_v13 = vld [vmem:[#allocation5 + $0xae8] sm:$0xf0]  ;;  %3131 = vmatpush.bf16.msra.mxu0 %v6961_v18  ;;  %v6837_v18 = vor.u32 %v9344_v9, %v6836_v6  ;;  %v6708_v5 = vld [vmem:[#allocation5 + $0x4d0] sm:$0xf] }
 0x12a   :  { %v9563_v15 = vld [vmem:[#allocation5 + $0xccc] sm:$0xf]  ;;  %v7473_v21 = vor.u32 %v9499_v12, %v7470_v13  ;;  %3144 = vmatpush.bf16.msra.mxu1 %v7217_v20  ;;  %v7092_v12 = vld [vmem:[#allocation5 + $0x7d0] sm:$0xf] }
 0x12b   :  { %v7726_v16 = vld [vmem:[#allocation5 + $0xce8] sm:$0xf0]  ;;  %v9408_v13 = vld [vmem:[#allocation5 + $0x7ec] sm:$0xf0] }
 0x12c   :  { %v9363_v23 = vld [vmem:[#allocation5 + $0x68c] sm:$0xf]  ;;  %v7729_v25 = vor.u32 %v9563_v15, %v7726_v16  ;;  %3157 = vmatpush.bf16.msra.mxu2 %v7473_v21  ;;  %v6325_v16 = vor.u32 %v9216_v1, %v6324_v0  ;;  %v6292_v20 = vld [vmem:[#allocation5 + $0x190] sm:$0xf]  ;;  %v2929_v1 = vadd.f32 %v2928_v59, %v10167_v32 }
 0x12d   :  { %v6926_v58 = vld [vmem:[#allocation5 + $0x6a8] sm:$0xf0]  ;;  %v9208_v21 = vld [vmem:[#allocation5 + $0x1ac] sm:$0xf0] }
 0x12e   :  { %v9427_v24 = vld [vmem:[#allocation5 + $0x88c] sm:$0xf]  ;;  %v6929_v33 = vor.u32 %v9363_v23, %v6926_v58  ;;  %3170 = vmatpush.bf16.msra.mxu3 %v7729_v25  ;;  %v7093_v23 = vor.u32 %v9408_v13, %v7092_v12  ;;  %v9272_v58 = vld [vmem:[#allocation5 + $0x3ac] sm:$0xf0] }
 0x12f   :  { %v7182_v27 = vld [vmem:[#allocation5 + $0x8a8] sm:$0xf0]  ;;  %v9336_v25 = vld [vmem:[#allocation5 + $0x5ac] sm:$0xf0] }
 0x130   :  { %v9491_v28 = vld [vmem:[#allocation5 + $0xa8c] sm:$0xf]  ;;  %v7185_v37 = vor.u32 %v9427_v24, %v7182_v27  ;;  %3132 = vmatpush.bf16.msra.mxu0 %v6929_v33  ;;  %v6804_v24 = vld [vmem:[#allocation5 + $0x590] sm:$0xf] }
 0x131   :  { %v7438_v29 = vld [vmem:[#allocation5 + $0xaa8] sm:$0xf0]  ;;  %v7060_v27 = vld [vmem:[#allocation5 + $0x790] sm:$0xf] }
 0x132   :  { %v9555_v30 = vld [vmem:[#allocation5 + $0xc8c] sm:$0xf]  ;;  %v7441_v38 = vor.u32 %v9491_v28, %v7438_v29  ;;  %3145 = vmatpush.bf16.msra.mxu1 %v7185_v37  ;;  %v9400_v28 = vld [vmem:[#allocation5 + $0x7ac] sm:$0xf0]  ;;  %v6293_v29 = vor.u32 %v9208_v21, %v6292_v20  ;;  %v2954_v20 = vpop.f32.mrf.mxu2 }
 0x133   :  { %v7694_v31 = vld [vmem:[#allocation5 + $0xca8] sm:$0xf0]  ;;  %v6260_v33 = vld [vmem:[#allocation5 + $0x150] sm:$0xf]  ;;  %v7061_v37 = vor.u32 %v9400_v28, %v7060_v27 }
 0x134   :  { %v9355_v39 = vld [vmem:[#allocation5 + $0x64c] sm:$0xf]  ;;  %v7697_v44 = vor.u32 %v9555_v30, %v7694_v31  ;;  %3158 = vmatpush.bf16.msra.mxu2 %v7441_v38  ;;  %v6549_v30 = vor.u32 %v9272_v58, %v6548_v22  ;;  %v6805_v31 = vor.u32 %v9336_v25, %v6804_v24  ;;  %v9264_v38 = vld [vmem:[#allocation5 + $0x36c] sm:$0xf0]  ;;  %v2967_v24 = vpop.f32.mrf.mxu3 }
 0x135   :  { %v6894_v42 = vld [vmem:[#allocation5 + $0x668] sm:$0xf0]  ;;  %v6452_v0 = vld [vmem:[#allocation5 + $0x2d0] sm:$0xf] }
 0x136   :  { %v9419_v43 = vld [vmem:[#allocation5 + $0x84c] sm:$0xf]  ;;  %v6897_v50 = vor.u32 %v9355_v39, %v6894_v42  ;;  %3171 = vmatpush.bf16.msra.mxu3 %v7697_v44  ;;  %v6772_v39 = vld [vmem:[#allocation5 + $0x550] sm:$0xf] }
 0x137   :  { %v7150_v45 = vld [vmem:[#allocation5 + $0x868] sm:$0xf0]  ;;  %v9328_v42 = vld [vmem:[#allocation5 + $0x56c] sm:$0xf0] }
 0x138   :  { %v9483_v46 = vld [vmem:[#allocation5 + $0xa4c] sm:$0xf]  ;;  %v7153_v53 = vor.u32 %v9419_v43, %v7150_v45  ;;  %3133 = vmatpush.bf16.msra.mxu0 %v6897_v50  ;;  %v7028_v43 = vld [vmem:[#allocation5 + $0x750] sm:$0xf]  ;;  %v6261_v45 = vor.u32 %v9200_v35, %v6260_v33 }
 0x139   :  { %v7406_v47 = vld [vmem:[#allocation5 + $0xa68] sm:$0xf0]  ;;  %v9392_v44 = vld [vmem:[#allocation5 + $0x76c] sm:$0xf0] }
 0x13a   :  { %v9547_v48 = vld [vmem:[#allocation5 + $0xc4c] sm:$0xf]  ;;  %v7409_v54 = vor.u32 %v9483_v46, %v7406_v47  ;;  %3146 = vmatpush.bf16.msra.mxu1 %v7153_v53  ;;  %v6517_v46 = vor.u32 %v9264_v38, %v6516_v36  ;;  %v6773_v47 = vor.u32 %v9328_v42, %v6772_v39  ;;  %v6484_v50 = vld [vmem:[#allocation5 + $0x310] sm:$0xf]  ;;  %v2943_v38 = vpop.f32.mrf.mxu1 }
 0x13b   :  { %v7662_v49 = vld [vmem:[#allocation5 + $0xc68] sm:$0xf0]  ;;  %v6740_v53 = vld [vmem:[#allocation5 + $0x510] sm:$0xf]  ;;  %v9196_v38 = vld [vmem:[#allocation5 + $0x154] sm:$0xf] }
 0x13c   :  { %v9347_v51 = vld [vmem:[#allocation5 + $0x60c] sm:$0xf]  ;;  %v7665_v60 = vor.u32 %v9547_v48, %v7662_v49  ;;  %3159 = vmatpush.bf16.msra.mxu2 %v7409_v54  ;;  %v6228_v48 = vld [vmem:[#allocation5 + $0x110] sm:$0xf] }
 0x13d   :  { %v6862_v52 = vld [vmem:[#allocation5 + $0x628] sm:$0xf0]  ;;  %v9192_v49 = vld [vmem:[#allocation5 + $0x12c] sm:$0xf0] }
 0x13e   :  { %v9411_v55 = vld [vmem:[#allocation5 + $0x80c] sm:$0xf]  ;;  %v6865_v4 = vor.u32 %v9347_v51, %v6862_v52  ;;  %3172 = vmatpush.bf16.msra.mxu3 %v7665_v60  ;;  %v7029_v51 = vor.u32 %v9392_v44, %v7028_v43  ;;  %v9256_v52 = vld [vmem:[#allocation5 + $0x32c] sm:$0xf0] }
 0x13f   :  { %v7118_v56 = vld [vmem:[#allocation5 + $0x828] sm:$0xf0]  ;;  %v9320_v54 = vld [vmem:[#allocation5 + $0x52c] sm:$0xf0]  ;;  %v6485_v60 = vor.u32 %v9256_v52, %v6484_v50 }
 0x140   :  { %v9475_v57 = vld [vmem:[#allocation5 + $0xa0c] sm:$0xf]  ;;  %v7121_v10 = vor.u32 %v9411_v55, %v7118_v56  ;;  %3134 = vmatpush.bf16.msra.mxu0 %v6865_v4  ;;  %v6996_v55 = vld [vmem:[#allocation5 + $0x710] sm:$0xf] }
 0x141   :  { %v7374_v61 = vld [vmem:[#allocation5 + $0xa28] sm:$0xf0]  ;;  %v9384_v56 = vld [vmem:[#allocation5 + $0x72c] sm:$0xf0] }
 0x142   :  { %v9539_v62 = vld [vmem:[#allocation5 + $0xc0c] sm:$0xf]  ;;  %v7377_v11 = vor.u32 %v9475_v57, %v7374_v61  ;;  %3147 = vmatpush.bf16.msra.mxu1 %v7121_v10  ;;  %v6229_v57 = vor.u32 %v9192_v49, %v6228_v48  ;;  %v6741_v61 = vor.u32 %v9320_v54, %v6740_v53  ;;  %v6997_v3 = vor.u32 %v9384_v56, %v6996_v55  ;;  %v9248_v4 = vld [vmem:[#allocation5 + $0x2ec] sm:$0xf0]  ;;  %v2956_v55 = vpop.f32.mrf.mxu2 }
 0x143   :  { %v7630_v63 = vld [vmem:[#allocation5 + $0xc28] sm:$0xf0]  ;;  %3135 = vmatmul.bf16.vlgmr.msra.gmra.mxu0 %v10126_v8  ;;  %v9312_v6 = vld [vmem:[#allocation5 + $0x4ec] sm:$0xf0]  ;;  %v6453_v13 = vor.u32 %v9248_v4, %v6452_v0 }
 0x144   :  { %v7633_v15 = vor.u32 %v9539_v62, %v7630_v63  ;;  %3160 = vmatpush.bf16.msra.mxu2 %v7377_v11  ;;  %3179 = vmatpush.bf16.msrb.mxu0 %v6325_v16  ;;  %v6196_v62 = vld [vmem:[#allocation5 + $0xd0] sm:$0xf]  ;;  %v2942_v11 = vadd.f32 %v2941_v2, %v2929_v1 }
 0x145   :  { %3148 = vmatmul.bf16.vlgmr.msra.gmra.mxu1 %v10138_v40  ;;  %v9184_v63 = vld [vmem:[#allocation5 + $0xec] sm:$0xf0] }
 0x146   :  { %3173 = vmatpush.bf16.msra.mxu3 %v7633_v15  ;;  %3192 = vmatpush.bf16.msrb.mxu1 %v6581_v17  ;;  %v6964_v9 = vld [vmem:[#allocation5 + $0x6d0] sm:$0xf]  ;;  %v6197_v12 = vor.u32 %v9184_v63, %v6196_v62  ;;  %v6709_v15 = vor.u32 %v9312_v6, %v6708_v5  ;;  %v2955_v58 = vadd.f32 %v2954_v20, %v2942_v11 }
 0x147   :  { %3161 = vmatmul.bf16.vlgmr.msra.gmra.mxu2 %v10140_v41  ;;  %v9376_v10 = vld [vmem:[#allocation5 + $0x6ec] sm:$0xf0] }
 0x148   :  { %3205 = vmatpush.bf16.msrb.mxu2 %v6837_v18  ;;  %3180 = vmatpush.bf16.msrb.mxu0 %v6293_v29  ;;  %v6164_v16 = vld [vmem:[#allocation5 + $0x90] sm:$0xf]  ;;  %v6965_v32 = vor.u32 %v9376_v10, %v6964_v9  ;;  %v10174_v29 = vadd.f32 %v2967_v24, %v2955_v58  ;;  %v9212_v9 = vld [vmem:[#allocation5 + $0x1d4] sm:$0xf] }
 0x149   :  { %3174 = vmatmul.bf16.vlgmr.msra.gmra.mxu3 %v10136_v34  ;;  %v9176_v17 = vld [vmem:[#allocation5 + $0xac] sm:$0xf0]  ;;  %v6326_v10 = vld [vmem:[#allocation5 + $0x1f0] sm:$0xf0] }
 0x14a   :  { %3218 = vmatpush.bf16.msrb.mxu3 %v7093_v23  ;;  %3193 = vmatpush.bf16.msrb.mxu1 %v6549_v30  ;;  %v6420_v18 = vld [vmem:[#allocation5 + $0x290] sm:$0xf]  ;;  %v6165_v28 = vor.u32 %v9176_v17, %v6164_v16  ;;  %v2930_v30 = vpop.f32.mrf.mxu0  ;;  %v6329_v20 = vor.u32 %v9212_v9, %v6326_v10  ;;  %v6294_v58 = vld [vmem:[#allocation5 + $0x1b0] sm:$0xf0] }
 0x14b   :  { %v9240_v21 = vld [vmem:[#allocation5 + $0x2ac] sm:$0xf0] }
 0x14c   :  { %3206 = vmatpush.bf16.msrb.mxu2 %v6805_v31  ;;  %3181 = vmatpush.bf16.msrb.mxu0 %v6261_v45  ;;  %v6676_v22 = vld [vmem:[#allocation5 + $0x490] sm:$0xf]  ;;  %v6421_v31 = vor.u32 %v9240_v21, %v6420_v18 }
 0x14d   :  { %v9304_v23 = vld [vmem:[#allocation5 + $0x4ac] sm:$0xf0] }
 0x14e   :  { %3219 = vmatpush.bf16.msrb.mxu3 %v7061_v37  ;;  %3194 = vmatpush.bf16.msrb.mxu1 %v6517_v46  ;;  %v6932_v25 = vld [vmem:[#allocation5 + $0x690] sm:$0xf]  ;;  %v6677_v33 = vor.u32 %v9304_v23, %v6676_v22  ;;  %v9204_v23 = vld [vmem:[#allocation5 + $0x194] sm:$0xf] }
 0x14f   :  { %v9368_v27 = vld [vmem:[#allocation5 + $0x6ac] sm:$0xf0] }
 0x150   :  { %3207 = vmatpush.bf16.msrb.mxu2 %v6773_v47  ;;  %3182 = vmatpush.bf16.msrb.mxu0 %v6229_v57  ;;  %v6132_v35 = vld [vmem:[#allocation5 + $0x50] sm:$0xf]  ;;  %v6933_v39 = vor.u32 %v9368_v27, %v6932_v25 }
 0x151   :  { %v9168_v36 = vld [vmem:[#allocation5 + $0x6c] sm:$0xf0] }
 0x152   :  { %3220 = vmatpush.bf16.msrb.mxu3 %v7029_v51  ;;  %3195 = vmatpush.bf16.msrb.mxu1 %v6485_v60  ;;  %v6388_v37 = vld [vmem:[#allocation5 + $0x250] sm:$0xf]  ;;  %v6133_v47 = vor.u32 %v9168_v36, %v6132_v35 }
 0x153   :  { %v9232_v42 = vld [vmem:[#allocation5 + $0x26c] sm:$0xf0] }
 0x154   :  { %3208 = vmatpush.bf16.msrb.mxu2 %v6741_v61  ;;  %3183 = vmatpush.bf16.msrb.mxu0 %v6197_v12  ;;  %v6644_v43 = vld [vmem:[#allocation5 + $0x450] sm:$0xf]  ;;  %v6389_v50 = vor.u32 %v9232_v42, %v6388_v37  ;;  %v2969_v61 = vpop.f32.mrf.mxu3 }
 0x155   :  { %v9296_v44 = vld [vmem:[#allocation5 + $0x46c] sm:$0xf0] }
 0x156   :  { %3221 = vmatpush.bf16.msrb.mxu3 %v6997_v3  ;;  %3196 = vmatpush.bf16.msrb.mxu1 %v6453_v13  ;;  %v6900_v45 = vld [vmem:[#allocation5 + $0x650] sm:$0xf]  ;;  %v6645_v51 = vor.u32 %v9296_v44, %v6644_v43 }
 0x157   :  { %v9360_v46 = vld [vmem:[#allocation5 + $0x66c] sm:$0xf0] }
 0x158   :  { %3209 = vmatpush.bf16.msrb.mxu2 %v6709_v15  ;;  %3184 = vmatpush.bf16.msrb.mxu0 %v6165_v28  ;;  %v6100_v48 = vld [vmem:[#allocation5 + $0x10] sm:$0xf]  ;;  %v6901_v56 = vor.u32 %v9360_v46, %v6900_v45 }
 0x159   :  { %v9160_v49 = vld [vmem:[#allocation5 + $0x2c] sm:$0xf0] }
 0x15a   :  { %3222 = vmatpush.bf16.msrb.mxu3 %v6965_v32  ;;  %3197 = vmatpush.bf16.msrb.mxu1 %v6421_v31  ;;  %v6356_v52 = vld [vmem:[#allocation5 + $0x210] sm:$0xf]  ;;  %v6101_v1 = vor.u32 %v9160_v49, %v6100_v48 }
 0x15b   :  { %v9224_v53 = vld [vmem:[#allocation5 + $0x22c] sm:$0xf0] }
 0x15c   :  { %3210 = vmatpush.bf16.msrb.mxu2 %v6677_v33  ;;  %v6612_v54 = vld [vmem:[#allocation5 + $0x410] sm:$0xf]  ;;  %3185 = vmatpush.bf16.msrb.mxu0 %v6133_v47  ;;  %v6357_v5 = vor.u32 %v9224_v53, %v6356_v52  ;;  %v6297_v33 = vor.u32 %v9204_v23, %v6294_v58  ;;  %v2980_v52 = vpop.f32.mrf.mxu0  ;;  %v9188_v53 = vld [vmem:[#allocation5 + $0x114] sm:$0xf] }
 0x15d   :  { %v9288_v57 = vld [vmem:[#allocation5 + $0x42c] sm:$0xf0]  ;;  %v2981_v55 = vadd.f32 %v2980_v52, %v10174_v29 }
 0x15e   :  { %3223 = vmatpush.bf16.msrb.mxu3 %v6933_v39  ;;  %v6868_v59 = vld [vmem:[#allocation5 + $0x610] sm:$0xf]  ;;  %3198 = vmatpush.bf16.msrb.mxu1 %v6389_v50  ;;  %v6613_v6 = vor.u32 %v9288_v57, %v6612_v54  ;;  %v6262_v39 = vld [vmem:[#allocation5 + $0x170] sm:$0xf0]  ;;  %v2993_v57 = vpop.f32.mrf.mxu1 }
 0x15f   :  { %v9352_v60 = vld [vmem:[#allocation5 + $0x62c] sm:$0xf0]  ;;  %v6265_v48 = vor.u32 %v9196_v38, %v6262_v39  ;;  %v6230_v54 = vld [vmem:[#allocation5 + $0x130] sm:$0xf0] }
 0x160   :  { %v7348_v62 = vld [vmem:[#allocation5 + $0x9d0] sm:$0xf]  ;;  %3211 = vmatpush.bf16.msrb.mxu2 %v6645_v51  ;;  %v6869_v11 = vor.u32 %v9352_v60, %v6868_v59  ;;  %3186 = vmatpush.bf16.msrb.mxu0 %v6101_v1  ;;  %v10181_v1 = vadd.f32 %v2993_v57, %v2981_v55  ;;  %v9164_v39 = vld [vmem:[#allocation5 + $0x54] sm:$0xf] }
 0x161   :  { %v9472_v63 = vld [vmem:[#allocation5 + $0x9ec] sm:$0xf0]  ;;  %v6582_v57 = vld [vmem:[#allocation5 + $0x3f0] sm:$0xf0] }
 0x162   :  { %v7604_v0 = vld [vmem:[#allocation5 + $0xbd0] sm:$0xf]  ;;  %3224 = vmatpush.bf16.msrb.mxu3 %v6901_v56  ;;  %v7349_v12 = vor.u32 %v9472_v63, %v7348_v62  ;;  %3199 = vmatpush.bf16.msrb.mxu1 %v6357_v5  ;;  %v9180_v5 = vld [vmem:[#allocation5 + $0xd4] sm:$0xf]  ;;  %vm3544_vm1 = vcmp.gt.f32.partialorder %v10181_v1, 0.0 }
 0x163   :  { %v9536_v2 = vld [vmem:[#allocation5 + $0xbec] sm:$0xf0]  ;;  %3187 = vmatmul.bf16.vlgmr.msrb.gmra.mxu0 %v10128_v14 }
 0x164   :  { %v7860_v3 = vld [vmem:[#allocation5 + $0xdd0] sm:$0xf]  ;;  %v7605_v13 = vor.u32 %v9536_v2, %v7604_v0  ;;  %3212 = vmatpush.bf16.msrb.mxu2 %v6613_v6  ;;  %3231 = vmatpush.bf16.msra.mxu0 %v7349_v12  ;;  %v6233_v0 = vor.u32 %v9188_v53, %v6230_v54  ;;  %v6198_v6 = vld [vmem:[#allocation5 + $0xf0] sm:$0xf0]  ;;  %v2982_v23 = vpop.f32.mrf.mxu0 }
 0x165   :  { %v9600_v4 = vld [vmem:[#allocation5 + $0xdec] sm:$0xf0]  ;;  %3200 = vmatmul.bf16.vlgmr.msrb.gmra.mxu1 %v10131_v19  ;;  %v9156_v53 = vld [vmem:[#allocation5 + $0x14] sm:$0xf] }
 0x166   :  { %v7861_v15 = vor.u32 %v9600_v4, %v7860_v3  ;;  %v7316_v16 = vld [vmem:[#allocation5 + $0x990] sm:$0xf]  ;;  %3225 = vmatpush.bf16.msrb.mxu3 %v6869_v11  ;;  %3244 = vmatpush.bf16.msra.mxu1 %v7605_v13  ;;  %v6102_v54 = vld [vmem:[#allocation5 + $0x30] sm:$0xf0] }
 0x167   :  { %v9464_v17 = vld [vmem:[#allocation5 + $0x9ac] sm:$0xf0]  ;;  %3213 = vmatmul.bf16.vlgmr.msrb.gmra.mxu2 %v10124_v7 }
 0x168   :  { %v7572_v18 = vld [vmem:[#allocation5 + $0xb90] sm:$0xf]  ;;  %v7317_v24 = vor.u32 %v9464_v17, %v7316_v16  ;;  %3257 = vmatpush.bf16.msra.mxu2 %v7861_v15  ;;  %v6201_v15 = vor.u32 %v9180_v5, %v6198_v6  ;;  %v7350_v5 = vld [vmem:[#allocation5 + $0x9f0] sm:$0xf0]  ;;  %v6105_v6 = vor.u32 %v9156_v53, %v6102_v54 }
 0x169   :  { %v9528_v32 = vld [vmem:[#allocation5 + $0xbac] sm:$0xf0]  ;;  %3226 = vmatmul.bf16.vlgmr.msrb.gmra.mxu3 %v10126_v8 }
 0x16a   :  { %v7828_v21 = vld [vmem:[#allocation5 + $0xd90] sm:$0xf]  ;;  %v7573_v25 = vor.u32 %v9528_v32, %v7572_v18  ;;  %3270 = vmatpush.bf16.msra.mxu3 %v6329_v20  ;;  %3232 = vmatpush.bf16.msra.mxu0 %v7317_v24  ;;  %v3006_v20 = vpop.f32.mrf.mxu2  ;;  %v9172_v32 = vld [vmem:[#allocation5 + $0x94] sm:$0xf] }
 0x16b   :  { %v9592_v22 = vld [vmem:[#allocation5 + $0xdac] sm:$0xf0] }
 0x16c   :  { %v7829_v27 = vor.u32 %v9592_v22, %v7828_v21  ;;  %v7284_v28 = vld [vmem:[#allocation5 + $0x950] sm:$0xf]  ;;  %3245 = vmatpush.bf16.msra.mxu1 %v7573_v25  ;;  %v6166_v21 = vld [vmem:[#allocation5 + $0xb0] sm:$0xf0]  ;;  %v3019_v22 = vpop.f32.mrf.mxu3  ;;  %v2995_v25 = vpop.f32.mrf.mxu1 }
 0x16d   :  { %v9456_v30 = vld [vmem:[#allocation5 + $0x96c] sm:$0xf0]  ;;  %v10183_v24 = vadd.f32 %v3019_v22, %v3006_v20  ;;  %v9460_v20 = vld [vmem:[#allocation5 + $0x994] sm:$0xf] }
 0x16e   :  { %v7540_v31 = vld [vmem:[#allocation5 + $0xb50] sm:$0xf]  ;;  %v7285_v42 = vor.u32 %v9456_v30, %v7284_v28  ;;  %3258 = vmatpush.bf16.msra.mxu2 %v7829_v27  ;;  %3271 = vmatpush.bf16.msra.mxu3 %v6297_v33  ;;  %v6518_v25 = vld [vmem:[#allocation5 + $0x370] sm:$0xf0] }
 0x16f   :  { %v9520_v35 = vld [vmem:[#allocation5 + $0xb6c] sm:$0xf0] }
 0x170   :  { %v7796_v36 = vld [vmem:[#allocation5 + $0xd50] sm:$0xf]  ;;  %v7541_v43 = vor.u32 %v9520_v35, %v7540_v31  ;;  %3233 = vmatpush.bf16.msra.mxu0 %v7285_v42  ;;  %v6169_v35 = vor.u32 %v9172_v32, %v6166_v21  ;;  %v6134_v42 = vld [vmem:[#allocation5 + $0x70] sm:$0xf0] }
 0x171   :  { %v9584_v37 = vld [vmem:[#allocation5 + $0xd6c] sm:$0xf0]  ;;  %v7318_v32 = vld [vmem:[#allocation5 + $0x9b0] sm:$0xf0] }
 0x172   :  { %v7797_v44 = vor.u32 %v9584_v37, %v7796_v36  ;;  %v7252_v45 = vld [vmem:[#allocation5 + $0x910] sm:$0xf]  ;;  %3246 = vmatpush.bf16.msra.mxu1 %v7541_v43  ;;  %3272 = vmatpush.bf16.msra.mxu3 %v6265_v48  ;;  %v3008_v55 = vpop.f32.mrf.mxu2 }
 0x173   :  { %v9448_v46 = vld [vmem:[#allocation5 + $0x92c] sm:$0xf0]  ;;  %v9244_v55 = vld [vmem:[#allocation5 + $0x2d4] sm:$0xf] }
 0x174   :  { %v7508_v47 = vld [vmem:[#allocation5 + $0xb10] sm:$0xf]  ;;  %v7253_v56 = vor.u32 %v9448_v46, %v7252_v45  ;;  %3259 = vmatpush.bf16.msra.mxu2 %v7797_v44 }
 0x175   :  { %v9512_v49 = vld [vmem:[#allocation5 + $0xb2c] sm:$0xf0] }
 0x176   :  { %v7764_v50 = vld [vmem:[#allocation5 + $0xd10] sm:$0xf]  ;;  %v7509_v59 = vor.u32 %v9512_v49, %v7508_v47  ;;  %3234 = vmatpush.bf16.msra.mxu0 %v7253_v56  ;;  %3273 = vmatpush.bf16.msra.mxu3 %v6233_v0  ;;  %v9276_v56 = vld [vmem:[#allocation5 + $0x3d4] sm:$0xf] }
 0x177   :  { %v9576_v51 = vld [vmem:[#allocation5 + $0xd2c] sm:$0xf0]  ;;  %v7094_v0 = vld [vmem:[#allocation5 + $0x7f0] sm:$0xf0] }
 0x178   :  { %v7765_v60 = vor.u32 %v9576_v51, %v7764_v50  ;;  %v7220_v61 = vld [vmem:[#allocation5 + $0x8d0] sm:$0xf]  ;;  %3247 = vmatpush.bf16.msra.mxu1 %v7509_v59  ;;  %v6137_v51 = vor.u32 %v9164_v39, %v6134_v42  ;;  %v9340_v59 = vld [vmem:[#allocation5 + $0x5d4] sm:$0xf] }
 0x179   :  { %v9440_v62 = vld [vmem:[#allocation5 + $0x8ec] sm:$0xf0]  ;;  %v9252_v42 = vld [vmem:[#allocation5 + $0x314] sm:$0xf] }
 0x17a   :  { %v7476_v63 = vld [vmem:[#allocation5 + $0xad0] sm:$0xf]  ;;  %v7221_v29 = vor.u32 %v9440_v62, %v7220_v61  ;;  %3260 = vmatpush.bf16.msra.mxu2 %v7765_v60  ;;  %3274 = vmatpush.bf16.msra.mxu3 %v6201_v15  ;;  %v3021_v60 = vpop.f32.mrf.mxu3  ;;  %v6838_v62 = vld [vmem:[#allocation5 + $0x5f0] sm:$0xf0] }
 0x17b   :  { %v9504_v2 = vld [vmem:[#allocation5 + $0xaec] sm:$0xf0]  ;;  %v3045_v60 = vpop.f32.mrf.mxu1 }
 0x17c   :  { %v7732_v3 = vld [vmem:[#allocation5 + $0xcd0] sm:$0xf]  ;;  %v7477_v9 = vor.u32 %v9504_v2, %v7476_v63  ;;  %3235 = vmatpush.bf16.msra.mxu0 %v7221_v29  ;;  %v9404_v63 = vld [vmem:[#allocation5 + $0x7d4] sm:$0xf]  ;;  %v6585_v29 = vor.u32 %v9276_v56, %v6582_v57 }
 0x17d   :  { %v9568_v4 = vld [vmem:[#allocation5 + $0xcec] sm:$0xf0]  ;;  %v6454_v56 = vld [vmem:[#allocation5 + $0x2f0] sm:$0xf0] }
 0x17e   :  { %v7733_v10 = vor.u32 %v9568_v4, %v7732_v3  ;;  %v7188_v11 = vld [vmem:[#allocation5 + $0x890] sm:$0xf]  ;;  %3248 = vmatpush.bf16.msra.mxu1 %v7477_v9  ;;  %3275 = vmatpush.bf16.msra.mxu3 %v6169_v35  ;;  %v9468_v4 = vld [vmem:[#allocation5 + $0x9d4] sm:$0xf]  ;;  %v6841_v9 = vor.u32 %v9340_v59, %v6838_v62 }
 0x17f   :  { %v9432_v12 = vld [vmem:[#allocation5 + $0x8ac] sm:$0xf0]  ;;  %v7353_v15 = vor.u32 %v9468_v4, %v7350_v5  ;;  %v9452_v35 = vld [vmem:[#allocation5 + $0x954] sm:$0xf]  ;;  %v6457_v5 = vor.u32 %v9244_v55, %v6454_v56 }
 0x180   :  { %v7444_v13 = vld [vmem:[#allocation5 + $0xa90] sm:$0xf]  ;;  %v7189_v58 = vor.u32 %v9432_v12, %v7188_v11  ;;  %3261 = vmatpush.bf16.msra.mxu2 %v7733_v10  ;;  %v7097_v10 = vor.u32 %v9404_v63, %v7094_v0  ;;  %v9268_v11 = vld [vmem:[#allocation5 + $0x394] sm:$0xf] }
 0x181   :  { %v9496_v16 = vld [vmem:[#allocation5 + $0xaac] sm:$0xf0]  ;;  %v6550_v12 = vld [vmem:[#allocation5 + $0x3b0] sm:$0xf0] }
 0x182   :  { %v7700_v17 = vld [vmem:[#allocation5 + $0xc90] sm:$0xf]  ;;  %v7445_v27 = vor.u32 %v9496_v16, %v7444_v13  ;;  %3236 = vmatpush.bf16.msra.mxu0 %v7189_v58  ;;  %3276 = vmatpush.bf16.msra.mxu3 %v6137_v51  ;;  %v9332_v13 = vld [vmem:[#allocation5 + $0x594] sm:$0xf]  ;;  %v6553_v21 = vor.u32 %v9268_v11, %v6550_v12  ;;  %v3058_v12 = vpop.f32.mrf.mxu2 }
 0x183   :  { %v9560_v18 = vld [vmem:[#allocation5 + $0xcac] sm:$0xf0]  ;;  %v6806_v16 = vld [vmem:[#allocation5 + $0x5b0] sm:$0xf0] }
 0x184   :  { %v7701_v28 = vor.u32 %v9560_v18, %v7700_v17  ;;  %v7156_v30 = vld [vmem:[#allocation5 + $0x850] sm:$0xf]  ;;  %3249 = vmatpush.bf16.msra.mxu1 %v7445_v27  ;;  %v9396_v17 = vld [vmem:[#allocation5 + $0x794] sm:$0xf]  ;;  %v6809_v22 = vor.u32 %v9332_v13, %v6806_v16 }
 0x185   :  { %v9424_v31 = vld [vmem:[#allocation5 + $0x86c] sm:$0xf0]  ;;  %v7062_v18 = vld [vmem:[#allocation5 + $0x7b0] sm:$0xf0] }
 0x186   :  { %v7412_v33 = vld [vmem:[#allocation5 + $0xa50] sm:$0xf]  ;;  %v7157_v43 = vor.u32 %v9424_v31, %v7156_v30  ;;  %3262 = vmatpush.bf16.msra.mxu2 %v7701_v28  ;;  %3277 = vmatpush.bf16.msra.mxu3 %v6105_v6  ;;  %v7065_v23 = vor.u32 %v9396_v17, %v7062_v18  ;;  %v9260_v58 = vld [vmem:[#allocation5 + $0x354] sm:$0xf]  ;;  %v7321_v28 = vor.u32 %v9460_v20, %v7318_v32  ;;  %v3071_v18 = vpop.f32.mrf.mxu3 }
 0x187   :  { %v9488_v36 = vld [vmem:[#allocation5 + $0xa6c] sm:$0xf0]  ;;  %v9324_v27 = vld [vmem:[#allocation5 + $0x554] sm:$0xf] }
 0x188   :  { %v7668_v37 = vld [vmem:[#allocation5 + $0xc50] sm:$0xf]  ;;  %v7413_v46 = vor.u32 %v9488_v36, %v7412_v33  ;;  %3237 = vmatpush.bf16.msra.mxu0 %v7157_v43  ;;  %v6774_v30 = vld [vmem:[#allocation5 + $0x570] sm:$0xf0] }
 0x189   :  { %v9552_v38 = vld [vmem:[#allocation5 + $0xc6c] sm:$0xf0]  ;;  %v9388_v31 = vld [vmem:[#allocation5 + $0x754] sm:$0xf]  ;;  %3278 = vmatmul.bf16.vlgmr.msra.gmra.mxu3 %v10128_v14 }
 0x18a   :  { %v7124_v44 = vld [vmem:[#allocation5 + $0x810] sm:$0xf]  ;;  %v7669_v47 = vor.u32 %v9552_v38, %v7668_v37  ;;  %3250 = vmatpush.bf16.msra.mxu1 %v7413_v46  ;;  %3322 = vmatpush.bf16.msrb.mxu3 %v7353_v15  ;;  %v7030_v33 = vld [vmem:[#allocation5 + $0x770] sm:$0xf0]  ;;  %v6521_v37 = vor.u32 %v9260_v58, %v6518_v25  ;;  %v6777_v38 = vor.u32 %v9324_v27, %v6774_v30 }
 0x18b   :  { %v9416_v45 = vld [vmem:[#allocation5 + $0x82c] sm:$0xf0]  ;;  %v7286_v36 = vld [vmem:[#allocation5 + $0x970] sm:$0xf0]  ;;  %v7033_v39 = vor.u32 %v9388_v31, %v7030_v33  ;;  %v3047_v31 = vpop.f32.mrf.mxu1 }
 0x18c   :  { %v7380_v48 = vld [vmem:[#allocation5 + $0xa10] sm:$0xf]  ;;  %v7125_v61 = vor.u32 %v9416_v45, %v7124_v44  ;;  %3263 = vmatpush.bf16.msra.mxu2 %v7669_v47  ;;  %v6486_v43 = vld [vmem:[#allocation5 + $0x330] sm:$0xf0]  ;;  %v7289_v45 = vor.u32 %v9452_v35, %v7286_v36  ;;  %v9201_v31 = vld [vmem:[#allocation5 + $0x174] sm:$0xf0] }
 0x18d   :  { %v9480_v49 = vld [vmem:[#allocation5 + $0xa2c] sm:$0xf0]  ;;  %v9316_v44 = vld [vmem:[#allocation5 + $0x514] sm:$0xf]  ;;  %v6489_v51 = vor.u32 %v9252_v42, %v6486_v43 }
 0x18e   :  { %v7636_v50 = vld [vmem:[#allocation5 + $0xc10] sm:$0xf]  ;;  %v7381_v2 = vor.u32 %v9480_v49, %v7380_v48  ;;  %3238 = vmatpush.bf16.msra.mxu0 %v7125_v61  ;;  %3323 = vmatpush.bf16.msrb.mxu3 %v7321_v28  ;;  %v6742_v46 = vld [vmem:[#allocation5 + $0x530] sm:$0xf0]  ;;  %v3073_v55 = vpop.f32.mrf.mxu3 }
 0x18f   :  { %v9544_v52 = vld [vmem:[#allocation5 + $0xc2c] sm:$0xf0]  ;;  %v9380_v47 = vld [vmem:[#allocation5 + $0x714] sm:$0xf]  ;;  %v6745_v53 = vor.u32 %v9316_v44, %v6742_v46 }
 0x190   :  { %v7637_v3 = vor.u32 %v9544_v52, %v7636_v50  ;;  %3251 = vmatpush.bf16.msra.mxu1 %v7381_v2  ;;  %v6998_v48 = vld [vmem:[#allocation5 + $0x730] sm:$0xf0]  ;;  %v3032_v52 = vpop.f32.mrf.mxu0 }
 0x191   :  { %3239 = vmatmul.bf16.vlgmr.msra.gmra.mxu0 %v10138_v40  ;;  %v9444_v49 = vld [vmem:[#allocation5 + $0x914] sm:$0xf]  ;;  %v7001_v54 = vor.u32 %v9380_v47, %v6998_v48  ;;  %v3033_v59 = vadd.f32 %v3032_v52, %v10183_v24 }
 0x192   :  { %3264 = vmatpush.bf16.msra.mxu2 %v7637_v3  ;;  %3283 = vmatpush.bf16.msrb.mxu0 %v6585_v29  ;;  %v7254_v50 = vld [vmem:[#allocation5 + $0x930] sm:$0xf0] }
 0x193   :  { %3252 = vmatmul.bf16.vlgmr.msra.gmra.mxu1 %v10140_v41  ;;  %v9308_v57 = vld [vmem:[#allocation5 + $0x4d4] sm:$0xf]  ;;  %3324 = vmatpush.bf16.msrb.mxu3 %v7289_v45  ;;  %v7257_v61 = vor.u32 %v9444_v49, %v7254_v50  ;;  %v3046_v4 = vadd.f32 %v3045_v60, %v3033_v59  ;;  %v3060_v50 = vpop.f32.mrf.mxu2 }
 0x194   :  { %3296 = vmatpush.bf16.msrb.mxu1 %v6841_v9  ;;  %v6710_v62 = vld [vmem:[#allocation5 + $0x4f0] sm:$0xf0]  ;;  %v9257_v50 = vld [vmem:[#allocation5 + $0x334] sm:$0xf0] }
 0x195   :  { %3265 = vmatmul.bf16.vlgmr.msra.gmra.mxu2 %v10136_v34  ;;  %v9372_v63 = vld [vmem:[#allocation5 + $0x6d4] sm:$0xf]  ;;  %v6713_v6 = vor.u32 %v9308_v57, %v6710_v62  ;;  %v3059_v17 = vadd.f32 %v3058_v12, %v3046_v4  ;;  %v6332_v62 = vld [vmem:[#allocation5 + $0x1d8] sm:$0xf] }
 0x196   :  { %3309 = vmatpush.bf16.msrb.mxu2 %v7097_v10  ;;  %3284 = vmatpush.bf16.msrb.mxu0 %v6553_v21  ;;  %v6966_v0 = vld [vmem:[#allocation5 + $0x6f0] sm:$0xf0]  ;;  %v9281_v4 = vld [vmem:[#allocation5 + $0x3f4] sm:$0xf0] }
 0x197   :  { %v9436_v2 = vld [vmem:[#allocation5 + $0x8d4] sm:$0xf]  ;;  %v6969_v29 = vor.u32 %v9372_v63, %v6966_v0  ;;  %3325 = vmatpush.bf16.msrb.mxu3 %v7257_v61  ;;  %v9217_v63 = vld [vmem:[#allocation5 + $0x1f4] sm:$0xf0] }
 0x198   :  { %3297 = vmatpush.bf16.msrb.mxu1 %v6809_v22  ;;  %v7222_v3 = vld [vmem:[#allocation5 + $0x8f0] sm:$0xf0]  ;;  %v10190_v22 = vadd.f32 %v3071_v18, %v3059_v17  ;;  %v6556_v17 = vld [vmem:[#allocation5 + $0x398] sm:$0xf] }
 0x199   :  { %v9236_v9 = vld [vmem:[#allocation5 + $0x294] sm:$0xf]  ;;  %v7225_v24 = vor.u32 %v9436_v2, %v7222_v3  ;;  %v6588_v3 = vld [vmem:[#allocation5 + $0x3d8] sm:$0xf] }
 0x19a   :  { %3310 = vmatpush.bf16.msrb.mxu2 %v7065_v23  ;;  %3285 = vmatpush.bf16.msrb.mxu0 %v6521_v37  ;;  %v6422_v10 = vld [vmem:[#allocation5 + $0x2b0] sm:$0xf0]  ;;  %v3034_v23 = vpop.f32.mrf.mxu0  ;;  %v9273_v18 = vld [vmem:[#allocation5 + $0x3b4] sm:$0xf0] }
 0x19b   :  { %v9300_v11 = vld [vmem:[#allocation5 + $0x494] sm:$0xf]  ;;  %v6425_v21 = vor.u32 %v9236_v9, %v6422_v10  ;;  %3326 = vmatpush.bf16.msrb.mxu3 %v7225_v24  ;;  %v6333_v9 = vor.u32 %v9217_v63, %v6332_v62  ;;  %v6589_v24 = vor.u32 %v9281_v4, %v6588_v3  ;;  %v6204_v62 = vld [vmem:[#allocation5 + $0xd8] sm:$0xf] }
 0x19c   :  { %3298 = vmatpush.bf16.msrb.mxu1 %v6777_v38  ;;  %v6678_v13 = vld [vmem:[#allocation5 + $0x4b0] sm:$0xf0]  ;;  %v9185_v63 = vld [vmem:[#allocation5 + $0xf4] sm:$0xf0] }
 0x19d   :  { %v9364_v15 = vld [vmem:[#allocation5 + $0x694] sm:$0xf]  ;;  %v6681_v58 = vor.u32 %v9300_v11, %v6678_v13  ;;  %v6205_v4 = vor.u32 %v9185_v63, %v6204_v62  ;;  %v9473_v62 = vld [vmem:[#allocation5 + $0x9f4] sm:$0xf0] }
 0x19e   :  { %3311 = vmatpush.bf16.msrb.mxu2 %v7033_v39  ;;  %3286 = vmatpush.bf16.msrb.mxu0 %v6489_v51  ;;  %v6934_v16 = vld [vmem:[#allocation5 + $0x6b0] sm:$0xf0] }
 0x19f   :  { %v9428_v20 = vld [vmem:[#allocation5 + $0x894] sm:$0xf]  ;;  %v6937_v25 = vor.u32 %v9364_v15, %v6934_v16  ;;  %v6300_v15 = vld [vmem:[#allocation5 + $0x198] sm:$0xf] }
 0x1a0   :  { %3299 = vmatpush.bf16.msrb.mxu1 %v6745_v53  ;;  %v7190_v32 = vld [vmem:[#allocation5 + $0x8b0] sm:$0xf0]  ;;  %v9209_v16 = vld [vmem:[#allocation5 + $0x1b4] sm:$0xf0] }
 0x1a1   :  { %v9228_v27 = vld [vmem:[#allocation5 + $0x254] sm:$0xf]  ;;  %v7193_v33 = vor.u32 %v9428_v20, %v7190_v32 }
 0x1a2   :  { %3312 = vmatpush.bf16.msrb.mxu2 %v7001_v54  ;;  %3287 = vmatpush.bf16.msrb.mxu0 %v6457_v5  ;;  %v6390_v28 = vld [vmem:[#allocation5 + $0x270] sm:$0xf0] }
 0x1a3   :  { %v9292_v30 = vld [vmem:[#allocation5 + $0x454] sm:$0xf]  ;;  %v6393_v42 = vor.u32 %v9228_v27, %v6390_v28  ;;  %3327 = vmatpush.bf16.msrb.mxu3 %v7193_v33  ;;  %v6557_v27 = vor.u32 %v9273_v18, %v6556_v17  ;;  %v6524_v33 = vld [vmem:[#allocation5 + $0x358] sm:$0xf] }
 0x1a4   :  { %3300 = vmatpush.bf16.msrb.mxu1 %v6713_v6  ;;  %v6646_v35 = vld [vmem:[#allocation5 + $0x470] sm:$0xf0] }
 0x1a5   :  { %v9356_v36 = vld [vmem:[#allocation5 + $0x654] sm:$0xf]  ;;  %v6649_v45 = vor.u32 %v9292_v30, %v6646_v35  ;;  %v6268_v30 = vld [vmem:[#allocation5 + $0x158] sm:$0xf] }
 0x1a6   :  { %3313 = vmatpush.bf16.msrb.mxu2 %v6969_v29  ;;  %v6902_v37 = vld [vmem:[#allocation5 + $0x670] sm:$0xf0]  ;;  %3288 = vmatpush.bf16.msrb.mxu0 %v6425_v21  ;;  %v6301_v21 = vor.u32 %v9209_v16, %v6300_v15  ;;  %v9265_v35 = vld [vmem:[#allocation5 + $0x374] sm:$0xf0] }
 0x1a7   :  { %v9420_v38 = vld [vmem:[#allocation5 + $0x854] sm:$0xf]  ;;  %v6905_v46 = vor.u32 %v9356_v36, %v6902_v37  ;;  %v6428_v15 = vld [vmem:[#allocation5 + $0x298] sm:$0xf] }
 0x1a8   :  { %v7158_v39 = vld [vmem:[#allocation5 + $0x870] sm:$0xf0]  ;;  %3301 = vmatpush.bf16.msrb.mxu1 %v6681_v58  ;;  %v9241_v16 = vld [vmem:[#allocation5 + $0x2b4] sm:$0xf0] }
 0x1a9   :  { %v9220_v43 = vld [vmem:[#allocation5 + $0x214] sm:$0xf]  ;;  %v7161_v51 = vor.u32 %v9420_v38, %v7158_v39  ;;  %v6269_v38 = vor.u32 %v9201_v31, %v6268_v30  ;;  %v6429_v30 = vor.u32 %v9241_v16, %v6428_v15  ;;  %v7580_v15 = vld [vmem:[#allocation5 + $0xb98] sm:$0xf] }
 0x1aa   :  { %v6358_v44 = vld [vmem:[#allocation5 + $0x230] sm:$0xf0]  ;;  %3314 = vmatpush.bf16.msrb.mxu2 %v6937_v25  ;;  %3289 = vmatpush.bf16.msrb.mxu0 %v6393_v42  ;;  %v9529_v16 = vld [vmem:[#allocation5 + $0xbb4] sm:$0xf0] }
 0x1ab   :  { %v9284_v47 = vld [vmem:[#allocation5 + $0x414] sm:$0xf]  ;;  %v6361_v60 = vor.u32 %v9220_v43, %v6358_v44  ;;  %3328 = vmatpush.bf16.msrb.mxu3 %v7161_v51  ;;  %v6525_v44 = vor.u32 %v9265_v35, %v6524_v33  ;;  %v6140_v33 = vld [vmem:[#allocation5 + $0x58] sm:$0xf] }
 0x1ac   :  { %v6614_v48 = vld [vmem:[#allocation5 + $0x430] sm:$0xf0]  ;;  %3302 = vmatpush.bf16.msrb.mxu1 %v6649_v45  ;;  %v9169_v35 = vld [vmem:[#allocation5 + $0x74] sm:$0xf0] }
 0x1ad   :  { %v9348_v49 = vld [vmem:[#allocation5 + $0x614] sm:$0xf]  ;;  %v6617_v0 = vor.u32 %v9284_v47, %v6614_v48  ;;  %v9193_v47 = vld [vmem:[#allocation5 + $0x134] sm:$0xf0]  ;;  %v3084_v48 = vpop.f32.mrf.mxu0 }
 0x1ae   :  { %v6870_v52 = vld [vmem:[#allocation5 + $0x630] sm:$0xf0]  ;;  %3315 = vmatpush.bf16.msrb.mxu2 %v6905_v46  ;;  %3290 = vmatpush.bf16.msrb.mxu0 %v6361_v60  ;;  %v6236_v46 = vld [vmem:[#allocation5 + $0x118] sm:$0xf]  ;;  %v10197_v51 = vadd.f32 %v3084_v48, %v10190_v22 }
 0x1af   :  { %v9412_v53 = vld [vmem:[#allocation5 + $0x814] sm:$0xf]  ;;  %v6873_v2 = vor.u32 %v9348_v49, %v6870_v52  ;;  %v6492_v49 = vld [vmem:[#allocation5 + $0x318] sm:$0xf] }
 0x1b0   :  { %v7126_v54 = vld [vmem:[#allocation5 + $0x830] sm:$0xf0]  ;;  %3303 = vmatpush.bf16.msrb.mxu1 %v6617_v0  ;;  %v6493_v60 = vor.u32 %v9257_v50, %v6492_v49  ;;  %v6460_v0 = vld [vmem:[#allocation5 + $0x2d8] sm:$0xf]  ;;  %vm3545_vm2 = vcmp.gt.f32.partialorder %v10197_v51, 0.0 }
 0x1b1   :  { %v9532_v56 = vld [vmem:[#allocation5 + $0xbd4] sm:$0xf]  ;;  %v7129_v5 = vor.u32 %v9412_v53, %v7126_v54  ;;  %3291 = vmatmul.bf16.vlgmr.msrb.gmra.mxu0 %v10131_v19  ;;  %v6237_v54 = vor.u32 %v9193_v47, %v6236_v46  ;;  %v6108_v47 = vld [vmem:[#allocation5 + $0x18] sm:$0xf] }
 0x1b2   :  { %v7606_v57 = vld [vmem:[#allocation5 + $0xbf0] sm:$0xf0]  ;;  %3316 = vmatpush.bf16.msrb.mxu2 %v6873_v2  ;;  %v9249_v2 = vld [vmem:[#allocation5 + $0x2f4] sm:$0xf0] }
 0x1b3   :  { %v9596_v59 = vld [vmem:[#allocation5 + $0xdd4] sm:$0xf]  ;;  %v7609_v6 = vor.u32 %v9532_v56, %v7606_v57  ;;  %3329 = vmatpush.bf16.msrb.mxu3 %v7129_v5  ;;  %3304 = vmatmul.bf16.vlgmr.msrb.gmra.mxu1 %v10124_v7  ;;  %v9161_v49 = vld [vmem:[#allocation5 + $0x34] sm:$0xf0] }
 0x1b4   :  { %v7862_v61 = vld [vmem:[#allocation5 + $0xdf0] sm:$0xf0]  ;;  %v6364_v50 = vld [vmem:[#allocation5 + $0x218] sm:$0xf] }
 0x1b5   :  { %v7865_v29 = vor.u32 %v9596_v59, %v7862_v61  ;;  %v9524_v10 = vld [vmem:[#allocation5 + $0xb94] sm:$0xf]  ;;  %3335 = vmatpush.bf16.msra.mxu0 %v7609_v6  ;;  %3317 = vmatmul.bf16.vlgmr.msrb.gmra.mxu2 %v10126_v8  ;;  %v3097_v59 = vpop.f32.mrf.mxu1  ;;  %v3086_v18 = vpop.f32.mrf.mxu0 }
 0x1b6   :  { %v7574_v11 = vld [vmem:[#allocation5 + $0xbb0] sm:$0xf0]  ;;  %3361 = vmatpush.bf16.msra.mxu2 %v6333_v9  ;;  %3330 = vmatmul.bf16.vlgmr.msrb.gmra.mxu3 %v10138_v40  ;;  %v6461_v9 = vor.u32 %v9249_v2, %v6460_v0  ;;  %v6109_v0 = vor.u32 %v9161_v49, %v6108_v47  ;;  %v7612_v2 = vld [vmem:[#allocation5 + $0xbd8] sm:$0xf] }
 0x1b7   :  { %v9588_v12 = vld [vmem:[#allocation5 + $0xd94] sm:$0xf]  ;;  %v7577_v20 = vor.u32 %v9524_v10, %v7574_v11  ;;  %3348 = vmatpush.bf16.msra.mxu1 %v7865_v29  ;;  %3374 = vmatpush.bf16.msra.mxu3 %v6589_v24  ;;  %v6172_v11 = vld [vmem:[#allocation5 + $0x98] sm:$0xf]  ;;  %v3110_v24 = vpop.f32.mrf.mxu2 }
 0x1b8   :  { %v7830_v13 = vld [vmem:[#allocation5 + $0xdb0] sm:$0xf0]  ;;  %v3111_v17 = vadd.f32 %v3110_v24, %v3097_v59  ;;  %v7324_v24 = vld [vmem:[#allocation5 + $0x998] sm:$0xf] }
 0x1b9   :  { %v7833_v32 = vor.u32 %v9588_v12, %v7830_v13  ;;  %v9516_v23 = vld [vmem:[#allocation5 + $0xb54] sm:$0xf]  ;;  %3336 = vmatpush.bf16.msra.mxu0 %v7577_v20  ;;  %v9177_v12 = vld [vmem:[#allocation5 + $0xb4] sm:$0xf0]  ;;  %v3123_v13 = vpop.f32.mrf.mxu3 }
 0x1ba   :  { %v7542_v58 = vld [vmem:[#allocation5 + $0xb70] sm:$0xf0]  ;;  %3362 = vmatpush.bf16.msra.mxu2 %v6301_v21  ;;  %v6173_v21 = vor.u32 %v9177_v12, %v6172_v11  ;;  %v9401_v12 = vld [vmem:[#allocation5 + $0x7b4] sm:$0xf0] }
 0x1bb   :  { %v9580_v25 = vld [vmem:[#allocation5 + $0xd54] sm:$0xf]  ;;  %v7545_v36 = vor.u32 %v9516_v23, %v7542_v58  ;;  %3349 = vmatpush.bf16.msra.mxu1 %v7833_v32  ;;  %3375 = vmatpush.bf16.msra.mxu3 %v6557_v27  ;;  %v10199_v27 = vadd.f32 %v3123_v13, %v3111_v17  ;;  %v9465_v13 = vld [vmem:[#allocation5 + $0x9b4] sm:$0xf0] }
 0x1bc   :  { %v7798_v28 = vld [vmem:[#allocation5 + $0xd70] sm:$0xf0]  ;;  %v7516_v47 = vld [vmem:[#allocation5 + $0xb18] sm:$0xf] }
 0x1bd   :  { %v7801_v37 = vor.u32 %v9580_v25, %v7798_v28  ;;  %v9508_v39 = vld [vmem:[#allocation5 + $0xb14] sm:$0xf]  ;;  %3337 = vmatpush.bf16.msra.mxu0 %v7545_v36  ;;  %v3099_v28 = vpop.f32.mrf.mxu1  ;;  %v6396_v36 = vld [vmem:[#allocation5 + $0x258] sm:$0xf] }
 0x1be   :  { %v7510_v42 = vld [vmem:[#allocation5 + $0xb30] sm:$0xf0]  ;;  %3363 = vmatpush.bf16.msra.mxu2 %v6269_v38  ;;  %v7292_v28 = vld [vmem:[#allocation5 + $0x958] sm:$0xf] }
 0x1bf   :  { %v9572_v43 = vld [vmem:[#allocation5 + $0xd14] sm:$0xf]  ;;  %v7513_v52 = vor.u32 %v9508_v39, %v7510_v42  ;;  %3350 = vmatpush.bf16.msra.mxu1 %v7801_v37  ;;  %3376 = vmatpush.bf16.msra.mxu3 %v6525_v44  ;;  %v9233_v37 = vld [vmem:[#allocation5 + $0x274] sm:$0xf0]  ;;  %v6141_v44 = vor.u32 %v9169_v35, %v6140_v33 }
 0x1c0   :  { %v7766_v45 = vld [vmem:[#allocation5 + $0xd30] sm:$0xf0]  ;;  %v6397_v48 = vor.u32 %v9233_v37, %v6396_v36  ;;  %v9521_v33 = vld [vmem:[#allocation5 + $0xb74] sm:$0xf0] }
 0x1c1   :  { %v7769_v53 = vor.u32 %v9572_v43, %v7766_v45  ;;  %v9500_v55 = vld [vmem:[#allocation5 + $0xad4] sm:$0xf]  ;;  %3338 = vmatpush.bf16.msra.mxu0 %v7513_v52  ;;  %v9225_v52 = vld [vmem:[#allocation5 + $0x234] sm:$0xf0] }
 0x1c2   :  { %v7478_v56 = vld [vmem:[#allocation5 + $0xaf0] sm:$0xf0]  ;;  %3364 = vmatpush.bf16.msra.mxu2 %v6237_v54  ;;  %v3125_v54 = vpop.f32.mrf.mxu3 }
 0x1c3   :  { %v9564_v57 = vld [vmem:[#allocation5 + $0xcd4] sm:$0xf]  ;;  %v7481_v3 = vor.u32 %v9500_v55, %v7478_v56  ;;  %3351 = vmatpush.bf16.msra.mxu1 %v7769_v53  ;;  %3377 = vmatpush.bf16.msra.mxu3 %v6493_v60  ;;  %v3112_v53 = vpop.f32.mrf.mxu2  ;;  %v6844_v55 = vld [vmem:[#allocation5 + $0x5d8] sm:$0xf] }
 0x1c4   :  { %v7734_v61 = vld [vmem:[#allocation5 + $0xcf0] sm:$0xf0]  ;;  %v9345_v56 = vld [vmem:[#allocation5 + $0x5f4] sm:$0xf0] }
 0x1c5   :  { %v7737_v22 = vor.u32 %v9564_v57, %v7734_v61  ;;  %v9492_v5 = vld [vmem:[#allocation5 + $0xa94] sm:$0xf]  ;;  %3339 = vmatpush.bf16.msra.mxu0 %v7481_v3  ;;  %v7100_v57 = vld [vmem:[#allocation5 + $0x7d8] sm:$0xf] }
 0x1c6   :  { %v7446_v6 = vld [vmem:[#allocation5 + $0xab0] sm:$0xf0]  ;;  %3365 = vmatpush.bf16.msra.mxu2 %v6205_v4  ;;  %v9409_v60 = vld [vmem:[#allocation5 + $0x7f4] sm:$0xf0]  ;;  %v6845_v4 = vor.u32 %v9345_v56, %v6844_v55 }
 0x1c7   :  { %v9556_v29 = vld [vmem:[#allocation5 + $0xc94] sm:$0xf]  ;;  %v7449_v20 = vor.u32 %v9492_v5, %v7446_v6  ;;  %3352 = vmatpush.bf16.msra.mxu1 %v7737_v22  ;;  %3378 = vmatpush.bf16.msra.mxu3 %v6461_v9  ;;  %v7356_v61 = vld [vmem:[#allocation5 + $0x9d8] sm:$0xf]  ;;  %v6365_v22 = vor.u32 %v9225_v52, %v6364_v50  ;;  %v7101_v5 = vor.u32 %v9409_v60, %v7100_v57  ;;  %v3136_v50 = vpop.f32.mrf.mxu0 }
 0x1c8   :  { %v7702_v10 = vld [vmem:[#allocation5 + $0xcb0] sm:$0xf0]  ;;  %v9537_v3 = vld [vmem:[#allocation5 + $0xbf4] sm:$0xf0]  ;;  %v7357_v6 = vor.u32 %v9473_v62, %v7356_v61  ;;  %v3137_v54 = vadd.f32 %v3136_v50, %v10199_v27 }
 0x1c9   :  { %v7705_v32 = vor.u32 %v9556_v29, %v7702_v10  ;;  %v9484_v23 = vld [vmem:[#allocation5 + $0xa54] sm:$0xf]  ;;  %3340 = vmatpush.bf16.msra.mxu0 %v7449_v20  ;;  %v6812_v29 = vld [vmem:[#allocation5 + $0x598] sm:$0xf]  ;;  %v7613_v11 = vor.u32 %v9537_v3, %v7612_v2  ;;  %v7325_v20 = vor.u32 %v9465_v13, %v7324_v24 }
 0x1ca   :  { %v7414_v58 = vld [vmem:[#allocation5 + $0xa70] sm:$0xf0]  ;;  %3366 = vmatpush.bf16.msra.mxu2 %v6173_v21  ;;  %v9337_v9 = vld [vmem:[#allocation5 + $0x5b4] sm:$0xf0] }
 0x1cb   :  { %v9548_v25 = vld [vmem:[#allocation5 + $0xc54] sm:$0xf]  ;;  %v7417_v38 = vor.u32 %v9484_v23, %v7414_v58  ;;  %3353 = vmatpush.bf16.msra.mxu1 %v7705_v32  ;;  %3379 = vmatpush.bf16.msra.mxu3 %v6429_v30  ;;  %v7068_v10 = vld [vmem:[#allocation5 + $0x798] sm:$0xf]  ;;  %v6813_v17 = vor.u32 %v9337_v9, %v6812_v29  ;;  %v7581_v58 = vor.u32 %v9529_v16, %v7580_v15 }
 0x1cc   :  { %v7670_v31 = vld [vmem:[#allocation5 + $0xc70] sm:$0xf0]  ;;  %v7069_v18 = vor.u32 %v9401_v12, %v7068_v10  ;;  %v6780_v32 = vld [vmem:[#allocation5 + $0x558] sm:$0xf]  ;;  %v3175_v15 = vpop.f32.mrf.mxu3 }
 0x1cd   :  { %v9476_v39 = vld [vmem:[#allocation5 + $0xa14] sm:$0xf]  ;;  %v7673_v43 = vor.u32 %v9548_v25, %v7670_v31  ;;  %3341 = vmatpush.bf16.msra.mxu0 %v7417_v38  ;;  %v9329_v21 = vld [vmem:[#allocation5 + $0x574] sm:$0xf0] }
 0x1ce   :  { %v7382_v42 = vld [vmem:[#allocation5 + $0xa30] sm:$0xf0]  ;;  %3367 = vmatpush.bf16.msra.mxu2 %v6141_v44  ;;  %v7036_v23 = vld [vmem:[#allocation5 + $0x758] sm:$0xf]  ;;  %v6781_v35 = vor.u32 %v9329_v21, %v6780_v32 }
 0x1cf   :  { %v9540_v45 = vld [vmem:[#allocation5 + $0xc14] sm:$0xf]  ;;  %v7385_v59 = vor.u32 %v9476_v39, %v7382_v42  ;;  %3354 = vmatpush.bf16.msra.mxu1 %v7673_v43  ;;  %3380 = vmatpush.bf16.msra.mxu3 %v6397_v48  ;;  %v9393_v25 = vld [vmem:[#allocation5 + $0x774] sm:$0xf0]  ;;  %v3138_v32 = vpop.f32.mrf.mxu0 }
 0x1d0   :  { %v7638_v46 = vld [vmem:[#allocation5 + $0xc30] sm:$0xf0]  ;;  %v9457_v30 = vld [vmem:[#allocation5 + $0x974] sm:$0xf0]  ;;  %v7037_v36 = vor.u32 %v9393_v25, %v7036_v23 }
 0x1d1   :  { %v7641_v63 = vor.u32 %v9540_v45, %v7638_v46  ;;  %3342 = vmatpush.bf16.msra.mxu0 %v7385_v59  ;;  %v7548_v31 = vld [vmem:[#allocation5 + $0xb58] sm:$0xf]  ;;  %v7293_v37 = vor.u32 %v9457_v30, %v7292_v28  ;;  %v3149_v59 = vpop.f32.mrf.mxu1 }
 0x1d2   :  { %3368 = vmatpush.bf16.msra.mxu2 %v6109_v0  ;;  %v6748_v38 = vld [vmem:[#allocation5 + $0x518] sm:$0xf]  ;;  %v7549_v43 = vor.u32 %v9521_v33, %v7548_v31  ;;  %v3150_v3 = vadd.f32 %v3149_v59, %v3137_v54  ;;  %v9213_v59 = vld [vmem:[#allocation5 + $0x1dc] sm:$0xf] }
 0x1d3   :  { %3355 = vmatpush.bf16.msra.mxu1 %v7641_v63  ;;  %3381 = vmatpush.bf16.msra.mxu3 %v6365_v22  ;;  %v9321_v39 = vld [vmem:[#allocation5 + $0x534] sm:$0xf0] }
 0x1d4   :  { %3343 = vmatmul.bf16.vlgmr.msra.gmra.mxu0 %v10140_v41  ;;  %v7004_v42 = vld [vmem:[#allocation5 + $0x718] sm:$0xf]  ;;  %v6749_v49 = vor.u32 %v9321_v39, %v6748_v38 }
 0x1d5   :  { %3387 = vmatpush.bf16.msrb.mxu0 %v6845_v4  ;;  %3369 = vmatmul.bf16.vlgmr.msra.gmra.mxu2 %v10128_v14  ;;  %v9385_v44 = vld [vmem:[#allocation5 + $0x734] sm:$0xf0] }
 0x1d6   :  { %3413 = vmatpush.bf16.msrb.mxu2 %v7357_v6  ;;  %3356 = vmatmul.bf16.vlgmr.msra.gmra.mxu1 %v10136_v34  ;;  %v7260_v45 = vld [vmem:[#allocation5 + $0x918] sm:$0xf]  ;;  %v7005_v52 = vor.u32 %v9385_v44, %v7004_v42  ;;  %v3162_v6 = vpop.f32.mrf.mxu2 }
 0x1d7   :  { %3400 = vmatpush.bf16.msrb.mxu1 %v7101_v5  ;;  %3426 = vmatpush.bf16.msrb.mxu3 %v7613_v11  ;;  %v9449_v46 = vld [vmem:[#allocation5 + $0x934] sm:$0xf0]  ;;  %v3163_v11 = vadd.f32 %v3162_v6, %v3150_v3  ;;  %v9341_v3 = vld [vmem:[#allocation5 + $0x5dc] sm:$0xf] }
 0x1d8   :  { %3382 = vmatmul.bf16.vlgmr.msra.gmra.mxu3 %v10131_v19  ;;  %v9513_v48 = vld [vmem:[#allocation5 + $0xb34] sm:$0xf0]  ;;  %v7261_v53 = vor.u32 %v9449_v46, %v7260_v45 }
 0x1d9   :  { %3388 = vmatpush.bf16.msrb.mxu0 %v6813_v17  ;;  %v6716_v55 = vld [vmem:[#allocation5 + $0x4d8] sm:$0xf]  ;;  %v7517_v60 = vor.u32 %v9513_v48, %v7516_v47  ;;  %v3151_v30 = vpop.f32.mrf.mxu1 }
 0x1da   :  { %3414 = vmatpush.bf16.msrb.mxu2 %v7325_v20  ;;  %v9313_v56 = vld [vmem:[#allocation5 + $0x4f4] sm:$0xf0]  ;;  %v10206_v20 = vadd.f32 %v3175_v15, %v3163_v11  ;;  %v9333_v15 = vld [vmem:[#allocation5 + $0x59c] sm:$0xf] }
 0x1db   :  { %3401 = vmatpush.bf16.msrb.mxu1 %v7069_v18  ;;  %3427 = vmatpush.bf16.msrb.mxu3 %v7581_v58  ;;  %v6972_v57 = vld [vmem:[#allocation5 + $0x6d8] sm:$0xf]  ;;  %v6717_v22 = vor.u32 %v9313_v56, %v6716_v55  ;;  %v3177_v55 = vpop.f32.mrf.mxu3  ;;  %v9261_v30 = vld [vmem:[#allocation5 + $0x35c] sm:$0xf] }
 0x1dc   :  { %v9377_v61 = vld [vmem:[#allocation5 + $0x6f4] sm:$0xf0]  ;;  %vm3546_vm3 = vcmp.gt.f32.partialorder %v10206_v20, 0.0 }
 0x1dd   :  { %3389 = vmatpush.bf16.msrb.mxu0 %v6781_v35  ;;  %v7228_v62 = vld [vmem:[#allocation5 + $0x8d8] sm:$0xf]  ;;  %v6973_v4 = vor.u32 %v9377_v61, %v6972_v57  ;;  %v6334_v61 = vld [vmem:[#allocation5 + $0x1f8] sm:$0xf0] }
 0x1de   :  { %3415 = vmatpush.bf16.msrb.mxu2 %v7293_v37  ;;  %v9441_v63 = vld [vmem:[#allocation5 + $0x8f4] sm:$0xf0]  ;;  %v6337_v6 = vor.u32 %v9213_v59, %v6334_v61  ;;  %v9181_v59 = vld [vmem:[#allocation5 + $0xdc] sm:$0xf] }
 0x1df   :  { %3402 = vmatpush.bf16.msrb.mxu1 %v7037_v36  ;;  %3428 = vmatpush.bf16.msrb.mxu3 %v7549_v43  ;;  %v7484_v0 = vld [vmem:[#allocation5 + $0xad8] sm:$0xf]  ;;  %v7229_v5 = vor.u32 %v9441_v63, %v7228_v62  ;;  %v9277_v62 = vld [vmem:[#allocation5 + $0x3dc] sm:$0xf] }
 0x1e0   :  { %v9505_v2 = vld [vmem:[#allocation5 + $0xaf4] sm:$0xf0]  ;;  %v6590_v63 = vld [vmem:[#allocation5 + $0x3f8] sm:$0xf0] }
 0x1e1   :  { %3390 = vmatpush.bf16.msrb.mxu0 %v6749_v49  ;;  %v6684_v27 = vld [vmem:[#allocation5 + $0x498] sm:$0xf]  ;;  %v7485_v10 = vor.u32 %v9505_v2, %v7484_v0  ;;  %v3164_v49 = vpop.f32.mrf.mxu2 }
 0x1e2   :  { %3416 = vmatpush.bf16.msrb.mxu2 %v7261_v53  ;;  %v9305_v29 = vld [vmem:[#allocation5 + $0x4b4] sm:$0xf0]  ;;  %v6750_v49 = vld [vmem:[#allocation5 + $0x538] sm:$0xf0] }
 0x1e3   :  { %3403 = vmatpush.bf16.msrb.mxu1 %v7005_v52  ;;  %v6940_v9 = vld [vmem:[#allocation5 + $0x698] sm:$0xf]  ;;  %3429 = vmatpush.bf16.msrb.mxu3 %v7517_v60  ;;  %v6685_v18 = vor.u32 %v9305_v29, %v6684_v27  ;;  %v6593_v27 = vor.u32 %v9277_v62, %v6590_v63  ;;  %v6206_v62 = vld [vmem:[#allocation5 + $0xf8] sm:$0xf0] }
 0x1e4   :  { %v9369_v12 = vld [vmem:[#allocation5 + $0x6b4] sm:$0xf0]  ;;  %v9245_v63 = vld [vmem:[#allocation5 + $0x2dc] sm:$0xf] }
 0x1e5   :  { %v7196_v24 = vld [vmem:[#allocation5 + $0x898] sm:$0xf]  ;;  %3391 = vmatpush.bf16.msrb.mxu0 %v6717_v22  ;;  %v6941_v21 = vor.u32 %v9369_v12, %v6940_v9  ;;  %v6846_v22 = vld [vmem:[#allocation5 + $0x5f8] sm:$0xf0] }
 0x1e6   :  { %v9433_v13 = vld [vmem:[#allocation5 + $0x8b4] sm:$0xf0]  ;;  %3417 = vmatpush.bf16.msrb.mxu2 %v7229_v5  ;;  %v6849_v11 = vor.u32 %v9341_v3, %v6846_v22  ;;  %v6302_v12 = vld [vmem:[#allocation5 + $0x1b8] sm:$0xf0] }
 0x1e7   :  { %v7452_v16 = vld [vmem:[#allocation5 + $0xa98] sm:$0xf]  ;;  %3404 = vmatpush.bf16.msrb.mxu1 %v6973_v4  ;;  %v7197_v23 = vor.u32 %v9433_v13, %v7196_v24  ;;  %3430 = vmatpush.bf16.msrb.mxu3 %v7485_v10  ;;  %v9205_v10 = vld [vmem:[#allocation5 + $0x19c] sm:$0xf] }
 0x1e8   :  { %v9497_v17 = vld [vmem:[#allocation5 + $0xab4] sm:$0xf0]  ;;  %v9269_v24 = vld [vmem:[#allocation5 + $0x39c] sm:$0xf] }
 0x1e9   :  { %v6652_v58 = vld [vmem:[#allocation5 + $0x458] sm:$0xf]  ;;  %v7453_v31 = vor.u32 %v9497_v17, %v7452_v16  ;;  %3392 = vmatpush.bf16.msrb.mxu0 %v6685_v18  ;;  %v6558_v13 = vld [vmem:[#allocation5 + $0x3b8] sm:$0xf0]  ;;  %v6305_v18 = vor.u32 %v9205_v10, %v6302_v12 }
 0x1ea   :  { %v9297_v25 = vld [vmem:[#allocation5 + $0x474] sm:$0xf0]  ;;  %3418 = vmatpush.bf16.msrb.mxu2 %v7197_v23  ;;  %v6814_v16 = vld [vmem:[#allocation5 + $0x5b8] sm:$0xf0]  ;;  %v6561_v32 = vor.u32 %v9269_v24, %v6558_v13 }
 0x1eb   :  { %v6908_v28 = vld [vmem:[#allocation5 + $0x658] sm:$0xf]  ;;  %v6653_v39 = vor.u32 %v9297_v25, %v6652_v58  ;;  %3405 = vmatpush.bf16.msrb.mxu1 %v6941_v21  ;;  %3431 = vmatpush.bf16.msrb.mxu3 %v7453_v31  ;;  %v9197_v58 = vld [vmem:[#allocation5 + $0x15c] sm:$0xf]  ;;  %v6817_v25 = vor.u32 %v9333_v15, %v6814_v16 }
 0x1ec   :  { %v9361_v33 = vld [vmem:[#allocation5 + $0x674] sm:$0xf0]  ;;  %v6526_v31 = vld [vmem:[#allocation5 + $0x378] sm:$0xf0] }
 0x1ed   :  { %v7164_v35 = vld [vmem:[#allocation5 + $0x858] sm:$0xf]  ;;  %v6909_v44 = vor.u32 %v9361_v33, %v6908_v28  ;;  %3393 = vmatpush.bf16.msrb.mxu0 %v6653_v39  ;;  %v6270_v28 = vld [vmem:[#allocation5 + $0x178] sm:$0xf0] }
 0x1ee   :  { %v9425_v36 = vld [vmem:[#allocation5 + $0x874] sm:$0xf0]  ;;  %v9325_v33 = vld [vmem:[#allocation5 + $0x55c] sm:$0xf] }
 0x1ef   :  { %v7420_v37 = vld [vmem:[#allocation5 + $0xa58] sm:$0xf]  ;;  %v7165_v45 = vor.u32 %v9425_v36, %v7164_v35  ;;  %3406 = vmatpush.bf16.msrb.mxu1 %v6909_v44  ;;  %v6782_v35 = vld [vmem:[#allocation5 + $0x578] sm:$0xf0] }
 0x1f0   :  { %v9489_v38 = vld [vmem:[#allocation5 + $0xa74] sm:$0xf0]  ;;  %v6785_v44 = vor.u32 %v9325_v33, %v6782_v35  ;;  %v6718_v3 = vld [vmem:[#allocation5 + $0x4f8] sm:$0xf0] }
 0x1f1   :  { %v6620_v42 = vld [vmem:[#allocation5 + $0x418] sm:$0xf]  ;;  %v7421_v50 = vor.u32 %v9489_v38, %v7420_v37  ;;  %3419 = vmatpush.bf16.msrb.mxu2 %v7165_v45  ;;  %v6273_v37 = vor.u32 %v9197_v58, %v6270_v28  ;;  %v6529_v38 = vor.u32 %v9261_v30, %v6526_v31  ;;  %v6238_v45 = vld [vmem:[#allocation5 + $0x138] sm:$0xf0] }
 0x1f2   :  { %v9289_v43 = vld [vmem:[#allocation5 + $0x434] sm:$0xf0]  ;;  %v9237_v12 = vld [vmem:[#allocation5 + $0x29c] sm:$0xf] }
 0x1f3   :  { %v6876_v46 = vld [vmem:[#allocation5 + $0x618] sm:$0xf]  ;;  %v6621_v60 = vor.u32 %v9289_v43, %v6620_v42  ;;  %3432 = vmatpush.bf16.msrb.mxu3 %v7421_v50  ;;  %v9189_v43 = vld [vmem:[#allocation5 + $0x11c] sm:$0xf] }
 0x1f4   :  { %v9353_v47 = vld [vmem:[#allocation5 + $0x634] sm:$0xf0]  ;;  %v6430_v24 = vld [vmem:[#allocation5 + $0x2b8] sm:$0xf0] }
 0x1f5   :  { %v7132_v48 = vld [vmem:[#allocation5 + $0x818] sm:$0xf]  ;;  %v6877_v0 = vor.u32 %v9353_v47, %v6876_v46  ;;  %3394 = vmatpush.bf16.msrb.mxu0 %v6621_v60  ;;  %v9253_v46 = vld [vmem:[#allocation5 + $0x31c] sm:$0xf] }
 0x1f6   :  { %v9417_v52 = vld [vmem:[#allocation5 + $0x834] sm:$0xf0]  ;;  %v6494_v47 = vld [vmem:[#allocation5 + $0x338] sm:$0xf0] }
 0x1f7   :  { %v7388_v53 = vld [vmem:[#allocation5 + $0xa18] sm:$0xf]  ;;  %v7133_v2 = vor.u32 %v9417_v52, %v7132_v48  ;;  %3407 = vmatpush.bf16.msrb.mxu1 %v6877_v0  ;;  %v9317_v48 = vld [vmem:[#allocation5 + $0x51c] sm:$0xf]  ;;  %v3188_v52 = vpop.f32.mrf.mxu0  ;;  %v6497_v55 = vor.u32 %v9253_v46, %v6494_v47 }
 0x1f8   :  { %v9481_v54 = vld [vmem:[#allocation5 + $0xa34] sm:$0xf0]  ;;  %3395 = vmatmul.bf16.vlgmr.msrb.gmra.mxu0 %v10124_v7  ;;  %v6753_v61 = vor.u32 %v9317_v48, %v6750_v49  ;;  %v6462_v0 = vld [vmem:[#allocation5 + $0x2f8] sm:$0xf0] }
 0x1f9   :  { %v7868_v56 = vld [vmem:[#allocation5 + $0xdd8] sm:$0xf]  ;;  %v7389_v4 = vor.u32 %v9481_v54, %v7388_v53  ;;  %3420 = vmatpush.bf16.msrb.mxu2 %v7133_v2  ;;  %v3201_v53 = vpop.f32.mrf.mxu1  ;;  %v6241_v54 = vor.u32 %v9189_v43, %v6238_v45  ;;  %v9309_v2 = vld [vmem:[#allocation5 + $0x4dc] sm:$0xf] }
 0x1fa   :  { %v9601_v57 = vld [vmem:[#allocation5 + $0xdf4] sm:$0xf0]  ;;  %3408 = vmatmul.bf16.vlgmr.msrb.gmra.mxu1 %v10126_v8  ;;  %v3202_v60 = vadd.f32 %v3201_v53, %v3188_v52  ;;  %v6721_v10 = vor.u32 %v9309_v2, %v6718_v3  ;;  %v9301_v15 = vld [vmem:[#allocation5 + $0x49c] sm:$0xf] }
 0x1fb   :  { %v7869_v5 = vor.u32 %v9601_v57, %v7868_v56  ;;  %v7836_v29 = vld [vmem:[#allocation5 + $0xd98] sm:$0xf]  ;;  %3433 = vmatpush.bf16.msrb.mxu3 %v7389_v4  ;;  %3452 = vmatpush.bf16.msra.mxu1 %v6337_v6  ;;  %v6209_v4 = vor.u32 %v9181_v59, %v6206_v62  ;;  %v6686_v16 = vld [vmem:[#allocation5 + $0x4b8] sm:$0xf0] }
 0x1fc   :  { %v9593_v9 = vld [vmem:[#allocation5 + $0xdb4] sm:$0xf0]  ;;  %3421 = vmatmul.bf16.vlgmr.msrb.gmra.mxu2 %v10138_v40  ;;  %v9165_v31 = vld [vmem:[#allocation5 + $0x5c] sm:$0xf]  ;;  %v6689_v33 = vor.u32 %v9301_v15, %v6686_v16 }
 0x1fd   :  { %3439 = vmatpush.bf16.msra.mxu0 %v7869_v5  ;;  %v7837_v17 = vor.u32 %v9593_v9, %v7836_v29  ;;  %3465 = vmatpush.bf16.msra.mxu2 %v6593_v27  ;;  %v7804_v21 = vld [vmem:[#allocation5 + $0xd58] sm:$0xf]  ;;  %v6465_v5 = vor.u32 %v9245_v63, %v6462_v0  ;;  %v9173_v29 = vld [vmem:[#allocation5 + $0x9c] sm:$0xf]  ;;  %v3214_v9 = vpop.f32.mrf.mxu2 }
 0x1fe   :  { %v9585_v23 = vld [vmem:[#allocation5 + $0xd74] sm:$0xf0]  ;;  %3434 = vmatmul.bf16.vlgmr.msrb.gmra.mxu3 %v10140_v41  ;;  %v3215_v13 = vadd.f32 %v3214_v9, %v3202_v60  ;;  %v6142_v35 = vld [vmem:[#allocation5 + $0x78] sm:$0xf0] }
 0x1ff   :  { %3478 = vmatpush.bf16.msra.mxu3 %v6849_v11  ;;  %v7805_v36 = vor.u32 %v9585_v23, %v7804_v21  ;;  %3453 = vmatpush.bf16.msra.mxu1 %v6305_v18  ;;  %v7772_v39 = vld [vmem:[#allocation5 + $0xd18] sm:$0xf]  ;;  %v6174_v11 = vld [vmem:[#allocation5 + $0xb8] sm:$0xf0]  ;;  %v6145_v45 = vor.u32 %v9165_v31, %v6142_v35 }
 0x200   :  { %v9577_v42 = vld [vmem:[#allocation5 + $0xd34] sm:$0xf0]  ;;  %v6177_v58 = vor.u32 %v9173_v29, %v6174_v11  ;;  %v9157_v47 = vld [vmem:[#allocation5 + $0x1c] sm:$0xf] }
 0x201   :  { %3440 = vmatpush.bf16.msra.mxu0 %v7837_v17  ;;  %3466 = vmatpush.bf16.msra.mxu2 %v6561_v32  ;;  %v7773_v50 = vor.u32 %v9577_v42, %v7772_v39  ;;  %v7740_v56 = vld [vmem:[#allocation5 + $0xcd8] sm:$0xf]  ;;  %v3227_v17 = vpop.f32.mrf.mxu3  ;;  %v3190_v32 = vpop.f32.mrf.mxu0  ;;  %v6654_v39 = vld [vmem:[#allocation5 + $0x478] sm:$0xf0] }
 0x202   :  { %v9569_v57 = vld [vmem:[#allocation5 + $0xcf4] sm:$0xf0]  ;;  %v3203_v21 = vpop.f32.mrf.mxu1  ;;  %v10212_v23 = vadd.f32 %v3227_v17, %v3215_v13  ;;  %v6110_v48 = vld [vmem:[#allocation5 + $0x38] sm:$0xf0] }
 0x203   :  { %3479 = vmatpush.bf16.msra.mxu3 %v6817_v25  ;;  %3454 = vmatpush.bf16.msra.mxu1 %v6273_v37  ;;  %v7741_v22 = vor.u32 %v9569_v57, %v7740_v56  ;;  %v7708_v6 = vld [vmem:[#allocation5 + $0xc98] sm:$0xf]  ;;  %v6433_v25 = vor.u32 %v9237_v12, %v6430_v24  ;;  %v6398_v37 = vld [vmem:[#allocation5 + $0x278] sm:$0xf0]  ;;  %v6113_v2 = vor.u32 %v9157_v47, %v6110_v48 }
 0x204   :  { %v9561_v27 = vld [vmem:[#allocation5 + $0xcb4] sm:$0xf0]  ;;  %v9221_v49 = vld [vmem:[#allocation5 + $0x21c] sm:$0xf] }
 0x205   :  { %3441 = vmatpush.bf16.msra.mxu0 %v7805_v36  ;;  %3467 = vmatpush.bf16.msra.mxu2 %v6529_v38  ;;  %v7709_v18 = vor.u32 %v9561_v27, %v7708_v6  ;;  %v7676_v28 = vld [vmem:[#allocation5 + $0xc58] sm:$0xf]  ;;  %v9229_v36 = vld [vmem:[#allocation5 + $0x25c] sm:$0xf] }
 0x206   :  { %v9553_v30 = vld [vmem:[#allocation5 + $0xc74] sm:$0xf0]  ;;  %v9293_v38 = vld [vmem:[#allocation5 + $0x45c] sm:$0xf]  ;;  %v6401_v46 = vor.u32 %v9229_v36, %v6398_v37 }
 0x207   :  { %3480 = vmatpush.bf16.msra.mxu3 %v6785_v44  ;;  %3455 = vmatpush.bf16.msra.mxu1 %v6241_v54  ;;  %v7677_v42 = vor.u32 %v9553_v30, %v7676_v28  ;;  %v7644_v43 = vld [vmem:[#allocation5 + $0xc18] sm:$0xf]  ;;  %v6657_v52 = vor.u32 %v9293_v38, %v6654_v39  ;;  %v6366_v53 = vld [vmem:[#allocation5 + $0x238] sm:$0xf0] }
 0x208   :  { %v9545_v44 = vld [vmem:[#allocation5 + $0xc34] sm:$0xf0]  ;;  %v9285_v54 = vld [vmem:[#allocation5 + $0x41c] sm:$0xf]  ;;  %v6369_v3 = vor.u32 %v9221_v49, %v6366_v53 }
 0x209   :  { %3442 = vmatpush.bf16.msra.mxu0 %v7773_v50  ;;  %3468 = vmatpush.bf16.msra.mxu2 %v6497_v55  ;;  %v3216_v50 = vpop.f32.mrf.mxu2  ;;  %v6622_v55 = vld [vmem:[#allocation5 + $0x438] sm:$0xf0]  ;;  %v3229_v60 = vpop.f32.mrf.mxu3 }
 0x20a   :  { %v9405_v56 = vld [vmem:[#allocation5 + $0x7dc] sm:$0xf] }
 0x20b   :  { %3481 = vmatpush.bf16.msra.mxu3 %v6753_v61  ;;  %3456 = vmatpush.bf16.msra.mxu1 %v6209_v4  ;;  %v7102_v57 = vld [vmem:[#allocation5 + $0x7f8] sm:$0xf0]  ;;  %v7645_v61 = vor.u32 %v9545_v44, %v7644_v43 }
 0x20c   :  { %v9469_v59 = vld [vmem:[#allocation5 + $0x9dc] sm:$0xf]  ;;  %v7105_v6 = vor.u32 %v9405_v56, %v7102_v57 }
 0x20d   :  { %3443 = vmatpush.bf16.msra.mxu0 %v7741_v22  ;;  %3469 = vmatpush.bf16.msra.mxu2 %v6465_v5  ;;  %v7358_v62 = vld [vmem:[#allocation5 + $0x9f8] sm:$0xf0]  ;;  %v6625_v5 = vor.u32 %v9285_v54, %v6622_v55 }
 0x20e   :  { %v9533_v63 = vld [vmem:[#allocation5 + $0xbdc] sm:$0xf]  ;;  %v7361_v27 = vor.u32 %v9469_v59, %v7358_v62 }
 0x20f   :  { %3482 = vmatpush.bf16.msra.mxu3 %v6721_v10  ;;  %3457 = vmatpush.bf16.msra.mxu1 %v6177_v58  ;;  %v7614_v0 = vld [vmem:[#allocation5 + $0xbf8] sm:$0xf0] }
 0x210   :  { %v9597_v22 = vld [vmem:[#allocation5 + $0xddc] sm:$0xf]  ;;  %v7617_v29 = vor.u32 %v9533_v63, %v7614_v0  ;;  %v3253_v53 = vpop.f32.mrf.mxu1 }
 0x211   :  { %3444 = vmatpush.bf16.msra.mxu0 %v7709_v18  ;;  %3470 = vmatpush.bf16.msra.mxu2 %v6433_v25  ;;  %v7870_v4 = vld [vmem:[#allocation5 + $0xdf8] sm:$0xf0] }
 0x212   :  { %v9397_v9 = vld [vmem:[#allocation5 + $0x79c] sm:$0xf]  ;;  %v7873_v12 = vor.u32 %v9597_v22, %v7870_v4 }
 0x213   :  { %3483 = vmatpush.bf16.msra.mxu3 %v6689_v33  ;;  %3458 = vmatpush.bf16.msra.mxu1 %v6145_v45  ;;  %v7070_v10 = vld [vmem:[#allocation5 + $0x7b8] sm:$0xf0] }
 0x214   :  { %v9461_v11 = vld [vmem:[#allocation5 + $0x99c] sm:$0xf]  ;;  %v7073_v18 = vor.u32 %v9397_v9, %v7070_v10 }
 0x215   :  { %3445 = vmatpush.bf16.msra.mxu0 %v7677_v42  ;;  %3471 = vmatpush.bf16.msra.mxu2 %v6401_v46  ;;  %v7326_v24 = vld [vmem:[#allocation5 + $0x9b8] sm:$0xf0] }
 0x216   :  { %v9525_v13 = vld [vmem:[#allocation5 + $0xb9c] sm:$0xf]  ;;  %v7329_v32 = vor.u32 %v9461_v11, %v7326_v24 }
 0x217   :  { %3484 = vmatpush.bf16.msra.mxu3 %v6657_v52  ;;  %v7582_v15 = vld [vmem:[#allocation5 + $0xbb8] sm:$0xf0]  ;;  %3459 = vmatpush.bf16.msra.mxu1 %v6113_v2  ;;  %v3240_v52 = vpop.f32.mrf.mxu0 }
 0x218   :  { %v9589_v16 = vld [vmem:[#allocation5 + $0xd9c] sm:$0xf]  ;;  %v7585_v21 = vor.u32 %v9525_v13, %v7582_v15  ;;  %v3241_v55 = vadd.f32 %v3240_v52, %v10212_v23 }
 0x219   :  { %3446 = vmatpush.bf16.msra.mxu0 %v7645_v61  ;;  %3472 = vmatpush.bf16.msra.mxu2 %v6369_v3  ;;  %v7838_v17 = vld [vmem:[#allocation5 + $0xdb8] sm:$0xf0] }
 0x21a   :  { %v9389_v58 = vld [vmem:[#allocation5 + $0x75c] sm:$0xf]  ;;  %v7841_v30 = vor.u32 %v9589_v16, %v7838_v17  ;;  %3460 = vmatmul.bf16.vlgmr.msra.gmra.mxu1 %v10128_v14  ;;  %v3254_v3 = vadd.f32 %v3253_v53, %v3241_v55  ;;  %v10221_v16 = vpop.f32.mrf.mxu3  ;;  %v7988_v53 = vld [vmem:[#allocation7 + $0xe0] sm:$0xf] }
 0x21b   :  { %3485 = vmatpush.bf16.msra.mxu3 %v6625_v5  ;;  %3504 = vmatpush.bf16.msrb.mxu1 %v7361_v27  ;;  %v7038_v25 = vld [vmem:[#allocation5 + $0x778] sm:$0xf0] }
 0x21c   :  { %v9453_v28 = vld [vmem:[#allocation5 + $0x95c] sm:$0xf]  ;;  %3447 = vmatmul.bf16.vlgmr.msra.gmra.mxu0 %v10136_v34  ;;  %3473 = vmatmul.bf16.vlgmr.msra.gmra.mxu2 %v10131_v19  ;;  %v7041_v38 = vor.u32 %v9389_v58, %v7038_v25 }
 0x21d   :  { %3491 = vmatpush.bf16.msrb.mxu0 %v7105_v6  ;;  %3517 = vmatpush.bf16.msrb.mxu2 %v7617_v29  ;;  %v7294_v31 = vld [vmem:[#allocation5 + $0x978] sm:$0xf0]  ;;  %v3266_v6 = vpop.f32.mrf.mxu2 }
 0x21e   :  { %v9517_v33 = vld [vmem:[#allocation5 + $0xb5c] sm:$0xf]  ;;  %3486 = vmatmul.bf16.vlgmr.msra.gmra.mxu3 %v10124_v7  ;;  %v7297_v39 = vor.u32 %v9453_v28, %v7294_v31  ;;  %v10219_v10 = vadd.f32 %v3266_v6, %v3254_v3  ;;  %v9628_v6 = vld [vmem:[#allocation7 + $0xcc] sm:$0xf0] }
 0x21f   :  { %3530 = vmatpush.bf16.msrb.mxu3 %v7873_v12  ;;  %v7550_v35 = vld [vmem:[#allocation5 + $0xb78] sm:$0xf0]  ;;  %3505 = vmatpush.bf16.msrb.mxu1 %v7329_v32  ;;  %v3255_v32 = vpop.f32.mrf.mxu1 }
 0x220   :  { %v9581_v36 = vld [vmem:[#allocation5 + $0xd5c] sm:$0xf]  ;;  %v7553_v42 = vor.u32 %v9517_v33, %v7550_v35  ;;  %v9624_v32 = vld [vmem:[#allocation7 + $0xac] sm:$0xf0]  ;;  %vm3547_vm4 = vcmp.gt.f32.partialorder %v10219_v10, 0.0 }
 0x221   :  { %v7806_v37 = vld [vmem:[#allocation5 + $0xd78] sm:$0xf0]  ;;  %3492 = vmatpush.bf16.msrb.mxu0 %v7073_v18  ;;  %3518 = vmatpush.bf16.msrb.mxu2 %v7585_v21  ;;  %v3242_v18 = vpop.f32.mrf.mxu0 }
 0x222   :  { %v9381_v43 = vld [vmem:[#allocation5 + $0x71c] sm:$0xf]  ;;  %v7809_v46 = vor.u32 %v9581_v36, %v7806_v37  ;;  %v3281_v55 = vpop.f32.mrf.mxu3  ;;  %v7956_v18 = vld [vmem:[#allocation7 + $0xa0] sm:$0xf] }
 0x223   :  { %v7006_v44 = vld [vmem:[#allocation5 + $0x738] sm:$0xf0]  ;;  %3531 = vmatpush.bf16.msrb.mxu3 %v7841_v30  ;;  %3506 = vmatpush.bf16.msrb.mxu1 %v7297_v39  ;;  %v8308_v55 = vld [vmem:[#allocation7 + $0x360] sm:$0xf] }
 0x224   :  { %v9445_v45 = vld [vmem:[#allocation5 + $0x91c] sm:$0xf]  ;;  %v7009_v7 = vor.u32 %v9381_v43, %v7006_v44 }
 0x225   :  { %v7262_v47 = vld [vmem:[#allocation5 + $0x938] sm:$0xf0]  ;;  %3493 = vmatpush.bf16.msrb.mxu0 %v7041_v38  ;;  %3519 = vmatpush.bf16.msrb.mxu2 %v7553_v42 }
 0x226   :  { %v9509_v48 = vld [vmem:[#allocation5 + $0xb1c] sm:$0xf]  ;;  %v7265_v14 = vor.u32 %v9445_v45, %v7262_v47 }
 0x227   :  { %v7518_v19 = vld [vmem:[#allocation5 + $0xb38] sm:$0xf0]  ;;  %3532 = vmatpush.bf16.msrb.mxu3 %v7809_v46 }
 0x228   :  { %v9573_v49 = vld [vmem:[#allocation5 + $0xd1c] sm:$0xf]  ;;  %v7521_v54 = vor.u32 %v9509_v48, %v7518_v19  ;;  %3507 = vmatpush.bf16.msrb.mxu1 %v7265_v14  ;;  %v3268_v19 = vpop.f32.mrf.mxu2  ;;  %v9632_v14 = vld [vmem:[#allocation7 + $0xec] sm:$0xf0] }
 0x229   :  { %v7774_v50 = vld [vmem:[#allocation5 + $0xd38] sm:$0xf0]  ;;  %3494 = vmatpush.bf16.msrb.mxu0 %v7009_v7  ;;  %v7989_v3 = vor.u32 %v9632_v14, %v7988_v53  ;;  %v7924_v19 = vld [vmem:[#allocation7 + $0x60] sm:$0xf]  ;;  %v9648_v53 = vld [vmem:[#allocation7 + $0x16c] sm:$0xf0] }
 0x22a   :  { %v9373_v56 = vld [vmem:[#allocation5 + $0x6dc] sm:$0xf]  ;;  %v7777_v60 = vor.u32 %v9573_v49, %v7774_v50  ;;  %3520 = vmatpush.bf16.msrb.mxu2 %v7521_v54  ;;  %v8116_v54 = vld [vmem:[#allocation7 + $0x1e0] sm:$0xf] }
 0x22b   :  { %v6974_v57 = vld [vmem:[#allocation5 + $0x6f8] sm:$0xf0]  ;;  %v8180_v14 = vld [vmem:[#allocation7 + $0x260] sm:$0xf] }
 0x22c   :  { %v9437_v59 = vld [vmem:[#allocation5 + $0x8dc] sm:$0xf]  ;;  %v6977_v22 = vor.u32 %v9373_v56, %v6974_v57  ;;  %3533 = vmatpush.bf16.msrb.mxu3 %v7777_v60  ;;  %v9664_v57 = vld [vmem:[#allocation7 + $0x1ec] sm:$0xf0] }
 0x22d   :  { %v7230_v61 = vld [vmem:[#allocation5 + $0x8f8] sm:$0xf0]  ;;  %v9696_v60 = vld [vmem:[#allocation7 + $0x2ec] sm:$0xf0] }
 0x22e   :  { %v9501_v62 = vld [vmem:[#allocation5 + $0xadc] sm:$0xf]  ;;  %v7233_v4 = vor.u32 %v9437_v59, %v7230_v61  ;;  %3495 = vmatpush.bf16.msrb.mxu0 %v6977_v22  ;;  %v8244_v59 = vld [vmem:[#allocation7 + $0x2e0] sm:$0xf]  ;;  %v8117_v22 = vor.u32 %v9664_v57, %v8116_v54  ;;  %v9680_v54 = vld [vmem:[#allocation7 + $0x26c] sm:$0xf0] }
 0x22f   :  { %v7486_v63 = vld [vmem:[#allocation5 + $0xaf8] sm:$0xf0] }
 0x230   :  { %v9565_v0 = vld [vmem:[#allocation5 + $0xcdc] sm:$0xf]  ;;  %v7489_v5 = vor.u32 %v9501_v62, %v7486_v63  ;;  %3508 = vmatpush.bf16.msrb.mxu1 %v7233_v4  ;;  %v8372_v63 = vld [vmem:[#allocation7 + $0x3e0] sm:$0xf]  ;;  %v8245_v4 = vor.u32 %v9696_v60, %v8244_v59  ;;  %v8181_v60 = vor.u32 %v9680_v54, %v8180_v14 }
 0x231   :  { %v7742_v2 = vld [vmem:[#allocation5 + $0xcf8] sm:$0xf0] }
 0x232   :  { %v9365_v27 = vld [vmem:[#allocation5 + $0x69c] sm:$0xf]  ;;  %v7745_v9 = vor.u32 %v9565_v0, %v7742_v2  ;;  %3521 = vmatpush.bf16.msrb.mxu2 %v7489_v5  ;;  %v9728_v0 = vld [vmem:[#allocation7 + $0x3ec] sm:$0xf0]  ;;  %v7972_v5 = vld [vmem:[#allocation7 + $0xc0] sm:$0xf] }
 0x233   :  { %v6942_v23 = vld [vmem:[#allocation5 + $0x6b8] sm:$0xf0] }
 0x234   :  { %v9429_v29 = vld [vmem:[#allocation5 + $0x89c] sm:$0xf]  ;;  %v6945_v17 = vor.u32 %v9365_v27, %v6942_v23  ;;  %3534 = vmatpush.bf16.msrb.mxu3 %v7745_v9  ;;  %v8100_v27 = vld [vmem:[#allocation7 + $0x1c0] sm:$0xf]  ;;  %v8373_v23 = vor.u32 %v9728_v0, %v8372_v63 }
 0x235   :  { %v7198_v11 = vld [vmem:[#allocation5 + $0x8b8] sm:$0xf0]  ;;  %v8228_v9 = vld [vmem:[#allocation7 + $0x2c0] sm:$0xf] }
 0x236   :  { %v9493_v12 = vld [vmem:[#allocation5 + $0xa9c] sm:$0xf]  ;;  %v7201_v21 = vor.u32 %v9429_v29, %v7198_v11  ;;  %3496 = vmatpush.bf16.msrb.mxu0 %v6945_v17  ;;  %v9660_v29 = vld [vmem:[#allocation7 + $0x1cc] sm:$0xf0]  ;;  %v8036_v63 = vld [vmem:[#allocation7 + $0x140] sm:$0xf] }
 0x237   :  { %v7454_v24 = vld [vmem:[#allocation5 + $0xab8] sm:$0xf0]  ;;  %v9692_v11 = vld [vmem:[#allocation7 + $0x2cc] sm:$0xf0] }
 0x238   :  { %v9557_v13 = vld [vmem:[#allocation5 + $0xc9c] sm:$0xf]  ;;  %v7457_v58 = vor.u32 %v9493_v12, %v7454_v24  ;;  %3509 = vmatpush.bf16.msrb.mxu1 %v7201_v21  ;;  %v8356_v12 = vld [vmem:[#allocation7 + $0x3c0] sm:$0xf]  ;;  %v9724_v24 = vld [vmem:[#allocation7 + $0x3cc] sm:$0xf0]  ;;  %v8229_v17 = vor.u32 %v9692_v11, %v8228_v9  ;;  %v10231_v0 = vpop.f32.mrf.mxu2 }
 0x239   :  { %v7710_v15 = vld [vmem:[#allocation5 + $0xcb8] sm:$0xf0]  ;;  %v8084_v21 = vld [vmem:[#allocation7 + $0x1a0] sm:$0xf] }
 0x23a   :  { %v9357_v25 = vld [vmem:[#allocation5 + $0x65c] sm:$0xf]  ;;  %v7713_v31 = vor.u32 %v9557_v13, %v7710_v15  ;;  %3522 = vmatpush.bf16.msrb.mxu2 %v7457_v58  ;;  %v7973_v13 = vor.u32 %v9628_v6, %v7972_v5  ;;  %v8101_v15 = vor.u32 %v9660_v29, %v8100_v27  ;;  %v8357_v58 = vor.u32 %v9724_v24, %v8356_v12  ;;  %v10233_v5 = vpop.f32.mrf.mxu3  ;;  %v8292_v6 = vld [vmem:[#allocation7 + $0x340] sm:$0xf]  ;;  %v9708_v27 = vld [vmem:[#allocation7 + $0x34c] sm:$0xf0] }
 0x23b   :  { %v6910_v28 = vld [vmem:[#allocation5 + $0x678] sm:$0xf0]  ;;  %v7892_v24 = vld [vmem:[#allocation7 + $0x20] sm:$0xf] }
 0x23c   :  { %v9421_v30 = vld [vmem:[#allocation5 + $0x85c] sm:$0xf]  ;;  %v6913_v39 = vor.u32 %v9357_v25, %v6910_v28  ;;  %3535 = vmatpush.bf16.msrb.mxu3 %v7713_v31  ;;  %v9656_v25 = vld [vmem:[#allocation7 + $0x1ac] sm:$0xf0]  ;;  %v8212_v28 = vld [vmem:[#allocation7 + $0x2a0] sm:$0xf] }
 0x23d   :  { %v7166_v33 = vld [vmem:[#allocation5 + $0x878] sm:$0xf0]  ;;  %v8340_v31 = vld [vmem:[#allocation7 + $0x3a0] sm:$0xf] }
 0x23e   :  { %v9485_v35 = vld [vmem:[#allocation5 + $0xa5c] sm:$0xf]  ;;  %v7169_v44 = vor.u32 %v9421_v30, %v7166_v33  ;;  %3497 = vmatpush.bf16.msrb.mxu0 %v6913_v39  ;;  %v9688_v30 = vld [vmem:[#allocation7 + $0x2ac] sm:$0xf0]  ;;  %v8068_v39 = vld [vmem:[#allocation7 + $0x180] sm:$0xf] }
 0x23f   :  { %v7422_v36 = vld [vmem:[#allocation5 + $0xa78] sm:$0xf0]  ;;  %v9720_v33 = vld [vmem:[#allocation7 + $0x3ac] sm:$0xf0] }
 0x240   :  { %v9549_v37 = vld [vmem:[#allocation5 + $0xc5c] sm:$0xf]  ;;  %v7425_v45 = vor.u32 %v9485_v35, %v7422_v36  ;;  %3510 = vmatpush.bf16.msrb.mxu1 %v7169_v44  ;;  %v7957_v35 = vor.u32 %v9624_v32, %v7956_v18  ;;  %v8085_v36 = vor.u32 %v9656_v25, %v8084_v21  ;;  %v8196_v44 = vld [vmem:[#allocation7 + $0x280] sm:$0xf]  ;;  %v8293_v18 = vor.u32 %v9708_v27, %v8292_v6  ;;  %v9640_v32 = vld [vmem:[#allocation7 + $0x12c] sm:$0xf0] }
 0x241   :  { %v7678_v38 = vld [vmem:[#allocation5 + $0xc78] sm:$0xf0]  ;;  %v8148_v21 = vld [vmem:[#allocation7 + $0x220] sm:$0xf]  ;;  %v3552_v25 = vmul.f32 0.2, %v10181_v1 }
 0x242   :  { %v9349_v42 = vld [vmem:[#allocation5 + $0x61c] sm:$0xf]  ;;  %v7681_v49 = vor.u32 %v9549_v37, %v7678_v38  ;;  %3523 = vmatpush.bf16.msrb.mxu2 %v7425_v45  ;;  %v8213_v37 = vor.u32 %v9688_v30, %v8212_v28  ;;  %v7940_v38 = vld [vmem:[#allocation7 + $0x80] sm:$0xf]  ;;  %v9704_v30 = vld [vmem:[#allocation7 + $0x32c] sm:$0xf0] }
 0x243   :  { %v6878_v43 = vld [vmem:[#allocation5 + $0x638] sm:$0xf0]  ;;  %v8324_v45 = vld [vmem:[#allocation7 + $0x380] sm:$0xf] }
 0x244   :  { %v9413_v46 = vld [vmem:[#allocation5 + $0x81c] sm:$0xf]  ;;  %v6881_v56 = vor.u32 %v9349_v42, %v6878_v43  ;;  %3536 = vmatpush.bf16.msrb.mxu3 %v7681_v49  ;;  %v8341_v42 = vor.u32 %v9720_v33, %v8340_v31  ;;  %v9652_v43 = vld [vmem:[#allocation7 + $0x18c] sm:$0xf0]  ;;  %v8276_v28 = vld [vmem:[#allocation7 + $0x320] sm:$0xf] }
 0x245   :  { %v7134_v47 = vld [vmem:[#allocation5 + $0x838] sm:$0xf0]  ;;  %v9616_v49 = vld [vmem:[#allocation7 + $0x6c] sm:$0xf0]  ;;  %v3553_v31 = vmul.f32 0.2, %v10197_v51 }
 0x246   :  { %v9477_v48 = vld [vmem:[#allocation5 + $0xa1c] sm:$0xf]  ;;  %v7137_v61 = vor.u32 %v9413_v46, %v7134_v47  ;;  %3498 = vmatpush.bf16.msrb.mxu0 %v6881_v56  ;;  %v10227_v47 = vpop.f32.mrf.mxu0  ;;  %v9712_v56 = vld [vmem:[#allocation7 + $0x36c] sm:$0xf0]  ;;  %v7925_v57 = vor.u32 %v9616_v49, %v7924_v19  ;;  %v3554_v19 = vmul.f32 0.2, %v10206_v20 }
 0x247   :  { %v7390_v50 = vld [vmem:[#allocation5 + $0xa38] sm:$0xf0] }
 0x248   :  { %v9541_v7 = vld [vmem:[#allocation5 + $0xc1c] sm:$0xf]  ;;  %v7393_v62 = vor.u32 %v9477_v48, %v7390_v50  ;;  %3511 = vmatpush.bf16.msrb.mxu1 %v7137_v61  ;;  %v8052_v50 = vld [vmem:[#allocation7 + $0x160] sm:$0xf] }
 0x249   :  { %v7646_v52 = vld [vmem:[#allocation5 + $0xc38] sm:$0xf0]  ;;  %3499 = vmatmul.bf16.vlgmr.msrb.gmra.mxu0 %v10126_v8  ;;  %v9620_v8 = vld [vmem:[#allocation7 + $0x8c] sm:$0xf0]  ;;  %v8053_v59 = vor.u32 %v9648_v53, %v8052_v50  ;;  %v7908_v61 = vld [vmem:[#allocation7 + $0x40] sm:$0xf] }
 0x24a   :  { %v7649_v2 = vor.u32 %v9541_v7, %v7646_v52  ;;  %3524 = vmatpush.bf16.msrb.mxu2 %v7393_v62  ;;  %5111 = vmatpush.bf16.msra.mxu0 %v7989_v3  ;;  %v7941_v46 = vor.u32 %v9620_v8, %v7940_v38  ;;  %v10229_v7 = vpop.f32.mrf.mxu1  ;;  %v9612_v62 = vld [vmem:[#allocation7 + $0x4c] sm:$0xf0]  ;;  %v8004_v8 = vld [vmem:[#allocation7 + $0x100] sm:$0xf] }
 0x24b   :  { %3512 = vmatmul.bf16.vlgmr.msrb.gmra.mxu1 %v10138_v40  ;;  %v9684_v40 = vld [vmem:[#allocation7 + $0x28c] sm:$0xf0]  ;;  %v7909_v29 = vor.u32 %v9612_v62, %v7908_v61  ;;  %v8628_v50 = vld [vmem:[#allocation7 + $0x5e0] sm:$0xf]  ;;  %v3561_v61 = vsel %vm3545_vm2, %v10197_v51, %v3553_v31 }
 0x24c   :  { %3537 = vmatpush.bf16.msrb.mxu3 %v7649_v2  ;;  %5124 = vmatpush.bf16.msra.mxu1 %v8117_v22  ;;  %v8197_v48 = vor.u32 %v9684_v40, %v8196_v44  ;;  %v8309_v2 = vor.u32 %v9712_v56, %v8308_v55  ;;  %v9644_v3 = vld [vmem:[#allocation7 + $0x14c] sm:$0xf0]  ;;  %v8164_v22 = vld [vmem:[#allocation7 + $0x240] sm:$0xf]  ;;  %v10259_v27 = vpack.c.bf16 %v3561_v61, %v3561_v61 }
 0x24d   :  { %3525 = vmatmul.bf16.vlgmr.msrb.gmra.mxu2 %v10140_v41  ;;  %v9716_v41 = vld [vmem:[#allocation7 + $0x38c] sm:$0xf0]  ;;  %v8037_v11 = vor.u32 %v9644_v3, %v8036_v63  ;;  %v8132_v44 = vld [vmem:[#allocation7 + $0x200] sm:$0xf] }
 0x24e   :  { %5137 = vmatpush.bf16.msra.mxu2 %v8245_v4  ;;  %5112 = vmatpush.bf16.msra.mxu0 %v7973_v13  ;;  %v8325_v52 = vor.u32 %v9716_v41, %v8324_v45  ;;  %v9676_v4 = vld [vmem:[#allocation7 + $0x24c] sm:$0xf0]  ;;  %v3294_v9 = vpop.f32.mrf.mxu0  ;;  %v8260_v45 = vld [vmem:[#allocation7 + $0x300] sm:$0xf]  ;;  %v3333_v41 = vpop.f32.mrf.mxu3 }
 0x24f   :  { %3538 = vmatmul.bf16.vlgmr.msrb.gmra.mxu3 %v10136_v34  ;;  %v8069_v34 = vor.u32 %v9652_v43, %v8068_v39  ;;  %v8165_v12 = vor.u32 %v9676_v4, %v8164_v22  ;;  %v9608_v13 = vld [vmem:[#allocation7 + $0x2c] sm:$0xf0]  ;;  %v8277_v43 = vor.u32 %v9704_v30, %v8276_v28  ;;  %v8484_v63 = vld [vmem:[#allocation7 + $0x4c0] sm:$0xf] }
 0x250   :  { %5150 = vmatpush.bf16.msra.mxu3 %v8373_v23  ;;  %5125 = vmatpush.bf16.msra.mxu1 %v8101_v15  ;;  %v3551_v23 = vmul.f32 0.2, %v10165_v26  ;;  %v8020_v15 = vld [vmem:[#allocation7 + $0x120] sm:$0xf]  ;;  %v7893_v33 = vor.u32 %v9608_v13, %v7892_v24  ;;  %v9604_v38 = vld [vmem:[#allocation7 + $0xc] sm:$0xf0] }
 0x251   :  { %v9636_v39 = vld [vmem:[#allocation7 + $0x10c] sm:$0xf0]  ;;  %v8612_v3 = vld [vmem:[#allocation7 + $0x5c0] sm:$0xf] }
 0x252   :  { %5138 = vmatpush.bf16.msra.mxu2 %v8229_v17  ;;  %5113 = vmatpush.bf16.msra.mxu0 %v7957_v35  ;;  %v3307_v17 = vpop.f32.mrf.mxu1  ;;  %v7876_v35 = vld [vmem:[#allocation7] sm:$0xf]  ;;  %v9668_v40 = vld [vmem:[#allocation7 + $0x20c] sm:$0xf0]  ;;  %v8005_v53 = vor.u32 %v9636_v39, %v8004_v8  ;;  %v3559_v54 = vsel %vm3543_vm0, %v10165_v26, %v3551_v23  ;;  %v3562_v26 = vsel %vm3546_vm3, %v10206_v20, %v3554_v19  ;;  %vm6073_vm3 = vcmask 7168  }
 0x253   :  { %v7877_v49 = vor.u32 %v9604_v38, %v7876_v35  ;;  %v8133_v14 = vor.u32 %v9668_v40, %v8132_v44  ;;  %v9788_v22 = vld [vmem:[#allocation7 + $0x5cc] sm:$0xf0]  ;;  %v10255_v4 = vpack.c.bf16 %v3559_v54, %v3559_v54  ;;  %v8740_v23 = vld [vmem:[#allocation7 + $0x6c0] sm:$0xf]  ;;  %v10261_v9 = vpack.c.bf16 %v3562_v26, %v3562_v26 }
 0x254   :  { %5151 = vmatpush.bf16.msra.mxu3 %v8357_v58  ;;  %5126 = vmatpush.bf16.msra.mxu1 %v8085_v36  ;;  %v9672_v58 = vld [vmem:[#allocation7 + $0x22c] sm:$0xf0]  ;;  %v8021_v36 = vor.u32 %v9640_v32, %v8020_v15  ;;  %v3293_v20 = vadd.f32 %v10227_v47, %v10221_v16  ;;  %v8596_v13 = vld [vmem:[#allocation7 + $0x5a0] sm:$0xf]  ;;  %v3555_v26 = vmul.f32 0.2, %v10219_v10 }
 0x255   :  { %v9752_v24 = vld [vmem:[#allocation7 + $0x4ac] sm:$0xf0]  ;;  %v8724_v32 = vld [vmem:[#allocation7 + $0x6a0] sm:$0xf] }
 0x256   :  { %5139 = vmatpush.bf16.msra.mxu2 %v8213_v37  ;;  %5114 = vmatpush.bf16.msra.mxu0 %v7941_v46  ;;  %v8149_v37 = vor.u32 %v9672_v58, %v8148_v21  ;;  %v9700_v46 = vld [vmem:[#allocation7 + $0x30c] sm:$0xf0]  ;;  %v3306_v47 = vadd.f32 %v10229_v7, %v3293_v20  ;;  %v8452_v58 = vld [vmem:[#allocation7 + $0x480] sm:$0xf]  ;;  %v3344_v31 = vpop.f32.mrf.mxu0 }
 0x257   :  { %v8261_v55 = vor.u32 %v9700_v46, %v8260_v45  ;;  %v9784_v15 = vld [vmem:[#allocation7 + $0x5ac] sm:$0xf0]  ;;  %v8580_v28 = vld [vmem:[#allocation7 + $0x580] sm:$0xf] }
 0x258   :  { %5152 = vmatpush.bf16.msra.mxu3 %v8341_v42  ;;  %5127 = vmatpush.bf16.msra.mxu1 %v8069_v34  ;;  %v3320_v42 = vpop.f32.mrf.mxu2  ;;  %v8500_v34 = vld [vmem:[#allocation7 + $0x4e0] sm:$0xf]  ;;  %v9816_v16 = vld [vmem:[#allocation7 + $0x6ac] sm:$0xf0]  ;;  %v8597_v21 = vor.u32 %v9784_v15, %v8596_v13  ;;  %v3319_v8 = vadd.f32 %v10231_v0, %v3306_v47  ;;  %v9630_v13 = vld [vmem:[#allocation7 + $0xe4] sm:$0xf] }
 0x259   :  { %v9780_v30 = vld [vmem:[#allocation7 + $0x58c] sm:$0xf0]  ;;  %v8436_v42 = vld [vmem:[#allocation7 + $0x460] sm:$0xf]  ;;  %v7990_v15 = vld [vmem:[#allocation7 + $0xf0] sm:$0xf0] }
 0x25a   :  { %5140 = vmatpush.bf16.msra.mxu2 %v8197_v48  ;;  %5115 = vmatpush.bf16.msra.mxu0 %v7925_v57  ;;  %v9760_v48 = vld [vmem:[#allocation7 + $0x4ec] sm:$0xf0]  ;;  %v8756_v57 = vld [vmem:[#allocation7 + $0x6e0] sm:$0xf]  ;;  %v8581_v39 = vor.u32 %v9780_v30, %v8580_v28  ;;  %v9662_v47 = vld [vmem:[#allocation7 + $0x1e4] sm:$0xf] }
 0x25b   :  { %v8501_v56 = vor.u32 %v9760_v48, %v8500_v34  ;;  %v9812_v38 = vld [vmem:[#allocation7 + $0x68c] sm:$0xf0]  ;;  %v8692_v41 = vld [vmem:[#allocation7 + $0x660] sm:$0xf]  ;;  %v3332_v34 = vadd.f32 %v10233_v5, %v3319_v8  ;;  %v10274_v54 = vpop.f32.mrf.mxu3  ;;  %v8246_v8 = vld [vmem:[#allocation7 + $0x2f0] sm:$0xf0] }
 0x25c   :  { %5153 = vmatpush.bf16.msra.mxu3 %v8325_v52  ;;  %5128 = vmatpush.bf16.msra.mxu1 %v8053_v59  ;;  %v9792_v52 = vld [vmem:[#allocation7 + $0x5ec] sm:$0xf0]  ;;  %v8420_v19 = vld [vmem:[#allocation7 + $0x440] sm:$0xf] }
 0x25d   :  { %v9824_v59 = vld [vmem:[#allocation7 + $0x6ec] sm:$0xf0]  ;;  %v8629_v62 = vor.u32 %v9792_v52, %v8628_v50  ;;  %v8548_v50 = vld [vmem:[#allocation7 + $0x540] sm:$0xf] }
 0x25e   :  { %5141 = vmatpush.bf16.msra.mxu2 %v8181_v60  ;;  %5116 = vmatpush.bf16.msra.mxu0 %v7909_v29  ;;  %v3560_v60 = vsel %vm3544_vm1, %v10181_v1, %v3552_v25  ;;  %v8757_v6 = vor.u32 %v9824_v59, %v8756_v57  ;;  %v9820_v29 = vld [vmem:[#allocation7 + $0x6cc] sm:$0xf0]  ;;  %v8676_v57 = vld [vmem:[#allocation7 + $0x640] sm:$0xf] }
 0x25f   :  { %v10257_v1 = vpack.c.bf16 %v3560_v60, %v3560_v60  ;;  %v8741_v17 = vor.u32 %v9820_v29, %v8740_v23  ;;  %v9748_v25 = vld [vmem:[#allocation7 + $0x48c] sm:$0xf0]  ;;  %v8404_v61 = vld [vmem:[#allocation7 + $0x420] sm:$0xf] }
 0x260   :  { %5154 = vmatpush.bf16.msra.mxu3 %v8309_v2  ;;  %5129 = vmatpush.bf16.msra.mxu1 %v8037_v11  ;;  %v9756_v2 = vld [vmem:[#allocation7 + $0x4cc] sm:$0xf0]  ;;  %v8613_v11 = vor.u32 %v9788_v22, %v8612_v3  ;;  %v8453_v35 = vor.u32 %v9748_v25, %v8452_v58  ;;  %v10272_v52 = vpop.f32.mrf.mxu2  ;;  %v8388_v22 = vld [vmem:[#allocation7 + $0x400] sm:$0xf] }
 0x261   :  { %v8485_v51 = vor.u32 %v9756_v2, %v8484_v63  ;;  %v9744_v7 = vld [vmem:[#allocation7 + $0x46c] sm:$0xf0]  ;;  %v8532_v63 = vld [vmem:[#allocation7 + $0x520] sm:$0xf] }
 0x262   :  { %5142 = vmatpush.bf16.msra.mxu2 %v8165_v12  ;;  %5117 = vmatpush.bf16.msra.mxu0 %v7893_v33  ;;  %v8468_v12 = vld [vmem:[#allocation7 + $0x4a0] sm:$0xf]  ;;  %v8725_v33 = vor.u32 %v9816_v16, %v8724_v32  ;;  %v9776_v44 = vld [vmem:[#allocation7 + $0x56c] sm:$0xf0]  ;;  %v8437_v45 = vor.u32 %v9744_v7, %v8436_v42  ;;  %v7974_v7 = vld [vmem:[#allocation7 + $0xd0] sm:$0xf0] }
 0x263   :  { %v9808_v46 = vld [vmem:[#allocation7 + $0x66c] sm:$0xf0]  ;;  %v8660_v29 = vld [vmem:[#allocation7 + $0x620] sm:$0xf]  ;;  %v3385_v25 = vpop.f32.mrf.mxu3 }
 0x264   :  { %5155 = vmatpush.bf16.msra.mxu3 %v8293_v18  ;;  %5130 = vmatpush.bf16.msra.mxu1 %v8021_v36  ;;  %v8469_v18 = vor.u32 %v9752_v24, %v8468_v12  ;;  %v3357_v36 = vpop.f32.mrf.mxu1  ;;  %v9772_v0 = vld [vmem:[#allocation7 + $0x54c] sm:$0xf0]  ;;  %v8516_v12 = vld [vmem:[#allocation7 + $0x500] sm:$0xf] }
 0x265   :  { %v9804_v59 = vld [vmem:[#allocation7 + $0x64c] sm:$0xf0]  ;;  %v8549_v5 = vor.u32 %v9772_v0, %v8548_v50  ;;  %v9622_v50 = vld [vmem:[#allocation7 + $0xa4] sm:$0xf]  ;;  %v8230_v0 = vld [vmem:[#allocation7 + $0x2d0] sm:$0xf0] }
 0x266   :  { %5143 = vmatpush.bf16.msra.mxu2 %v8149_v37  ;;  %5118 = vmatpush.bf16.msra.mxu0 %v7877_v49  ;;  %v8708_v37 = vld [vmem:[#allocation7 + $0x680] sm:$0xf]  ;;  %v9740_v49 = vld [vmem:[#allocation7 + $0x44c] sm:$0xf0] }
 0x267   :  { %v8709_v40 = vor.u32 %v9812_v38, %v8708_v37  ;;  %v9768_v2 = vld [vmem:[#allocation7 + $0x52c] sm:$0xf0]  ;;  %v9626_v37 = vld [vmem:[#allocation7 + $0xc4] sm:$0xf] }
 0x268   :  { %5156 = vmatpush.bf16.msra.mxu3 %v8277_v43  ;;  %5131 = vmatpush.bf16.msra.mxu1 %v8005_v53  ;;  %v8564_v43 = vld [vmem:[#allocation7 + $0x560] sm:$0xf]  ;;  %v3345_v53 = vadd.f32 %v3344_v31, %v3332_v34  ;;  %v9732_v23 = vld [vmem:[#allocation7 + $0x40c] sm:$0xf0]  ;;  %v9694_v38 = vld [vmem:[#allocation7 + $0x2e4] sm:$0xf] }
 0x269   :  { %5119 = vmatmul.bf16.vlgmr.msra.gmra.mxu0 %v10255_v4  ;;  %v8565_v48 = vor.u32 %v9776_v44, %v8564_v43  ;;  %v9800_v20 = vld [vmem:[#allocation7 + $0x62c] sm:$0xf0]  ;;  %v8389_v30 = vor.u32 %v9732_v23, %v8388_v22  ;;  %v8644_v31 = vld [vmem:[#allocation7 + $0x600] sm:$0xf]  ;;  %v7942_v22 = vld [vmem:[#allocation7 + $0x90] sm:$0xf0] }
 0x26a   :  { %5144 = vmatpush.bf16.msra.mxu2 %v8133_v14  ;;  %5163 = vmatpush.bf16.msrb.mxu0 %v8501_v56  ;;  %v8693_v14 = vor.u32 %v9808_v46, %v8692_v41  ;;  %v8421_v56 = vor.u32 %v9740_v49, %v8420_v19  ;;  %v3358_v3 = vadd.f32 %v3357_v36, %v3345_v53  ;;  %v9764_v24 = vld [vmem:[#allocation7 + $0x50c] sm:$0xf0]  ;;  %v8868_v43 = vld [vmem:[#allocation7 + $0x7c0] sm:$0xf]  ;;  %v8102_v41 = vld [vmem:[#allocation7 + $0x1d0] sm:$0xf0] }
 0x26b   :  { %5132 = vmatmul.bf16.vlgmr.msra.gmra.mxu1 %v10257_v1  ;;  %v9856_v32 = vld [vmem:[#allocation7 + $0x7ec] sm:$0xf0]  ;;  %v8661_v58 = vor.u32 %v9800_v20, %v8660_v29  ;;  %v7993_v36 = vor.u32 %v9630_v13, %v7990_v15  ;;  %v7977_v49 = vor.u32 %v9626_v37, %v7974_v7  ;;  %v9650_v23 = vld [vmem:[#allocation7 + $0x184] sm:$0xf]  ;;  %v8070_v29 = vld [vmem:[#allocation7 + $0x190] sm:$0xf0] }
 0x26c   :  { %5157 = vmatpush.bf16.msra.mxu3 %v8261_v55  ;;  %5176 = vmatpush.bf16.msrb.mxu1 %v8629_v62  ;;  %v3346_v55 = vpop.f32.mrf.mxu0  ;;  %v3359_v60 = vpop.f32.mrf.mxu1  ;;  %v9736_v62 = vld [vmem:[#allocation7 + $0x42c] sm:$0xf0]  ;;  %v3556_v16 = vmul.f32 0.2, %v3358_v3  ;;  %vm3548_vm5 = vcmp.gt.f32.partialorder %v3358_v3, 0.0 }
 0x26d   :  { %5145 = vmatmul.bf16.vlgmr.msra.gmra.mxu2 %v10259_v27  ;;  %v9852_v44 = vld [vmem:[#allocation7 + $0x7cc] sm:$0xf0]  ;;  %v7958_v55 = vld [vmem:[#allocation7 + $0xb0] sm:$0xf0]  ;;  %v9682_v13 = vld [vmem:[#allocation7 + $0x284] sm:$0xf] }
 0x26e   :  { %5189 = vmatpush.bf16.msrb.mxu2 %v8757_v6  ;;  %5164 = vmatpush.bf16.msrb.mxu0 %v8485_v51  ;;  %v8677_v6 = vor.u32 %v9804_v59, %v8676_v57  ;;  %v8405_v51 = vor.u32 %v9736_v62, %v8404_v61  ;;  %v8869_v34 = vor.u32 %v9852_v44, %v8868_v43  ;;  %v9848_v57 = vld [vmem:[#allocation7 + $0x7ac] sm:$0xf0]  ;;  %v9654_v59 = vld [vmem:[#allocation7 + $0x1a4] sm:$0xf]  ;;  %v8086_v60 = vld [vmem:[#allocation7 + $0x1b0] sm:$0xf0] }
 0x26f   :  { %5158 = vmatmul.bf16.vlgmr.msra.gmra.mxu3 %v10261_v9  ;;  %v7961_v62 = vor.u32 %v9622_v50, %v7958_v55  ;;  %v8198_v15 = vld [vmem:[#allocation7 + $0x290] sm:$0xf0]  ;;  %v9638_v55 = vld [vmem:[#allocation7 + $0x124] sm:$0xf] }
 0x270   :  { %5177 = vmatpush.bf16.msrb.mxu1 %v8613_v11  ;;  %v8533_v11 = vor.u32 %v9768_v2, %v8532_v63  ;;  %v9618_v63 = vld [vmem:[#allocation7 + $0x84] sm:$0xf]  ;;  %v8038_v7 = vld [vmem:[#allocation7 + $0x150] sm:$0xf0] }
 0x271   :  { %v9686_v2 = vld [vmem:[#allocation7 + $0x2a4] sm:$0xf]  ;;  %v7894_v50 = vld [vmem:[#allocation7 + $0x30] sm:$0xf0] }
 0x272   :  { %5190 = vmatpush.bf16.msrb.mxu2 %v8741_v17  ;;  %5165 = vmatpush.bf16.msrb.mxu0 %v8469_v18  ;;  %v3372_v17 = vpop.f32.mrf.mxu2  ;;  %v8884_v18 = vld [vmem:[#allocation7 + $0x7e0] sm:$0xf] }
 0x273   :  { %v8885_v28 = vor.u32 %v9856_v32, %v8884_v18  ;;  %v8073_v17 = vor.u32 %v9650_v23, %v8070_v29  ;;  %v7926_v18 = vld [vmem:[#allocation7 + $0x70] sm:$0xf0]  ;;  %v8772_v23 = vld [vmem:[#allocation7 + $0x700] sm:$0xf]  ;;  %v9828_v29 = vld [vmem:[#allocation7 + $0x70c] sm:$0xf0] }
 0x274   :  { %5178 = vmatpush.bf16.msrb.mxu1 %v8597_v21  ;;  %v8118_v21 = vld [vmem:[#allocation7 + $0x1f0] sm:$0xf0] }
 0x275   :  { %5202 = vmatpush.bf16.msrb.mxu3 %v8885_v28  ;;  %v8121_v42 = vor.u32 %v9662_v47, %v8118_v21  ;;  %v10288_v32 = vpop.f32.mrf.mxu0  ;;  %v9840_v47 = vld [vmem:[#allocation7 + $0x76c] sm:$0xf0]  ;;  %v9646_v21 = vld [vmem:[#allocation7 + $0x164] sm:$0xf] }
 0x276   :  { %5191 = vmatpush.bf16.msrb.mxu2 %v8725_v33  ;;  %5166 = vmatpush.bf16.msrb.mxu0 %v8453_v35  ;;  %v9796_v33 = vld [vmem:[#allocation7 + $0x60c] sm:$0xf0]  ;;  %v8517_v35 = vor.u32 %v9764_v24, %v8516_v12  ;;  %v7945_v12 = vor.u32 %v9618_v63, %v7942_v22  ;;  %v9614_v24 = vld [vmem:[#allocation7 + $0x64] sm:$0xf]  ;;  %v3384_v22 = vadd.f32 %v10274_v54, %v10272_v52  ;;  %v8134_v54 = vld [vmem:[#allocation7 + $0x210] sm:$0xf0] }
 0x277   :  { %v8645_v46 = vor.u32 %v9796_v33, %v8644_v31  ;;  %v10290_v25 = vpop.f32.mrf.mxu1  ;;  %v7929_v31 = vor.u32 %v9614_v24, %v7926_v18  ;;  %v9610_v33 = vld [vmem:[#allocation7 + $0x44] sm:$0xf] }
 0x278   :  { %5179 = vmatpush.bf16.msrb.mxu1 %v8581_v39  ;;  %v3563_v39 = vsel %vm3547_vm4, %v10219_v10, %v3555_v26  ;;  %v9690_v10 = vld [vmem:[#allocation7 + $0x2c4] sm:$0xf]  ;;  %v8214_v26 = vld [vmem:[#allocation7 + $0x2b0] sm:$0xf0] }
 0x279   :  { %v10282_v19 = vpack.c.bf16 %v3563_v39, %v3563_v39  ;;  %5203 = vmatpush.bf16.msrb.mxu3 %v8869_v34  ;;  %v8233_v61 = vor.u32 %v9690_v10, %v8230_v0  ;;  %v9836_v39 = vld [vmem:[#allocation7 + $0x74c] sm:$0xf0]  ;;  %v9674_v34 = vld [vmem:[#allocation7 + $0x244] sm:$0xf]  ;;  %v8788_v0 = vld [vmem:[#allocation7 + $0x720] sm:$0xf] }
 0x27a   :  { %5192 = vmatpush.bf16.msrb.mxu2 %v8709_v40  ;;  %5167 = vmatpush.bf16.msrb.mxu0 %v8437_v45  ;;  %v3564_v40 = vsel %vm3548_vm5, %v3358_v3, %v3556_v16  ;;  %v9658_v45 = vld [vmem:[#allocation7 + $0x1c4] sm:$0xf]  ;;  %v8089_v3 = vor.u32 %v9654_v59, %v8086_v60  ;;  %v8820_v16 = vld [vmem:[#allocation7 + $0x760] sm:$0xf] }
 0x27b   :  { %v10284_v53 = vpack.c.bf16 %v3564_v40, %v3564_v40  ;;  %v8821_v28 = vor.u32 %v9840_v47, %v8820_v16  ;;  %v9602_v60 = vld [vmem:[#allocation7 + $0x4] sm:$0xf] }
 0x27c   :  { %5180 = vmatpush.bf16.msrb.mxu1 %v8565_v48  ;;  %v8249_v48 = vor.u32 %v9694_v38, %v8246_v8  ;;  %v7910_v38 = vld [vmem:[#allocation7 + $0x50] sm:$0xf0]  ;;  %v8804_v8 = vld [vmem:[#allocation7 + $0x740] sm:$0xf]  ;;  %v9634_v63 = vld [vmem:[#allocation7 + $0x104] sm:$0xf] }
 0x27d   :  { %v8805_v44 = vor.u32 %v9836_v39, %v8804_v8  ;;  %v3398_v10 = vpop.f32.mrf.mxu0  ;;  %v9726_v24 = vld [vmem:[#allocation7 + $0x3e4] sm:$0xf]  ;;  %v8614_v8 = vld [vmem:[#allocation7 + $0x5d0] sm:$0xf0] }
 0x27e   :  { %5193 = vmatpush.bf16.msrb.mxu2 %v8693_v14  ;;  %5168 = vmatpush.bf16.msrb.mxu0 %v8421_v56  ;;  %v8105_v14 = vor.u32 %v9658_v45, %v8102_v41  ;;  %v8852_v56 = vld [vmem:[#allocation7 + $0x7a0] sm:$0xf]  ;;  %v7913_v41 = vor.u32 %v9610_v33, %v7910_v38  ;;  %v9666_v52 = vld [vmem:[#allocation7 + $0x204] sm:$0xf] }
 0x27f   :  { %v10292_v43 = vpop.f32.mrf.mxu2  ;;  %v9786_v38 = vld [vmem:[#allocation7 + $0x5c4] sm:$0xf]  ;;  %v8137_v39 = vor.u32 %v9666_v52, %v8134_v54  ;;  %v8550_v54 = vld [vmem:[#allocation7 + $0x550] sm:$0xf0] }
 0x280   :  { %5181 = vmatpush.bf16.msrb.mxu1 %v8549_v5  ;;  %v8853_v5 = vor.u32 %v9848_v57, %v8852_v56  ;;  %v8022_v56 = vld [vmem:[#allocation7 + $0x130] sm:$0xf0]  ;;  %v3411_v57 = vpop.f32.mrf.mxu1  ;;  %v9770_v52 = vld [vmem:[#allocation7 + $0x544] sm:$0xf] }
 0x281   :  { %v10294_v40 = vpop.f32.mrf.mxu3  ;;  %v8326_v57 = vld [vmem:[#allocation7 + $0x390] sm:$0xf0] }
 0x282   :  { %5194 = vmatpush.bf16.msrb.mxu2 %v8677_v6  ;;  %5169 = vmatpush.bf16.msrb.mxu0 %v8405_v51  ;;  %v8836_v6 = vld [vmem:[#allocation7 + $0x780] sm:$0xf]  ;;  %v9844_v51 = vld [vmem:[#allocation7 + $0x78c] sm:$0xf0] }
 0x283   :  { %5204 = vmatpush.bf16.msrb.mxu3 %v8853_v5  ;;  %v8837_v20 = vor.u32 %v9844_v51, %v8836_v6  ;;  %v7878_v5 = vld [vmem:[#allocation7 + $0x10] sm:$0xf0]  ;;  %v8025_v6 = vor.u32 %v9638_v55, %v8022_v56  ;;  %v9758_v51 = vld [vmem:[#allocation7 + $0x4e4] sm:$0xf] }
 0x284   :  { %5182 = vmatpush.bf16.msrb.mxu1 %v8533_v11  ;;  %v8217_v11 = vor.u32 %v9686_v2, %v8214_v26  ;;  %v8006_v2 = vld [vmem:[#allocation7 + $0x110] sm:$0xf0]  ;;  %v9670_v26 = vld [vmem:[#allocation7 + $0x224] sm:$0xf] }
 0x285   :  { %v8454_v55 = vld [vmem:[#allocation7 + $0x490] sm:$0xf0]  ;;  %v9714_v56 = vld [vmem:[#allocation7 + $0x384] sm:$0xf] }
 0x286   :  { %5195 = vmatpush.bf16.msrb.mxu2 %v8661_v58  ;;  %5170 = vmatpush.bf16.msrb.mxu0 %v8389_v30  ;;  %v8054_v58 = vld [vmem:[#allocation7 + $0x170] sm:$0xf0]  ;;  %v8201_v30 = vor.u32 %v9682_v13, %v8198_v15  ;;  %v9790_v15 = vld [vmem:[#allocation7 + $0x5e4] sm:$0xf] }
 0x287   :  { %5205 = vmatpush.bf16.msrb.mxu3 %v8837_v20  ;;  %v8057_v37 = vor.u32 %v9646_v21, %v8054_v58  ;;  %v8502_v20 = vld [vmem:[#allocation7 + $0x4f0] sm:$0xf0]  ;;  %v7881_v21 = vor.u32 %v9602_v60, %v7878_v5  ;;  %v3397_v58 = vadd.f32 %v10288_v32, %v3384_v22  ;;  %v8329_v5 = vor.u32 %v9714_v56, %v8326_v57 }
 0x288   :  { %5183 = vmatpush.bf16.msrb.mxu1 %v8517_v35  ;;  %v9678_v35 = vld [vmem:[#allocation7 + $0x264] sm:$0xf]  ;;  %v8374_v13 = vld [vmem:[#allocation7 + $0x3f0] sm:$0xf0] }
 0x289   :  { %5171 = vmatmul.bf16.vlgmr.msrb.gmra.mxu0 %v10282_v19  ;;  %v3437_v16 = vpop.f32.mrf.mxu3  ;;  %v8377_v47 = vor.u32 %v9726_v24, %v8374_v13  ;;  %v8582_v60 = vld [vmem:[#allocation7 + $0x590] sm:$0xf0]  ;;  %v9738_v13 = vld [vmem:[#allocation7 + $0x444] sm:$0xf] }
 0x28a   :  { %5215 = vmatpush.bf16.msra.mxu0 %v7993_v36  ;;  %5196 = vmatpush.bf16.msrb.mxu2 %v8645_v46  ;;  %v8182_v36 = vld [vmem:[#allocation7 + $0x270] sm:$0xf0]  ;;  %v9606_v46 = vld [vmem:[#allocation7 + $0x24] sm:$0xf] }
 0x28b   :  { %5184 = vmatmul.bf16.vlgmr.msrb.gmra.mxu1 %v10284_v53  ;;  %5206 = vmatpush.bf16.msrb.mxu3 %v8821_v28  ;;  %v8185_v45 = vor.u32 %v9678_v35, %v8182_v36  ;;  %v8009_v28 = vor.u32 %v9634_v63, %v8006_v2  ;;  %v8486_v35 = vld [vmem:[#allocation7 + $0x4d0] sm:$0xf0]  ;;  %v9722_v36 = vld [vmem:[#allocation7 + $0x3c4] sm:$0xf] }
 0x28c   :  { %5228 = vmatpush.bf16.msra.mxu1 %v8121_v42  ;;  %v9642_v42 = vld [vmem:[#allocation7 + $0x144] sm:$0xf]  ;;  %v8310_v22 = vld [vmem:[#allocation7 + $0x370] sm:$0xf0] }
 0x28d   :  { %v9742_v63 = vld [vmem:[#allocation7 + $0x464] sm:$0xf]  ;;  %v8294_v16 = vld [vmem:[#allocation7 + $0x350] sm:$0xf0] }
 0x28e   :  { %5241 = vmatpush.bf16.msra.mxu2 %v8249_v48  ;;  %5216 = vmatpush.bf16.msra.mxu0 %v7977_v49  ;;  %v8166_v48 = vld [vmem:[#allocation7 + $0x250] sm:$0xf0]  ;;  %v8041_v49 = vor.u32 %v9642_v42, %v8038_v7  ;;  %v3410_v7 = vadd.f32 %v10290_v25, %v3397_v58 }
 0x28f   :  { %5207 = vmatpush.bf16.msrb.mxu3 %v8805_v44  ;;  %v9750_v44 = vld [vmem:[#allocation7 + $0x4a4] sm:$0xf]  ;;  %v8262_v56 = vld [vmem:[#allocation7 + $0x310] sm:$0xf0] }
 0x290   :  { %5229 = vmatpush.bf16.msra.mxu1 %v8105_v14  ;;  %v9832_v14 = vld [vmem:[#allocation7 + $0x72c] sm:$0xf0]  ;;  %v3423_v25 = vadd.f32 %v10292_v43, %v3410_v7  ;;  %v8278_v7 = vld [vmem:[#allocation7 + $0x330] sm:$0xf0] }
 0x291   :  { %v8789_v59 = vor.u32 %v9832_v14, %v8788_v0  ;;  %v9746_v0 = vld [vmem:[#allocation7 + $0x484] sm:$0xf] }
 0x292   :  { %5242 = vmatpush.bf16.msra.mxu2 %v8233_v61  ;;  %5217 = vmatpush.bf16.msra.mxu0 %v7961_v62  ;;  %v8169_v61 = vor.u32 %v9674_v34, %v8166_v48  ;;  %v7897_v62 = vor.u32 %v9606_v46, %v7894_v50  ;;  %v9718_v46 = vld [vmem:[#allocation7 + $0x3a4] sm:$0xf]  ;;  %v8342_v34 = vld [vmem:[#allocation7 + $0x3b0] sm:$0xf0] }
 0x293   :  { %5208 = vmatpush.bf16.msrb.mxu3 %v8789_v59  ;;  %v9782_v48 = vld [vmem:[#allocation7 + $0x5a4] sm:$0xf]  ;;  %v8345_v50 = vor.u32 %v9718_v46, %v8342_v34  ;;  %v8726_v34 = vld [vmem:[#allocation7 + $0x6b0] sm:$0xf0] }
 0x294   :  { %5230 = vmatpush.bf16.msra.mxu1 %v8089_v3  ;;  %v8150_v3 = vld [vmem:[#allocation7 + $0x230] sm:$0xf0]  ;;  %v9778_v59 = vld [vmem:[#allocation7 + $0x584] sm:$0xf] }
 0x295   :  { %v8153_v18 = vor.u32 %v9670_v26, %v8150_v3  ;;  %v8585_v43 = vor.u32 %v9778_v59, %v8582_v60  ;;  %v8438_v26 = vld [vmem:[#allocation7 + $0x470] sm:$0xf0]  ;;  %v9710_v3 = vld [vmem:[#allocation7 + $0x364] sm:$0xf]  ;;  %v7996_v59 = vld [vmem:[#allocation7 + $0xe8] sm:$0xf] }
 0x296   :  { %5243 = vmatpush.bf16.msra.mxu2 %v8217_v11  ;;  %5218 = vmatpush.bf16.msra.mxu0 %v7945_v12  ;;  %v3424_v11 = vpop.f32.mrf.mxu2  ;;  %v8773_v12 = vor.u32 %v9828_v29, %v8772_v23  ;;  %v8566_v23 = vld [vmem:[#allocation7 + $0x570] sm:$0xf0]  ;;  %v8313_v29 = vor.u32 %v9710_v3, %v8310_v22  ;;  %v8441_v24 = vor.u32 %v9742_v63, %v8438_v26  ;;  %v9814_v46 = vld [vmem:[#allocation7 + $0x6a4] sm:$0xf]  ;;  %v9633_v60 = vld [vmem:[#allocation7 + $0xf4] sm:$0xf0] }
 0x297   :  { %v8758_v11 = vld [vmem:[#allocation7 + $0x6f0] sm:$0xf0]  ;;  %v8729_v57 = vor.u32 %v9814_v46, %v8726_v34  ;;  %v9810_v63 = vld [vmem:[#allocation7 + $0x684] sm:$0xf]  ;;  %v7932_v46 = vld [vmem:[#allocation7 + $0x68] sm:$0xf] }
 0x298   :  { %5231 = vmatpush.bf16.msra.mxu1 %v8073_v17  ;;  %v8630_v17 = vld [vmem:[#allocation7 + $0x5f0] sm:$0xf0]  ;;  %5209 = vmatpush.bf16.msrb.mxu3 %v8773_v12  ;;  %v10304_v12 = vpop.f32.mrf.mxu1  ;;  %v9617_v34 = vld [vmem:[#allocation7 + $0x74] sm:$0xf0] }
 0x299   :  { %v8633_v33 = vor.u32 %v9790_v15, %v8630_v17  ;;  %v3448_v2 = vpop.f32.mrf.mxu0  ;;  %v8422_v17 = vld [vmem:[#allocation7 + $0x450] sm:$0xf0] }
 0x29a   :  { %5244 = vmatpush.bf16.msra.mxu2 %v8201_v30  ;;  %5219 = vmatpush.bf16.msra.mxu0 %v7929_v31  ;;  %v8505_v30 = vor.u32 %v9758_v51, %v8502_v20  ;;  %v9754_v31 = vld [vmem:[#allocation7 + $0x4c4] sm:$0xf] }
 0x29b   :  { %v8489_v32 = vor.u32 %v9754_v31, %v8486_v35  ;;  %v9774_v51 = vld [vmem:[#allocation7 + $0x564] sm:$0xf]  ;;  %v8742_v31 = vld [vmem:[#allocation7 + $0x6d0] sm:$0xf0] }
 0x29c   :  { %5232 = vmatpush.bf16.msra.mxu1 %v8057_v37  ;;  %5254 = vmatpush.bf16.msra.mxu3 %v8377_v47  ;;  %v8358_v37 = vld [vmem:[#allocation7 + $0x3d0] sm:$0xf0]  ;;  %v9822_v20 = vld [vmem:[#allocation7 + $0x6e4] sm:$0xf]  ;;  %v8569_v15 = vor.u32 %v9774_v51, %v8566_v23 }
 0x29d   :  { %v8361_v42 = vor.u32 %v9722_v36, %v8358_v37  ;;  %v9734_v37 = vld [vmem:[#allocation7 + $0x424] sm:$0xf] }
 0x29e   :  { %5245 = vmatpush.bf16.msra.mxu2 %v8185_v45  ;;  %5220 = vmatpush.bf16.msra.mxu0 %v7913_v41  ;;  %v8617_v45 = vor.u32 %v9786_v38, %v8614_v8  ;;  %v8470_v41 = vld [vmem:[#allocation7 + $0x4b0] sm:$0xf0]  ;;  %v8553_v38 = vor.u32 %v9770_v52, %v8550_v54  ;;  %v9657_v52 = vld [vmem:[#allocation7 + $0x1b4] sm:$0xf0]  ;;  %v9802_v54 = vld [vmem:[#allocation7 + $0x644] sm:$0xf] }
 0x29f   :  { %v8473_v10 = vor.u32 %v9750_v44, %v8470_v41  ;;  %v10308_v35 = vpop.f32.mrf.mxu2  ;;  %v8406_v8 = vld [vmem:[#allocation7 + $0x430] sm:$0xf0]  ;;  %v9766_v44 = vld [vmem:[#allocation7 + $0x524] sm:$0xf] }
 0x2a0   :  { %5233 = vmatpush.bf16.msra.mxu1 %v8041_v49  ;;  %5255 = vmatpush.bf16.msra.mxu3 %v8361_v42  ;;  %v8598_v49 = vld [vmem:[#allocation7 + $0x5b0] sm:$0xf0]  ;;  %v9702_v42 = vld [vmem:[#allocation7 + $0x324] sm:$0xf] }
 0x2a1   :  { %v8601_v14 = vor.u32 %v9782_v48, %v8598_v49  ;;  %v10310_v36 = vpop.f32.mrf.mxu3  ;;  %v8281_v41 = vor.u32 %v9702_v42, %v8278_v7  ;;  %v3463_v48 = vpop.f32.mrf.mxu1  ;;  %v8409_v49 = vor.u32 %v9734_v37, %v8406_v8  ;;  %v7948_v37 = vld [vmem:[#allocation7 + $0x88] sm:$0xf]  ;;  %v9653_v42 = vld [vmem:[#allocation7 + $0x194] sm:$0xf0]  ;;  %v9798_v7 = vld [vmem:[#allocation7 + $0x624] sm:$0xf] }
 0x2a2   :  { %5246 = vmatpush.bf16.msra.mxu2 %v8169_v61  ;;  %5221 = vmatpush.bf16.msra.mxu0 %v7897_v62  ;;  %v3436_v61 = vadd.f32 %v10294_v40, %v3423_v25  ;;  %v8457_v62 = vor.u32 %v9746_v0, %v8454_v55  ;;  %v8390_v25 = vld [vmem:[#allocation7 + $0x410] sm:$0xf0]  ;;  %v9698_v55 = vld [vmem:[#allocation7 + $0x304] sm:$0xf]  ;;  %v8076_v8 = vld [vmem:[#allocation7 + $0x188] sm:$0xf] }
 0x2a3   :  { %v8060_v48 = vld [vmem:[#allocation7 + $0x168] sm:$0xf] }
 0x2a4   :  { %5234 = vmatpush.bf16.msra.mxu1 %v8025_v6  ;;  %5256 = vmatpush.bf16.msra.mxu3 %v8345_v50  ;;  %v3449_v6 = vadd.f32 %v3448_v2, %v3436_v61  ;;  %v9730_v50 = vld [vmem:[#allocation7 + $0x404] sm:$0xf]  ;;  %v8265_v61 = vor.u32 %v9698_v55, %v8262_v56  ;;  %v8710_v2 = vld [vmem:[#allocation7 + $0x690] sm:$0xf0]  ;;  %v7933_v56 = vor.u32 %v9617_v34, %v7932_v46 }
 0x2a5   :  { %v8713_v23 = vor.u32 %v9810_v63, %v8710_v2  ;;  %v9645_v63 = vld [vmem:[#allocation7 + $0x154] sm:$0xf0] }
 0x2a6   :  { %5247 = vmatpush.bf16.msra.mxu2 %v8153_v18  ;;  %5222 = vmatpush.bf16.msra.mxu0 %v7881_v21  ;;  %vm3549_vm6 = vcmp.gt.f32.partialorder %v3449_v6, 0.0  ;;  %v3557_v40 = vmul.f32 0.2, %v3449_v6  ;;  %v9706_v18 = vld [vmem:[#allocation7 + $0x344] sm:$0xf]  ;;  %v8761_v21 = vor.u32 %v9822_v20, %v8758_v11 }
 0x2a7   :  { %v8297_v58 = vor.u32 %v9706_v18, %v8294_v16  ;;  %v3476_v26 = vpop.f32.mrf.mxu2  ;;  %v9629_v20 = vld [vmem:[#allocation7 + $0xd4] sm:$0xf0]  ;;  %v8108_v11 = vld [vmem:[#allocation7 + $0x1c8] sm:$0xf] }
 0x2a8   :  { %5235 = vmatpush.bf16.msra.mxu1 %v8009_v28  ;;  %5257 = vmatpush.bf16.msra.mxu3 %v8329_v5  ;;  %v3565_v47 = vsel %vm3549_vm6, %v3449_v6, %v3557_v40  ;;  %v8124_v5 = vld [vmem:[#allocation7 + $0x1e8] sm:$0xf]  ;;  %v7997_v6 = vor.u32 %v9633_v60, %v7996_v59  ;;  %v9661_v40 = vld [vmem:[#allocation7 + $0x1d4] sm:$0xf0] }
 0x2a9   :  { %5223 = vmatmul.bf16.vlgmr.msra.gmra.mxu0 %v10255_v4  ;;  %v10306_v28 = vpack.c.bf16 %v3565_v47, %v3565_v47  ;;  %v3489_v3 = vpop.f32.mrf.mxu3  ;;  %v7964_v16 = vld [vmem:[#allocation7 + $0xa8] sm:$0xf]  ;;  %v9625_v47 = vld [vmem:[#allocation7 + $0xb4] sm:$0xf0] }
 0x2aa   :  { %5267 = vmatpush.bf16.msrb.mxu0 %v8505_v30  ;;  %5248 = vmatpush.bf16.msra.mxu2 %v8137_v39  ;;  %v9818_v30 = vld [vmem:[#allocation7 + $0x6c4] sm:$0xf]  ;;  %v3450_v39 = vpop.f32.mrf.mxu0  ;;  %v7916_v60 = vld [vmem:[#allocation7 + $0x48] sm:$0xf]  ;;  %v9693_v2 = vld [vmem:[#allocation7 + $0x2d4] sm:$0xf0] }
 0x2ab   :  { %5236 = vmatmul.bf16.vlgmr.msra.gmra.mxu1 %v10257_v1  ;;  %5197 = vmatmul.bf16.vlgmr.msrb.gmra.mxu2 %v10306_v28  ;;  %v3475_v39 = vadd.f32 %v10308_v35, %v10304_v12  ;;  %v8252_v12 = vld [vmem:[#allocation7 + $0x2e8] sm:$0xf]  ;;  %v9697_v35 = vld [vmem:[#allocation7 + $0x2f4] sm:$0xf0] }
 0x2ac   :  { %5280 = vmatpush.bf16.msrb.mxu1 %v8633_v33  ;;  %5258 = vmatpush.bf16.msra.mxu3 %v8313_v29  ;;  %v8425_v33 = vor.u32 %v9738_v13, %v8422_v17  ;;  %v7980_v29 = vld [vmem:[#allocation7 + $0xc8] sm:$0xf]  ;;  %v8694_v13 = vld [vmem:[#allocation7 + $0x670] sm:$0xf0]  ;;  %v8109_v17 = vor.u32 %v9661_v40, %v8108_v11 }
 0x2ad   :  { %v8028_v40 = vld [vmem:[#allocation7 + $0x128] sm:$0xf] }
 0x2ae   :  { %5268 = vmatpush.bf16.msrb.mxu0 %v8489_v32  ;;  %5293 = vmatpush.bf16.msrb.mxu2 %v8761_v21  ;;  %v8745_v32 = vor.u32 %v9818_v30, %v8742_v31  ;;  %v8092_v21 = vld [vmem:[#allocation7 + $0x1a8] sm:$0xf]  ;;  %v7965_v30 = vor.u32 %v9625_v47, %v7964_v16  ;;  %v9689_v16 = vld [vmem:[#allocation7 + $0x2b4] sm:$0xf0] }
 0x2af   :  { %v8093_v31 = vor.u32 %v9657_v52, %v8092_v21  ;;  %v7884_v52 = vld [vmem:[#allocation7 + $0x8] sm:$0xf] }
 0x2b0   :  { %5281 = vmatpush.bf16.msrb.mxu1 %v8617_v45  ;;  %v8534_v45 = vld [vmem:[#allocation7 + $0x530] sm:$0xf0]  ;;  %5259 = vmatpush.bf16.msra.mxu3 %v8297_v58 }
 0x2b1   :  { %v8537_v0 = vor.u32 %v9766_v44, %v8534_v45  ;;  %v8678_v58 = vld [vmem:[#allocation7 + $0x650] sm:$0xf0]  ;;  %v8077_v45 = vor.u32 %v9653_v42, %v8076_v8  ;;  %v9793_v42 = vld [vmem:[#allocation7 + $0x5f4] sm:$0xf0] }
 0x2b2   :  { %5269 = vmatpush.bf16.msrb.mxu0 %v8473_v10  ;;  %v9762_v10 = vld [vmem:[#allocation7 + $0x504] sm:$0xf]  ;;  %5294 = vmatpush.bf16.msrb.mxu2 %v8745_v32  ;;  %v8662_v32 = vld [vmem:[#allocation7 + $0x630] sm:$0xf0] }
 0x2b4   :  { %5282 = vmatpush.bf16.msrb.mxu1 %v8601_v14  ;;  %v8518_v14 = vld [vmem:[#allocation7 + $0x510] sm:$0xf0]  ;;  %5260 = vmatpush.bf16.msra.mxu3 %v8281_v41  ;;  %v8665_v41 = vor.u32 %v9798_v7, %v8662_v32  ;;  %v8204_v7 = vld [vmem:[#allocation7 + $0x288] sm:$0xf]  ;;  %v9685_v32 = vld [vmem:[#allocation7 + $0x294] sm:$0xf0] }
 0x2b5   :  { %v8521_v22 = vor.u32 %v9762_v10, %v8518_v14  ;;  %v9794_v10 = vld [vmem:[#allocation7 + $0x604] sm:$0xf] }
 0x2b6   :  { %5270 = vmatpush.bf16.msrb.mxu0 %v8457_v62  ;;  %v9665_v62 = vld [vmem:[#allocation7 + $0x1f4] sm:$0xf0]  ;;  %5295 = vmatpush.bf16.msrb.mxu2 %v8729_v57 }
 0x2b7   :  { %v8125_v51 = vor.u32 %v9665_v62, %v8124_v5  ;;  %v9613_v5 = vld [vmem:[#allocation7 + $0x54] sm:$0xf0]  ;;  %v8044_v62 = vld [vmem:[#allocation7 + $0x148] sm:$0xf] }
 0x2b8   :  { %5283 = vmatpush.bf16.msrb.mxu1 %v8585_v43  ;;  %v8393_v43 = vor.u32 %v9730_v50, %v8390_v25  ;;  %5261 = vmatpush.bf16.msra.mxu3 %v8265_v61  ;;  %v9649_v25 = vld [vmem:[#allocation7 + $0x174] sm:$0xf0]  ;;  %v8253_v61 = vor.u32 %v9697_v35, %v8252_v12  ;;  %v7917_v26 = vor.u32 %v9613_v5, %v7916_v60  ;;  %v8492_v12 = vld [vmem:[#allocation7 + $0x4c8] sm:$0xf] }
 0x2b9   :  { %v8061_v57 = vor.u32 %v9649_v25, %v8060_v48  ;;  %v8870_v25 = vld [vmem:[#allocation7 + $0x7d0] sm:$0xf0]  ;;  %v9757_v35 = vld [vmem:[#allocation7 + $0x4d4] sm:$0xf0] }
 0x2ba   :  { %5271 = vmatpush.bf16.msrb.mxu0 %v8441_v24  ;;  %v9806_v24 = vld [vmem:[#allocation7 + $0x664] sm:$0xf]  ;;  %5296 = vmatpush.bf16.msrb.mxu2 %v8713_v23  ;;  %v8493_v5 = vor.u32 %v9757_v35, %v8492_v12  ;;  %v8556_v12 = vld [vmem:[#allocation7 + $0x548] sm:$0xf]  ;;  %v9773_v35 = vld [vmem:[#allocation7 + $0x554] sm:$0xf0] }
 0x2bb   :  { %v8697_v18 = vor.u32 %v9806_v24, %v8694_v13  ;;  %5249 = vmatmul.bf16.vlgmr.msra.gmra.mxu2 %v10259_v27  ;;  %v9641_v24 = vld [vmem:[#allocation7 + $0x134] sm:$0xf0] }
 0x2bc   :  { %5284 = vmatpush.bf16.msrb.mxu1 %v8569_v15  ;;  %v7981_v15 = vor.u32 %v9629_v20, %v7980_v29 }
 0x2be   :  { %5272 = vmatpush.bf16.msrb.mxu0 %v8425_v33  ;;  %5297 = vmatpush.bf16.msrb.mxu2 %v8697_v18  ;;  %v8681_v33 = vor.u32 %v9802_v54, %v8678_v58  ;;  %v8220_v18 = vld [vmem:[#allocation7 + $0x2a8] sm:$0xf]  ;;  %v9605_v54 = vld [vmem:[#allocation7 + $0x14] sm:$0xf0] }
 0x2bf   :  { %v8012_v58 = vld [vmem:[#allocation7 + $0x108] sm:$0xf]  ;;  %v8221_v8 = vor.u32 %v9689_v16, %v8220_v18  ;;  %v9673_v16 = vld [vmem:[#allocation7 + $0x234] sm:$0xf0] }
 0x2c0   :  { %5285 = vmatpush.bf16.msrb.mxu1 %v8553_v38  ;;  %v9621_v38 = vld [vmem:[#allocation7 + $0x94] sm:$0xf0]  ;;  %v8156_v18 = vld [vmem:[#allocation7 + $0x228] sm:$0xf] }
 0x2c1   :  { %v7949_v44 = vor.u32 %v9621_v38, %v7948_v37  ;;  %v9761_v37 = vld [vmem:[#allocation7 + $0x4f4] sm:$0xf0] }
 0x2c2   :  { %5273 = vmatpush.bf16.msrb.mxu0 %v8409_v49  ;;  %5298 = vmatpush.bf16.msrb.mxu2 %v8681_v33  ;;  %v3488_v49 = vadd.f32 %v10310_v36, %v3475_v39  ;;  %v8236_v36 = vld [vmem:[#allocation7 + $0x2c8] sm:$0xf] }
 0x2c3   :  { %v8237_v11 = vor.u32 %v9693_v2, %v8236_v36  ;;  %v8508_v33 = vld [vmem:[#allocation7 + $0x4e8] sm:$0xf] }
 0x2c4   :  { %5286 = vmatpush.bf16.msrb.mxu1 %v8537_v0  ;;  %v8646_v0 = vld [vmem:[#allocation7 + $0x610] sm:$0xf0]  ;;  %v8636_v39 = vld [vmem:[#allocation7 + $0x5e8] sm:$0xf] }
 0x2c5   :  { %v8649_v59 = vor.u32 %v9794_v10, %v8646_v0  ;;  %v8637_v0 = vor.u32 %v9793_v42, %v8636_v39  ;;  %v8476_v2 = vld [vmem:[#allocation7 + $0x4a8] sm:$0xf]  ;;  %v9669_v42 = vld [vmem:[#allocation7 + $0x214] sm:$0xf0] }
 0x2c6   :  { %5274 = vmatpush.bf16.msrb.mxu0 %v8393_v43  ;;  %v3500_v50 = vpop.f32.mrf.mxu0  ;;  %5299 = vmatpush.bf16.msrb.mxu2 %v8665_v41  ;;  %v7885_v41 = vor.u32 %v9605_v54, %v7884_v52  ;;  %v9838_v52 = vld [vmem:[#allocation7 + $0x764] sm:$0xf]  ;;  %v8822_v54 = vld [vmem:[#allocation7 + $0x770] sm:$0xf0]  ;;  %v8140_v39 = vld [vmem:[#allocation7 + $0x208] sm:$0xf] }
 0x2c7   :  { %v3501_v55 = vadd.f32 %v3500_v50, %v3488_v49  ;;  %v8509_v49 = vor.u32 %v9761_v37, %v8508_v33  ;;  %v9850_v50 = vld [vmem:[#allocation7 + $0x7c4] sm:$0xf]  ;;  %v9745_v33 = vld [vmem:[#allocation7 + $0x474] sm:$0xf0]  ;;  %v8572_v37 = vld [vmem:[#allocation7 + $0x568] sm:$0xf] }
 0x2c8   :  { %5287 = vmatpush.bf16.msrb.mxu1 %v8521_v22  ;;  %v3513_v14 = vpop.f32.mrf.mxu1  ;;  %v8045_v22 = vor.u32 %v9645_v63, %v8044_v62  ;;  %v8873_v60 = vor.u32 %v9850_v50, %v8870_v25  ;;  %v8854_v62 = vld [vmem:[#allocation7 + $0x7b0] sm:$0xf0]  ;;  %v8141_v25 = vor.u32 %v9669_v42, %v8140_v39  ;;  %v8716_v39 = vld [vmem:[#allocation7 + $0x688] sm:$0xf]  ;;  %v9813_v42 = vld [vmem:[#allocation7 + $0x694] sm:$0xf0] }
 0x2c9   :  { %5275 = vmatmul.bf16.vlgmr.msrb.gmra.mxu0 %v10282_v19  ;;  %v3514_v43 = vadd.f32 %v3513_v14, %v3501_v55  ;;  %v8205_v14 = vor.u32 %v9685_v32, %v8204_v7  ;;  %v8620_v55 = vld [vmem:[#allocation7 + $0x5c8] sm:$0xf]  ;;  %v8825_v32 = vor.u32 %v9838_v52, %v8822_v54  ;;  %v9765_v54 = vld [vmem:[#allocation7 + $0x514] sm:$0xf0] }
 0x2ca   :  { %5319 = vmatpush.bf16.msra.mxu0 %v7997_v6  ;;  %5300 = vmatpush.bf16.msrb.mxu2 %v8649_v59  ;;  %v7900_v6 = vld [vmem:[#allocation7 + $0x28] sm:$0xf]  ;;  %v9681_v59 = vld [vmem:[#allocation7 + $0x274] sm:$0xf0] }
 0x2cb   :  { %5288 = vmatmul.bf16.vlgmr.msrb.gmra.mxu1 %v10284_v53 }
 0x2cc   :  { %5332 = vmatpush.bf16.msra.mxu1 %v8125_v51  ;;  %v9609_v51 = vld [vmem:[#allocation7 + $0x34] sm:$0xf0] }
 0x2cd   :  { %5301 = vmatmul.bf16.vlgmr.msrb.gmra.mxu2 %v10306_v28  ;;  %v7901_v21 = vor.u32 %v9609_v51, %v7900_v6  ;;  %v9677_v6 = vld [vmem:[#allocation7 + $0x254] sm:$0xf0] }
 0x2ce   :  { %5320 = vmatpush.bf16.msra.mxu0 %v7981_v15  ;;  %v3502_v20 = vpop.f32.mrf.mxu0  ;;  %5345 = vmatpush.bf16.msra.mxu2 %v8253_v61  ;;  %v9854_v15 = vld [vmem:[#allocation7 + $0x7e4] sm:$0xf] }
 0x2cf   :  { %v9846_v61 = vld [vmem:[#allocation7 + $0x7a4] sm:$0xf]  ;;  %v8838_v20 = vld [vmem:[#allocation7 + $0x790] sm:$0xf0] }
 0x2d0   :  { %5333 = vmatpush.bf16.msra.mxu1 %v8109_v17  ;;  %v3526_v3 = vpop.f32.mrf.mxu2  ;;  %v3515_v13 = vpop.f32.mrf.mxu1  ;;  %v8886_v17 = vld [vmem:[#allocation7 + $0x7f0] sm:$0xf0]  ;;  %v8857_v51 = vor.u32 %v9846_v61, %v8854_v62  ;;  %v8557_v62 = vor.u32 %v9773_v35, %v8556_v12  ;;  %v8700_v12 = vld [vmem:[#allocation7 + $0x668] sm:$0xf]  ;;  %v9809_v35 = vld [vmem:[#allocation7 + $0x674] sm:$0xf0] }
 0x2d1   :  { %v3527_v23 = vadd.f32 %v3526_v3, %v3514_v43  ;;  %v9753_v43 = vld [vmem:[#allocation7 + $0x4b4] sm:$0xf0] }
 0x2d2   :  { %5321 = vmatpush.bf16.msra.mxu0 %v7965_v30  ;;  %v3539_v29 = vpop.f32.mrf.mxu3  ;;  %v8029_v30 = vor.u32 %v9641_v24, %v8028_v40  ;;  %5346 = vmatpush.bf16.msra.mxu2 %v8237_v11  ;;  %v9785_v3 = vld [vmem:[#allocation7 + $0x5b4] sm:$0xf0]  ;;  %v8460_v24 = vld [vmem:[#allocation7 + $0x488] sm:$0xf] }
 0x2d3   :  { %v3540_v47 = vadd.f32 %v3539_v29, %v3527_v23  ;;  %v8477_v23 = vor.u32 %v9753_v43, %v8476_v2  ;;  %v9842_v29 = vld [vmem:[#allocation7 + $0x784] sm:$0xf]  ;;  %v9749_v13 = vld [vmem:[#allocation7 + $0x494] sm:$0xf0] }
 0x2d4   :  { %5334 = vmatpush.bf16.msra.mxu1 %v8093_v31  ;;  %v9637_v31 = vld [vmem:[#allocation7 + $0x114] sm:$0xf0] }
 0x2d5   :  { %vm3550_vm7 = vcmp.gt.f32.partialorder %v3540_v47, 0.0  ;;  %v3558_v38 = vmul.f32 0.2, %v3540_v47  ;;  %v8013_v48 = vor.u32 %v9637_v31, %v8012_v58  ;;  %v8444_v31 = vld [vmem:[#allocation7 + $0x468] sm:$0xf] }
 0x2d6   :  { %5322 = vmatpush.bf16.msra.mxu0 %v7949_v44  ;;  %5347 = vmatpush.bf16.msra.mxu2 %v8221_v8  ;;  %v9777_v8 = vld [vmem:[#allocation7 + $0x574] sm:$0xf0] }
 0x2d7   :  { %v3566_v44 = vsel %vm3550_vm7, %v3540_v47, %v3558_v38  ;;  %v8841_v47 = vor.u32 %v9842_v29, %v8838_v20  ;;  %v8573_v50 = vor.u32 %v9777_v8, %v8572_v37  ;;  %v9826_v29 = vld [vmem:[#allocation7 + $0x704] sm:$0xf]  ;;  %v8732_v20 = vld [vmem:[#allocation7 + $0x6a8] sm:$0xf]  ;;  %v8126_v37 = vld [vmem:[#allocation7 + $0x1f8] sm:$0xf0] }
 0x2d8   :  { %5335 = vmatpush.bf16.msra.mxu1 %v8077_v45  ;;  %v8889_v45 = vor.u32 %v9854_v15, %v8886_v17  ;;  %v10320_v46 = vpack.c.bf16 %v3566_v44, %v3566_v44  ;;  %v3528_v34 = vpop.f32.mrf.mxu2  ;;  %v8588_v15 = vld [vmem:[#allocation7 + $0x588] sm:$0xf]  ;;  %v9781_v17 = vld [vmem:[#allocation7 + $0x594] sm:$0xf0] }
 0x2d9   :  { %v8589_v58 = vor.u32 %v9781_v17, %v8588_v15  ;;  %v8764_v44 = vld [vmem:[#allocation7 + $0x6e8] sm:$0xf]  ;;  %v8445_v34 = vor.u32 %v9745_v33, %v8444_v31  ;;  %v9729_v17 = vld [vmem:[#allocation7 + $0x3f4] sm:$0xf0]  ;;  %v9663_v33 = vld [vmem:[#allocation7 + $0x1ec] sm:$0xf] }
 0x2da   :  { %5323 = vmatpush.bf16.msra.mxu0 %v7933_v56  ;;  %v3541_v10 = vpop.f32.mrf.mxu3  ;;  %5210 = vmatmul.bf16.vlgmr.msrb.gmra.mxu3 %v10320_v46  ;;  %v9789_v56 = vld [vmem:[#allocation7 + $0x5d4] sm:$0xf0]  ;;  %v8380_v15 = vld [vmem:[#allocation7 + $0x3e8] sm:$0xf] }
 0x2db   :  { %5306 = vmatpush.bf16.msrb.mxu3 %v8889_v45  ;;  %5348 = vmatpush.bf16.msra.mxu2 %v8205_v14  ;;  %v8621_v63 = vor.u32 %v9789_v56, %v8620_v55  ;;  %v9825_v45 = vld [vmem:[#allocation7 + $0x6f4] sm:$0xf0]  ;;  %v8428_v10 = vld [vmem:[#allocation7 + $0x448] sm:$0xf] }
 0x2dc   :  { %5336 = vmatpush.bf16.msra.mxu1 %v8061_v57  ;;  %v8188_v57 = vld [vmem:[#allocation7 + $0x268] sm:$0xf]  ;;  %v8765_v14 = vor.u32 %v9825_v45, %v8764_v44 }
 0x2dd   :  { %v8189_v36 = vor.u32 %v9681_v59, %v8188_v57  ;;  %v8748_v56 = vld [vmem:[#allocation7 + $0x6c8] sm:$0xf]  ;;  %v9821_v57 = vld [vmem:[#allocation7 + $0x6d4] sm:$0xf0] }
 0x2de   :  { %5324 = vmatpush.bf16.msra.mxu0 %v7917_v26  ;;  %v8604_v26 = vld [vmem:[#allocation7 + $0x5a8] sm:$0xf] }
 0x2df   :  { %5307 = vmatpush.bf16.msrb.mxu3 %v8873_v60  ;;  %5349 = vmatpush.bf16.msra.mxu2 %v8189_v36  ;;  %v8605_v11 = vor.u32 %v9785_v3, %v8604_v26  ;;  %v9830_v60 = vld [vmem:[#allocation7 + $0x724] sm:$0xf]  ;;  %v9737_v36 = vld [vmem:[#allocation7 + $0x434] sm:$0xf0]  ;;  %v8749_v3 = vor.u32 %v9821_v57, %v8748_v56  ;;  %v8364_v45 = vld [vmem:[#allocation7 + $0x3c8] sm:$0xf] }
 0x2e0   :  { %5337 = vmatpush.bf16.msra.mxu1 %v8045_v22  ;;  %v8172_v22 = vld [vmem:[#allocation7 + $0x248] sm:$0xf]  ;;  %v9721_v57 = vld [vmem:[#allocation7 + $0x3b4] sm:$0xf0] }
 0x2e1   :  { %v8173_v40 = vor.u32 %v9677_v6, %v8172_v22  ;;  %v8540_v22 = vld [vmem:[#allocation7 + $0x528] sm:$0xf]  ;;  %v9769_v6 = vld [vmem:[#allocation7 + $0x534] sm:$0xf0] }
 0x2e2   :  { %5325 = vmatpush.bf16.msra.mxu0 %v7901_v21  ;;  %v8461_v21 = vor.u32 %v9749_v13, %v8460_v24  ;;  %v8774_v13 = vld [vmem:[#allocation7 + $0x710] sm:$0xf0]  ;;  %v8348_v56 = vld [vmem:[#allocation7 + $0x3a8] sm:$0xf] }
 0x2e3   :  { %5308 = vmatpush.bf16.msrb.mxu3 %v8857_v51  ;;  %5350 = vmatpush.bf16.msra.mxu2 %v8173_v40  ;;  %v8777_v31 = vor.u32 %v9826_v29, %v8774_v13  ;;  %v8668_v13 = vld [vmem:[#allocation7 + $0x628] sm:$0xf] }
 0x2e4   :  { %5338 = vmatpush.bf16.msra.mxu1 %v8029_v30  ;;  %v8157_v30 = vor.u32 %v9673_v16, %v8156_v18  ;;  %v8541_v18 = vor.u32 %v9769_v6, %v8540_v22  ;;  %v8396_v16 = vld [vmem:[#allocation7 + $0x408] sm:$0xf]  ;;  %v9717_v22 = vld [vmem:[#allocation7 + $0x394] sm:$0xf0] }
 0x2e6   :  { %5326 = vmatpush.bf16.msra.mxu0 %v7885_v41  ;;  %v5120_v38 = vpop.f32.mrf.mxu0 }
 0x2e7   :  { %5309 = vmatpush.bf16.msrb.mxu3 %v8841_v47  ;;  %5351 = vmatpush.bf16.msra.mxu2 %v8157_v30  ;;  %v9733_v47 = vld [vmem:[#allocation7 + $0x414] sm:$0xf0]  ;;  %v7998_v30 = vld [vmem:[#allocation7 + $0xf8] sm:$0xf0] }
 0x2e8   :  { %5339 = vmatpush.bf16.msra.mxu1 %v8013_v48  ;;  %v5133_v7 = vpop.f32.mrf.mxu1  ;;  %v9834_v48 = vld [vmem:[#allocation7 + $0x744] sm:$0xf]  ;;  %v8397_v8 = vor.u32 %v9733_v47, %v8396_v16  ;;  %v9713_v16 = vld [vmem:[#allocation7 + $0x374] sm:$0xf0] }
 0x2e9   :  { %5327 = vmatmul.bf16.vlgmr.msra.gmra.mxu0 %v10255_v4  ;;  %v5134_v41 = vadd.f32 %v5133_v7, %v5120_v38  ;;  %v8381_v38 = vor.u32 %v9729_v17, %v8380_v15  ;;  %v9801_v15 = vld [vmem:[#allocation7 + $0x634] sm:$0xf0] }
 0x2ea   :  { %5371 = vmatpush.bf16.msrb.mxu0 %v8509_v49  ;;  %v8806_v49 = vld [vmem:[#allocation7 + $0x750] sm:$0xf0]  ;;  %5262 = vmatmul.bf16.vlgmr.msra.gmra.mxu3 %v10261_v9 }
 0x2eb   :  { %5340 = vmatmul.bf16.vlgmr.msra.gmra.mxu1 %v10257_v1  ;;  %5310 = vmatpush.bf16.msrb.mxu3 %v8825_v32  ;;  %v8809_v55 = vor.u32 %v9834_v48, %v8806_v49  ;;  %v8129_v48 = vor.u32 %v9663_v33, %v8126_v37  ;;  %v9627_v49 = vld [vmem:[#allocation7 + $0xcc] sm:$0xf]  ;;  %v8300_v37 = vld [vmem:[#allocation7 + $0x348] sm:$0xf] }
 0x2ec   :  { %5384 = vmatpush.bf16.msrb.mxu1 %v8637_v0  ;;  %v9741_v0 = vld [vmem:[#allocation7 + $0x454] sm:$0xf0]  ;;  %5352 = vmatpush.bf16.msra.mxu2 %v8141_v25  ;;  %v8717_v25 = vor.u32 %v9813_v42, %v8716_v39 }
 0x2ed   :  { %v8429_v59 = vor.u32 %v9741_v0, %v8428_v10  ;;  %v9659_v10 = vld [vmem:[#allocation7 + $0x1cc] sm:$0xf]  ;;  %v8110_v0 = vld [vmem:[#allocation7 + $0x1d8] sm:$0xf0] }
 0x2ee   :  { %5372 = vmatpush.bf16.msrb.mxu0 %v8493_v5  ;;  %v8790_v5 = vld [vmem:[#allocation7 + $0x730] sm:$0xf0]  ;;  %v5122_v26 = vpop.f32.mrf.mxu0 }
 0x2ef   :  { %5311 = vmatpush.bf16.msrb.mxu3 %v8809_v55  ;;  %5353 = vmatmul.bf16.vlgmr.msra.gmra.mxu2 %v10259_v27 }
 0x2f0   :  { %5385 = vmatpush.bf16.msrb.mxu1 %v8621_v63  ;;  %v5146_v61 = vpop.f32.mrf.mxu2  ;;  %v8412_v63 = vld [vmem:[#allocation7 + $0x428] sm:$0xf]  ;;  %5397 = vmatpush.bf16.msrb.mxu2 %v8765_v14  ;;  %v5135_v51 = vpop.f32.mrf.mxu1 }
 0x2f1   :  { %v5147_v2 = vadd.f32 %v5146_v61, %v5134_v41  ;;  %v8413_v24 = vor.u32 %v9737_v36, %v8412_v63  ;;  %v9725_v41 = vld [vmem:[#allocation7 + $0x3d4] sm:$0xf0]  ;;  %v8701_v61 = vor.u32 %v9809_v35, %v8700_v12  ;;  %v8094_v63 = vld [vmem:[#allocation7 + $0x1b8] sm:$0xf0]  ;;  %v8349_v36 = vor.u32 %v9721_v57, %v8348_v56  ;;  %v9619_v51 = vld [vmem:[#allocation7 + $0x8c] sm:$0xf] }
 0x2f2   :  { %5373 = vmatpush.bf16.msrb.mxu0 %v8477_v23  ;;  %v5159_v43 = vpop.f32.mrf.mxu3  ;;  %v8793_v23 = vor.u32 %v9830_v60, %v8790_v5  ;;  %v8365_v14 = vor.u32 %v9725_v41, %v8364_v45  ;;  %v9623_v60 = vld [vmem:[#allocation7 + $0xac] sm:$0xf]  ;;  %v7966_v5 = vld [vmem:[#allocation7 + $0xb8] sm:$0xf0]  ;;  %v9705_v35 = vld [vmem:[#allocation7 + $0x334] sm:$0xf0] }
 0x2f3   :  { %v10326_v40 = vadd.f32 %v5159_v43, %v5147_v2  ;;  %v8684_v2 = vld [vmem:[#allocation7 + $0x648] sm:$0xf]  ;;  %v9805_v43 = vld [vmem:[#allocation7 + $0x654] sm:$0xf0]  ;;  %v7969_v26 = vor.u32 %v9623_v60, %v7966_v5  ;;  %v8254_v45 = vld [vmem:[#allocation7 + $0x2f8] sm:$0xf0] }
 0x2f4   :  { %5386 = vmatpush.bf16.msrb.mxu1 %v8605_v11  ;;  %v9817_v11 = vld [vmem:[#allocation7 + $0x6b4] sm:$0xf0]  ;;  %5398 = vmatpush.bf16.msrb.mxu2 %v8749_v3  ;;  %v8332_v3 = vld [vmem:[#allocation7 + $0x388] sm:$0xf]  ;;  %v8685_v29 = vor.u32 %v9805_v43, %v8684_v2  ;;  %v8238_v56 = vld [vmem:[#allocation7 + $0x2d8] sm:$0xf0] }
 0x2f5   :  { %v8733_v52 = vor.u32 %v9817_v11, %v8732_v20  ;;  %5312 = vmatpush.bf16.msrb.mxu3 %v8793_v23  ;;  %v7950_v23 = vld [vmem:[#allocation7 + $0x98] sm:$0xf0]  ;;  %v9651_v20 = vld [vmem:[#allocation7 + $0x18c] sm:$0xf]  ;;  %v8268_v2 = vld [vmem:[#allocation7 + $0x308] sm:$0xf] }
 0x2f6   :  { %5374 = vmatpush.bf16.msrb.mxu0 %v8461_v21  ;;  %v8524_v21 = vld [vmem:[#allocation7 + $0x508] sm:$0xf]  ;;  %v8078_v11 = vld [vmem:[#allocation7 + $0x198] sm:$0xf0]  ;;  %v7953_v17 = vor.u32 %v9619_v51, %v7950_v23  ;;  %v9639_v5 = vld [vmem:[#allocation7 + $0x12c] sm:$0xf] }
 0x2f7   :  { %v8525_v32 = vor.u32 %v9765_v54, %v8524_v21  ;;  %v8081_v47 = vor.u32 %v9651_v20, %v8078_v11  ;;  %v9615_v21 = vld [vmem:[#allocation7 + $0x6c] sm:$0xf]  ;;  %v8669_v54 = vor.u32 %v9801_v15, %v8668_v13  ;;  %v7902_v60 = vld [vmem:[#allocation7 + $0x38] sm:$0xf0]  ;;  %v9701_v43 = vld [vmem:[#allocation7 + $0x314] sm:$0xf0] }
 0x2f8   :  { %5387 = vmatpush.bf16.msrb.mxu1 %v8589_v58  ;;  %v9631_v58 = vld [vmem:[#allocation7 + $0xec] sm:$0xf]  ;;  %v5148_v7 = vpop.f32.mrf.mxu2  ;;  %5399 = vmatpush.bf16.msrb.mxu2 %v8733_v52  ;;  %v7934_v52 = vld [vmem:[#allocation7 + $0x78] sm:$0xf0] }
 0x2f9   :  { %v8001_v44 = vor.u32 %v9631_v58, %v7998_v30  ;;  %5313 = vmatpush.bf16.msrb.mxu3 %v8777_v31  ;;  %v9647_v58 = vld [vmem:[#allocation7 + $0x16c] sm:$0xf]  ;;  %v8062_v30 = vld [vmem:[#allocation7 + $0x178] sm:$0xf0]  ;;  %v7937_v7 = vor.u32 %v9615_v21, %v7934_v52 }
 0x2fa   :  { %5375 = vmatpush.bf16.msrb.mxu0 %v8445_v34  ;;  %v5161_v34 = vpop.f32.mrf.mxu3  ;;  %v8065_v41 = vor.u32 %v9647_v58, %v8062_v30  ;;  %v9687_v51 = vld [vmem:[#allocation7 + $0x2ac] sm:$0xf]  ;;  %v8222_v23 = vld [vmem:[#allocation7 + $0x2b8] sm:$0xf0] }
 0x2fb   :  { %v9611_v34 = vld [vmem:[#allocation7 + $0x4c] sm:$0xf]  ;;  %v7886_v11 = vld [vmem:[#allocation7 + $0x18] sm:$0xf0] }
 0x2fc   :  { %5388 = vmatpush.bf16.msrb.mxu1 %v8573_v50  ;;  %v7982_v50 = vld [vmem:[#allocation7 + $0xd8] sm:$0xf0]  ;;  %5314 = vmatmul.bf16.vlgmr.msrb.gmra.mxu3 %v10320_v46  ;;  %v9603_v20 = vld [vmem:[#allocation7 + $0xc] sm:$0xf] }
 0x2fd   :  { %5358 = vmatpush.bf16.msra.mxu3 %v8381_v38  ;;  %v7985_v55 = vor.u32 %v9627_v49, %v7982_v50  ;;  %5400 = vmatpush.bf16.msrb.mxu2 %v8717_v25  ;;  %v8652_v38 = vld [vmem:[#allocation7 + $0x608] sm:$0xf]  ;;  %v9643_v25 = vld [vmem:[#allocation7 + $0x14c] sm:$0xf]  ;;  %v8014_v13 = vld [vmem:[#allocation7 + $0x118] sm:$0xf0] }
 0x2fe   :  { %5376 = vmatpush.bf16.msrb.mxu0 %v8429_v59  ;;  %v8113_v59 = vor.u32 %v9659_v10, %v8110_v0  ;;  %v8046_v10 = vld [vmem:[#allocation7 + $0x158] sm:$0xf0]  ;;  %v9759_v15 = vld [vmem:[#allocation7 + $0x4ec] sm:$0xf] }
 0x2ff   :  { %v8049_v57 = vor.u32 %v9643_v25, %v8046_v10  ;;  %v8638_v21 = vld [vmem:[#allocation7 + $0x5f8] sm:$0xf0]  ;;  %v9683_v58 = vld [vmem:[#allocation7 + $0x28c] sm:$0xf]  ;;  %v9849_v25 = vld [vmem:[#allocation7 + $0x7b4] sm:$0xf0] }
 0x300   :  { %5389 = vmatpush.bf16.msrb.mxu1 %v8557_v62  ;;  %v9655_v62 = vld [vmem:[#allocation7 + $0x1ac] sm:$0xf]  ;;  %v8206_v30 = vld [vmem:[#allocation7 + $0x298] sm:$0xf0] }
 0x301   :  { %5359 = vmatpush.bf16.msra.mxu3 %v8365_v14  ;;  %v8097_v6 = vor.u32 %v9655_v62, %v8094_v63  ;;  %5401 = vmatpush.bf16.msrb.mxu2 %v8701_v61  ;;  %v8030_v61 = vld [vmem:[#allocation7 + $0x138] sm:$0xf0] }
 0x302   :  { %5377 = vmatpush.bf16.msrb.mxu0 %v8413_v24  ;;  %v8333_v24 = vor.u32 %v9717_v22, %v8332_v3 }
 0x304   :  { %5390 = vmatpush.bf16.msrb.mxu1 %v8541_v18  ;;  %v8316_v18 = vld [vmem:[#allocation7 + $0x368] sm:$0xf] }
 0x305   :  { %5360 = vmatpush.bf16.msra.mxu3 %v8349_v36  ;;  %5402 = vmatpush.bf16.msrb.mxu2 %v8685_v29  ;;  %v8317_v33 = vor.u32 %v9713_v16, %v8316_v18  ;;  %v8033_v29 = vor.u32 %v9639_v5, %v8030_v61  ;;  %v8269_v18 = vor.u32 %v9701_v43, %v8268_v2  ;;  %v9845_v5 = vld [vmem:[#allocation7 + $0x794] sm:$0xf0]  ;;  %v8590_v2 = vld [vmem:[#allocation7 + $0x598] sm:$0xf0] }
 0x306   :  { %5378 = vmatpush.bf16.msrb.mxu0 %v8397_v8  ;;  %v5172_v31 = vpop.f32.mrf.mxu0  ;;  %v9797_v8 = vld [vmem:[#allocation7 + $0x614] sm:$0xf0]  ;;  %v8225_v16 = vor.u32 %v9687_v51, %v8222_v23  ;;  %v9743_v23 = vld [vmem:[#allocation7 + $0x46c] sm:$0xf] }
 0x307   :  { %v5173_v39 = vadd.f32 %v5172_v31, %v10326_v40  ;;  %v8653_v50 = vor.u32 %v9797_v8, %v8652_v38  ;;  %v8284_v40 = vld [vmem:[#allocation7 + $0x328] sm:$0xf]  ;;  %v9853_v38 = vld [vmem:[#allocation7 + $0x7d4] sm:$0xf0] }
 0x308   :  { %5391 = vmatpush.bf16.msrb.mxu1 %v8525_v32  ;;  %v5185_v42 = vpop.f32.mrf.mxu1  ;;  %v9709_v32 = vld [vmem:[#allocation7 + $0x354] sm:$0xf0]  ;;  %v8285_v63 = vor.u32 %v9705_v35, %v8284_v40  ;;  %v8606_v35 = vld [vmem:[#allocation7 + $0x5b8] sm:$0xf0] }
 0x309   :  { %5379 = vmatmul.bf16.vlgmr.msrb.gmra.mxu0 %v10282_v19  ;;  %5361 = vmatpush.bf16.msra.mxu3 %v8333_v24  ;;  %v10333_v49 = vadd.f32 %v5185_v42, %v5173_v39  ;;  %v8301_v0 = vor.u32 %v9709_v32, %v8300_v37  ;;  %v9635_v24 = vld [vmem:[#allocation7 + $0x10c] sm:$0xf]  ;;  %v8876_v37 = vld [vmem:[#allocation7 + $0x7c8] sm:$0xf]  ;;  %v8494_v42 = vld [vmem:[#allocation7 + $0x4d8] sm:$0xf0] }
 0x30a   :  { %5423 = vmatpush.bf16.msra.mxu0 %v8001_v44  ;;  %v9695_v44 = vld [vmem:[#allocation7 + $0x2ec] sm:$0xf]  ;;  %5403 = vmatpush.bf16.msrb.mxu2 %v8669_v54  ;;  %v7889_v54 = vor.u32 %v9603_v20, %v7886_v11  ;;  %v8017_v31 = vor.u32 %v9635_v24, %v8014_v13  ;;  %v8574_v24 = vld [vmem:[#allocation7 + $0x578] sm:$0xf0] }
 0x30b   :  { %5392 = vmatmul.bf16.vlgmr.msrb.gmra.mxu1 %v10284_v53  ;;  %v8257_v14 = vor.u32 %v9695_v44, %v8254_v45  ;;  %v9755_v39 = vld [vmem:[#allocation7 + $0x4cc] sm:$0xf]  ;;  %v8622_v44 = vld [vmem:[#allocation7 + $0x5d8] sm:$0xf0]  ;;  %v8877_v45 = vor.u32 %v9853_v38, %v8876_v37 }
 0x30c   :  { %5436 = vmatpush.bf16.msra.mxu1 %v8129_v48  ;;  %v7918_v48 = vld [vmem:[#allocation7 + $0x58] sm:$0xf0]  ;;  %v9787_v32 = vld [vmem:[#allocation7 + $0x5cc] sm:$0xf] }
 0x30d   :  { %5362 = vmatpush.bf16.msra.mxu3 %v8317_v33  ;;  %v7921_v12 = vor.u32 %v9611_v34, %v7918_v48  ;;  %v8190_v34 = vld [vmem:[#allocation7 + $0x278] sm:$0xf0]  ;;  %v8497_v48 = vor.u32 %v9755_v39, %v8494_v42  ;;  %v8625_v10 = vor.u32 %v9787_v32, %v8622_v44  ;;  %v9775_v11 = vld [vmem:[#allocation7 + $0x56c] sm:$0xf]  ;;  %v8796_v32 = vld [vmem:[#allocation7 + $0x728] sm:$0xf] }
 0x30e   :  { %5424 = vmatpush.bf16.msra.mxu0 %v7985_v55  ;;  %v9691_v55 = vld [vmem:[#allocation7 + $0x2cc] sm:$0xf]  ;;  %5404 = vmatpush.bf16.msrb.mxu2 %v8653_v50  ;;  %v5174_v62 = vpop.f32.mrf.mxu0  ;;  %v8860_v50 = vld [vmem:[#allocation7 + $0x7a8] sm:$0xf]  ;;  %v8430_v37 = vld [vmem:[#allocation7 + $0x458] sm:$0xf0] }
 0x30f   :  { %v8241_v36 = vor.u32 %v9691_v55, %v8238_v56  ;;  %v8861_v55 = vor.u32 %v9849_v25, %v8860_v50  ;;  %v9675_v56 = vld [vmem:[#allocation7 + $0x24c] sm:$0xf]  ;;  %v8558_v39 = vld [vmem:[#allocation7 + $0x558] sm:$0xf0] }
 0x310   :  { %5437 = vmatpush.bf16.msra.mxu1 %v8113_v59  ;;  %v9607_v59 = vld [vmem:[#allocation7 + $0x2c] sm:$0xf]  ;;  %v5187_v3 = vpop.f32.mrf.mxu1  ;;  %v8414_v25 = vld [vmem:[#allocation7 + $0x438] sm:$0xf0] }
 0x311   :  { %5363 = vmatpush.bf16.msra.mxu3 %v8301_v0  ;;  %v7905_v22 = vor.u32 %v9607_v59, %v7902_v60  ;;  %5405 = vmatmul.bf16.vlgmr.msrb.gmra.mxu2 %v10306_v28  ;;  %v9751_v0 = vld [vmem:[#allocation7 + $0x4ac] sm:$0xf]  ;;  %v8844_v60 = vld [vmem:[#allocation7 + $0x788] sm:$0xf]  ;;  %v8158_v3 = vld [vmem:[#allocation7 + $0x238] sm:$0xf0] }
 0x312   :  { %5425 = vmatpush.bf16.msra.mxu0 %v7969_v26  ;;  %5449 = vmatpush.bf16.msra.mxu2 %v8257_v14  ;;  %v8892_v26 = vld [vmem:[#allocation7 + $0x7e8] sm:$0xf]  ;;  %v8478_v14 = vld [vmem:[#allocation7 + $0x4b8] sm:$0xf0]  ;;  %v9747_v62 = vld [vmem:[#allocation7 + $0x48c] sm:$0xf]  ;;  %v8845_v43 = vor.u32 %v9845_v5, %v8844_v60 }
 0x313   :  { %v8481_v59 = vor.u32 %v9751_v0, %v8478_v14  ;;  %v9735_v50 = vld [vmem:[#allocation7 + $0x42c] sm:$0xf]  ;;  %v8542_v0 = vld [vmem:[#allocation7 + $0x538] sm:$0xf0] }
 0x314   :  { %5438 = vmatpush.bf16.msra.mxu1 %v8097_v6  ;;  %v9857_v6 = vld [vmem:[#allocation7 + $0x7f4] sm:$0xf0]  ;;  %v8382_v60 = vld [vmem:[#allocation7 + $0x3f8] sm:$0xf0]  ;;  %v9815_v5 = vld [vmem:[#allocation7 + $0x6ac] sm:$0xf] }
 0x315   :  { %5364 = vmatpush.bf16.msra.mxu3 %v8285_v63  ;;  %v8893_v52 = vor.u32 %v9857_v6, %v8892_v26  ;;  %v8462_v63 = vld [vmem:[#allocation7 + $0x498] sm:$0xf0]  ;;  %v9671_v26 = vld [vmem:[#allocation7 + $0x22c] sm:$0xf]  ;;  %v9841_v6 = vld [vmem:[#allocation7 + $0x774] sm:$0xf0] }
 0x316   :  { %5426 = vmatpush.bf16.msra.mxu0 %v7953_v17  ;;  %v8510_v17 = vld [vmem:[#allocation7 + $0x4f8] sm:$0xf0]  ;;  %5450 = vmatpush.bf16.msra.mxu2 %v8241_v36  ;;  %v9779_v36 = vld [vmem:[#allocation7 + $0x58c] sm:$0xf]  ;;  %v8161_v20 = vor.u32 %v9671_v26, %v8158_v3  ;;  %v9873_v26 = vld [vmem:[#allocation8 + $0x74] sm:$0xf0] }
 0x317   :  { %v8513_v33 = vor.u32 %v9759_v15, %v8510_v17  ;;  %v8593_v51 = vor.u32 %v9779_v36, %v8590_v2  ;;  %v8812_v17 = vld [vmem:[#allocation7 + $0x748] sm:$0xf]  ;;  %v9763_v36 = vld [vmem:[#allocation7 + $0x50c] sm:$0xf]  ;;  %v8526_v2 = vld [vmem:[#allocation7 + $0x518] sm:$0xf0] }
 0x318   :  { %5439 = vmatpush.bf16.msra.mxu1 %v8081_v47  ;;  %v9791_v47 = vld [vmem:[#allocation7 + $0x5ec] sm:$0xf] }
 0x319   :  { %v8641_v8 = vor.u32 %v9791_v47, %v8638_v21  ;;  %5365 = vmatpush.bf16.msra.mxu3 %v8269_v18  ;;  %v9667_v18 = vld [vmem:[#allocation7 + $0x20c] sm:$0xf] }
 0x31a   :  { %5427 = vmatpush.bf16.msra.mxu0 %v7937_v7  ;;  %5451 = vmatpush.bf16.msra.mxu2 %v8225_v16  ;;  %v8209_v7 = vor.u32 %v9683_v58, %v8206_v30  ;;  %v8142_v16 = vld [vmem:[#allocation7 + $0x218] sm:$0xf0] }
 0x31b   :  { %v8766_v58 = vld [vmem:[#allocation7 + $0x6f8] sm:$0xf0]  ;;  %v8145_v38 = vor.u32 %v9667_v18, %v8142_v16  ;;  %v9807_v18 = vld [vmem:[#allocation7 + $0x66c] sm:$0xf] }
 0x31c   :  { %5440 = vmatpush.bf16.msra.mxu1 %v8065_v41  ;;  %v9679_v41 = vld [vmem:[#allocation7 + $0x26c] sm:$0xf]  ;;  %5366 = vmatmul.bf16.vlgmr.msra.gmra.mxu3 %v10261_v9  ;;  %v8702_v16 = vld [vmem:[#allocation7 + $0x678] sm:$0xf0] }
 0x31d   :  { %5410 = vmatpush.bf16.msrb.mxu3 %v8893_v52  ;;  %v8193_v40 = vor.u32 %v9679_v41, %v8190_v34  ;;  %v9837_v52 = vld [vmem:[#allocation7 + $0x754] sm:$0xf0]  ;;  %v9819_v41 = vld [vmem:[#allocation7 + $0x6cc] sm:$0xf]  ;;  %v8750_v34 = vld [vmem:[#allocation7 + $0x6d8] sm:$0xf0] }
 0x31e   :  { %5428 = vmatpush.bf16.msra.mxu0 %v7921_v12  ;;  %5452 = vmatpush.bf16.msra.mxu2 %v8209_v7  ;;  %v9783_v12 = vld [vmem:[#allocation7 + $0x5ac] sm:$0xf]  ;;  %v8813_v42 = vor.u32 %v9837_v52, %v8812_v17 }
 0x31f   :  { %v8609_v61 = vor.u32 %v9783_v12, %v8606_v35  ;;  %v8753_v12 = vor.u32 %v9819_v41, %v8750_v34  ;;  %v8780_v35 = vld [vmem:[#allocation7 + $0x708] sm:$0xf] }
 0x320   :  { %5441 = vmatpush.bf16.msra.mxu1 %v8049_v57  ;;  %v8174_v57 = vld [vmem:[#allocation7 + $0x258] sm:$0xf0]  ;;  %v9867_v41 = vld [vmem:[#allocation8 + $0x44] sm:$0xf0] }
 0x321   :  { %5411 = vmatpush.bf16.msrb.mxu3 %v8877_v45  ;;  %v9833_v45 = vld [vmem:[#allocation7 + $0x734] sm:$0xf0] }
 0x322   :  { %5429 = vmatpush.bf16.msra.mxu0 %v7905_v22  ;;  %5453 = vmatpush.bf16.msra.mxu2 %v8193_v40  ;;  %v8828_v22 = vld [vmem:[#allocation7 + $0x768] sm:$0xf]  ;;  %v8797_v40 = vor.u32 %v9833_v45, %v8796_v32  ;;  %v9020_v32 = vld [vmem:[#allocation8 + $0xf0] sm:$0xf]  ;;  %v8932_v45 = vld [vmem:[#allocation8 + $0x40] sm:$0xf] }
 0x323   :  { %v8829_v15 = vor.u32 %v9841_v6, %v8828_v22 }
 0x324   :  { %5442 = vmatpush.bf16.msra.mxu1 %v8033_v29  ;;  %v8446_v29 = vld [vmem:[#allocation7 + $0x478] sm:$0xf0] }
 0x325   :  { %5412 = vmatpush.bf16.msrb.mxu3 %v8861_v55  ;;  %v8449_v21 = vor.u32 %v9743_v23, %v8446_v29  ;;  %v9829_v55 = vld [vmem:[#allocation7 + $0x714] sm:$0xf0]  ;;  %v8718_v23 = vld [vmem:[#allocation7 + $0x698] sm:$0xf0]  ;;  %v8529_v29 = vor.u32 %v9763_v36, %v8526_v2  ;;  %v9004_v2 = vld [vmem:[#allocation8 + $0xd0] sm:$0xf] }
 0x326   :  { %5430 = vmatpush.bf16.msra.mxu0 %v7889_v54  ;;  %v5224_v13 = vpop.f32.mrf.mxu0  ;;  %v9823_v54 = vld [vmem:[#allocation7 + $0x6ec] sm:$0xf]  ;;  %v8781_v3 = vor.u32 %v9829_v55, %v8780_v35  ;;  %v9865_v35 = vld [vmem:[#allocation8 + $0x34] sm:$0xf0] }
 0x327   :  { %v8769_v7 = vor.u32 %v9823_v54, %v8766_v58  ;;  %v8940_v54 = vld [vmem:[#allocation8 + $0x50] sm:$0xf]  ;;  %v9869_v58 = vld [vmem:[#allocation8 + $0x54] sm:$0xf0] }
 0x328   :  { %5443 = vmatpush.bf16.msra.mxu1 %v8017_v31  ;;  %v5237_v47 = vpop.f32.mrf.mxu1  ;;  %v8577_v31 = vor.u32 %v9775_v11, %v8574_v24  ;;  %v8948_v24 = vld [vmem:[#allocation8 + $0x60] sm:$0xf] }
 0x329   :  { %5431 = vmatmul.bf16.vlgmr.msra.gmra.mxu0 %v10255_v4  ;;  %v8177_v4 = vor.u32 %v9675_v56, %v8174_v57  ;;  %5413 = vmatpush.bf16.msrb.mxu3 %v8845_v43  ;;  %v10339_v30 = vadd.f32 %v5237_v47, %v5224_v13  ;;  %v9727_v56 = vld [vmem:[#allocation7 + $0x3ec] sm:$0xf]  ;;  %v8956_v43 = vld [vmem:[#allocation8 + $0x70] sm:$0xf]  ;;  %v9871_v13 = vld [vmem:[#allocation8 + $0x64] sm:$0xf0] }
 0x32a   :  { %5475 = vmatpush.bf16.msrb.mxu0 %v8513_v33  ;;  %v9739_v33 = vld [vmem:[#allocation7 + $0x44c] sm:$0xf]  ;;  %v8385_v22 = vor.u32 %v9727_v56, %v8382_v60  ;;  %v8957_v11 = vor.u32 %v9873_v26, %v8956_v43  ;;  %v8949_v52 = vor.u32 %v9871_v13, %v8948_v24  ;;  %v9885_v43 = vld [vmem:[#allocation8 + $0xd4] sm:$0xf0]  ;;  %v8916_v26 = vld [vmem:[#allocation8 + $0x20] sm:$0xf] }
 0x32b   :  { %5444 = vmatmul.bf16.vlgmr.msra.gmra.mxu1 %v10257_v1  ;;  %v8465_v1 = vor.u32 %v9747_v62, %v8462_v63  ;;  %5454 = vmatpush.bf16.msra.mxu2 %v8177_v4  ;;  %v8433_v44 = vor.u32 %v9739_v33, %v8430_v37  ;;  %v9731_v63 = vld [vmem:[#allocation7 + $0x40c] sm:$0xf]  ;;  %v8398_v4 = vld [vmem:[#allocation7 + $0x418] sm:$0xf0]  ;;  %v9861_v24 = vld [vmem:[#allocation8 + $0x14] sm:$0xf0] }
 0x32c   :  { %5488 = vmatpush.bf16.msrb.mxu1 %v8641_v8  ;;  %v9771_v8 = vld [vmem:[#allocation7 + $0x54c] sm:$0xf]  ;;  %v8401_v6 = vor.u32 %v9731_v63, %v8398_v4  ;;  %v8302_v4 = vld [vmem:[#allocation7 + $0x358] sm:$0xf0] }
 0x32d   :  { %5414 = vmatpush.bf16.msrb.mxu3 %v8829_v15  ;;  %v9719_v47 = vld [vmem:[#allocation7 + $0x3ac] sm:$0xf] }
 0x32e   :  { %5476 = vmatpush.bf16.msrb.mxu0 %v8497_v48  ;;  %v8561_v48 = vor.u32 %v9771_v8, %v8558_v39  ;;  %v5226_v14 = vpop.f32.mrf.mxu0  ;;  %v10345_v33 = vpop.f32.mrf.mxu2  ;;  %v9803_v8 = vld [vmem:[#allocation7 + $0x64c] sm:$0xf]  ;;  %v8686_v39 = vld [vmem:[#allocation7 + $0x658] sm:$0xf0] }
 0x32f   :  { %5455 = vmatpush.bf16.msra.mxu2 %v8161_v20  ;;  %v9723_v20 = vld [vmem:[#allocation7 + $0x3cc] sm:$0xf]  ;;  %v9012_v14 = vld [vmem:[#allocation8 + $0xe0] sm:$0xf] }
 0x330   :  { %5489 = vmatpush.bf16.msrb.mxu1 %v8625_v10  ;;  %v9767_v10 = vld [vmem:[#allocation7 + $0x52c] sm:$0xf]  ;;  %v5239_v57 = vpop.f32.mrf.mxu1 }
 0x331   :  { %5415 = vmatpush.bf16.msrb.mxu3 %v8813_v42  ;;  %v8545_v62 = vor.u32 %v9767_v10, %v8542_v0  ;;  %v8334_v42 = vld [vmem:[#allocation7 + $0x398] sm:$0xf0]  ;;  %v8933_v0 = vor.u32 %v9867_v41, %v8932_v45  ;;  %v8980_v41 = vld [vmem:[#allocation8 + $0xa0] sm:$0xf] }
 0x332   :  { %5477 = vmatpush.bf16.msrb.mxu0 %v8481_v59  ;;  %v8417_v59 = vor.u32 %v9735_v50, %v8414_v25  ;;  %v9711_v50 = vld [vmem:[#allocation7 + $0x36c] sm:$0xf]  ;;  %v8670_v25 = vld [vmem:[#allocation7 + $0x638] sm:$0xf0] }
 0x333   :  { %5456 = vmatpush.bf16.msra.mxu2 %v8145_v38  ;;  %v9715_v38 = vld [vmem:[#allocation7 + $0x38c] sm:$0xf]  ;;  %v8318_v10 = vld [vmem:[#allocation7 + $0x378] sm:$0xf0] }
 0x334   :  { %5490 = vmatpush.bf16.msrb.mxu1 %v8609_v61  ;;  %v8734_v61 = vld [vmem:[#allocation7 + $0x6b8] sm:$0xf0]  ;;  %v8321_v60 = vor.u32 %v9711_v50, %v8318_v10 }
 0x335   :  { %5416 = vmatpush.bf16.msrb.mxu3 %v8797_v40  ;;  %v9887_v40 = vld [vmem:[#allocation8 + $0xe4] sm:$0xf0] }
 0x336   :  { %5478 = vmatpush.bf16.msrb.mxu0 %v8465_v1  ;;  %5457 = vmatmul.bf16.vlgmr.msra.gmra.mxu2 %v10259_v27  ;;  %v8737_v1 = vor.u32 %v9815_v5, %v8734_v61  ;;  %v8366_v27 = vld [vmem:[#allocation7 + $0x3d8] sm:$0xf0]  ;;  %v9013_v55 = vor.u32 %v9887_v40, %v9012_v14  ;;  %v9707_v5 = vld [vmem:[#allocation7 + $0x34c] sm:$0xf]  ;;  %v8972_v14 = vld [vmem:[#allocation8 + $0x90] sm:$0xf] }
 0x337   :  { %5501 = vmatpush.bf16.msrb.mxu2 %v8769_v7  ;;  %v8369_v17 = vor.u32 %v9723_v20, %v8366_v27  ;;  %v8941_v7 = vor.u32 %v9869_v58, %v8940_v54  ;;  %v9795_v61 = vld [vmem:[#allocation7 + $0x60c] sm:$0xf]  ;;  %v8996_v20 = vld [vmem:[#allocation8 + $0xc0] sm:$0xf]  ;;  %v9883_v27 = vld [vmem:[#allocation8 + $0xc4] sm:$0xf0] }
 0x338   :  { %5491 = vmatpush.bf16.msrb.mxu1 %v8593_v51  ;;  %v9811_v51 = vld [vmem:[#allocation7 + $0x68c] sm:$0xf]  ;;  %v8997_v13 = vor.u32 %v9883_v27, %v8996_v20  ;;  %v8988_v58 = vld [vmem:[#allocation8 + $0xb0] sm:$0xf]  ;;  %v9877_v40 = vld [vmem:[#allocation8 + $0x94] sm:$0xf0] }
 0x339   :  { %5417 = vmatpush.bf16.msrb.mxu3 %v8781_v3  ;;  %v8721_v15 = vor.u32 %v9811_v51, %v8718_v23  ;;  %v9863_v3 = vld [vmem:[#allocation8 + $0x24] sm:$0xf0]  ;;  %v9703_v51 = vld [vmem:[#allocation7 + $0x32c] sm:$0xf]  ;;  %v8286_v23 = vld [vmem:[#allocation7 + $0x338] sm:$0xf0] }
 0x33a   :  { %5479 = vmatpush.bf16.msrb.mxu0 %v8449_v21  ;;  %v8350_v21 = vld [vmem:[#allocation7 + $0x3b8] sm:$0xf0]  ;;  %v9886_v27 = vld [vmem:[#allocation8 + $0xe4] sm:$0xf] }
 0x33b   :  { %5502 = vmatpush.bf16.msrb.mxu2 %v8753_v12  ;;  %v8353_v37 = vor.u32 %v9719_v47, %v8350_v21  ;;  %v8924_v12 = vld [vmem:[#allocation8 + $0x30] sm:$0xf]  ;;  %v8270_v47 = vld [vmem:[#allocation7 + $0x318] sm:$0xf0] }
 0x33c   :  { %5492 = vmatpush.bf16.msrb.mxu1 %v8577_v31  ;;  %5418 = vmatmul.bf16.vlgmr.msrb.gmra.mxu3 %v10320_v46  ;;  %v8705_v31 = vor.u32 %v9807_v18, %v8702_v16  ;;  %v8925_v36 = vor.u32 %v9865_v35, %v8924_v12  ;;  %v8289_v18 = vor.u32 %v9703_v51, %v8286_v23  ;;  %v9699_v16 = vld [vmem:[#allocation7 + $0x30c] sm:$0xf]  ;;  %v8862_v35 = vld [vmem:[#allocation7 + $0x7b8] sm:$0xf0] }
 0x33d   :  { %5462 = vmatpush.bf16.msra.mxu3 %v8385_v22  ;;  %v9847_v12 = vld [vmem:[#allocation7 + $0x7ac] sm:$0xf] }
 0x33e   :  { %5480 = vmatpush.bf16.msrb.mxu0 %v8433_v44  ;;  %v9889_v44 = vld [vmem:[#allocation8 + $0xf4] sm:$0xf0]  ;;  %v9839_v23 = vld [vmem:[#allocation7 + $0x76c] sm:$0xf] }
 0x33f   :  { %5503 = vmatpush.bf16.msrb.mxu2 %v8737_v1  ;;  %v9021_v34 = vor.u32 %v9889_v44, %v9020_v32  ;;  %v9005_v1 = vor.u32 %v9885_v43, %v9004_v2  ;;  %v8273_v32 = vor.u32 %v9699_v16, %v8270_v47  ;;  %v9835_v47 = vld [vmem:[#allocation7 + $0x74c] sm:$0xf] }
 0x340   :  { %5493 = vmatpush.bf16.msrb.mxu1 %v8561_v48  ;;  %v8337_v48 = vor.u32 %v9715_v38, %v8334_v42  ;;  %v8900_v38 = vld [vmem:[#allocation8] sm:$0xf]  ;;  %v9872_v42 = vld [vmem:[#allocation8 + $0x74] sm:$0xf] }
 0x341   :  { %5463 = vmatpush.bf16.msra.mxu3 %v8369_v17 }
 0x342   :  { %5481 = vmatpush.bf16.msrb.mxu0 %v8417_v59  ;;  %v5200_v59 = vpop.f32.mrf.mxu2 }
 0x343   :  { %5504 = vmatpush.bf16.msrb.mxu2 %v8721_v15  ;;  %v9868_v59 = vld [vmem:[#allocation8 + $0x54] sm:$0xf] }
 0x344   :  { %5494 = vmatpush.bf16.msrb.mxu1 %v8545_v62  ;;  %v8654_v62 = vld [vmem:[#allocation7 + $0x618] sm:$0xf0] }
 0x345   :  { %5464 = vmatpush.bf16.msra.mxu3 %v8353_v37  ;;  %v8657_v22 = vor.u32 %v9795_v61, %v8654_v62  ;;  %v8894_v37 = vld [vmem:[#allocation7 + $0x7f8] sm:$0xf0]  ;;  %v9843_v61 = vld [vmem:[#allocation7 + $0x78c] sm:$0xf]  ;;  %v8964_v62 = vld [vmem:[#allocation8 + $0x80] sm:$0xf] }
 0x346   :  { %5482 = vmatpush.bf16.msrb.mxu0 %v8401_v6  ;;  %v10347_v57 = vpop.f32.mrf.mxu0  ;;  %v8305_v6 = vor.u32 %v9707_v5, %v8302_v4  ;;  %v8865_v5 = vor.u32 %v9847_v12, %v8862_v35  ;;  %v9875_v4 = vld [vmem:[#allocation8 + $0x84] sm:$0xf0]  ;;  %v8782_v12 = vld [vmem:[#allocation7 + $0x718] sm:$0xf0] }
 0x347   :  { %5505 = vmatpush.bf16.msrb.mxu2 %v8705_v31  ;;  %v9881_v31 = vld [vmem:[#allocation8 + $0xb4] sm:$0xf0]  ;;  %v8965_v43 = vor.u32 %v9875_v4, %v8964_v62  ;;  %v9878_v4 = vld [vmem:[#allocation8 + $0xa4] sm:$0xf] }
 0x348   :  { %5495 = vmatpush.bf16.msrb.mxu1 %v8529_v29  ;;  %v10349_v63 = vpop.f32.mrf.mxu1  ;;  %v8917_v29 = vor.u32 %v9863_v3, %v8916_v26  ;;  %v9888_v26 = vld [vmem:[#allocation8 + $0xf4] sm:$0xf]  ;;  %v9022_v3 = vld [vmem:[#allocation8 + $0xf8] sm:$0xf0] }
 0x349   :  { %5483 = vmatmul.bf16.vlgmr.msrb.gmra.mxu0 %v10282_v19  ;;  %v8689_v19 = vor.u32 %v9803_v8, %v8686_v39  ;;  %5465 = vmatpush.bf16.msra.mxu3 %v8337_v48  ;;  %v9859_v8 = vld [vmem:[#allocation8 + $0x4] sm:$0xf0]  ;;  %v8989_v39 = vor.u32 %v9881_v31, %v8988_v58  ;;  %v8878_v48 = vld [vmem:[#allocation7 + $0x7d8] sm:$0xf0]  ;;  %v9884_v31 = vld [vmem:[#allocation8 + $0xd4] sm:$0xf] }
 0x34a   :  { %5927 = vmatpush.bf16.msra.mxu0 %v8957_v11  ;;  %v8908_v11 = vld [vmem:[#allocation8 + $0x10] sm:$0xf]  ;;  %v10351_v17 = vpop.f32.mrf.mxu2  ;;  %v8901_v45 = vor.u32 %v9859_v8, %v8900_v38 }
 0x34b   :  { %5496 = vmatmul.bf16.vlgmr.msrb.gmra.mxu1 %v10284_v53  ;;  %v9799_v53 = vld [vmem:[#allocation7 + $0x62c] sm:$0xf]  ;;  %5506 = vmatpush.bf16.msrb.mxu2 %v8689_v19  ;;  %v8909_v54 = vor.u32 %v9861_v24, %v8908_v11  ;;  %v9864_v24 = vld [vmem:[#allocation8 + $0x34] sm:$0xf] }
 0x34c   :  { %5940 = vmatpush.bf16.msra.mxu1 %v9021_v34  ;;  %v8673_v56 = vor.u32 %v9799_v53, %v8670_v25  ;;  %v9879_v34 = vld [vmem:[#allocation8 + $0xa4] sm:$0xf0]  ;;  %v9851_v19 = vld [vmem:[#allocation7 + $0x7cc] sm:$0xf]  ;;  %v9870_v25 = vld [vmem:[#allocation8 + $0x64] sm:$0xf] }
 0x34d   :  { %5466 = vmatpush.bf16.msra.mxu3 %v8321_v60  ;;  %v8981_v53 = vor.u32 %v9879_v34, %v8980_v41  ;;  %v8942_v60 = vld [vmem:[#allocation8 + $0x58] sm:$0xf0]  ;;  %v9014_v11 = vld [vmem:[#allocation8 + $0xe8] sm:$0xf0] }
 0x34e   :  { %5928 = vmatpush.bf16.msra.mxu0 %v8949_v52  ;;  %v5278_v15 = vpop.f32.mrf.mxu0  ;;  %v9855_v52 = vld [vmem:[#allocation7 + $0x7ec] sm:$0xf]  ;;  %v8945_v2 = vor.u32 %v9868_v59, %v8942_v60  ;;  %v8798_v34 = vld [vmem:[#allocation7 + $0x738] sm:$0xf0]  ;;  %v9880_v59 = vld [vmem:[#allocation8 + $0xb4] sm:$0xf] }
 0x34f   :  { %5507 = vmatpush.bf16.msrb.mxu2 %v8673_v56  ;;  %v8897_v44 = vor.u32 %v9855_v52, %v8894_v37  ;;  %v8973_v56 = vor.u32 %v9877_v40, %v8972_v14  ;;  %v9017_v15 = vor.u32 %v9886_v27, %v9014_v11  ;;  %v9006_v37 = vld [vmem:[#allocation8 + $0xd8] sm:$0xf0]  ;;  %v9831_v41 = vld [vmem:[#allocation7 + $0x72c] sm:$0xf]  ;;  %v9874_v27 = vld [vmem:[#allocation8 + $0x84] sm:$0xf] }
 0x350   :  { %5941 = vmatpush.bf16.msra.mxu1 %v9013_v55  ;;  %v5291_v21 = vpop.f32.mrf.mxu1  ;;  %v8801_v14 = vor.u32 %v9831_v41, %v8798_v34  ;;  %v9827_v40 = vld [vmem:[#allocation7 + $0x70c] sm:$0xf]  ;;  %v8990_v60 = vld [vmem:[#allocation8 + $0xb8] sm:$0xf0]  ;;  %v9052_v41 = vld [vmem:[#allocation8 + $0x130] sm:$0xf] }
 0x351   :  { %5467 = vmatpush.bf16.msra.mxu3 %v8305_v6  ;;  %v9025_v6 = vor.u32 %v9888_v26, %v9022_v3  ;;  %v5199_v21 = vadd.f32 %v10345_v33, %v10333_v49  ;;  %v8993_v62 = vor.u32 %v9880_v59, %v8990_v60  ;;  %v9876_v3 = vld [vmem:[#allocation8 + $0x94] sm:$0xf]  ;;  %v9897_v34 = vld [vmem:[#allocation8 + $0x134] sm:$0xf0]  ;;  %v9902_v59 = vld [vmem:[#allocation8 + $0x164] sm:$0xf] }
 0x352   :  { %5929 = vmatpush.bf16.msra.mxu0 %v8941_v7  ;;  %v8958_v7 = vld [vmem:[#allocation8 + $0x78] sm:$0xf0]  ;;  %v5252_v10 = vpop.f32.mrf.mxu2  ;;  %v9078_v60 = vld [vmem:[#allocation8 + $0x168] sm:$0xf0] }
 0x353   :  { %5508 = vmatpush.bf16.msrb.mxu2 %v8657_v22  ;;  %v8961_v50 = vor.u32 %v9872_v42, %v8958_v7  ;;  %v8934_v22 = vld [vmem:[#allocation8 + $0x48] sm:$0xf0]  ;;  %v9009_v7 = vor.u32 %v9884_v31, %v9006_v37 }
 0x354   :  { %5942 = vmatpush.bf16.msra.mxu1 %v9005_v1  ;;  %v9866_v1 = vld [vmem:[#allocation8 + $0x44] sm:$0xf]  ;;  %v8918_v42 = vld [vmem:[#allocation8 + $0x28] sm:$0xf0] }
 0x355   :  { %5468 = vmatpush.bf16.msra.mxu3 %v8289_v18  ;;  %v8937_v20 = vor.u32 %v9866_v1, %v8934_v22  ;;  %v8974_v1 = vld [vmem:[#allocation8 + $0x98] sm:$0xf0] }
 0x356   :  { %5930 = vmatpush.bf16.msra.mxu0 %v8933_v0  ;;  %5509 = vmatmul.bf16.vlgmr.msrb.gmra.mxu2 %v10306_v28  ;;  %v8950_v28 = vld [vmem:[#allocation8 + $0x68] sm:$0xf0]  ;;  %v8881_v0 = vor.u32 %v9851_v19, %v8878_v48  ;;  %v9882_v19 = vld [vmem:[#allocation8 + $0xc4] sm:$0xf]  ;;  %v9860_v48 = vld [vmem:[#allocation8 + $0x14] sm:$0xf]  ;;  %v8977_v22 = vor.u32 %v9876_v3, %v8974_v1 }
 0x357   :  { %v8953_v55 = vor.u32 %v9870_v25, %v8950_v28  ;;  %v9898_v3 = vld [vmem:[#allocation8 + $0x144] sm:$0xf]  ;;  %v9062_v1 = vld [vmem:[#allocation8 + $0x148] sm:$0xf0] }
 0x358   :  { %5943 = vmatpush.bf16.msra.mxu1 %v8997_v13  ;;  %v8926_v13 = vld [vmem:[#allocation8 + $0x38] sm:$0xf0] }
 0x359   :  { %5469 = vmatpush.bf16.msra.mxu3 %v8273_v32  ;;  %v8929_v58 = vor.u32 %v9864_v24, %v8926_v13  ;;  %v8966_v24 = vld [vmem:[#allocation8 + $0x88] sm:$0xf0] }
 0x35a   :  { %5931 = vmatpush.bf16.msra.mxu0 %v8925_v36  ;;  %v8846_v36 = vld [vmem:[#allocation7 + $0x798] sm:$0xf0]  ;;  %v10355_v51 = vpop.f32.mrf.mxu2  ;;  %v8969_v13 = vor.u32 %v9874_v27, %v8966_v24  ;;  %v9046_v24 = vld [vmem:[#allocation8 + $0x128] sm:$0xf0] }
 0x35c   :  { %5944 = vmatpush.bf16.msra.mxu1 %v8989_v39  ;;  %5470 = vmatmul.bf16.vlgmr.msra.gmra.mxu3 %v10261_v9  ;;  %v8849_v9 = vor.u32 %v9843_v61, %v8846_v36  ;;  %v9862_v39 = vld [vmem:[#allocation8 + $0x24] sm:$0xf]  ;;  %v8902_v61 = vld [vmem:[#allocation8 + $0x8] sm:$0xf0] }
 0x35d   :  { %5514 = vmatpush.bf16.msrb.mxu3 %v8897_v44  ;;  %v5211_v8 = vpop.f32.mrf.mxu3  ;;  %v8921_v33 = vor.u32 %v9862_v39, %v8918_v42  ;;  %v8982_v36 = vld [vmem:[#allocation8 + $0xa8] sm:$0xf0]  ;;  %v9899_v39 = vld [vmem:[#allocation8 + $0x144] sm:$0xf0] }
 0x35e   :  { %5932 = vmatpush.bf16.msra.mxu0 %v8917_v29  ;;  %v8830_v29 = vld [vmem:[#allocation7 + $0x778] sm:$0xf0]  ;;  %v5212_v32 = vadd.f32 %v5211_v8, %v5199_v21  ;;  %v8985_v26 = vor.u32 %v9878_v4, %v8982_v36  ;;  %v9060_v8 = vld [vmem:[#allocation8 + $0x140] sm:$0xf] }
 0x35f   :  { %v8833_v16 = vor.u32 %v9839_v23, %v8830_v29  ;;  %v9084_v29 = vld [vmem:[#allocation8 + $0x170] sm:$0xf]  ;;  %v9070_v4 = vld [vmem:[#allocation8 + $0x158] sm:$0xf0] }
 0x360   :  { %5945 = vmatpush.bf16.msra.mxu1 %v8981_v53  ;;  %vm5527_vm8 = vcmp.gt.f32.partialorder %v5212_v32, 0.0  ;;  %v5531_v49 = vmul.f32 0.2, %v5212_v32  ;;  %v8998_v53 = vld [vmem:[#allocation8 + $0xc8] sm:$0xf0] }
 0x361   :  { %5515 = vmatpush.bf16.msrb.mxu3 %v8881_v0  ;;  %v9001_v28 = vor.u32 %v9882_v19, %v8998_v53  ;;  %v9044_v19 = vld [vmem:[#allocation8 + $0x120] sm:$0xf] }
 0x362   :  { %5933 = vmatpush.bf16.msra.mxu0 %v8909_v54  ;;  %v8814_v54 = vld [vmem:[#allocation7 + $0x758] sm:$0xf0]  ;;  %v5304_v44 = vpop.f32.mrf.mxu2  ;;  %v5535_v25 = vsel %vm5527_vm8, %v5212_v32, %v5531_v49 }
 0x363   :  { %v5539_v10 = vpack.c.bf16 %v5535_v25, %v5535_v25  ;;  %v9036_v25 = vld [vmem:[#allocation8 + $0x110] sm:$0xf] }
 0x364   :  { %5946 = vmatpush.bf16.msra.mxu1 %v8973_v56  ;;  %v9858_v56 = vld [vmem:[#allocation8 + $0x4] sm:$0xf] }
 0x365   :  { %5516 = vmatpush.bf16.msrb.mxu3 %v8865_v5  ;;  %v5213_v5 = vpop.f32.mrf.mxu3 }
 0x366   :  { %5934 = vmatpush.bf16.msra.mxu0 %v8901_v45  ;;  %v5328_v18 = vpop.f32.mrf.mxu0  ;;  %v8817_v45 = vor.u32 %v9835_v47, %v8814_v54  ;;  %v9903_v47 = vld [vmem:[#allocation8 + $0x164] sm:$0xf0]  ;;  %v9901_v54 = vld [vmem:[#allocation8 + $0x154] sm:$0xf0]  ;;  %v9081_v5 = vor.u32 %v9902_v59, %v9078_v60  ;;  %v9100_v59 = vld [vmem:[#allocation8 + $0x190] sm:$0xf] }
 0x367   :  { %v9909_v60 = vld [vmem:[#allocation8 + $0x194] sm:$0xf0] }
 0x368   :  { %5947 = vmatpush.bf16.msra.mxu1 %v8965_v43  ;;  %v5341_v52 = vpop.f32.mrf.mxu1  ;;  %v8905_v43 = vor.u32 %v9858_v56, %v8902_v61 }
 0x369   :  { %5517 = vmatpush.bf16.msrb.mxu3 %v8849_v9  ;;  %v10359_v38 = vadd.f32 %v5341_v52, %v5328_v18  ;;  %5935 = vmatmul.bf16.vlgmr.msra.gmra.mxu0 %v5539_v10  ;;  %v5251_v9 = vadd.f32 %v10351_v17, %v10339_v30  ;;  %v9068_v52 = vld [vmem:[#allocation8 + $0x150] sm:$0xf] }
 0x36a   :  { %5979 = vmatpush.bf16.msrb.mxu0 %v8961_v50  ;;  %v8910_v50 = vld [vmem:[#allocation8 + $0x18] sm:$0xf0]  ;;  %v9069_v31 = vor.u32 %v9901_v54, %v9068_v52  ;;  %v9030_v52 = vld [vmem:[#allocation8 + $0x108] sm:$0xf0] }
 0x36c   :  { %5992 = vmatpush.bf16.msrb.mxu1 %v9025_v6 }
 0x36d   :  { %5518 = vmatpush.bf16.msrb.mxu3 %v8833_v16  ;;  %v5263_v6 = vpop.f32.mrf.mxu3  ;;  %v9076_v16 = vld [vmem:[#allocation8 + $0x160] sm:$0xf] }
 0x36e   :  { %5980 = vmatpush.bf16.msrb.mxu0 %v8953_v55  ;;  %v5330_v0 = vpop.f32.mrf.mxu0  ;;  %v8913_v55 = vor.u32 %v9860_v48, %v8910_v50  ;;  %v5264_v23 = vadd.f32 %v5263_v6, %v5251_v9  ;;  %v9077_v30 = vor.u32 %v9903_v47, %v9076_v16  ;;  %v9895_v48 = vld [vmem:[#allocation8 + $0x124] sm:$0xf0]  ;;  %v9065_v6 = vor.u32 %v9898_v3, %v9062_v1  ;;  %v9892_v16 = vld [vmem:[#allocation8 + $0x114] sm:$0xf]  ;;  %v9038_v47 = vld [vmem:[#allocation8 + $0x118] sm:$0xf0] }
 0x36f   :  { %v9045_v53 = vor.u32 %v9895_v48, %v9044_v19  ;;  %v9028_v0 = vld [vmem:[#allocation8 + $0x100] sm:$0xf]  ;;  %v9918_v3 = vld [vmem:[#allocation8 + $0x1e4] sm:$0xf]  ;;  %v9142_v1 = vld [vmem:[#allocation8 + $0x1e8] sm:$0xf0] }
 0x370   :  { %5993 = vmatpush.bf16.msrb.mxu1 %v9017_v15  ;;  %v5343_v35 = vpop.f32.mrf.mxu1  ;;  %v5277_v18 = vadd.f32 %v10347_v57, %v5264_v23  ;;  %v9896_v23 = vld [vmem:[#allocation8 + $0x134] sm:$0xf]  ;;  %v9124_v19 = vld [vmem:[#allocation8 + $0x1c0] sm:$0xf] }
 0x371   :  { %5519 = vmatpush.bf16.msrb.mxu3 %v8817_v45  ;;  %v9086_v35 = vld [vmem:[#allocation8 + $0x178] sm:$0xf0] }
 0x372   :  { %5981 = vmatpush.bf16.msrb.mxu0 %v8945_v2  ;;  %v8785_v2 = vor.u32 %v9827_v40, %v8782_v12  ;;  %v10364_v15 = vpop.f32.mrf.mxu2  ;;  %v5290_v17 = vadd.f32 %v10349_v63, %v5277_v18  ;;  %v9904_v12 = vld [vmem:[#allocation8 + $0x174] sm:$0xf] }
 0x374   :  { %5994 = vmatpush.bf16.msrb.mxu1 %v9009_v7  ;;  %v5303_v57 = vadd.f32 %v10355_v51, %v5290_v17  ;;  %v9061_v7 = vor.u32 %v9899_v39, %v9060_v8  ;;  %v9890_v17 = vld [vmem:[#allocation8 + $0x104] sm:$0xf] }
 0x375   :  { %5520 = vmatpush.bf16.msrb.mxu3 %v8801_v14  ;;  %v5265_v21 = vpop.f32.mrf.mxu3  ;;  %v9891_v14 = vld [vmem:[#allocation8 + $0x104] sm:$0xf0] }
 0x376   :  { %5982 = vmatpush.bf16.msrb.mxu0 %v8937_v20  ;;  %v9905_v20 = vld [vmem:[#allocation8 + $0x174] sm:$0xf0]  ;;  %v9029_v40 = vor.u32 %v9891_v14, %v9028_v0  ;;  %v9041_v21 = vor.u32 %v9892_v16, %v9038_v47  ;;  %v9118_v16 = vld [vmem:[#allocation8 + $0x1b8] sm:$0xf0] }
 0x377   :  { %v9085_v11 = vor.u32 %v9905_v20, %v9084_v29  ;;  %v9054_v29 = vld [vmem:[#allocation8 + $0x138] sm:$0xf0] }
 0x378   :  { %5995 = vmatpush.bf16.msrb.mxu1 %v9001_v28  ;;  %v9893_v28 = vld [vmem:[#allocation8 + $0x114] sm:$0xf0]  ;;  %v9057_v27 = vor.u32 %v9896_v23, %v9054_v29  ;;  %v9134_v23 = vld [vmem:[#allocation8 + $0x1d8] sm:$0xf0] }
 0x379   :  { %5521 = vmatpush.bf16.msrb.mxu3 %v8785_v2  ;;  %5953 = vmatpush.bf16.msra.mxu2 %v9085_v11  ;;  %v9894_v11 = vld [vmem:[#allocation8 + $0x124] sm:$0xf] }
 0x37a   :  { %5983 = vmatpush.bf16.msrb.mxu0 %v8929_v58  ;;  %v5356_v37 = vpop.f32.mrf.mxu2 }
 0x37b   :  { %v9148_v37 = vld [vmem:[#allocation8 + $0x1f0] sm:$0xf] }
 0x37c   :  { %5996 = vmatpush.bf16.msrb.mxu1 %v8993_v62  ;;  %5522 = vmatmul.bf16.vlgmr.msrb.gmra.mxu3 %v10320_v46  ;;  %v9900_v62 = vld [vmem:[#allocation8 + $0x154] sm:$0xf] }
 0x37d   :  { %5954 = vmatpush.bf16.msra.mxu2 %v9077_v30  ;;  %v9073_v2 = vor.u32 %v9900_v62, %v9070_v4  ;;  %v5355_v30 = vadd.f32 %v10364_v15, %v10359_v38  ;;  %v9132_v15 = vld [vmem:[#allocation8 + $0x1d0] sm:$0xf]  ;;  %v9907_v62 = vld [vmem:[#allocation8 + $0x184] sm:$0xf0]  ;;  %v9920_v4 = vld [vmem:[#allocation8 + $0x1f4] sm:$0xf] }
 0x37e   :  { %5984 = vmatpush.bf16.msrb.mxu0 %v8921_v33  ;;  %v9053_v33 = vor.u32 %v9897_v34, %v9052_v41  ;;  %v9917_v41 = vld [vmem:[#allocation8 + $0x1d4] sm:$0xf0] }
 0x37f   :  { %v5315_v42 = vpop.f32.mrf.mxu3  ;;  %v9133_v34 = vor.u32 %v9917_v41, %v9132_v15 }
 0x380   :  { %5997 = vmatpush.bf16.msrb.mxu1 %v8985_v26  ;;  %v5316_v32 = vadd.f32 %v5315_v42, %v5303_v57  ;;  %v9921_v57 = vld [vmem:[#allocation8 + $0x1f4] sm:$0xf0] }
 0x381   :  { %5955 = vmatpush.bf16.msra.mxu2 %v9069_v31  ;;  %v9033_v31 = vor.u32 %v9890_v17, %v9030_v52  ;;  %v9149_v8 = vor.u32 %v9921_v57, %v9148_v37 }
 0x382   :  { %5985 = vmatpush.bf16.msrb.mxu0 %v8913_v55  ;;  %vm5528_vm9 = vcmp.gt.f32.partialorder %v5316_v32, 0.0  ;;  %v5532_v44 = vmul.f32 0.2, %v5316_v32  ;;  %v9089_v55 = vor.u32 %v9904_v12, %v9086_v35  ;;  %v9911_v12 = vld [vmem:[#allocation8 + $0x1a4] sm:$0xf0] }
 0x383   :  { %5966 = vmatpush.bf16.msra.mxu3 %v9149_v8 }
 0x384   :  { %5998 = vmatpush.bf16.msrb.mxu1 %v8977_v22  ;;  %v5536_v49 = vsel %vm5528_vm9, %v5316_v32, %v5532_v44  ;;  %v9919_v32 = vld [vmem:[#allocation8 + $0x1e4] sm:$0xf0] }
 0x385   :  { %5956 = vmatpush.bf16.msra.mxu2 %v9061_v7  ;;  %v5540_v50 = vpack.c.bf16 %v5536_v49, %v5536_v49  ;;  %v9140_v7 = vld [vmem:[#allocation8 + $0x1e0] sm:$0xf] }
 0x386   :  { %5986 = vmatpush.bf16.msrb.mxu0 %v8905_v43  ;;  %v10367_v46 = vpop.f32.mrf.mxu0  ;;  %v9141_v44 = vor.u32 %v9919_v32, %v9140_v7  ;;  %v9094_v7 = vld [vmem:[#allocation8 + $0x188] sm:$0xf0] }
 0x387   :  { %v5317_v51 = vpop.f32.mrf.mxu3  ;;  %5948 = vmatmul.bf16.vlgmr.msra.gmra.mxu1 %v5540_v50 }
 0x388   :  { %5999 = vmatpush.bf16.msrb.mxu1 %v8969_v13  ;;  %v10370_v58 = vpop.f32.mrf.mxu1  ;;  %v9049_v13 = vor.u32 %v9894_v11, %v9046_v24  ;;  %5967 = vmatpush.bf16.msra.mxu3 %v9141_v44  ;;  %v9126_v11 = vld [vmem:[#allocation8 + $0x1c8] sm:$0xf0] }
 0x389   :  { %5987 = vmatmul.bf16.vlgmr.msrb.gmra.mxu0 %v5539_v10  ;;  %5957 = vmatpush.bf16.msra.mxu2 %v9053_v33  ;;  %v9037_v10 = vor.u32 %v9893_v28, %v9036_v25  ;;  %v9116_v28 = vld [vmem:[#allocation8 + $0x1b0] sm:$0xf] }
 0x38c   :  { %5968 = vmatpush.bf16.msra.mxu3 %v9133_v34 }
 0x38d   :  { %5958 = vmatpush.bf16.msra.mxu2 %v9045_v53 }
 0x38e   :  { %v5382_v45 = vpop.f32.mrf.mxu0 }
 0x390   :  { %v5395_v63 = vpop.f32.mrf.mxu1 }
 0x391   :  { %5959 = vmatpush.bf16.msra.mxu2 %v9037_v10 }
 0x394   :  { %v5406_v56 = vpop.f32.mrf.mxu2 }
 0x395   :  { %5960 = vmatpush.bf16.msra.mxu2 %v9029_v40  ;;  %v9108_v40 = vld [vmem:[#allocation8 + $0x1a0] sm:$0xf] }
 0x397   :  { %6000 = vmatmul.bf16.vlgmr.msrb.gmra.mxu1 %v5540_v50 }
 0x399   :  { %6005 = vmatpush.bf16.msrb.mxu2 %v9089_v55  ;;  %v9109_v55 = vor.u32 %v9911_v12, %v9108_v40 }
 0x39c   :  { %v5408_v26 = vpop.f32.mrf.mxu2 }
 0x39d   :  { %6006 = vmatpush.bf16.msrb.mxu2 %v9081_v5  ;;  %v9101_v5 = vor.u32 %v9909_v60, %v9100_v59  ;;  %v6037_v60 = vld [vmem:[#allocation10] sm:$0x3] }
 0x39f   :  { %v5367_v22 = vpop.f32.mrf.mxu3 }
 0x3a0   :  { %v5368_v54 = vadd.f32 %v5367_v22, %v5355_v30  ;;  %v9110_v30 = vld [vmem:[#allocation8 + $0x1a8] sm:$0xf0] }
 0x3a1   :  { %6007 = vmatpush.bf16.msrb.mxu2 %v9073_v2 }
 0x3a2   :  { %v5381_v39 = vadd.f32 %v10367_v46, %v5368_v54  ;;  %v9915_v46 = vld [vmem:[#allocation8 + $0x1c4] sm:$0xf0]  ;;  %v9908_v54 = vld [vmem:[#allocation8 + $0x194] sm:$0xf] }
 0x3a3   :  { %v9125_v50 = vor.u32 %v9915_v46, %v9124_v19 }
 0x3a4   :  { %v5394_v38 = vadd.f32 %v10370_v58, %v5381_v39  ;;  %v9913_v58 = vld [vmem:[#allocation8 + $0x1b4] sm:$0xf0]  ;;  %v9906_v39 = vld [vmem:[#allocation8 + $0x184] sm:$0xf] }
 0x3a5   :  { %6008 = vmatpush.bf16.msrb.mxu2 %v9065_v6  ;;  %5969 = vmatpush.bf16.msra.mxu3 %v9125_v50  ;;  %v9117_v14 = vor.u32 %v9913_v58, %v9116_v28  ;;  %v9145_v6 = vor.u32 %v9918_v3, %v9142_v1  ;;  %v9097_v44 = vor.u32 %v9906_v39, %v9094_v7 }
 0x3a6   :  { %v5432_v61 = vpop.f32.mrf.mxu0  ;;  %v5407_v49 = vadd.f32 %v5406_v56, %v5394_v38 }
 0x3a7   :  { %v5369_v18 = vpop.f32.mrf.mxu3 }
 0x3a8   :  { %v5445_v36 = vpop.f32.mrf.mxu1  ;;  %v9912_v18 = vld [vmem:[#allocation8 + $0x1b4] sm:$0xf] }
 0x3a9   :  { %v10373_v43 = vadd.f32 %v5445_v36, %v5432_v61  ;;  %6009 = vmatpush.bf16.msrb.mxu2 %v9057_v27  ;;  %5970 = vmatpush.bf16.msra.mxu3 %v9117_v14  ;;  %v9092_v61 = vld [vmem:[#allocation8 + $0x180] sm:$0xf]  ;;  %v9150_v36 = vld [vmem:[#allocation8 + $0x1f8] sm:$0xf0]  ;;  %v9914_v27 = vld [vmem:[#allocation8 + $0x1c4] sm:$0xf]  ;;  %v9121_v47 = vor.u32 %v9912_v18, %v9118_v16 }
 0x3aa   :  { %v9093_v2 = vor.u32 %v9907_v62, %v9092_v61  ;;  %v9153_v26 = vor.u32 %v9920_v4, %v9150_v36  ;;  %v6039_v62 = vperm.slane %v6037_v60, 0  ;;  %v6040_v4 = vperm.slane %v6037_v60, 1 }
 0x3ad   :  { %6010 = vmatpush.bf16.msrb.mxu2 %v9049_v13  ;;  %5971 = vmatpush.bf16.msra.mxu3 %v9109_v55  ;;  %v9129_v13 = vor.u32 %v9914_v27, %v9126_v11 }
 0x3ae   :  { %v5434_v9 = vpop.f32.mrf.mxu0 }
 0x3af   :  { %v9916_v9 = vld [vmem:[#allocation8 + $0x1d4] sm:$0xf] }
 0x3b0   :  { %v5447_v20 = vpop.f32.mrf.mxu1  ;;  %v9137_v29 = vor.u32 %v9916_v9, %v9134_v23  ;;  %v6049_v9 = vstv %s10400_s5 }
 0x3b1   :  { %6011 = vmatpush.bf16.msrb.mxu2 %v9041_v21  ;;  %5972 = vmatpush.bf16.msra.mxu3 %v9101_v5  ;;  %v9910_v21 = vld [vmem:[#allocation8 + $0x1a4] sm:$0xf] }
 0x3b2   :  { %v9113_v17 = vor.u32 %v9910_v21, %v9110_v30 }
 0x3b5   :  { %6012 = vmatpush.bf16.msrb.mxu2 %v9033_v31  ;;  %5973 = vmatpush.bf16.msra.mxu3 %v9093_v2  ;;  %v9102_v31 = vld [vmem:[#allocation8 + $0x198] sm:$0xf0] }
 0x3b6   :  { %v9105_v37 = vor.u32 %v9908_v54, %v9102_v31 }
 0x3b9   :  { %v10378_v42 = vpop.f32.mrf.mxu2  ;;  %6018 = vmatpush.bf16.msrb.mxu3 %v9153_v26 }
 0x3ba   :  { %v5459_v57 = vadd.f32 %v10378_v42, %v10373_v43 }
 0x3bd   :  { %6019 = vmatpush.bf16.msrb.mxu3 %v9145_v6 }
 0x3bf   :  { %v5419_v48 = vpop.f32.mrf.mxu3 }
 0x3c0   :  { %v5420_v53 = vadd.f32 %v5419_v48, %v5407_v49 }
 0x3c1   :  { %v5460_v33 = vpop.f32.mrf.mxu2  ;;  %6020 = vmatpush.bf16.msrb.mxu3 %v9137_v29 }
 0x3c2   :  { %vm5529_vm10 = vcmp.gt.f32.partialorder %v5420_v53, 0.0  ;;  %v5533_v51 = vmul.f32 0.2, %v5420_v53 }
 0x3c4   :  { %v5537_v0 = vsel %vm5529_vm10, %v5420_v53, %v5533_v51 }
 0x3c5   :  { %v5541_v35 = vpack.c.bf16 %v5537_v0, %v5537_v0  ;;  %6021 = vmatpush.bf16.msrb.mxu3 %v9129_v13 }
 0x3c6   :  { %v10380_v45 = vpop.f32.mrf.mxu0 }
 0x3c7   :  { %v5421_v56 = vpop.f32.mrf.mxu3  ;;  %5961 = vmatmul.bf16.vlgmr.msra.gmra.mxu2 %v5541_v35 }
 0x3c8   :  { %v10383_v63 = vpop.f32.mrf.mxu1 }
 0x3c9   :  { %6022 = vmatpush.bf16.msrb.mxu3 %v9121_v47 }
 0x3cd   :  { %6023 = vmatpush.bf16.msrb.mxu3 %v9113_v17 }
 0x3ce   :  { %v5486_v25 = vpop.f32.mrf.mxu0 }
 0x3d0   :  { %v5499_v10 = vpop.f32.mrf.mxu1 }
 0x3d1   :  { %6024 = vmatpush.bf16.msrb.mxu3 %v9105_v37 }
 0x3d5   :  { %6025 = vmatpush.bf16.msrb.mxu3 %v9097_v44 }
 0x3d7   :  { %6013 = vmatmul.bf16.vlgmr.msrb.gmra.mxu2 %v5541_v35 }
 0x3d9   :  { %v5510_v22 = vpop.f32.mrf.mxu2 }
 0x3df   :  { %v5471_v24 = vpop.f32.mrf.mxu3 }
 0x3e0   :  { %v5472_v32 = vadd.f32 %v5471_v24, %v5459_v57 }
 0x3e1   :  { %v5512_v20 = vpop.f32.mrf.mxu2 }
 0x3e2   :  { %v5485_v38 = vadd.f32 %v10380_v45, %v5472_v32 }
 0x3e4   :  { %v5498_v41 = vadd.f32 %v10383_v63, %v5485_v38 }
 0x3e6   :  { %v5936_v8 = vpop.f32.mrf.mxu0  ;;  %v5511_v34 = vadd.f32 %v5510_v22, %v5498_v41 }
 0x3e7   :  { %v5473_v52 = vpop.f32.mrf.mxu3 }
 0x3ee   :  { %v5938_v15 = vpop.f32.mrf.mxu0 }
 0x3ff   :  { %v5523_v49 = vpop.f32.mrf.mxu3 }
 0x400   :  { %v5524_v33 = vadd.f32 %v5523_v49, %v5511_v34 }
 0x402   :  { %vm5530_vm11 = vcmp.gt.f32.partialorder %v5524_v33, 0.0  ;;  %v5534_v46 = vmul.f32 0.2, %v5524_v33 }
 0x404   :  { %v5538_v48 = vsel %vm5530_vm11, %v5524_v33, %v5534_v46  ;;  %v5949_v53 = vpop.f32.mrf.mxu1 }
 0x405   :  { %v5542_v43 = vpack.c.bf16 %v5538_v48, %v5538_v48  ;;  %v5950_v51 = vadd.f32 %v5949_v53, %v5936_v8 }
 0x406   :  { %v5988_v19 = vpop.f32.mrf.mxu0 }
 0x407   :  { %v5525_v42 = vpop.f32.mrf.mxu3  ;;  %5974 = vmatmul.bf16.vlgmr.msra.gmra.mxu3 %v5542_v43 }
 0x40c   :  { %v5951_v25 = vpop.f32.mrf.mxu1 }
 0x40e   :  { %v5990_v50 = vpop.f32.mrf.mxu0 }
 0x414   :  { %v6001_v28 = vpop.f32.mrf.mxu1 }
 0x415   :  { %v6002_v45 = vadd.f32 %v6001_v28, %v5988_v19 }
 0x417   :  { %6026 = vmatmul.bf16.vlgmr.msrb.gmra.mxu3 %v5542_v43 }
 0x41c   :  { %v6003_v10 = vpop.f32.mrf.mxu1 }
 0x44a   :  { %v5962_v58 = vpop.f32.mrf.mxu2 }
 0x44b   :  { %v5963_v63 = vadd.f32 %v5962_v58, %v5950_v51 }
 0x452   :  { %v5964_v0 = vpop.f32.mrf.mxu2 }
 0x45a   :  { %v6014_v14 = vpop.f32.mrf.mxu2 }
 0x45b   :  { %v6015_v56 = vadd.f32 %v6014_v14, %v6002_v45 }
 0x462   :  { %v6016_v40 = vpop.f32.mrf.mxu2 }
 0x48a   :  { %v5975_v12 = vpop.f32.mrf.mxu3 }
 0x48b   :  { %v5976_v55 = vadd.f32 %v5975_v12, %v5963_v63 }
 0x48d   :  { %v6033_v59 = vmul.f32 0.2, %v5976_v55  ;;  %vm6031_vm12 = vcmp.gt.f32.partialorder %v5976_v55, 0.0 }
 0x48f   :  { %v6035_v2 = vsel %vm6031_vm12, %v5976_v55, %v6033_v59 }
 0x490   :  { %v6043_v3 = vmul.f32 %v6039_v62, %v6035_v2 }
 0x492   :  { %v5977_v35 = vpop.f32.mrf.mxu3 }
 0x49a   :  { %v6027_v5 = vpop.f32.mrf.mxu3 }
 0x49b   :  { %v6028_v61 = vadd.f32 %v6027_v5, %v6015_v56 }
 0x49d   :  { %vm6032_vm13 = vcmp.gt.f32.partialorder %v6028_v61, 0.0  ;;  %v6034_v36 = vmul.f32 0.2, %v6028_v61 }
 0x49f   :  { %v6036_v26 = vsel %vm6032_vm13, %v6028_v61, %v6034_v36 }
 0x4a0   :  { %v6044_v1 = vmul.f32 %v6040_v4, %v6036_v26 }
 0x4a2   :  { %v6029_v22 = vpop.f32.mrf.mxu3  ;;  %v6045_v6 = vadd.f32 %v6044_v1, %v6043_v3 }
 0x4a4   :  { %6046 = vadd.xlane.f32.xlu0 %v6045_v6 }
 0x517   :  { %v6047_v23 = vpop.xlane.xlu0 %6046 }
 0x518   :  { %v6050_v29 = vadd.f32 %v6049_v9, %v6047_v23 }
 0x51a   :  { %v6051_v20 = vand.u32 2147483647, %v6050_v29  ;;  %vm6055_vm1 = vcmp.ge.f32.partialorder %v6050_v29, 0.0 }
 0x51c   :  { %v6052_v27 = vsub.f32 0.0, %v6051_v20 }
 0x51e   :  { %v6053_v11 = vmul.f32 1.442695, %v6052_v27 }
 0x520   :  { %9933 = vpow2.f32 %v6053_v11 }
 0x526   :  { %v9934_v24 = vpop.eup %9933 }
 0x527   :  { %v6057_v13 = vadd.f32 1.0, %v9934_v24  ;;  %v6056_v37 = vsel %vm6055_vm1, 1.0, %v9934_v24 }
 0x529   :  { %9935 = vrcp.f32 %v6057_v13  ;;  %v6069_v21 = vand.u32 2147483648, %v6057_v13  ;;  %v6067_v17 = vand.u32 2147483647, %v6057_v13  ;;  %vm6063_vm15 = vweird.f32 %v6057_v13 }
 0x52b   :  { %v6070_v54 = vor.u32 1.1754944e-38, %v6069_v21  ;;  %vm6068_vm2 = vcmp.eq.f32.partialorder %v6067_v17, 8.507059e+37 }
 0x52f   :  { %v9936_v18 = vpop.eup %9935 }
 0x530   :  { %v6059_v16 = vmul.f32 %v9936_v18, %v6057_v13  ;;  %vm6064_vm14 = vweird.f32 %v9936_v18 }
 0x531   :  { %vm6065_vm0 = vmor %vm6063_vm15, %vm6064_vm14 }
 0x532   :  { %v6060_v47 = vsub.f32 1.0, %v6059_v16 }
 0x534   :  { %v6061_v30 = vmul.f32 %v9936_v18, %v6060_v47 }
 0x536   :  { %v6062_v52 = vadd.f32 %v9936_v18, %v6061_v30 }
 0x538   :  { %v6066_v31 = vsel %vm6065_vm0, %v9936_v18, %v6062_v52 }
 0x539   :  { %v6071_v57 = vsel %vm6068_vm2, %v6070_v54, %v6066_v31 }
 0x53a   :  { %v6072_v8 = vmul.f32 %v6071_v57, %v6056_v37 }
 0x53c   :  { %6074 = vst.msk [vmem:[%s10401_s6] sm:$0xff] %vm6073_vm3, %v6072_v8 }
 0x53d   :  { %6079 = vsyncpa [#allocation4], 1 }
 0x53e   :  { %6080 = vsyncpa [#allocation6], 1 }
 0x53f   :  { %6081 = vsyncpa [#allocation9], 1 }

// kernel: tpu_custom_call.1
= control target key start
LH: loop header
LB: loop body
LE: loop exit
PB: predicated region body
PF: predicated region fallthrough
CT: control target
= control target key end

     0   :  { %12 = vsyncpa [#allocation4], 0  ;;  %s10395_s0 = inlined_call_operand.hbm [shape: bf16[8,896], index: 0, kind: input, shape index: {}]   ;;  %s10396_s1 = inlined_call_operand.hbm [shape: bf16[896,1024], index: 1, kind: input, shape index: {}]   ;;  %s10397_s2 = inlined_call_operand.hbm [shape: bf16[1024,512], index: 2, kind: input, shape index: {}]   ;;  %s10398_s3 = inlined_call_operand.hbm [shape: bf16[512,256], index: 3, kind: input, shape index: {}]   ;;  %s10399_s4 = inlined_call_operand.hbm [shape: f32[1,256], index: 4, kind: input, shape index: {}]   ;;  %s10400_s5 = inlined_call_operand.<no memory space> [shape: f32[1], index: 5, kind: input, shape index: {}]   ;;  %s10401_s6 = inlined_call_operand.vmem [shape: f32[8,1], index: 6, kind: output, shape index: {}]  }
   0x1   :  { %13 = vsyncpa [#allocation6], 0  ;;  %s30_s23 = sshll.u32 %s10396_s1, 4  ;;  %s31_s23 = int_to_ptr.hbm [resolvable:$true] %s30_s23 }
   0x2   :  { %14 = vsyncpa [#allocation9], 0  ;;  %s10063_s24 = smov [#allocation5]   ;;  %s56_s28 = sshll.u32 %s10398_s3, 4  ;;  %s57_s28 = int_to_ptr.hbm [resolvable:$true] %s56_s28 }
   0x3   :  { %s32_s25 = sshll.u32 %s10063_s24, 4  ;;  %s10064_s29 = smov 512   ;;  %s33_s25 = int_to_ptr.vmem [resolvable:$true] %s32_s25 }
   0x4   :  { %s10065_s30 = smov 32   ;;  %s10066_s7 = smov [#allocation8]  }
   0x5   :  { %38 = dma.hbm_to_vmem [thread:$0]  %s31_s23, 57344, %s33_s25, [#allocation6], %s10064_s29, %s10064_s29, %s10065_s30  }
   0x6   :  { %s58_s8 = sshll.u32 %s10066_s7, 4  ;;  %s10067_s9 = smov 128   ;;  %s59_s8 = int_to_ptr.vmem [resolvable:$true] %s58_s8 }
   0x7   :  { %s10068_s10 = smov 8   ;;  %s20_s12 = sshll.u32 %s10395_s0, 4  ;;  %s21_s12 = int_to_ptr.hbm [resolvable:$true] %s20_s12 }
   0x8   :  { %64 = dma.hbm_to_vmem [thread:$0]  %s57_s28, 8192, %s59_s8, [#allocation9], %s10067_s9, %s10067_s9, %s10068_s10  }
   0x9   :  { %s10069_s13 = smov [#allocation3]   ;;  %s43_s16 = sshll.u32 %s10397_s2, 4  ;;  %s44_s16 = int_to_ptr.hbm [resolvable:$true] %s43_s16 }
   0xa   :  { %s22_s14 = sshll.u32 %s10069_s13, 4  ;;  %s10070_s17 = smov [#allocation7]   ;;  %s23_s14 = int_to_ptr.vmem [resolvable:$true] %s22_s14 }
   0xb   :  { %25 = dma.hbm_to_vmem [thread:$0]  %s21_s12, 448, %s23_s14, [#allocation4]  }
   0xc   :  { %s45_s18 = sshll.u32 %s10070_s17, 4  ;;  %s10071_s19 = smov 256   ;;  %s46_s18 = int_to_ptr.vmem [resolvable:$true] %s45_s18 }
   0xd   :  { %s10072_s20 = smov 16   ;;  %s70_s0 = sshll.u32 %s10399_s4, 4  ;;  %s71_s0 = int_to_ptr.hbm [resolvable:$true] %s70_s0 }
   0xe   :  { %51 = dma.hbm_to_vmem [thread:$0]  %s44_s16, 32768, %s46_s18, [#allocation6], %s10071_s19, %s10071_s19, %s10072_s20  }
   0xf   :  { %s10073_s23 = smov [#allocation10]  }
  0x10   :  { %s72_s24 = sshll.u32 %s10073_s23, 4  ;;  %s73_s24 = int_to_ptr.vmem [resolvable:$true] %s72_s24 }
  0x11   :  { %75 = dma.hbm_to_vmem [thread:$0]  %s71_s0, 32, %s73_s24, [#allocation9]  }
  0x12   :  { %10057 = dma.done.wait [#allocation4], 448  }
  0x13   :  { %10058 = vsyncadd [#allocation4], 4294966848 }
  0x14   :  { %10059 = dma.done.wait [#allocation6], 90112  }
  0x15   :  { %10060 = vsyncadd [#allocation6], 4294877184 }
  0x16   :  { %10061 = dma.done.wait [#allocation9], 8224  }
  0x17   :  { %10062 = vsyncadd [#allocation9], 4294959072  ;;  %v6308_v0 = vld [vmem:[#allocation5 + $0x1c0] sm:$0xf] }
  0x18   :  { %v9214_v1 = vld [vmem:[#allocation5 + $0x1dc] sm:$0xf0] }
  0x19   :  { %v6564_v2 = vld [vmem:[#allocation5 + $0x3c0] sm:$0xf]  ;;  %v6309_v3 = vor.u32 %v9214_v1, %v6308_v0 }
  0x1a   :  { %v9278_v4 = vld [vmem:[#allocation5 + $0x3dc] sm:$0xf0] }
  0x1b   :  { %v6820_v5 = vld [vmem:[#allocation5 + $0x5c0] sm:$0xf]  ;;  %v6565_v7 = vor.u32 %v9278_v4, %v6564_v2  ;;  %2815 = vmatpush.bf16.msra.mxu0 %v6309_v3 }
  0x1c   :  { %v9342_v6 = vld [vmem:[#allocation5 + $0x5dc] sm:$0xf0] }
  0x1d   :  { %v6821_v8 = vor.u32 %v9342_v6, %v6820_v5  ;;  %v7076_v9 = vld [vmem:[#allocation5 + $0x7c0] sm:$0xf]  ;;  %2828 = vmatpush.bf16.msra.mxu1 %v6565_v7 }
  0x1e   :  { %v9406_v10 = vld [vmem:[#allocation5 + $0x7dc] sm:$0xf0] }
  0x1f   :  { %v6276_v11 = vld [vmem:[#allocation5 + $0x180] sm:$0xf]  ;;  %v7077_v12 = vor.u32 %v9406_v10, %v7076_v9  ;;  %2841 = vmatpush.bf16.msra.mxu2 %v6821_v8 }
  0x20   :  { %v9206_v13 = vld [vmem:[#allocation5 + $0x19c] sm:$0xf0] }
  0x21   :  { %v6532_v14 = vld [vmem:[#allocation5 + $0x380] sm:$0xf]  ;;  %v6277_v16 = vor.u32 %v9206_v13, %v6276_v11  ;;  %2854 = vmatpush.bf16.msra.mxu3 %v7077_v12 }
  0x22   :  { %v9270_v15 = vld [vmem:[#allocation5 + $0x39c] sm:$0xf0] }
  0x23   :  { %v6533_v17 = vor.u32 %v9270_v15, %v6532_v14  ;;  %v6788_v18 = vld [vmem:[#allocation5 + $0x580] sm:$0xf]  ;;  %2816 = vmatpush.bf16.msra.mxu0 %v6277_v16 }
  0x24   :  { %v9334_v19 = vld [vmem:[#allocation5 + $0x59c] sm:$0xf0] }
  0x25   :  { %v7044_v20 = vld [vmem:[#allocation5 + $0x780] sm:$0xf]  ;;  %v6789_v21 = vor.u32 %v9334_v19, %v6788_v18  ;;  %2829 = vmatpush.bf16.msra.mxu1 %v6533_v17 }
  0x26   :  { %v9398_v22 = vld [vmem:[#allocation5 + $0x79c] sm:$0xf0] }
  0x27   :  { %v6244_v23 = vld [vmem:[#allocation5 + $0x140] sm:$0xf]  ;;  %v7045_v25 = vor.u32 %v9398_v22, %v7044_v20  ;;  %2842 = vmatpush.bf16.msra.mxu2 %v6789_v21 }
  0x28   :  { %v9198_v24 = vld [vmem:[#allocation5 + $0x15c] sm:$0xf0] }
  0x29   :  { %v6500_v26 = vld [vmem:[#allocation5 + $0x340] sm:$0xf]  ;;  %v6245_v29 = vor.u32 %v9198_v24, %v6244_v23  ;;  %2855 = vmatpush.bf16.msra.mxu3 %v7045_v25 }
  0x2a   :  { %v9262_v27 = vld [vmem:[#allocation5 + $0x35c] sm:$0xf0] }
  0x2b   :  { %v6756_v28 = vld [vmem:[#allocation5 + $0x540] sm:$0xf]  ;;  %v6501_v33 = vor.u32 %v9262_v27, %v6500_v26  ;;  %2817 = vmatpush.bf16.msra.mxu0 %v6245_v29 }
  0x2c   :  { %v9326_v30 = vld [vmem:[#allocation5 + $0x55c] sm:$0xf0] }
  0x2d   :  { %v7012_v31 = vld [vmem:[#allocation5 + $0x740] sm:$0xf]  ;;  %v6757_v34 = vor.u32 %v9326_v30, %v6756_v28  ;;  %2830 = vmatpush.bf16.msra.mxu1 %v6501_v33 }
  0x2e   :  { %v9390_v32 = vld [vmem:[#allocation5 + $0x75c] sm:$0xf0] }
  0x2f   :  { %v6212_v35 = vld [vmem:[#allocation5 + $0x100] sm:$0xf]  ;;  %v7013_v38 = vor.u32 %v9390_v32, %v7012_v31  ;;  %2843 = vmatpush.bf16.msra.mxu2 %v6757_v34 }
  0x30   :  { %v9190_v36 = vld [vmem:[#allocation5 + $0x11c] sm:$0xf0] }
  0x31   :  { %v6468_v37 = vld [vmem:[#allocation5 + $0x300] sm:$0xf]  ;;  %v6213_v44 = vor.u32 %v9190_v36, %v6212_v35  ;;  %2856 = vmatpush.bf16.msra.mxu3 %v7013_v38  ;;  %v6310_v38 = vld [vmem:[#allocation5 + $0x1e0] sm:$0xf0] }
  0x32   :  { %v9254_v39 = vld [vmem:[#allocation5 + $0x31c] sm:$0xf0] }
  0x33   :  { %v6724_v40 = vld [vmem:[#allocation5 + $0x500] sm:$0xf]  ;;  %v6469_v45 = vor.u32 %v9254_v39, %v6468_v37  ;;  %2818 = vmatpush.bf16.msra.mxu0 %v6213_v44  ;;  %v9210_v37 = vld [vmem:[#allocation5 + $0x1c4] sm:$0xf] }
  0x34   :  { %v9318_v41 = vld [vmem:[#allocation5 + $0x51c] sm:$0xf0] }
  0x35   :  { %v6980_v42 = vld [vmem:[#allocation5 + $0x700] sm:$0xf]  ;;  %v6725_v46 = vor.u32 %v9318_v41, %v6724_v40  ;;  %2831 = vmatpush.bf16.msra.mxu1 %v6469_v45 }
  0x36   :  { %v9382_v43 = vld [vmem:[#allocation5 + $0x71c] sm:$0xf0] }
  0x37   :  { %v6180_v47 = vld [vmem:[#allocation5 + $0xc0] sm:$0xf]  ;;  %v6981_v50 = vor.u32 %v9382_v43, %v6980_v42  ;;  %2844 = vmatpush.bf16.msra.mxu2 %v6725_v46  ;;  %v6313_v46 = vor.u32 %v9210_v37, %v6310_v38 }
  0x38   :  { %v9182_v48 = vld [vmem:[#allocation5 + $0xdc] sm:$0xf0] }
  0x39   :  { %v6436_v49 = vld [vmem:[#allocation5 + $0x2c0] sm:$0xf]  ;;  %v6181_v56 = vor.u32 %v9182_v48, %v6180_v47  ;;  %2857 = vmatpush.bf16.msra.mxu3 %v6981_v50  ;;  %v9202_v50 = vld [vmem:[#allocation5 + $0x184] sm:$0xf] }
  0x3a   :  { %v9246_v51 = vld [vmem:[#allocation5 + $0x2dc] sm:$0xf0] }
  0x3b   :  { %v6692_v52 = vld [vmem:[#allocation5 + $0x4c0] sm:$0xf]  ;;  %v6437_v57 = vor.u32 %v9246_v51, %v6436_v49  ;;  %2819 = vmatpush.bf16.msra.mxu0 %v6181_v56  ;;  %v6278_v51 = vld [vmem:[#allocation5 + $0x1a0] sm:$0xf0] }
  0x3c   :  { %v9310_v53 = vld [vmem:[#allocation5 + $0x4dc] sm:$0xf0] }
  0x3d   :  { %v6948_v54 = vld [vmem:[#allocation5 + $0x6c0] sm:$0xf]  ;;  %v6693_v58 = vor.u32 %v9310_v53, %v6692_v52  ;;  %2832 = vmatpush.bf16.msra.mxu1 %v6437_v57 }
  0x3e   :  { %v9374_v55 = vld [vmem:[#allocation5 + $0x6dc] sm:$0xf0] }
  0x3f   :  { %v6148_v59 = vld [vmem:[#allocation5 + $0x80] sm:$0xf]  ;;  %v6949_v62 = vor.u32 %v9374_v55, %v6948_v54  ;;  %2845 = vmatpush.bf16.msra.mxu2 %v6693_v58 }
  0x40   :  { %v9174_v60 = vld [vmem:[#allocation5 + $0x9c] sm:$0xf0] }
  0x41   :  { %v6404_v61 = vld [vmem:[#allocation5 + $0x280] sm:$0xf]  ;;  %v6149_v4 = vor.u32 %v9174_v60, %v6148_v59  ;;  %2858 = vmatpush.bf16.msra.mxu3 %v6949_v62  ;;  %v99_v59 = vld [vmem:[#allocation3 + $0x8] sm:$0xff]  ;;  %v6281_v60 = vor.u32 %v9202_v50, %v6278_v51 }
  0x42   :  { %v9238_v63 = vld [vmem:[#allocation5 + $0x29c] sm:$0xf0] }
  0x43   :  { %v6660_v0 = vld [vmem:[#allocation5 + $0x480] sm:$0xf]  ;;  %v6405_v5 = vor.u32 %v9238_v63, %v6404_v61  ;;  %2820 = vmatpush.bf16.msra.mxu0 %v6149_v4  ;;  %v556_v63 = vunpack.c.l.b16 %v99_v59 }
  0x44   :  { %v9302_v1 = vld [vmem:[#allocation5 + $0x49c] sm:$0xf0] }
  0x45   :  { %v6916_v2 = vld [vmem:[#allocation5 + $0x680] sm:$0xf]  ;;  %v6661_v6 = vor.u32 %v9302_v1, %v6660_v0  ;;  %2833 = vmatpush.bf16.msra.mxu1 %v6405_v5  ;;  %v98_v0 = vld [vmem:[#allocation3] sm:$0xff]  ;;  %v557_v1 = vunpack.c.h.b16 %v99_v59 }
  0x46   :  { %v9366_v3 = vld [vmem:[#allocation5 + $0x69c] sm:$0xf0]  ;;  %v554_v4 = vunpack.c.l.b16 %v98_v0  ;;  %v555_v5 = vunpack.c.h.b16 %v98_v0 }
  0x47   :  { %v6116_v7 = vld [vmem:[#allocation5 + $0x40] sm:$0xf]  ;;  %v6917_v10 = vor.u32 %v9366_v3, %v6916_v2  ;;  %2846 = vmatpush.bf16.msra.mxu2 %v6661_v6  ;;  %v9194_v2 = vld [vmem:[#allocation5 + $0x144] sm:$0xf] }
  0x48   :  { %v9166_v8 = vld [vmem:[#allocation5 + $0x5c] sm:$0xf0]  ;;  %v6246_v3 = vld [vmem:[#allocation5 + $0x160] sm:$0xf0] }
  0x49   :  { %v6372_v9 = vld [vmem:[#allocation5 + $0x240] sm:$0xf]  ;;  %v6117_v16 = vor.u32 %v9166_v8, %v6116_v7  ;;  %2859 = vmatpush.bf16.msra.mxu3 %v6917_v10  ;;  %v10124_v7 = vpack.c.b16 %v556_v63, %v556_v63  ;;  %v10126_v8 = vpack.c.b16 %v557_v1, %v557_v1 }
  0x4a   :  { %v9230_v11 = vld [vmem:[#allocation5 + $0x25c] sm:$0xf0] }
  0x4b   :  { %v6628_v12 = vld [vmem:[#allocation5 + $0x440] sm:$0xf]  ;;  %v6373_v19 = vor.u32 %v9230_v11, %v6372_v9  ;;  %2821 = vmatpush.bf16.msra.mxu0 %v6117_v16 }
  0x4c   :  { %v9294_v13 = vld [vmem:[#allocation5 + $0x45c] sm:$0xf0] }
  0x4d   :  { %v6884_v14 = vld [vmem:[#allocation5 + $0x640] sm:$0xf]  ;;  %v6629_v20 = vor.u32 %v9294_v13, %v6628_v12  ;;  %2834 = vmatpush.bf16.msra.mxu1 %v6373_v19  ;;  %v10131_v19 = vpack.c.b16 %v555_v5, %v555_v5  ;;  %v9154_v5 = vld [vmem:[#allocation5 + $0x4] sm:$0xf] }
  0x4e   :  { %v9358_v15 = vld [vmem:[#allocation5 + $0x65c] sm:$0xf0] }
  0x4f   :  { %v6084_v17 = vld [vmem:[#allocation5] sm:$0xf]  ;;  %v6885_v24 = vor.u32 %v9358_v15, %v6884_v14  ;;  %2847 = vmatpush.bf16.msra.mxu2 %v6629_v20  ;;  %v10128_v14 = vpack.c.b16 %v554_v4, %v554_v4  ;;  %v6249_v15 = vor.u32 %v9194_v2, %v6246_v3  ;;  %v9186_v20 = vld [vmem:[#allocation5 + $0x104] sm:$0xf]  ;;  %v101_v3 = vld [vmem:[#allocation3 + $0x18] sm:$0xf] }
  0x50   :  { %v9158_v18 = vld [vmem:[#allocation5 + $0x1c] sm:$0xf0] }
  0x51   :  { %v6340_v21 = vld [vmem:[#allocation5 + $0x200] sm:$0xf]  ;;  %v6085_v31 = vor.u32 %v9158_v18, %v6084_v17  ;;  %2860 = vmatpush.bf16.msra.mxu3 %v6885_v24 }
  0x52   :  { %v9222_v22 = vld [vmem:[#allocation5 + $0x21c] sm:$0xf0] }
  0x53   :  { %v6596_v23 = vld [vmem:[#allocation5 + $0x400] sm:$0xf]  ;;  %v6341_v35 = vor.u32 %v9222_v22, %v6340_v21  ;;  %2822 = vmatpush.bf16.msra.mxu0 %v6085_v31  ;;  %v6214_v21 = vld [vmem:[#allocation5 + $0x120] sm:$0xf0] }
  0x54   :  { %v9286_v25 = vld [vmem:[#allocation5 + $0x41c] sm:$0xf0] }
  0x55   :  { %v6852_v26 = vld [vmem:[#allocation5 + $0x600] sm:$0xf]  ;;  %v6597_v36 = vor.u32 %v9286_v25, %v6596_v23  ;;  %2835 = vmatpush.bf16.msra.mxu1 %v6341_v35 }
  0x56   :  { %v9350_v27 = vld [vmem:[#allocation5 + $0x61c] sm:$0xf0]  ;;  %2823 = vmatmul.bf16.vlgmr.msra.gmra.mxu0 %v10128_v14 }
  0x57   :  { %v7332_v28 = vld [vmem:[#allocation5 + $0x9c0] sm:$0xf]  ;;  %v6853_v39 = vor.u32 %v9350_v27, %v6852_v26  ;;  %2848 = vmatpush.bf16.msra.mxu2 %v6597_v36 }
  0x58   :  { %v9470_v29 = vld [vmem:[#allocation5 + $0x9dc] sm:$0xf0]  ;;  %2836 = vmatmul.bf16.vlgmr.msra.gmra.mxu1 %v10131_v19 }
  0x59   :  { %v7588_v30 = vld [vmem:[#allocation5 + $0xbc0] sm:$0xf]  ;;  %v7333_v40 = vor.u32 %v9470_v29, %v7332_v28  ;;  %2861 = vmatpush.bf16.msra.mxu3 %v6853_v39  ;;  %v6217_v28 = vor.u32 %v9186_v20, %v6214_v21 }
  0x5a   :  { %v9534_v32 = vld [vmem:[#allocation5 + $0xbdc] sm:$0xf0]  ;;  %2849 = vmatmul.bf16.vlgmr.msra.gmra.mxu2 %v10124_v7 }
  0x5b   :  { %v7844_v33 = vld [vmem:[#allocation5 + $0xdc0] sm:$0xf]  ;;  %v7589_v41 = vor.u32 %v9534_v32, %v7588_v30  ;;  %2867 = vmatpush.bf16.msrb.mxu0 %v7333_v40  ;;  %v9178_v32 = vld [vmem:[#allocation5 + $0xc4] sm:$0xf] }
  0x5c   :  { %v9598_v34 = vld [vmem:[#allocation5 + $0xddc] sm:$0xf0]  ;;  %2862 = vmatmul.bf16.vlgmr.msra.gmra.mxu3 %v10126_v8 }
  0x5d   :  { %v7845_v42 = vor.u32 %v9598_v34, %v7844_v33  ;;  %v7300_v43 = vld [vmem:[#allocation5 + $0x980] sm:$0xf]  ;;  %2880 = vmatpush.bf16.msrb.mxu1 %v7589_v41  ;;  %2906 = vmatpush.bf16.msrb.mxu3 %v6313_v46  ;;  %v6182_v33 = vld [vmem:[#allocation5 + $0xe0] sm:$0xf0] }
  0x5e   :  { %v9462_v44 = vld [vmem:[#allocation5 + $0x99c] sm:$0xf0]  ;;  %v6185_v40 = vor.u32 %v9178_v32, %v6182_v33  ;;  %v9330_v32 = vld [vmem:[#allocation5 + $0x584] sm:$0xf] }
  0x5f   :  { %v7556_v45 = vld [vmem:[#allocation5 + $0xb80] sm:$0xf]  ;;  %v7301_v52 = vor.u32 %v9462_v44, %v7300_v43  ;;  %2893 = vmatpush.bf16.msrb.mxu2 %v7845_v42  ;;  %v9170_v44 = vld [vmem:[#allocation5 + $0x84] sm:$0xf] }
  0x60   :  { %v9526_v47 = vld [vmem:[#allocation5 + $0xb9c] sm:$0xf0] }
  0x61   :  { %v7812_v48 = vld [vmem:[#allocation5 + $0xd80] sm:$0xf]  ;;  %v7557_v55 = vor.u32 %v9526_v47, %v7556_v45  ;;  %2868 = vmatpush.bf16.msrb.mxu0 %v7301_v52  ;;  %2907 = vmatpush.bf16.msrb.mxu3 %v6281_v60  ;;  %v6150_v45 = vld [vmem:[#allocation5 + $0xa0] sm:$0xf0] }
  0x62   :  { %v9590_v49 = vld [vmem:[#allocation5 + $0xd9c] sm:$0xf0]  ;;  %v6153_v52 = vor.u32 %v9170_v44, %v6150_v45  ;;  %v9258_v45 = vld [vmem:[#allocation5 + $0x344] sm:$0xf] }
  0x63   :  { %v7268_v53 = vld [vmem:[#allocation5 + $0x940] sm:$0xf]  ;;  %v7813_v56 = vor.u32 %v9590_v49, %v7812_v48  ;;  %2881 = vmatpush.bf16.msrb.mxu1 %v7557_v55 }
  0x64   :  { %v9454_v54 = vld [vmem:[#allocation5 + $0x95c] sm:$0xf0] }
  0x65   :  { %v7524_v57 = vld [vmem:[#allocation5 + $0xb40] sm:$0xf]  ;;  %v7269_v6 = vor.u32 %v9454_v54, %v7268_v53  ;;  %2894 = vmatpush.bf16.msrb.mxu2 %v7813_v56  ;;  %2908 = vmatpush.bf16.msrb.mxu3 %v6249_v15  ;;  %v9162_v56 = vld [vmem:[#allocation5 + $0x44] sm:$0xf] }
  0x66   :  { %v9518_v58 = vld [vmem:[#allocation5 + $0xb5c] sm:$0xf0]  ;;  %v6822_v15 = vld [vmem:[#allocation5 + $0x5e0] sm:$0xf0] }
  0x67   :  { %v7780_v61 = vld [vmem:[#allocation5 + $0xd40] sm:$0xf]  ;;  %v7525_v9 = vor.u32 %v9518_v58, %v7524_v57  ;;  %2869 = vmatpush.bf16.msrb.mxu0 %v7269_v6  ;;  %v6118_v57 = vld [vmem:[#allocation5 + $0x60] sm:$0xf0] }
  0x68   :  { %v9582_v62 = vld [vmem:[#allocation5 + $0xd5c] sm:$0xf0]  ;;  %v6121_v4 = vor.u32 %v9162_v56, %v6118_v57  ;;  %v6086_v6 = vld [vmem:[#allocation5 + $0x20] sm:$0xf0] }
  0x69   :  { %v7781_v10 = vor.u32 %v9582_v62, %v7780_v61  ;;  %v7236_v11 = vld [vmem:[#allocation5 + $0x900] sm:$0xf]  ;;  %2882 = vmatpush.bf16.msrb.mxu1 %v7525_v9  ;;  %2909 = vmatpush.bf16.msrb.mxu3 %v6217_v28  ;;  %v100_v9 = vld [vmem:[#allocation3 + $0x10] sm:$0xff]  ;;  %v9250_v57 = vld [vmem:[#allocation5 + $0x304] sm:$0xf] }
  0x6a   :  { %v9446_v12 = vld [vmem:[#allocation5 + $0x91c] sm:$0xf0] }
  0x6b   :  { %v7492_v13 = vld [vmem:[#allocation5 + $0xb00] sm:$0xf]  ;;  %v7237_v22 = vor.u32 %v9446_v12, %v7236_v11  ;;  %2895 = vmatpush.bf16.msrb.mxu2 %v7781_v10  ;;  %v9274_v10 = vld [vmem:[#allocation5 + $0x3c4] sm:$0xf] }
  0x6c   :  { %v9510_v16 = vld [vmem:[#allocation5 + $0xb1c] sm:$0xf0]  ;;  %v6566_v11 = vld [vmem:[#allocation5 + $0x3e0] sm:$0xf0] }
  0x6d   :  { %v7748_v17 = vld [vmem:[#allocation5 + $0xd00] sm:$0xf]  ;;  %v7493_v23 = vor.u32 %v9510_v16, %v7492_v13  ;;  %2870 = vmatpush.bf16.msrb.mxu0 %v7237_v22  ;;  %2910 = vmatpush.bf16.msrb.mxu3 %v6185_v40  ;;  %v9338_v12 = vld [vmem:[#allocation5 + $0x5c4] sm:$0xf] }
  0x6e   :  { %v9574_v18 = vld [vmem:[#allocation5 + $0xd1c] sm:$0xf0]  ;;  %v9402_v16 = vld [vmem:[#allocation5 + $0x7c4] sm:$0xf]  ;;  %v6825_v28 = vor.u32 %v9338_v12, %v6822_v15 }
  0x6f   :  { %v7749_v24 = vor.u32 %v9574_v18, %v7748_v17  ;;  %v7204_v25 = vld [vmem:[#allocation5 + $0x8c0] sm:$0xf]  ;;  %2883 = vmatpush.bf16.msrb.mxu1 %v7493_v23  ;;  %v7078_v17 = vld [vmem:[#allocation5 + $0x7e0] sm:$0xf0]  ;;  %v560_v18 = vunpack.c.l.b16 %v101_v3 }
  0x70   :  { %v9438_v26 = vld [vmem:[#allocation5 + $0x8dc] sm:$0xf0]  ;;  %v9466_v22 = vld [vmem:[#allocation5 + $0x9c4] sm:$0xf] }
  0x71   :  { %v7460_v27 = vld [vmem:[#allocation5 + $0xac0] sm:$0xf]  ;;  %v7205_v34 = vor.u32 %v9438_v26, %v7204_v25  ;;  %2896 = vmatpush.bf16.msrb.mxu2 %v7749_v24  ;;  %2911 = vmatpush.bf16.msrb.mxu3 %v6153_v52  ;;  %v7334_v23 = vld [vmem:[#allocation5 + $0x9e0] sm:$0xf0]  ;;  %v558_v24 = vunpack.c.l.b16 %v100_v9  ;;  %v559_v25 = vunpack.c.h.b16 %v100_v9  ;;  %v6089_v26 = vor.u32 %v9154_v5, %v6086_v6 }
  0x72   :  { %v9502_v29 = vld [vmem:[#allocation5 + $0xadc] sm:$0xf0]  ;;  %v7337_v33 = vor.u32 %v9466_v22, %v7334_v23  ;;  %v9450_v52 = vld [vmem:[#allocation5 + $0x944] sm:$0xf] }
  0x73   :  { %v7716_v30 = vld [vmem:[#allocation5 + $0xcc0] sm:$0xf]  ;;  %v7461_v35 = vor.u32 %v9502_v29, %v7460_v27  ;;  %2871 = vmatpush.bf16.msrb.mxu0 %v7205_v34  ;;  %v6569_v27 = vor.u32 %v9274_v10, %v6566_v11  ;;  %v7081_v29 = vor.u32 %v9402_v16, %v7078_v17  ;;  %v10136_v34 = vpack.c.b16 %v560_v18, %v560_v18  ;;  %v9242_v5 = vld [vmem:[#allocation5 + $0x2c4] sm:$0xf] }
  0x74   :  { %v9566_v31 = vld [vmem:[#allocation5 + $0xcdc] sm:$0xf0]  ;;  %v10138_v40 = vpack.c.b16 %v558_v24, %v558_v24  ;;  %v6438_v6 = vld [vmem:[#allocation5 + $0x2e0] sm:$0xf0] }
  0x75   :  { %v7717_v36 = vor.u32 %v9566_v31, %v7716_v30  ;;  %v7172_v37 = vld [vmem:[#allocation5 + $0x880] sm:$0xf]  ;;  %2884 = vmatpush.bf16.msrb.mxu1 %v7461_v35  ;;  %2912 = vmatpush.bf16.msrb.mxu3 %v6121_v4  ;;  %v9266_v30 = vld [vmem:[#allocation5 + $0x384] sm:$0xf]  ;;  %v6441_v17 = vor.u32 %v9242_v5, %v6438_v6 }
  0x76   :  { %v9430_v38 = vld [vmem:[#allocation5 + $0x89c] sm:$0xf0]  ;;  %v6534_v31 = vld [vmem:[#allocation5 + $0x3a0] sm:$0xf0] }
  0x77   :  { %v7428_v39 = vld [vmem:[#allocation5 + $0xa80] sm:$0xf]  ;;  %v7173_v46 = vor.u32 %v9430_v38, %v7172_v37  ;;  %2897 = vmatpush.bf16.msrb.mxu2 %v7717_v36  ;;  %v6790_v35 = vld [vmem:[#allocation5 + $0x5a0] sm:$0xf0] }
  0x78   :  { %v9494_v41 = vld [vmem:[#allocation5 + $0xa9c] sm:$0xf0]  ;;  %v9394_v36 = vld [vmem:[#allocation5 + $0x784] sm:$0xf] }
  0x79   :  { %v7684_v42 = vld [vmem:[#allocation5 + $0xc80] sm:$0xf]  ;;  %v7429_v47 = vor.u32 %v9494_v41, %v7428_v39  ;;  %2872 = vmatpush.bf16.msrb.mxu0 %v7173_v46  ;;  %v7046_v37 = vld [vmem:[#allocation5 + $0x7a0] sm:$0xf0]  ;;  %v10140_v41 = vpack.c.b16 %v559_v25, %v559_v25  ;;  %2913 = vmatpush.bf16.msrb.mxu3 %v6089_v26 }
  0x7a   :  { %v9558_v43 = vld [vmem:[#allocation5 + $0xc9c] sm:$0xf0]  ;;  %v9458_v38 = vld [vmem:[#allocation5 + $0x984] sm:$0xf]  ;;  %v7049_v44 = vor.u32 %v9394_v36, %v7046_v37 }
  0x7b   :  { %v7685_v48 = vor.u32 %v9558_v43, %v7684_v42  ;;  %v7140_v49 = vld [vmem:[#allocation5 + $0x840] sm:$0xf]  ;;  %2885 = vmatpush.bf16.msrb.mxu1 %v7429_v47  ;;  %v7302_v39 = vld [vmem:[#allocation5 + $0x9a0] sm:$0xf0]  ;;  %v6537_v42 = vor.u32 %v9266_v30, %v6534_v31  ;;  %v6793_v43 = vor.u32 %v9330_v32, %v6790_v35 }
  0x7c   :  { %v9422_v50 = vld [vmem:[#allocation5 + $0x85c] sm:$0xf0]  ;;  %v6502_v46 = vld [vmem:[#allocation5 + $0x360] sm:$0xf0]  ;;  %2914 = vmatmul.bf16.vlgmr.msrb.gmra.mxu3 %v10128_v14 }
  0x7d   :  { %v7396_v51 = vld [vmem:[#allocation5 + $0xa40] sm:$0xf]  ;;  %v7141_v59 = vor.u32 %v9422_v50, %v7140_v49  ;;  %2898 = vmatpush.bf16.msrb.mxu2 %v7685_v48  ;;  %v9322_v47 = vld [vmem:[#allocation5 + $0x544] sm:$0xf]  ;;  %2958 = vmatpush.bf16.msra.mxu3 %v7337_v33  ;;  %v7305_v48 = vor.u32 %v9458_v38, %v7302_v39 }
  0x7e   :  { %v9486_v53 = vld [vmem:[#allocation5 + $0xa5c] sm:$0xf0]  ;;  %v6758_v49 = vld [vmem:[#allocation5 + $0x560] sm:$0xf0] }
  0x7f   :  { %v7652_v54 = vld [vmem:[#allocation5 + $0xc40] sm:$0xf]  ;;  %v7397_v63 = vor.u32 %v9486_v53, %v7396_v51  ;;  %2873 = vmatpush.bf16.msrb.mxu0 %v7141_v59  ;;  %v9386_v50 = vld [vmem:[#allocation5 + $0x744] sm:$0xf] }
  0x80   :  { %v9550_v55 = vld [vmem:[#allocation5 + $0xc5c] sm:$0xf0]  ;;  %v7014_v51 = vld [vmem:[#allocation5 + $0x760] sm:$0xf0] }
  0x81   :  { %v7108_v58 = vld [vmem:[#allocation5 + $0x800] sm:$0xf]  ;;  %v7653_v0 = vor.u32 %v9550_v55, %v7652_v54  ;;  %2886 = vmatpush.bf16.msrb.mxu1 %v7397_v63  ;;  %v7270_v53 = vld [vmem:[#allocation5 + $0x960] sm:$0xf0]  ;;  %v6505_v54 = vor.u32 %v9258_v45, %v6502_v46  ;;  %v6761_v55 = vor.u32 %v9322_v47, %v6758_v49  ;;  %v7017_v56 = vor.u32 %v9386_v50, %v7014_v51 }
  0x82   :  { %v9414_v60 = vld [vmem:[#allocation5 + $0x81c] sm:$0xf0]  ;;  %v9314_v59 = vld [vmem:[#allocation5 + $0x504] sm:$0xf]  ;;  %2959 = vmatpush.bf16.msra.mxu3 %v7305_v48 }
  0x83   :  { %v7364_v61 = vld [vmem:[#allocation5 + $0xa00] sm:$0xf]  ;;  %v7109_v13 = vor.u32 %v9414_v60, %v7108_v58  ;;  %2899 = vmatpush.bf16.msrb.mxu2 %v7653_v0  ;;  %v6470_v58 = vld [vmem:[#allocation5 + $0x320] sm:$0xf0]  ;;  %v7273_v60 = vor.u32 %v9450_v52, %v7270_v53 }
  0x84   :  { %v9478_v62 = vld [vmem:[#allocation5 + $0xa1c] sm:$0xf0]  ;;  %v6982_v63 = vld [vmem:[#allocation5 + $0x720] sm:$0xf0] }
  0x85   :  { %v7620_v1 = vld [vmem:[#allocation5 + $0xc00] sm:$0xf]  ;;  %v7365_v20 = vor.u32 %v9478_v62, %v7364_v61  ;;  %2874 = vmatpush.bf16.msrb.mxu0 %v7109_v13  ;;  %v6726_v61 = vld [vmem:[#allocation5 + $0x520] sm:$0xf0] }
  0x86   :  { %v9542_v2 = vld [vmem:[#allocation5 + $0xc1c] sm:$0xf0]  ;;  %v9378_v62 = vld [vmem:[#allocation5 + $0x704] sm:$0xf]  ;;  %v6729_v3 = vor.u32 %v9314_v59, %v6726_v61  ;;  %2960 = vmatpush.bf16.msra.mxu3 %v7273_v60 }
  0x87   :  { %v7621_v21 = vor.u32 %v9542_v2, %v7620_v1  ;;  %2887 = vmatpush.bf16.msrb.mxu1 %v7365_v20  ;;  %v9442_v0 = vld [vmem:[#allocation5 + $0x904] sm:$0xf]  ;;  %v6473_v2 = vor.u32 %v9250_v57, %v6470_v58  ;;  %v6985_v4 = vor.u32 %v9378_v62, %v6982_v63  ;;  %v6316_v62 = vld [vmem:[#allocation5 + $0x1c8] sm:$0xf] }
  0x88   :  { %2875 = vmatmul.bf16.vlgmr.msrb.gmra.mxu0 %v10138_v40  ;;  %v7238_v1 = vld [vmem:[#allocation5 + $0x920] sm:$0xf0]  ;;  %v9215_v63 = vld [vmem:[#allocation5 + $0x1e4] sm:$0xf0] }
  0x89   :  { %2900 = vmatpush.bf16.msrb.mxu2 %v7621_v21  ;;  %2919 = vmatpush.bf16.msra.mxu0 %v6569_v27  ;;  %v9306_v9 = vld [vmem:[#allocation5 + $0x4c4] sm:$0xf]  ;;  %v7241_v10 = vor.u32 %v9442_v0, %v7238_v1 }
  0x8a   :  { %2888 = vmatmul.bf16.vlgmr.msrb.gmra.mxu1 %v10140_v41  ;;  %v6694_v11 = vld [vmem:[#allocation5 + $0x4e0] sm:$0xf0] }
  0x8b   :  { %2932 = vmatpush.bf16.msra.mxu1 %v6825_v28  ;;  %v9370_v12 = vld [vmem:[#allocation5 + $0x6c4] sm:$0xf]  ;;  %v6697_v18 = vor.u32 %v9306_v9, %v6694_v11  ;;  %2961 = vmatpush.bf16.msra.mxu3 %v7241_v10  ;;  %v6317_v9 = vor.u32 %v9215_v63, %v6316_v62 }
  0x8c   :  { %2901 = vmatmul.bf16.vlgmr.msrb.gmra.mxu2 %v10136_v34  ;;  %v6950_v13 = vld [vmem:[#allocation5 + $0x6e0] sm:$0xf0] }
  0x8d   :  { %2945 = vmatpush.bf16.msra.mxu2 %v7081_v29  ;;  %2920 = vmatpush.bf16.msra.mxu0 %v6537_v42  ;;  %v9434_v15 = vld [vmem:[#allocation5 + $0x8c4] sm:$0xf]  ;;  %v6953_v20 = vor.u32 %v9370_v12, %v6950_v13 }
  0x8e   :  { %v7206_v16 = vld [vmem:[#allocation5 + $0x8e0] sm:$0xf0] }
  0x8f   :  { %2933 = vmatpush.bf16.msra.mxu1 %v6793_v43  ;;  %v9234_v21 = vld [vmem:[#allocation5 + $0x284] sm:$0xf]  ;;  %v7209_v24 = vor.u32 %v9434_v15, %v7206_v16  ;;  %v6284_v16 = vld [vmem:[#allocation5 + $0x188] sm:$0xf] }
  0x90   :  { %v6406_v22 = vld [vmem:[#allocation5 + $0x2a0] sm:$0xf0] }
  0x91   :  { %2946 = vmatpush.bf16.msra.mxu2 %v7049_v44  ;;  %2921 = vmatpush.bf16.msra.mxu0 %v6505_v54  ;;  %v9298_v23 = vld [vmem:[#allocation5 + $0x484] sm:$0xf]  ;;  %v6409_v30 = vor.u32 %v9234_v21, %v6406_v22 }
  0x92   :  { %v6662_v25 = vld [vmem:[#allocation5 + $0x4a0] sm:$0xf0]  ;;  %2962 = vmatpush.bf16.msra.mxu3 %v7209_v24 }
  0x93   :  { %2934 = vmatpush.bf16.msra.mxu1 %v6761_v55  ;;  %v9362_v26 = vld [vmem:[#allocation5 + $0x684] sm:$0xf]  ;;  %v6665_v31 = vor.u32 %v9298_v23, %v6662_v25 }
  0x94   :  { %v6918_v27 = vld [vmem:[#allocation5 + $0x6a0] sm:$0xf0] }
  0x95   :  { %2947 = vmatpush.bf16.msra.mxu2 %v7017_v56  ;;  %2922 = vmatpush.bf16.msra.mxu0 %v6473_v2  ;;  %v9426_v28 = vld [vmem:[#allocation5 + $0x884] sm:$0xf]  ;;  %v6921_v32 = vor.u32 %v9362_v26, %v6918_v27  ;;  %v6572_v2 = vld [vmem:[#allocation5 + $0x3c8] sm:$0xf] }
  0x96   :  { %v7174_v29 = vld [vmem:[#allocation5 + $0x8a0] sm:$0xf0] }
  0x97   :  { %2935 = vmatpush.bf16.msra.mxu1 %v6729_v3  ;;  %v9226_v33 = vld [vmem:[#allocation5 + $0x244] sm:$0xf]  ;;  %v7177_v37 = vor.u32 %v9426_v28, %v7174_v29  ;;  %v9279_v3 = vld [vmem:[#allocation5 + $0x3e4] sm:$0xf0] }
  0x98   :  { %v6374_v35 = vld [vmem:[#allocation5 + $0x260] sm:$0xf0]  ;;  %v6573_v13 = vor.u32 %v9279_v3, %v6572_v2  ;;  %v6252_v29 = vld [vmem:[#allocation5 + $0x148] sm:$0xf] }
  0x99   :  { %2948 = vmatpush.bf16.msra.mxu2 %v6985_v4  ;;  %2923 = vmatpush.bf16.msra.mxu0 %v6441_v17  ;;  %v9290_v36 = vld [vmem:[#allocation5 + $0x444] sm:$0xf]  ;;  %v6377_v45 = vor.u32 %v9226_v33, %v6374_v35  ;;  %v9207_v17 = vld [vmem:[#allocation5 + $0x1a4] sm:$0xf0] }
  0x9a   :  { %v6630_v38 = vld [vmem:[#allocation5 + $0x460] sm:$0xf0]  ;;  %2963 = vmatpush.bf16.msra.mxu3 %v7177_v37  ;;  %v6285_v23 = vor.u32 %v9207_v17, %v6284_v16 }
  0x9b   :  { %2936 = vmatpush.bf16.msra.mxu1 %v6697_v18  ;;  %v9354_v39 = vld [vmem:[#allocation5 + $0x644] sm:$0xf]  ;;  %v6633_v48 = vor.u32 %v9290_v36, %v6630_v38  ;;  %v6540_v18 = vld [vmem:[#allocation5 + $0x388] sm:$0xf] }
  0x9c   :  { %v6886_v42 = vld [vmem:[#allocation5 + $0x660] sm:$0xf0] }
  0x9d   :  { %2949 = vmatpush.bf16.msra.mxu2 %v6953_v20  ;;  %v9418_v43 = vld [vmem:[#allocation5 + $0x844] sm:$0xf]  ;;  %2924 = vmatpush.bf16.msra.mxu0 %v6409_v30  ;;  %v6889_v49 = vor.u32 %v9354_v39, %v6886_v42  ;;  %v9271_v20 = vld [vmem:[#allocation5 + $0x3a4] sm:$0xf0] }
  0x9e   :  { %v7142_v44 = vld [vmem:[#allocation5 + $0x860] sm:$0xf0]  ;;  %v6541_v27 = vor.u32 %v9271_v20, %v6540_v18  ;;  %v9199_v30 = vld [vmem:[#allocation5 + $0x164] sm:$0xf0] }
  0x9f   :  { %v9218_v46 = vld [vmem:[#allocation5 + $0x204] sm:$0xf]  ;;  %2937 = vmatpush.bf16.msra.mxu1 %v6665_v31  ;;  %v7145_v53 = vor.u32 %v9418_v43, %v7142_v44  ;;  %v6508_v31 = vld [vmem:[#allocation5 + $0x348] sm:$0xf]  ;;  %v6253_v36 = vor.u32 %v9199_v30, %v6252_v29 }
  0xa0   :  { %v6342_v47 = vld [vmem:[#allocation5 + $0x220] sm:$0xf0]  ;;  %v6220_v44 = vld [vmem:[#allocation5 + $0x108] sm:$0xf] }
  0xa1   :  { %2950 = vmatpush.bf16.msra.mxu2 %v6921_v32  ;;  %v9282_v50 = vld [vmem:[#allocation5 + $0x404] sm:$0xf]  ;;  %2925 = vmatpush.bf16.msra.mxu0 %v6377_v45  ;;  %v6345_v60 = vor.u32 %v9218_v46, %v6342_v47  ;;  %v9263_v32 = vld [vmem:[#allocation5 + $0x364] sm:$0xf0] }
  0xa2   :  { %v6598_v51 = vld [vmem:[#allocation5 + $0x420] sm:$0xf0]  ;;  %2964 = vmatpush.bf16.msra.mxu3 %v7145_v53  ;;  %v6509_v42 = vor.u32 %v9263_v32, %v6508_v31  ;;  %v9191_v45 = vld [vmem:[#allocation5 + $0x124] sm:$0xf0] }
  0xa3   :  { %v9346_v52 = vld [vmem:[#allocation5 + $0x604] sm:$0xf]  ;;  %2938 = vmatpush.bf16.msra.mxu1 %v6633_v48  ;;  %v6601_v0 = vor.u32 %v9282_v50, %v6598_v51  ;;  %v6476_v46 = vld [vmem:[#allocation5 + $0x308] sm:$0xf]  ;;  %v6221_v50 = vor.u32 %v9191_v45, %v6220_v44 }
  0xa4   :  { %v6854_v54 = vld [vmem:[#allocation5 + $0x620] sm:$0xf0]  ;;  %v9255_v47 = vld [vmem:[#allocation5 + $0x324] sm:$0xf0] }
  0xa5   :  { %v9410_v55 = vld [vmem:[#allocation5 + $0x804] sm:$0xf]  ;;  %2951 = vmatpush.bf16.msra.mxu2 %v6889_v49  ;;  %v6857_v1 = vor.u32 %v9346_v52, %v6854_v54  ;;  %2926 = vmatpush.bf16.msra.mxu0 %v6345_v60  ;;  %v6477_v54 = vor.u32 %v9255_v47, %v6476_v46  ;;  %v6124_v20 = vld [vmem:[#allocation5 + $0x48] sm:$0xf] }
  0xa6   :  { %v7110_v56 = vld [vmem:[#allocation5 + $0x820] sm:$0xf0]  ;;  %v6092_v31 = vld [vmem:[#allocation5 + $0x8] sm:$0xf] }
  0xa7   :  { %v9530_v57 = vld [vmem:[#allocation5 + $0xbc4] sm:$0xf]  ;;  %v7113_v4 = vor.u32 %v9410_v55, %v7110_v56  ;;  %2939 = vmatpush.bf16.msra.mxu1 %v6601_v0  ;;  %v6188_v56 = vld [vmem:[#allocation5 + $0xc8] sm:$0xf] }
  0xa8   :  { %v7590_v58 = vld [vmem:[#allocation5 + $0xbe0] sm:$0xf0]  ;;  %2927 = vmatmul.bf16.vlgmr.msra.gmra.mxu0 %v10131_v19  ;;  %v7340_v44 = vld [vmem:[#allocation5 + $0x9c8] sm:$0xf] }
  0xa9   :  { %v9594_v59 = vld [vmem:[#allocation5 + $0xdc4] sm:$0xf]  ;;  %v7593_v5 = vor.u32 %v9530_v57, %v7590_v58  ;;  %2952 = vmatpush.bf16.msra.mxu2 %v6857_v1  ;;  %2965 = vmatpush.bf16.msra.mxu3 %v7113_v4  ;;  %v9183_v57 = vld [vmem:[#allocation5 + $0xe4] sm:$0xf0] }
  0xaa   :  { %v7846_v61 = vld [vmem:[#allocation5 + $0xde0] sm:$0xf0]  ;;  %2940 = vmatmul.bf16.vlgmr.msra.gmra.mxu1 %v10124_v7  ;;  %v6444_v58 = vld [vmem:[#allocation5 + $0x2c8] sm:$0xf]  ;;  %v6189_v62 = vor.u32 %v9183_v57, %v6188_v56 }
  0xab   :  { %v7849_v6 = vor.u32 %v9594_v59, %v7846_v61  ;;  %v9522_v10 = vld [vmem:[#allocation5 + $0xb84] sm:$0xf]  ;;  %2971 = vmatpush.bf16.msrb.mxu0 %v7593_v5  ;;  %v9247_v59 = vld [vmem:[#allocation5 + $0x2e4] sm:$0xf0] }
  0xac   :  { %v7558_v11 = vld [vmem:[#allocation5 + $0xba0] sm:$0xf0]  ;;  %2953 = vmatmul.bf16.vlgmr.msra.gmra.mxu2 %v10126_v8  ;;  %2966 = vmatmul.bf16.vlgmr.msra.gmra.mxu3 %v10138_v40  ;;  %v6445_v2 = vor.u32 %v9247_v59, %v6444_v58  ;;  %v6156_v4 = vld [vmem:[#allocation5 + $0x88] sm:$0xf] }
  0xad   :  { %v9586_v12 = vld [vmem:[#allocation5 + $0xd84] sm:$0xf]  ;;  %v7561_v21 = vor.u32 %v9522_v10, %v7558_v11  ;;  %2984 = vmatpush.bf16.msrb.mxu1 %v7849_v6  ;;  %2997 = vmatpush.bf16.msrb.mxu2 %v6317_v9  ;;  %v9175_v5 = vld [vmem:[#allocation5 + $0xa4] sm:$0xf0] }
  0xae   :  { %v7814_v15 = vld [vmem:[#allocation5 + $0xda0] sm:$0xf0]  ;;  %3010 = vmatpush.bf16.msrb.mxu3 %v6573_v13  ;;  %v6412_v6 = vld [vmem:[#allocation5 + $0x288] sm:$0xf] }
  0xaf   :  { %v7817_v22 = vor.u32 %v9586_v12, %v7814_v15  ;;  %v9514_v24 = vld [vmem:[#allocation5 + $0xb44] sm:$0xf]  ;;  %2972 = vmatpush.bf16.msrb.mxu0 %v7561_v21  ;;  %v9239_v9 = vld [vmem:[#allocation5 + $0x2a4] sm:$0xf0]  ;;  %v6157_v12 = vor.u32 %v9175_v5, %v6156_v4 }
  0xb0   :  { %v7526_v25 = vld [vmem:[#allocation5 + $0xb60] sm:$0xf0]  ;;  %v6413_v17 = vor.u32 %v9239_v9, %v6412_v6  ;;  %v9167_v21 = vld [vmem:[#allocation5 + $0x64] sm:$0xf0] }
  0xb1   :  { %v9578_v26 = vld [vmem:[#allocation5 + $0xd44] sm:$0xf]  ;;  %v7529_v33 = vor.u32 %v9514_v24, %v7526_v25  ;;  %2985 = vmatpush.bf16.msrb.mxu1 %v7817_v22  ;;  %2998 = vmatpush.bf16.msrb.mxu2 %v6285_v23  ;;  %v6380_v22 = vld [vmem:[#allocation5 + $0x248] sm:$0xf] }
  0xb2   :  { %v7782_v28 = vld [vmem:[#allocation5 + $0xd60] sm:$0xf0]  ;;  %3011 = vmatpush.bf16.msrb.mxu3 %v6541_v27  ;;  %v9231_v23 = vld [vmem:[#allocation5 + $0x264] sm:$0xf0] }
  0xb3   :  { %v7785_v35 = vor.u32 %v9578_v26, %v7782_v28  ;;  %v9506_v37 = vld [vmem:[#allocation5 + $0xb04] sm:$0xf]  ;;  %2973 = vmatpush.bf16.msrb.mxu0 %v7529_v33  ;;  %v6125_v28 = vor.u32 %v9167_v21, %v6124_v20  ;;  %v6381_v32 = vor.u32 %v9231_v23, %v6380_v22  ;;  %v9159_v33 = vld [vmem:[#allocation5 + $0x24] sm:$0xf0] }
  0xb4   :  { %v7494_v38 = vld [vmem:[#allocation5 + $0xb20] sm:$0xf0]  ;;  %v9471_v45 = vld [vmem:[#allocation5 + $0x9e4] sm:$0xf0]  ;;  %v6093_v47 = vor.u32 %v9159_v33, %v6092_v31 }
  0xb5   :  { %v9570_v39 = vld [vmem:[#allocation5 + $0xd04] sm:$0xf]  ;;  %v7497_v48 = vor.u32 %v9506_v37, %v7494_v38  ;;  %2986 = vmatpush.bf16.msrb.mxu1 %v7785_v35  ;;  %2999 = vmatpush.bf16.msrb.mxu2 %v6253_v36  ;;  %v6348_v35 = vld [vmem:[#allocation5 + $0x208] sm:$0xf] }
  0xb6   :  { %v7750_v43 = vld [vmem:[#allocation5 + $0xd20] sm:$0xf0]  ;;  %3012 = vmatpush.bf16.msrb.mxu3 %v6509_v42  ;;  %v9223_v36 = vld [vmem:[#allocation5 + $0x224] sm:$0xf0] }
  0xb7   :  { %v7753_v49 = vor.u32 %v9570_v39, %v7750_v43  ;;  %v9498_v51 = vld [vmem:[#allocation5 + $0xac4] sm:$0xf]  ;;  %2974 = vmatpush.bf16.msrb.mxu0 %v7497_v48  ;;  %v6828_v37 = vld [vmem:[#allocation5 + $0x5c8] sm:$0xf] }
  0xb8   :  { %v7462_v52 = vld [vmem:[#allocation5 + $0xae0] sm:$0xf0]  ;;  %v9343_v38 = vld [vmem:[#allocation5 + $0x5e4] sm:$0xf0] }
  0xb9   :  { %v9562_v53 = vld [vmem:[#allocation5 + $0xcc4] sm:$0xf]  ;;  %v7465_v60 = vor.u32 %v9498_v51, %v7462_v52  ;;  %2987 = vmatpush.bf16.msrb.mxu1 %v7753_v49  ;;  %3000 = vmatpush.bf16.msrb.mxu2 %v6221_v50  ;;  %v7084_v39 = vld [vmem:[#allocation5 + $0x7c8] sm:$0xf]  ;;  %v6349_v50 = vor.u32 %v9223_v36, %v6348_v35  ;;  %v6829_v51 = vor.u32 %v9343_v38, %v6828_v37 }
  0xba   :  { %v7718_v55 = vld [vmem:[#allocation5 + $0xce0] sm:$0xf0]  ;;  %3013 = vmatpush.bf16.msrb.mxu3 %v6477_v54  ;;  %v9407_v43 = vld [vmem:[#allocation5 + $0x7e4] sm:$0xf0] }
  0xbb   :  { %v7721_v61 = vor.u32 %v9562_v53, %v7718_v55  ;;  %v9490_v63 = vld [vmem:[#allocation5 + $0xa84] sm:$0xf]  ;;  %2975 = vmatpush.bf16.msrb.mxu0 %v7465_v60  ;;  %v7596_v48 = vld [vmem:[#allocation5 + $0xbc8] sm:$0xf]  ;;  %v7085_v52 = vor.u32 %v9407_v43, %v7084_v39  ;;  %v7341_v53 = vor.u32 %v9471_v45, %v7340_v44 }
  0xbc   :  { %v7430_v0 = vld [vmem:[#allocation5 + $0xaa0] sm:$0xf0]  ;;  %v9535_v49 = vld [vmem:[#allocation5 + $0xbe4] sm:$0xf0] }
  0xbd   :  { %v9554_v1 = vld [vmem:[#allocation5 + $0xc84] sm:$0xf]  ;;  %v7433_v10 = vor.u32 %v9490_v63, %v7430_v0  ;;  %2988 = vmatpush.bf16.msrb.mxu1 %v7721_v61  ;;  %3001 = vmatpush.bf16.msrb.mxu2 %v6189_v62  ;;  %v6796_v54 = vld [vmem:[#allocation5 + $0x588] sm:$0xf]  ;;  %v7597_v57 = vor.u32 %v9535_v49, %v7596_v48 }
  0xbe   :  { %v7686_v3 = vld [vmem:[#allocation5 + $0xca0] sm:$0xf0]  ;;  %3014 = vmatpush.bf16.msrb.mxu3 %v6445_v2  ;;  %v9335_v55 = vld [vmem:[#allocation5 + $0x5a4] sm:$0xf0] }
  0xbf   :  { %v7689_v11 = vor.u32 %v9554_v1, %v7686_v3  ;;  %v9482_v13 = vld [vmem:[#allocation5 + $0xa44] sm:$0xf]  ;;  %2976 = vmatpush.bf16.msrb.mxu0 %v7433_v10  ;;  %v7052_v56 = vld [vmem:[#allocation5 + $0x788] sm:$0xf]  ;;  %v6797_v63 = vor.u32 %v9335_v55, %v6796_v54 }
  0xc0   :  { %v7398_v15 = vld [vmem:[#allocation5 + $0xa60] sm:$0xf0]  ;;  %v9399_v58 = vld [vmem:[#allocation5 + $0x7a4] sm:$0xf0] }
  0xc1   :  { %v9546_v16 = vld [vmem:[#allocation5 + $0xc44] sm:$0xf]  ;;  %v7401_v24 = vor.u32 %v9482_v13, %v7398_v15  ;;  %2989 = vmatpush.bf16.msrb.mxu1 %v7689_v11  ;;  %3002 = vmatpush.bf16.msrb.mxu2 %v6157_v12  ;;  %v7308_v59 = vld [vmem:[#allocation5 + $0x988] sm:$0xf]  ;;  %v7053_v0 = vor.u32 %v9399_v58, %v7052_v56 }
  0xc2   :  { %v7654_v18 = vld [vmem:[#allocation5 + $0xc60] sm:$0xf0]  ;;  %3015 = vmatpush.bf16.msrb.mxu3 %v6413_v17  ;;  %v9463_v60 = vld [vmem:[#allocation5 + $0x9a4] sm:$0xf0] }
  0xc3   :  { %v9474_v25 = vld [vmem:[#allocation5 + $0xa04] sm:$0xf]  ;;  %v7657_v27 = vor.u32 %v9546_v16, %v7654_v18  ;;  %2977 = vmatpush.bf16.msrb.mxu0 %v7401_v24  ;;  %v7564_v61 = vld [vmem:[#allocation5 + $0xb88] sm:$0xf]  ;;  %v7309_v1 = vor.u32 %v9463_v60, %v7308_v59 }
  0xc4   :  { %v7366_v26 = vld [vmem:[#allocation5 + $0xa20] sm:$0xf0]  ;;  %v9527_v62 = vld [vmem:[#allocation5 + $0xba4] sm:$0xf0] }
  0xc5   :  { %v9538_v29 = vld [vmem:[#allocation5 + $0xc04] sm:$0xf]  ;;  %v7369_v42 = vor.u32 %v9474_v25, %v7366_v26  ;;  %2990 = vmatpush.bf16.msrb.mxu1 %v7657_v27  ;;  %3003 = vmatpush.bf16.msrb.mxu2 %v6125_v28  ;;  %v6764_v2 = vld [vmem:[#allocation5 + $0x548] sm:$0xf]  ;;  %v7565_v5 = vor.u32 %v9527_v62, %v7564_v61 }
  0xc6   :  { %v7622_v30 = vld [vmem:[#allocation5 + $0xc20] sm:$0xf0]  ;;  %3016 = vmatpush.bf16.msrb.mxu3 %v6381_v32  ;;  %v9327_v3 = vld [vmem:[#allocation5 + $0x564] sm:$0xf0] }
  0xc7   :  { %v7625_v46 = vor.u32 %v9538_v29, %v7622_v30  ;;  %2978 = vmatpush.bf16.msrb.mxu0 %v7369_v42  ;;  %v7020_v4 = vld [vmem:[#allocation5 + $0x748] sm:$0xf]  ;;  %v6765_v13 = vor.u32 %v9327_v3, %v6764_v2 }
  0xc8   :  { %v9391_v6 = vld [vmem:[#allocation5 + $0x764] sm:$0xf0] }
  0xc9   :  { %2991 = vmatpush.bf16.msrb.mxu1 %v7625_v46  ;;  %3004 = vmatpush.bf16.msrb.mxu2 %v6093_v47  ;;  %v7276_v9 = vld [vmem:[#allocation5 + $0x948] sm:$0xf]  ;;  %v7021_v15 = vor.u32 %v9391_v6, %v7020_v4 }
  0xca   :  { %3017 = vmatpush.bf16.msrb.mxu3 %v6349_v50  ;;  %2979 = vmatmul.bf16.vlgmr.msrb.gmra.mxu0 %v10140_v41  ;;  %v9455_v10 = vld [vmem:[#allocation5 + $0x964] sm:$0xf0] }
  0xcb   :  { %3023 = vmatpush.bf16.msra.mxu0 %v6829_v51  ;;  %v7532_v11 = vld [vmem:[#allocation5 + $0xb48] sm:$0xf]  ;;  %v7277_v16 = vor.u32 %v9455_v10, %v7276_v9 }
  0xcc   :  { %2992 = vmatmul.bf16.vlgmr.msrb.gmra.mxu1 %v10136_v34  ;;  %v9519_v12 = vld [vmem:[#allocation5 + $0xb64] sm:$0xf0]  ;;  %3005 = vmatmul.bf16.vlgmr.msrb.gmra.mxu2 %v10128_v14 }
  0xcd   :  { %3036 = vmatpush.bf16.msra.mxu1 %v7085_v52  ;;  %3049 = vmatpush.bf16.msra.mxu2 %v7341_v53  ;;  %v6732_v17 = vld [vmem:[#allocation5 + $0x508] sm:$0xf]  ;;  %v7533_v21 = vor.u32 %v9519_v12, %v7532_v11 }
  0xce   :  { %3062 = vmatpush.bf16.msra.mxu3 %v7597_v57  ;;  %v9319_v18 = vld [vmem:[#allocation5 + $0x524] sm:$0xf0] }
  0xcf   :  { %3024 = vmatpush.bf16.msra.mxu0 %v6797_v63  ;;  %3018 = vmatmul.bf16.vlgmr.msrb.gmra.mxu3 %v10131_v19  ;;  %v6988_v20 = vld [vmem:[#allocation5 + $0x708] sm:$0xf]  ;;  %v6733_v27 = vor.u32 %v9319_v18, %v6732_v17 }
  0xd0   :  { %v9383_v22 = vld [vmem:[#allocation5 + $0x724] sm:$0xf0] }
  0xd1   :  { %3037 = vmatpush.bf16.msra.mxu1 %v7053_v0  ;;  %3050 = vmatpush.bf16.msra.mxu2 %v7309_v1  ;;  %v7244_v23 = vld [vmem:[#allocation5 + $0x908] sm:$0xf]  ;;  %v6989_v28 = vor.u32 %v9383_v22, %v6988_v20  ;;  %v9211_v20 = vld [vmem:[#allocation5 + $0x1cc] sm:$0xf] }
  0xd2   :  { %3063 = vmatpush.bf16.msra.mxu3 %v7565_v5  ;;  %v9447_v24 = vld [vmem:[#allocation5 + $0x924] sm:$0xf0]  ;;  %v6318_v22 = vld [vmem:[#allocation5 + $0x1e8] sm:$0xf0] }
  0xd3   :  { %v7500_v25 = vld [vmem:[#allocation5 + $0xb08] sm:$0xf]  ;;  %3025 = vmatpush.bf16.msra.mxu0 %v6765_v13  ;;  %v7245_v29 = vor.u32 %v9447_v24, %v7244_v23  ;;  %v9275_v23 = vld [vmem:[#allocation5 + $0x3cc] sm:$0xf] }
  0xd4   :  { %v9511_v26 = vld [vmem:[#allocation5 + $0xb24] sm:$0xf0]  ;;  %v6574_v24 = vld [vmem:[#allocation5 + $0x3e8] sm:$0xf0] }
  0xd5   :  { %3038 = vmatpush.bf16.msra.mxu1 %v7021_v15  ;;  %3051 = vmatpush.bf16.msra.mxu2 %v7277_v16  ;;  %v6700_v30 = vld [vmem:[#allocation5 + $0x4c8] sm:$0xf]  ;;  %v7501_v33 = vor.u32 %v9511_v26, %v7500_v25 }
  0xd6   :  { %v9311_v31 = vld [vmem:[#allocation5 + $0x4e4] sm:$0xf0]  ;;  %3064 = vmatpush.bf16.msra.mxu3 %v7533_v21 }
  0xd7   :  { %v6956_v32 = vld [vmem:[#allocation5 + $0x6c8] sm:$0xf]  ;;  %3026 = vmatpush.bf16.msra.mxu0 %v6733_v27  ;;  %v6701_v42 = vor.u32 %v9311_v31, %v6700_v30  ;;  %v9339_v27 = vld [vmem:[#allocation5 + $0x5cc] sm:$0xf]  ;;  %v6321_v31 = vor.u32 %v9211_v20, %v6318_v22  ;;  %v2824_v22 = vpop.f32.mrf.mxu0 }
  0xd8   :  { %v9375_v35 = vld [vmem:[#allocation5 + $0x6e4] sm:$0xf0]  ;;  %v6702_v20 = vld [vmem:[#allocation5 + $0x4e8] sm:$0xf0] }
  0xd9   :  { %v7212_v36 = vld [vmem:[#allocation5 + $0x8c8] sm:$0xf]  ;;  %3039 = vmatpush.bf16.msra.mxu1 %v6989_v28  ;;  %3052 = vmatpush.bf16.msra.mxu2 %v7245_v29  ;;  %v6957_v43 = vor.u32 %v9375_v35, %v6956_v32  ;;  %v6830_v28 = vld [vmem:[#allocation5 + $0x5e8] sm:$0xf0]  ;;  %v6577_v32 = vor.u32 %v9275_v23, %v6574_v24 }
  0xda   :  { %v9439_v37 = vld [vmem:[#allocation5 + $0x8e4] sm:$0xf0]  ;;  %3065 = vmatpush.bf16.msra.mxu3 %v7501_v33 }
  0xdb   :  { %v7468_v38 = vld [vmem:[#allocation5 + $0xac8] sm:$0xf]  ;;  %v7213_v44 = vor.u32 %v9439_v37, %v7212_v36  ;;  %3027 = vmatpush.bf16.msra.mxu0 %v6701_v42  ;;  %v9203_v36 = vld [vmem:[#allocation5 + $0x18c] sm:$0xf]  ;;  %v6833_v37 = vor.u32 %v9339_v27, %v6830_v28  ;;  %v2837_v28 = vpop.f32.mrf.mxu1 }
  0xdc   :  { %v9503_v39 = vld [vmem:[#allocation5 + $0xae4] sm:$0xf0]  ;;  %v6542_v42 = vld [vmem:[#allocation5 + $0x3a8] sm:$0xf0] }
  0xdd   :  { %v6668_v45 = vld [vmem:[#allocation5 + $0x488] sm:$0xf]  ;;  %v7469_v48 = vor.u32 %v9503_v39, %v7468_v38  ;;  %3040 = vmatpush.bf16.msra.mxu1 %v6957_v43  ;;  %3053 = vmatpush.bf16.msra.mxu2 %v7213_v44  ;;  %v6286_v38 = vld [vmem:[#allocation5 + $0x1a8] sm:$0xf0] }
  0xde   :  { %v9303_v46 = vld [vmem:[#allocation5 + $0x4a4] sm:$0xf0]  ;;  %v9267_v39 = vld [vmem:[#allocation5 + $0x38c] sm:$0xf] }
  0xdf   :  { %v6924_v47 = vld [vmem:[#allocation5 + $0x688] sm:$0xf]  ;;  %v6669_v54 = vor.u32 %v9303_v46, %v6668_v45  ;;  %3066 = vmatpush.bf16.msra.mxu3 %v7469_v48  ;;  %v9331_v43 = vld [vmem:[#allocation5 + $0x58c] sm:$0xf]  ;;  %v6289_v46 = vor.u32 %v9203_v36, %v6286_v38 }
  0xe0   :  { %v9367_v49 = vld [vmem:[#allocation5 + $0x6a4] sm:$0xf0]  ;;  %v6798_v44 = vld [vmem:[#allocation5 + $0x5a8] sm:$0xf0] }
  0xe1   :  { %v7180_v50 = vld [vmem:[#allocation5 + $0x888] sm:$0xf]  ;;  %v6925_v55 = vor.u32 %v9367_v49, %v6924_v47  ;;  %3028 = vmatpush.bf16.msra.mxu0 %v6669_v54  ;;  %v6545_v47 = vor.u32 %v9267_v39, %v6542_v42  ;;  %v6510_v54 = vld [vmem:[#allocation5 + $0x368] sm:$0xf0] }
  0xe2   :  { %v9431_v51 = vld [vmem:[#allocation5 + $0x8a4] sm:$0xf0]  ;;  %v9171_v27 = vld [vmem:[#allocation5 + $0x8c] sm:$0xf] }
  0xe3   :  { %v7436_v52 = vld [vmem:[#allocation5 + $0xa88] sm:$0xf]  ;;  %v7181_v56 = vor.u32 %v9431_v51, %v7180_v50  ;;  %3041 = vmatpush.bf16.msra.mxu1 %v6925_v55  ;;  %v9195_v50 = vld [vmem:[#allocation5 + $0x14c] sm:$0xf]  ;;  %v6801_v51 = vor.u32 %v9331_v43, %v6798_v44 }
  0xe4   :  { %v9495_v53 = vld [vmem:[#allocation5 + $0xaa4] sm:$0xf0]  ;;  %v9323_v55 = vld [vmem:[#allocation5 + $0x54c] sm:$0xf] }
  0xe5   :  { %v6636_v57 = vld [vmem:[#allocation5 + $0x448] sm:$0xf]  ;;  %v7437_v60 = vor.u32 %v9495_v53, %v7436_v52  ;;  %3054 = vmatpush.bf16.msra.mxu2 %v7181_v56  ;;  %v6254_v52 = vld [vmem:[#allocation5 + $0x168] sm:$0xf0] }
  0xe6   :  { %v9295_v58 = vld [vmem:[#allocation5 + $0x464] sm:$0xf0]  ;;  %v9259_v53 = vld [vmem:[#allocation5 + $0x34c] sm:$0xf] }
  0xe7   :  { %v6892_v59 = vld [vmem:[#allocation5 + $0x648] sm:$0xf]  ;;  %v6637_v2 = vor.u32 %v9295_v58, %v6636_v57  ;;  %3067 = vmatpush.bf16.msra.mxu3 %v7437_v60  ;;  %v6766_v56 = vld [vmem:[#allocation5 + $0x568] sm:$0xf0]  ;;  %v6257_v58 = vor.u32 %v9195_v50, %v6254_v52 }
  0xe8   :  { %v9359_v61 = vld [vmem:[#allocation5 + $0x664] sm:$0xf0]  ;;  %v6670_v36 = vld [vmem:[#allocation5 + $0x4a8] sm:$0xf0] }
  0xe9   :  { %v7148_v62 = vld [vmem:[#allocation5 + $0x848] sm:$0xf]  ;;  %v6893_v5 = vor.u32 %v9359_v61, %v6892_v59  ;;  %3029 = vmatpush.bf16.msra.mxu0 %v6637_v2  ;;  %v6513_v59 = vor.u32 %v9259_v53, %v6510_v54  ;;  %v6478_v2 = vld [vmem:[#allocation5 + $0x328] sm:$0xf0] }
  0xea   :  { %v9423_v63 = vld [vmem:[#allocation5 + $0x864] sm:$0xf0]  ;;  %v9163_v44 = vld [vmem:[#allocation5 + $0x4c] sm:$0xf] }
  0xeb   :  { %v7404_v0 = vld [vmem:[#allocation5 + $0xa48] sm:$0xf]  ;;  %v7149_v6 = vor.u32 %v9423_v63, %v7148_v62  ;;  %3042 = vmatpush.bf16.msra.mxu1 %v6893_v5  ;;  %v9187_v62 = vld [vmem:[#allocation5 + $0x10c] sm:$0xf]  ;;  %v6769_v63 = vor.u32 %v9323_v55, %v6766_v56 }
  0xec   :  { %v9487_v1 = vld [vmem:[#allocation5 + $0xa64] sm:$0xf0]  ;;  %v9291_v52 = vld [vmem:[#allocation5 + $0x44c] sm:$0xf] }
  0xed   :  { %v6604_v3 = vld [vmem:[#allocation5 + $0x408] sm:$0xf]  ;;  %v7405_v12 = vor.u32 %v9487_v1, %v7404_v0  ;;  %3055 = vmatpush.bf16.msra.mxu2 %v7149_v6  ;;  %v6222_v0 = vld [vmem:[#allocation5 + $0x128] sm:$0xf0] }
  0xee   :  { %v9287_v4 = vld [vmem:[#allocation5 + $0x424] sm:$0xf0]  ;;  %v9251_v1 = vld [vmem:[#allocation5 + $0x30c] sm:$0xf]  ;;  %v6225_v6 = vor.u32 %v9187_v62, %v6222_v0  ;;  %v2839_v0 = vpop.f32.mrf.mxu1 }
  0xef   :  { %v6860_v9 = vld [vmem:[#allocation5 + $0x608] sm:$0xf]  ;;  %v6605_v21 = vor.u32 %v9287_v4, %v6604_v3  ;;  %3068 = vmatpush.bf16.msra.mxu3 %v7405_v12  ;;  %v9315_v3 = vld [vmem:[#allocation5 + $0x50c] sm:$0xf] }
  0xf0   :  { %v9351_v10 = vld [vmem:[#allocation5 + $0x624] sm:$0xf0]  ;;  %v6734_v4 = vld [vmem:[#allocation5 + $0x528] sm:$0xf0] }
  0xf1   :  { %v7116_v11 = vld [vmem:[#allocation5 + $0x808] sm:$0xf]  ;;  %v6861_v25 = vor.u32 %v9351_v10, %v6860_v9  ;;  %3030 = vmatpush.bf16.msra.mxu0 %v6605_v21  ;;  %v6481_v9 = vor.u32 %v9251_v1, %v6478_v2  ;;  %v9179_v12 = vld [vmem:[#allocation5 + $0xcc] sm:$0xf] }
  0xf2   :  { %v9415_v13 = vld [vmem:[#allocation5 + $0x824] sm:$0xf0]  ;;  %v6638_v53 = vld [vmem:[#allocation5 + $0x468] sm:$0xf0] }
  0xf3   :  { %v7372_v15 = vld [vmem:[#allocation5 + $0xa08] sm:$0xf]  ;;  %v7117_v26 = vor.u32 %v9415_v13, %v7116_v11  ;;  %3043 = vmatpush.bf16.msra.mxu1 %v6861_v25  ;;  %v6737_v13 = vor.u32 %v9315_v3, %v6734_v4  ;;  %v6094_v62 = vld [vmem:[#allocation5 + $0x28] sm:$0xf0]  ;;  %v6641_v1 = vor.u32 %v9291_v52, %v6638_v53 }
  0xf4   :  { %v9479_v16 = vld [vmem:[#allocation5 + $0xa24] sm:$0xf0]  ;;  %3031 = vmatmul.bf16.vlgmr.msra.gmra.mxu0 %v10124_v7  ;;  %v6350_v2 = vld [vmem:[#allocation5 + $0x228] sm:$0xf0] }
  0xf5   :  { %v7852_v17 = vld [vmem:[#allocation5 + $0xdc8] sm:$0xf]  ;;  %v7373_v29 = vor.u32 %v9479_v16, %v7372_v15  ;;  %3056 = vmatpush.bf16.msra.mxu2 %v7117_v26  ;;  %v6190_v15 = vld [vmem:[#allocation5 + $0xe8] sm:$0xf0] }
  0xf6   :  { %v9599_v18 = vld [vmem:[#allocation5 + $0xde4] sm:$0xf0]  ;;  %3044 = vmatmul.bf16.vlgmr.msra.gmra.mxu1 %v10126_v8  ;;  %v9243_v16 = vld [vmem:[#allocation5 + $0x2cc] sm:$0xf]  ;;  %v6193_v23 = vor.u32 %v9179_v12, %v6190_v15 }
  0xf7   :  { %v7853_v30 = vor.u32 %v9599_v18, %v7852_v17  ;;  %v7820_v33 = vld [vmem:[#allocation5 + $0xd88] sm:$0xf]  ;;  %3069 = vmatpush.bf16.msra.mxu3 %v7373_v29  ;;  %3088 = vmatpush.bf16.msrb.mxu1 %v6321_v31  ;;  %v6446_v17 = vld [vmem:[#allocation5 + $0x2e8] sm:$0xf0] }
  0xf8   :  { %v9591_v35 = vld [vmem:[#allocation5 + $0xda4] sm:$0xf0]  ;;  %3057 = vmatmul.bf16.vlgmr.msra.gmra.mxu2 %v10138_v40  ;;  %v9307_v18 = vld [vmem:[#allocation5 + $0x4cc] sm:$0xf]  ;;  %v6449_v24 = vor.u32 %v9243_v16, %v6446_v17 }
  0xf9   :  { %3075 = vmatpush.bf16.msrb.mxu0 %v7853_v30  ;;  %v7821_v45 = vor.u32 %v9591_v35, %v7820_v33  ;;  %3101 = vmatpush.bf16.msrb.mxu2 %v6577_v32  ;;  %v7788_v48 = vld [vmem:[#allocation5 + $0xd48] sm:$0xf]  ;;  %v6705_v29 = vor.u32 %v9307_v18, %v6702_v20  ;;  %v6158_v30 = vld [vmem:[#allocation5 + $0xa8] sm:$0xf0]  ;;  %v2838_v33 = vadd.f32 %v2837_v28, %v2824_v22 }
  0xfa   :  { %v9583_v49 = vld [vmem:[#allocation5 + $0xd64] sm:$0xf0]  ;;  %3070 = vmatmul.bf16.vlgmr.msra.gmra.mxu3 %v10140_v41  ;;  %v9235_v31 = vld [vmem:[#allocation5 + $0x28c] sm:$0xf]  ;;  %v6161_v38 = vor.u32 %v9171_v27, %v6158_v30 }
  0xfb   :  { %3114 = vmatpush.bf16.msrb.mxu3 %v6833_v37  ;;  %v7789_v57 = vor.u32 %v9583_v49, %v7788_v48  ;;  %3089 = vmatpush.bf16.msrb.mxu1 %v6289_v46  ;;  %v7756_v60 = vld [vmem:[#allocation5 + $0xd08] sm:$0xf]  ;;  %v6414_v32 = vld [vmem:[#allocation5 + $0x2a8] sm:$0xf0] }
  0xfc   :  { %v9575_v61 = vld [vmem:[#allocation5 + $0xd24] sm:$0xf0]  ;;  %v9299_v35 = vld [vmem:[#allocation5 + $0x48c] sm:$0xf]  ;;  %v6417_v39 = vor.u32 %v9235_v31, %v6414_v32 }
  0xfd   :  { %3076 = vmatpush.bf16.msrb.mxu0 %v7821_v45  ;;  %3102 = vmatpush.bf16.msrb.mxu2 %v6545_v47  ;;  %v7757_v5 = vor.u32 %v9575_v61, %v7756_v60  ;;  %v7724_v10 = vld [vmem:[#allocation5 + $0xcc8] sm:$0xf]  ;;  %v2850_v45 = vpop.f32.mrf.mxu2  ;;  %v6673_v46 = vor.u32 %v9299_v35, %v6670_v36  ;;  %v6126_v47 = vld [vmem:[#allocation5 + $0x68] sm:$0xf0] }
  0xfe   :  { %v9567_v11 = vld [vmem:[#allocation5 + $0xce4] sm:$0xf0]  ;;  %v9227_v48 = vld [vmem:[#allocation5 + $0x24c] sm:$0xf]  ;;  %v2851_v50 = vadd.f32 %v2850_v45, %v2838_v33 }
  0xff   :  { %3115 = vmatpush.bf16.msrb.mxu3 %v6801_v51  ;;  %3090 = vmatpush.bf16.msrb.mxu1 %v6257_v58  ;;  %v7725_v21 = vor.u32 %v9567_v11, %v7724_v10  ;;  %v7692_v25 = vld [vmem:[#allocation5 + $0xc88] sm:$0xf]  ;;  %v6382_v49 = vld [vmem:[#allocation5 + $0x268] sm:$0xf0]  ;;  %v2863_v51 = vpop.f32.mrf.mxu3 }
 0x100   :  { %v9559_v26 = vld [vmem:[#allocation5 + $0xca4] sm:$0xf0]  ;;  %v10158_v58 = vadd.f32 %v2863_v51, %v2851_v50  ;;  %v6385_v60 = vor.u32 %v9227_v48, %v6382_v49  ;;  %v9155_v61 = vld [vmem:[#allocation5 + $0xc] sm:$0xf] }
 0x101   :  { %3077 = vmatpush.bf16.msrb.mxu0 %v7789_v57  ;;  %3103 = vmatpush.bf16.msrb.mxu2 %v6513_v59  ;;  %v7693_v37 = vor.u32 %v9559_v26, %v7692_v25  ;;  %v7660_v42 = vld [vmem:[#allocation5 + $0xc48] sm:$0xf]  ;;  %v2826_v57 = vpop.f32.mrf.mxu0  ;;  %v6129_v59 = vor.u32 %v9163_v44, %v6126_v47  ;;  %v9283_v3 = vld [vmem:[#allocation5 + $0x40c] sm:$0xf]  ;;  %v6097_v15 = vor.u32 %v9155_v61, %v6094_v62 }
 0x102   :  { %v9551_v43 = vld [vmem:[#allocation5 + $0xc64] sm:$0xf0]  ;;  %v6606_v4 = vld [vmem:[#allocation5 + $0x428] sm:$0xf0] }
 0x103   :  { %3116 = vmatpush.bf16.msrb.mxu3 %v6769_v63  ;;  %3091 = vmatpush.bf16.msrb.mxu1 %v6225_v6  ;;  %v7661_v54 = vor.u32 %v9551_v43, %v7660_v42  ;;  %v7628_v55 = vld [vmem:[#allocation5 + $0xc08] sm:$0xf]  ;;  %v9219_v63 = vld [vmem:[#allocation5 + $0x20c] sm:$0xf] }
 0x104   :  { %v9543_v56 = vld [vmem:[#allocation5 + $0xc24] sm:$0xf0]  ;;  %v7086_v6 = vld [vmem:[#allocation5 + $0x7e8] sm:$0xf0]  ;;  %v6353_v16 = vor.u32 %v9219_v63, %v6350_v2 }
 0x105   :  { %3078 = vmatpush.bf16.msrb.mxu0 %v7757_v5  ;;  %3104 = vmatpush.bf16.msrb.mxu2 %v6481_v9  ;;  %v9403_v5 = vld [vmem:[#allocation5 + $0x7cc] sm:$0xf]  ;;  %v7629_v10 = vor.u32 %v9543_v56, %v7628_v55  ;;  %v2852_v20 = vpop.f32.mrf.mxu2 }
 0x106   :  { %v9467_v9 = vld [vmem:[#allocation5 + $0x9cc] sm:$0xf]  ;;  %v7089_v22 = vor.u32 %v9403_v5, %v7086_v6 }
 0x107   :  { %3117 = vmatpush.bf16.msrb.mxu3 %v6737_v13  ;;  %3092 = vmatpush.bf16.msrb.mxu1 %v6193_v23  ;;  %v7342_v11 = vld [vmem:[#allocation5 + $0x9e8] sm:$0xf0]  ;;  %v2865_v23 = vpop.f32.mrf.mxu3 }
 0x108   :  { %v9531_v12 = vld [vmem:[#allocation5 + $0xbcc] sm:$0xf] }
 0x109   :  { %3079 = vmatpush.bf16.msrb.mxu0 %v7725_v21  ;;  %3105 = vmatpush.bf16.msrb.mxu2 %v6449_v24  ;;  %v7598_v13 = vld [vmem:[#allocation5 + $0xbe8] sm:$0xf0]  ;;  %v6609_v21 = vor.u32 %v9283_v3, %v6606_v4  ;;  %v7345_v24 = vor.u32 %v9467_v9, %v7342_v11  ;;  %v2876_v0 = vpop.f32.mrf.mxu0 }
 0x10a   :  { %v9595_v17 = vld [vmem:[#allocation5 + $0xdcc] sm:$0xf]  ;;  %v7601_v25 = vor.u32 %v9531_v12, %v7598_v13  ;;  %v2877_v4 = vadd.f32 %v2876_v0, %v10158_v58  ;;  %v6324_v0 = vld [vmem:[#allocation5 + $0x1d0] sm:$0xf] }
 0x10b   :  { %3118 = vmatpush.bf16.msrb.mxu3 %v6705_v29  ;;  %3093 = vmatpush.bf16.msrb.mxu1 %v6161_v38  ;;  %v7854_v18 = vld [vmem:[#allocation5 + $0xde8] sm:$0xf0] }
 0x10c   :  { %v9395_v26 = vld [vmem:[#allocation5 + $0x78c] sm:$0xf]  ;;  %v7857_v29 = vor.u32 %v9595_v17, %v7854_v18 }
 0x10d   :  { %3080 = vmatpush.bf16.msrb.mxu0 %v7693_v37  ;;  %3106 = vmatpush.bf16.msrb.mxu2 %v6417_v39  ;;  %v7054_v27 = vld [vmem:[#allocation5 + $0x7a8] sm:$0xf0] }
 0x10e   :  { %v9459_v28 = vld [vmem:[#allocation5 + $0x98c] sm:$0xf]  ;;  %v7057_v36 = vor.u32 %v9395_v26, %v7054_v27 }
 0x10f   :  { %3119 = vmatpush.bf16.msrb.mxu3 %v6673_v46  ;;  %3094 = vmatpush.bf16.msrb.mxu1 %v6129_v59  ;;  %v7310_v30 = vld [vmem:[#allocation5 + $0x9a8] sm:$0xf0] }
 0x110   :  { %v9523_v31 = vld [vmem:[#allocation5 + $0xb8c] sm:$0xf]  ;;  %v7313_v37 = vor.u32 %v9459_v28, %v7310_v30 }
 0x111   :  { %3081 = vmatpush.bf16.msrb.mxu0 %v7661_v54  ;;  %3107 = vmatpush.bf16.msrb.mxu2 %v6385_v60  ;;  %v7566_v32 = vld [vmem:[#allocation5 + $0xba8] sm:$0xf0] }
 0x112   :  { %v9587_v33 = vld [vmem:[#allocation5 + $0xd8c] sm:$0xf]  ;;  %v7569_v38 = vor.u32 %v9523_v31, %v7566_v32  ;;  %v10167_v32 = vpop.f32.mrf.mxu3 }
 0x113   :  { %3120 = vmatpush.bf16.msrb.mxu3 %v6641_v1  ;;  %3095 = vmatpush.bf16.msrb.mxu1 %v6097_v15  ;;  %v7822_v35 = vld [vmem:[#allocation5 + $0xda8] sm:$0xf0]  ;;  %v2889_v1 = vpop.f32.mrf.mxu1 }
 0x114   :  { %v9387_v39 = vld [vmem:[#allocation5 + $0x74c] sm:$0xf]  ;;  %v7825_v44 = vor.u32 %v9587_v33, %v7822_v35  ;;  %v2890_v17 = vadd.f32 %v2889_v1, %v2877_v4  ;;  %v2878_v35 = vpop.f32.mrf.mxu0  ;;  %v9216_v1 = vld [vmem:[#allocation5 + $0x1ec] sm:$0xf0] }
 0x115   :  { %3082 = vmatpush.bf16.msrb.mxu0 %v7629_v10  ;;  %3108 = vmatpush.bf16.msrb.mxu2 %v6353_v16  ;;  %v7022_v42 = vld [vmem:[#allocation5 + $0x768] sm:$0xf0]  ;;  %v9200_v35 = vld [vmem:[#allocation5 + $0x16c] sm:$0xf0] }
 0x116   :  { %v9451_v43 = vld [vmem:[#allocation5 + $0x94c] sm:$0xf]  ;;  %v7025_v50 = vor.u32 %v9387_v39, %v7022_v42  ;;  %3096 = vmatmul.bf16.vlgmr.msrb.gmra.mxu1 %v10128_v14 }
 0x117   :  { %3121 = vmatpush.bf16.msrb.mxu3 %v6609_v21  ;;  %3140 = vmatpush.bf16.msra.mxu1 %v7345_v24  ;;  %v7278_v45 = vld [vmem:[#allocation5 + $0x968] sm:$0xf0] }
 0x118   :  { %3083 = vmatmul.bf16.vlgmr.msrb.gmra.mxu0 %v10136_v34  ;;  %v9515_v46 = vld [vmem:[#allocation5 + $0xb4c] sm:$0xf]  ;;  %3109 = vmatmul.bf16.vlgmr.msrb.gmra.mxu2 %v10131_v19  ;;  %v7281_v51 = vor.u32 %v9451_v43, %v7278_v45 }
 0x119   :  { %3127 = vmatpush.bf16.msra.mxu0 %v7089_v22  ;;  %3153 = vmatpush.bf16.msra.mxu2 %v7601_v25  ;;  %v7534_v47 = vld [vmem:[#allocation5 + $0xb68] sm:$0xf0]  ;;  %v2902_v22 = vpop.f32.mrf.mxu2 }
 0x11a   :  { %v9579_v48 = vld [vmem:[#allocation5 + $0xd4c] sm:$0xf]  ;;  %3122 = vmatmul.bf16.vlgmr.msrb.gmra.mxu3 %v10124_v7  ;;  %v7537_v52 = vor.u32 %v9515_v46, %v7534_v47  ;;  %v10165_v26 = vadd.f32 %v2902_v22, %v2890_v17  ;;  %v6548_v22 = vld [vmem:[#allocation5 + $0x390] sm:$0xf] }
 0x11b   :  { %3166 = vmatpush.bf16.msra.mxu3 %v7857_v29  ;;  %v7790_v49 = vld [vmem:[#allocation5 + $0xd68] sm:$0xf0]  ;;  %3141 = vmatpush.bf16.msra.mxu1 %v7313_v37 }
 0x11c   :  { %v9379_v53 = vld [vmem:[#allocation5 + $0x70c] sm:$0xf]  ;;  %v7793_v56 = vor.u32 %v9579_v48, %v7790_v49  ;;  %vm3543_vm0 = vcmp.gt.f32.partialorder %v10165_v26, 0.0 }
 0x11d   :  { %3128 = vmatpush.bf16.msra.mxu0 %v7057_v36  ;;  %3154 = vmatpush.bf16.msra.mxu2 %v7569_v38  ;;  %v6990_v54 = vld [vmem:[#allocation5 + $0x728] sm:$0xf0]  ;;  %v2891_v36 = vpop.f32.mrf.mxu1 }
 0x11e   :  { %v9443_v55 = vld [vmem:[#allocation5 + $0x90c] sm:$0xf]  ;;  %v6993_v63 = vor.u32 %v9379_v53, %v6990_v54  ;;  %v6516_v36 = vld [vmem:[#allocation5 + $0x350] sm:$0xf] }
 0x11f   :  { %3167 = vmatpush.bf16.msra.mxu3 %v7825_v44  ;;  %v7246_v57 = vld [vmem:[#allocation5 + $0x928] sm:$0xf0]  ;;  %3142 = vmatpush.bf16.msra.mxu1 %v7281_v51 }
 0x120   :  { %v9507_v59 = vld [vmem:[#allocation5 + $0xb0c] sm:$0xf]  ;;  %v7249_v2 = vor.u32 %v9443_v55, %v7246_v57 }
 0x121   :  { %v7502_v60 = vld [vmem:[#allocation5 + $0xb28] sm:$0xf0]  ;;  %3129 = vmatpush.bf16.msra.mxu0 %v7025_v50  ;;  %3155 = vmatpush.bf16.msra.mxu2 %v7537_v52 }
 0x122   :  { %v9571_v61 = vld [vmem:[#allocation5 + $0xd0c] sm:$0xf]  ;;  %v7505_v3 = vor.u32 %v9507_v59, %v7502_v60  ;;  %v2904_v59 = vpop.f32.mrf.mxu2 }
 0x123   :  { %v7758_v62 = vld [vmem:[#allocation5 + $0xd28] sm:$0xf0]  ;;  %3168 = vmatpush.bf16.msra.mxu3 %v7793_v56  ;;  %3143 = vmatpush.bf16.msra.mxu1 %v7249_v2  ;;  %v6580_v2 = vld [vmem:[#allocation5 + $0x3d0] sm:$0xf] }
 0x124   :  { %v9371_v5 = vld [vmem:[#allocation5 + $0x6cc] sm:$0xf]  ;;  %v7761_v10 = vor.u32 %v9571_v61, %v7758_v62 }
 0x125   :  { %v6958_v6 = vld [vmem:[#allocation5 + $0x6e8] sm:$0xf0]  ;;  %3130 = vmatpush.bf16.msra.mxu0 %v6993_v63  ;;  %3156 = vmatpush.bf16.msra.mxu2 %v7505_v3  ;;  %v2917_v3 = vpop.f32.mrf.mxu3  ;;  %v2928_v59 = vpop.f32.mrf.mxu0 }
 0x126   :  { %v9435_v9 = vld [vmem:[#allocation5 + $0x8cc] sm:$0xf]  ;;  %v6961_v18 = vor.u32 %v9371_v5, %v6958_v6  ;;  %v9280_v5 = vld [vmem:[#allocation5 + $0x3ec] sm:$0xf0] }
 0x127   :  { %v7214_v11 = vld [vmem:[#allocation5 + $0x8e8] sm:$0xf0]  ;;  %3169 = vmatpush.bf16.msra.mxu3 %v7761_v10  ;;  %v6836_v6 = vld [vmem:[#allocation5 + $0x5d0] sm:$0xf]  ;;  %v6581_v17 = vor.u32 %v9280_v5, %v6580_v2  ;;  %v2941_v2 = vpop.f32.mrf.mxu1 }
 0x128   :  { %v9499_v12 = vld [vmem:[#allocation5 + $0xacc] sm:$0xf]  ;;  %v7217_v20 = vor.u32 %v9435_v9, %v7214_v11  ;;  %v9344_v9 = vld [vmem:[#allocation5 + $0x5ec] sm:$0xf0] }
 0x129   :  { %v7470_v13 = vld [vmem:[#allocation5 + $0xae8] sm:$0xf0]  ;;  %3131 = vmatpush.bf16.msra.mxu0 %v6961_v18  ;;  %v6837_v18 = vor.u32 %v9344_v9, %v6836_v6  ;;  %v6708_v5 = vld [vmem:[#allocation5 + $0x4d0] sm:$0xf] }
 0x12a   :  { %v9563_v15 = vld [vmem:[#allocation5 + $0xccc] sm:$0xf]  ;;  %v7473_v21 = vor.u32 %v9499_v12, %v7470_v13  ;;  %3144 = vmatpush.bf16.msra.mxu1 %v7217_v20  ;;  %v7092_v12 = vld [vmem:[#allocation5 + $0x7d0] sm:$0xf] }
 0x12b   :  { %v7726_v16 = vld [vmem:[#allocation5 + $0xce8] sm:$0xf0]  ;;  %v9408_v13 = vld [vmem:[#allocation5 + $0x7ec] sm:$0xf0] }
 0x12c   :  { %v9363_v23 = vld [vmem:[#allocation5 + $0x68c] sm:$0xf]  ;;  %v7729_v25 = vor.u32 %v9563_v15, %v7726_v16  ;;  %3157 = vmatpush.bf16.msra.mxu2 %v7473_v21  ;;  %v6325_v16 = vor.u32 %v9216_v1, %v6324_v0  ;;  %v6292_v20 = vld [vmem:[#allocation5 + $0x190] sm:$0xf]  ;;  %v2929_v1 = vadd.f32 %v2928_v59, %v10167_v32 }
 0x12d   :  { %v6926_v58 = vld [vmem:[#allocation5 + $0x6a8] sm:$0xf0]  ;;  %v9208_v21 = vld [vmem:[#allocation5 + $0x1ac] sm:$0xf0] }
 0x12e   :  { %v9427_v24 = vld [vmem:[#allocation5 + $0x88c] sm:$0xf]  ;;  %v6929_v33 = vor.u32 %v9363_v23, %v6926_v58  ;;  %3170 = vmatpush.bf16.msra.mxu3 %v7729_v25  ;;  %v7093_v23 = vor.u32 %v9408_v13, %v7092_v12  ;;  %v9272_v58 = vld [vmem:[#allocation5 + $0x3ac] sm:$0xf0] }
 0x12f   :  { %v7182_v27 = vld [vmem:[#allocation5 + $0x8a8] sm:$0xf0]  ;;  %v9336_v25 = vld [vmem:[#allocation5 + $0x5ac] sm:$0xf0] }
 0x130   :  { %v9491_v28 = vld [vmem:[#allocation5 + $0xa8c] sm:$0xf]  ;;  %v7185_v37 = vor.u32 %v9427_v24, %v7182_v27  ;;  %3132 = vmatpush.bf16.msra.mxu0 %v6929_v33  ;;  %v6804_v24 = vld [vmem:[#allocation5 + $0x590] sm:$0xf] }
 0x131   :  { %v7438_v29 = vld [vmem:[#allocation5 + $0xaa8] sm:$0xf0]  ;;  %v7060_v27 = vld [vmem:[#allocation5 + $0x790] sm:$0xf] }
 0x132   :  { %v9555_v30 = vld [vmem:[#allocation5 + $0xc8c] sm:$0xf]  ;;  %v7441_v38 = vor.u32 %v9491_v28, %v7438_v29  ;;  %3145 = vmatpush.bf16.msra.mxu1 %v7185_v37  ;;  %v9400_v28 = vld [vmem:[#allocation5 + $0x7ac] sm:$0xf0]  ;;  %v6293_v29 = vor.u32 %v9208_v21, %v6292_v20  ;;  %v2954_v20 = vpop.f32.mrf.mxu2 }
 0x133   :  { %v7694_v31 = vld [vmem:[#allocation5 + $0xca8] sm:$0xf0]  ;;  %v6260_v33 = vld [vmem:[#allocation5 + $0x150] sm:$0xf]  ;;  %v7061_v37 = vor.u32 %v9400_v28, %v7060_v27 }
 0x134   :  { %v9355_v39 = vld [vmem:[#allocation5 + $0x64c] sm:$0xf]  ;;  %v7697_v44 = vor.u32 %v9555_v30, %v7694_v31  ;;  %3158 = vmatpush.bf16.msra.mxu2 %v7441_v38  ;;  %v6549_v30 = vor.u32 %v9272_v58, %v6548_v22  ;;  %v6805_v31 = vor.u32 %v9336_v25, %v6804_v24  ;;  %v9264_v38 = vld [vmem:[#allocation5 + $0x36c] sm:$0xf0]  ;;  %v2967_v24 = vpop.f32.mrf.mxu3 }
 0x135   :  { %v6894_v42 = vld [vmem:[#allocation5 + $0x668] sm:$0xf0]  ;;  %v6452_v0 = vld [vmem:[#allocation5 + $0x2d0] sm:$0xf] }
 0x136   :  { %v9419_v43 = vld [vmem:[#allocation5 + $0x84c] sm:$0xf]  ;;  %v6897_v50 = vor.u32 %v9355_v39, %v6894_v42  ;;  %3171 = vmatpush.bf16.msra.mxu3 %v7697_v44  ;;  %v6772_v39 = vld [vmem:[#allocation5 + $0x550] sm:$0xf] }
 0x137   :  { %v7150_v45 = vld [vmem:[#allocation5 + $0x868] sm:$0xf0]  ;;  %v9328_v42 = vld [vmem:[#allocation5 + $0x56c] sm:$0xf0] }
 0x138   :  { %v9483_v46 = vld [vmem:[#allocation5 + $0xa4c] sm:$0xf]  ;;  %v7153_v53 = vor.u32 %v9419_v43, %v7150_v45  ;;  %3133 = vmatpush.bf16.msra.mxu0 %v6897_v50  ;;  %v7028_v43 = vld [vmem:[#allocation5 + $0x750] sm:$0xf]  ;;  %v6261_v45 = vor.u32 %v9200_v35, %v6260_v33 }
 0x139   :  { %v7406_v47 = vld [vmem:[#allocation5 + $0xa68] sm:$0xf0]  ;;  %v9392_v44 = vld [vmem:[#allocation5 + $0x76c] sm:$0xf0] }
 0x13a   :  { %v9547_v48 = vld [vmem:[#allocation5 + $0xc4c] sm:$0xf]  ;;  %v7409_v54 = vor.u32 %v9483_v46, %v7406_v47  ;;  %3146 = vmatpush.bf16.msra.mxu1 %v7153_v53  ;;  %v6517_v46 = vor.u32 %v9264_v38, %v6516_v36  ;;  %v6773_v47 = vor.u32 %v9328_v42, %v6772_v39  ;;  %v6484_v50 = vld [vmem:[#allocation5 + $0x310] sm:$0xf]  ;;  %v2943_v38 = vpop.f32.mrf.mxu1 }
 0x13b   :  { %v7662_v49 = vld [vmem:[#allocation5 + $0xc68] sm:$0xf0]  ;;  %v6740_v53 = vld [vmem:[#allocation5 + $0x510] sm:$0xf]  ;;  %v9196_v38 = vld [vmem:[#allocation5 + $0x154] sm:$0xf] }
 0x13c   :  { %v9347_v51 = vld [vmem:[#allocation5 + $0x60c] sm:$0xf]  ;;  %v7665_v60 = vor.u32 %v9547_v48, %v7662_v49  ;;  %3159 = vmatpush.bf16.msra.mxu2 %v7409_v54  ;;  %v6228_v48 = vld [vmem:[#allocation5 + $0x110] sm:$0xf] }
 0x13d   :  { %v6862_v52 = vld [vmem:[#allocation5 + $0x628] sm:$0xf0]  ;;  %v9192_v49 = vld [vmem:[#allocation5 + $0x12c] sm:$0xf0] }
 0x13e   :  { %v9411_v55 = vld [vmem:[#allocation5 + $0x80c] sm:$0xf]  ;;  %v6865_v4 = vor.u32 %v9347_v51, %v6862_v52  ;;  %3172 = vmatpush.bf16.msra.mxu3 %v7665_v60  ;;  %v7029_v51 = vor.u32 %v9392_v44, %v7028_v43  ;;  %v9256_v52 = vld [vmem:[#allocation5 + $0x32c] sm:$0xf0] }
 0x13f   :  { %v7118_v56 = vld [vmem:[#allocation5 + $0x828] sm:$0xf0]  ;;  %v9320_v54 = vld [vmem:[#allocation5 + $0x52c] sm:$0xf0]  ;;  %v6485_v60 = vor.u32 %v9256_v52, %v6484_v50 }
 0x140   :  { %v9475_v57 = vld [vmem:[#allocation5 + $0xa0c] sm:$0xf]  ;;  %v7121_v10 = vor.u32 %v9411_v55, %v7118_v56  ;;  %3134 = vmatpush.bf16.msra.mxu0 %v6865_v4  ;;  %v6996_v55 = vld [vmem:[#allocation5 + $0x710] sm:$0xf] }
 0x141   :  { %v7374_v61 = vld [vmem:[#allocation5 + $0xa28] sm:$0xf0]  ;;  %v9384_v56 = vld [vmem:[#allocation5 + $0x72c] sm:$0xf0] }
 0x142   :  { %v9539_v62 = vld [vmem:[#allocation5 + $0xc0c] sm:$0xf]  ;;  %v7377_v11 = vor.u32 %v9475_v57, %v7374_v61  ;;  %3147 = vmatpush.bf16.msra.mxu1 %v7121_v10  ;;  %v6229_v57 = vor.u32 %v9192_v49, %v6228_v48  ;;  %v6741_v61 = vor.u32 %v9320_v54, %v6740_v53  ;;  %v6997_v3 = vor.u32 %v9384_v56, %v6996_v55  ;;  %v9248_v4 = vld [vmem:[#allocation5 + $0x2ec] sm:$0xf0]  ;;  %v2956_v55 = vpop.f32.mrf.mxu2 }
 0x143   :  { %v7630_v63 = vld [vmem:[#allocation5 + $0xc28] sm:$0xf0]  ;;  %3135 = vmatmul.bf16.vlgmr.msra.gmra.mxu0 %v10126_v8  ;;  %v9312_v6 = vld [vmem:[#allocation5 + $0x4ec] sm:$0xf0]  ;;  %v6453_v13 = vor.u32 %v9248_v4, %v6452_v0 }
 0x144   :  { %v7633_v15 = vor.u32 %v9539_v62, %v7630_v63  ;;  %3160 = vmatpush.bf16.msra.mxu2 %v7377_v11  ;;  %3179 = vmatpush.bf16.msrb.mxu0 %v6325_v16  ;;  %v6196_v62 = vld [vmem:[#allocation5 + $0xd0] sm:$0xf]  ;;  %v2942_v11 = vadd.f32 %v2941_v2, %v2929_v1 }
 0x145   :  { %3148 = vmatmul.bf16.vlgmr.msra.gmra.mxu1 %v10138_v40  ;;  %v9184_v63 = vld [vmem:[#allocation5 + $0xec] sm:$0xf0] }
 0x146   :  { %3173 = vmatpush.bf16.msra.mxu3 %v7633_v15  ;;  %3192 = vmatpush.bf16.msrb.mxu1 %v6581_v17  ;;  %v6964_v9 = vld [vmem:[#allocation5 + $0x6d0] sm:$0xf]  ;;  %v6197_v12 = vor.u32 %v9184_v63, %v6196_v62  ;;  %v6709_v15 = vor.u32 %v9312_v6, %v6708_v5  ;;  %v2955_v58 = vadd.f32 %v2954_v20, %v2942_v11 }
 0x147   :  { %3161 = vmatmul.bf16.vlgmr.msra.gmra.mxu2 %v10140_v41  ;;  %v9376_v10 = vld [vmem:[#allocation5 + $0x6ec] sm:$0xf0] }
 0x148   :  { %3205 = vmatpush.bf16.msrb.mxu2 %v6837_v18  ;;  %3180 = vmatpush.bf16.msrb.mxu0 %v6293_v29  ;;  %v6164_v16 = vld [vmem:[#allocation5 + $0x90] sm:$0xf]  ;;  %v6965_v32 = vor.u32 %v9376_v10, %v6964_v9  ;;  %v10174_v29 = vadd.f32 %v2967_v24, %v2955_v58  ;;  %v9212_v9 = vld [vmem:[#allocation5 + $0x1d4] sm:$0xf] }
 0x149   :  { %3174 = vmatmul.bf16.vlgmr.msra.gmra.mxu3 %v10136_v34  ;;  %v9176_v17 = vld [vmem:[#allocation5 + $0xac] sm:$0xf0]  ;;  %v6326_v10 = vld [vmem:[#allocation5 + $0x1f0] sm:$0xf0] }
 0x14a   :  { %3218 = vmatpush.bf16.msrb.mxu3 %v7093_v23  ;;  %3193 = vmatpush.bf16.msrb.mxu1 %v6549_v30  ;;  %v6420_v18 = vld [vmem:[#allocation5 + $0x290] sm:$0xf]  ;;  %v6165_v28 = vor.u32 %v9176_v17, %v6164_v16  ;;  %v2930_v30 = vpop.f32.mrf.mxu0  ;;  %v6329_v20 = vor.u32 %v9212_v9, %v6326_v10  ;;  %v6294_v58 = vld [vmem:[#allocation5 + $0x1b0] sm:$0xf0] }
 0x14b   :  { %v9240_v21 = vld [vmem:[#allocation5 + $0x2ac] sm:$0xf0] }
 0x14c   :  { %3206 = vmatpush.bf16.msrb.mxu2 %v6805_v31  ;;  %3181 = vmatpush.bf16.msrb.mxu0 %v6261_v45  ;;  %v6676_v22 = vld [vmem:[#allocation5 + $0x490] sm:$0xf]  ;;  %v6421_v31 = vor.u32 %v9240_v21, %v6420_v18 }
 0x14d   :  { %v9304_v23 = vld [vmem:[#allocation5 + $0x4ac] sm:$0xf0] }
 0x14e   :  { %3219 = vmatpush.bf16.msrb.mxu3 %v7061_v37  ;;  %3194 = vmatpush.bf16.msrb.mxu1 %v6517_v46  ;;  %v6932_v25 = vld [vmem:[#allocation5 + $0x690] sm:$0xf]  ;;  %v6677_v33 = vor.u32 %v9304_v23, %v6676_v22  ;;  %v9204_v23 = vld [vmem:[#allocation5 + $0x194] sm:$0xf] }
 0x14f   :  { %v9368_v27 = vld [vmem:[#allocation5 + $0x6ac] sm:$0xf0] }
 0x150   :  { %3207 = vmatpush.bf16.msrb.mxu2 %v6773_v47  ;;  %3182 = vmatpush.bf16.msrb.mxu0 %v6229_v57  ;;  %v6132_v35 = vld [vmem:[#allocation5 + $0x50] sm:$0xf]  ;;  %v6933_v39 = vor.u32 %v9368_v27, %v6932_v25 }
 0x151   :  { %v9168_v36 = vld [vmem:[#allocation5 + $0x6c] sm:$0xf0] }
 0x152   :  { %3220 = vmatpush.bf16.msrb.mxu3 %v7029_v51  ;;  %3195 = vmatpush.bf16.msrb.mxu1 %v6485_v60  ;;  %v6388_v37 = vld [vmem:[#allocation5 + $0x250] sm:$0xf]  ;;  %v6133_v47 = vor.u32 %v9168_v36, %v6132_v35 }
 0x153   :  { %v9232_v42 = vld [vmem:[#allocation5 + $0x26c] sm:$0xf0] }
 0x154   :  { %3208 = vmatpush.bf16.msrb.mxu2 %v6741_v61  ;;  %3183 = vmatpush.bf16.msrb.mxu0 %v6197_v12  ;;  %v6644_v43 = vld [vmem:[#allocation5 + $0x450] sm:$0xf]  ;;  %v6389_v50 = vor.u32 %v9232_v42, %v6388_v37  ;;  %v2969_v61 = vpop.f32.mrf.mxu3 }
 0x155   :  { %v9296_v44 = vld [vmem:[#allocation5 + $0x46c] sm:$0xf0] }
 0x156   :  { %3221 = vmatpush.bf16.msrb.mxu3 %v6997_v3  ;;  %3196 = vmatpush.bf16.msrb.mxu1 %v6453_v13  ;;  %v6900_v45 = vld [vmem:[#allocation5 + $0x650] sm:$0xf]  ;;  %v6645_v51 = vor.u32 %v9296_v44, %v6644_v43 }
 0x157   :  { %v9360_v46 = vld [vmem:[#allocation5 + $0x66c] sm:$0xf0] }
 0x158   :  { %3209 = vmatpush.bf16.msrb.mxu2 %v6709_v15  ;;  %3184 = vmatpush.bf16.msrb.mxu0 %v6165_v28  ;;  %v6100_v48 = vld [vmem:[#allocation5 + $0x10] sm:$0xf]  ;;  %v6901_v56 = vor.u32 %v9360_v46, %v6900_v45 }
 0x159   :  { %v9160_v49 = vld [vmem:[#allocation5 + $0x2c] sm:$0xf0] }
 0x15a   :  { %3222 = vmatpush.bf16.msrb.mxu3 %v6965_v32  ;;  %3197 = vmatpush.bf16.msrb.mxu1 %v6421_v31  ;;  %v6356_v52 = vld [vmem:[#allocation5 + $0x210] sm:$0xf]  ;;  %v6101_v1 = vor.u32 %v9160_v49, %v6100_v48 }
 0x15b   :  { %v9224_v53 = vld [vmem:[#allocation5 + $0x22c] sm:$0xf0] }
 0x15c   :  { %3210 = vmatpush.bf16.msrb.mxu2 %v6677_v33  ;;  %v6612_v54 = vld [vmem:[#allocation5 + $0x410] sm:$0xf]  ;;  %3185 = vmatpush.bf16.msrb.mxu0 %v6133_v47  ;;  %v6357_v5 = vor.u32 %v9224_v53, %v6356_v52  ;;  %v6297_v33 = vor.u32 %v9204_v23, %v6294_v58  ;;  %v2980_v52 = vpop.f32.mrf.mxu0  ;;  %v9188_v53 = vld [vmem:[#allocation5 + $0x114] sm:$0xf] }
 0x15d   :  { %v9288_v57 = vld [vmem:[#allocation5 + $0x42c] sm:$0xf0]  ;;  %v2981_v55 = vadd.f32 %v2980_v52, %v10174_v29 }
 0x15e   :  { %3223 = vmatpush.bf16.msrb.mxu3 %v6933_v39  ;;  %v6868_v59 = vld [vmem:[#allocation5 + $0x610] sm:$0xf]  ;;  %3198 = vmatpush.bf16.msrb.mxu1 %v6389_v50  ;;  %v6613_v6 = vor.u32 %v9288_v57, %v6612_v54  ;;  %v6262_v39 = vld [vmem:[#allocation5 + $0x170] sm:$0xf0]  ;;  %v2993_v57 = vpop.f32.mrf.mxu1 }
 0x15f   :  { %v9352_v60 = vld [vmem:[#allocation5 + $0x62c] sm:$0xf0]  ;;  %v6265_v48 = vor.u32 %v9196_v38, %v6262_v39  ;;  %v6230_v54 = vld [vmem:[#allocation5 + $0x130] sm:$0xf0] }
 0x160   :  { %v7348_v62 = vld [vmem:[#allocation5 + $0x9d0] sm:$0xf]  ;;  %3211 = vmatpush.bf16.msrb.mxu2 %v6645_v51  ;;  %v6869_v11 = vor.u32 %v9352_v60, %v6868_v59  ;;  %3186 = vmatpush.bf16.msrb.mxu0 %v6101_v1  ;;  %v10181_v1 = vadd.f32 %v2993_v57, %v2981_v55  ;;  %v9164_v39 = vld [vmem:[#allocation5 + $0x54] sm:$0xf] }
 0x161   :  { %v9472_v63 = vld [vmem:[#allocation5 + $0x9ec] sm:$0xf0]  ;;  %v6582_v57 = vld [vmem:[#allocation5 + $0x3f0] sm:$0xf0] }
 0x162   :  { %v7604_v0 = vld [vmem:[#allocation5 + $0xbd0] sm:$0xf]  ;;  %3224 = vmatpush.bf16.msrb.mxu3 %v6901_v56  ;;  %v7349_v12 = vor.u32 %v9472_v63, %v7348_v62  ;;  %3199 = vmatpush.bf16.msrb.mxu1 %v6357_v5  ;;  %v9180_v5 = vld [vmem:[#allocation5 + $0xd4] sm:$0xf]  ;;  %vm3544_vm1 = vcmp.gt.f32.partialorder %v10181_v1, 0.0 }
 0x163   :  { %v9536_v2 = vld [vmem:[#allocation5 + $0xbec] sm:$0xf0]  ;;  %3187 = vmatmul.bf16.vlgmr.msrb.gmra.mxu0 %v10128_v14 }
 0x164   :  { %v7860_v3 = vld [vmem:[#allocation5 + $0xdd0] sm:$0xf]  ;;  %v7605_v13 = vor.u32 %v9536_v2, %v7604_v0  ;;  %3212 = vmatpush.bf16.msrb.mxu2 %v6613_v6  ;;  %3231 = vmatpush.bf16.msra.mxu0 %v7349_v12  ;;  %v6233_v0 = vor.u32 %v9188_v53, %v6230_v54  ;;  %v6198_v6 = vld [vmem:[#allocation5 + $0xf0] sm:$0xf0]  ;;  %v2982_v23 = vpop.f32.mrf.mxu0 }
 0x165   :  { %v9600_v4 = vld [vmem:[#allocation5 + $0xdec] sm:$0xf0]  ;;  %3200 = vmatmul.bf16.vlgmr.msrb.gmra.mxu1 %v10131_v19  ;;  %v9156_v53 = vld [vmem:[#allocation5 + $0x14] sm:$0xf] }
 0x166   :  { %v7861_v15 = vor.u32 %v9600_v4, %v7860_v3  ;;  %v7316_v16 = vld [vmem:[#allocation5 + $0x990] sm:$0xf]  ;;  %3225 = vmatpush.bf16.msrb.mxu3 %v6869_v11  ;;  %3244 = vmatpush.bf16.msra.mxu1 %v7605_v13  ;;  %v6102_v54 = vld [vmem:[#allocation5 + $0x30] sm:$0xf0] }
 0x167   :  { %v9464_v17 = vld [vmem:[#allocation5 + $0x9ac] sm:$0xf0]  ;;  %3213 = vmatmul.bf16.vlgmr.msrb.gmra.mxu2 %v10124_v7 }
 0x168   :  { %v7572_v18 = vld [vmem:[#allocation5 + $0xb90] sm:$0xf]  ;;  %v7317_v24 = vor.u32 %v9464_v17, %v7316_v16  ;;  %3257 = vmatpush.bf16.msra.mxu2 %v7861_v15  ;;  %v6201_v15 = vor.u32 %v9180_v5, %v6198_v6  ;;  %v7350_v5 = vld [vmem:[#allocation5 + $0x9f0] sm:$0xf0]  ;;  %v6105_v6 = vor.u32 %v9156_v53, %v6102_v54 }
 0x169   :  { %v9528_v32 = vld [vmem:[#allocation5 + $0xbac] sm:$0xf0]  ;;  %3226 = vmatmul.bf16.vlgmr.msrb.gmra.mxu3 %v10126_v8 }
 0x16a   :  { %v7828_v21 = vld [vmem:[#allocation5 + $0xd90] sm:$0xf]  ;;  %v7573_v25 = vor.u32 %v9528_v32, %v7572_v18  ;;  %3270 = vmatpush.bf16.msra.mxu3 %v6329_v20  ;;  %3232 = vmatpush.bf16.msra.mxu0 %v7317_v24  ;;  %v3006_v20 = vpop.f32.mrf.mxu2  ;;  %v9172_v32 = vld [vmem:[#allocation5 + $0x94] sm:$0xf] }
 0x16b   :  { %v9592_v22 = vld [vmem:[#allocation5 + $0xdac] sm:$0xf0] }
 0x16c   :  { %v7829_v27 = vor.u32 %v9592_v22, %v7828_v21  ;;  %v7284_v28 = vld [vmem:[#allocation5 + $0x950] sm:$0xf]  ;;  %3245 = vmatpush.bf16.msra.mxu1 %v7573_v25  ;;  %v6166_v21 = vld [vmem:[#allocation5 + $0xb0] sm:$0xf0]  ;;  %v3019_v22 = vpop.f32.mrf.mxu3  ;;  %v2995_v25 = vpop.f32.mrf.mxu1 }
 0x16d   :  { %v9456_v30 = vld [vmem:[#allocation5 + $0x96c] sm:$0xf0]  ;;  %v10183_v24 = vadd.f32 %v3019_v22, %v3006_v20  ;;  %v9460_v20 = vld [vmem:[#allocation5 + $0x994] sm:$0xf] }
 0x16e   :  { %v7540_v31 = vld [vmem:[#allocation5 + $0xb50] sm:$0xf]  ;;  %v7285_v42 = vor.u32 %v9456_v30, %v7284_v28  ;;  %3258 = vmatpush.bf16.msra.mxu2 %v7829_v27  ;;  %3271 = vmatpush.bf16.msra.mxu3 %v6297_v33  ;;  %v6518_v25 = vld [vmem:[#allocation5 + $0x370] sm:$0xf0] }
 0x16f   :  { %v9520_v35 = vld [vmem:[#allocation5 + $0xb6c] sm:$0xf0] }
 0x170   :  { %v7796_v36 = vld [vmem:[#allocation5 + $0xd50] sm:$0xf]  ;;  %v7541_v43 = vor.u32 %v9520_v35, %v7540_v31  ;;  %3233 = vmatpush.bf16.msra.mxu0 %v7285_v42  ;;  %v6169_v35 = vor.u32 %v9172_v32, %v6166_v21  ;;  %v6134_v42 = vld [vmem:[#allocation5 + $0x70] sm:$0xf0] }
 0x171   :  { %v9584_v37 = vld [vmem:[#allocation5 + $0xd6c] sm:$0xf0]  ;;  %v7318_v32 = vld [vmem:[#allocation5 + $0x9b0] sm:$0xf0] }
 0x172   :  { %v7797_v44 = vor.u32 %v9584_v37, %v7796_v36  ;;  %v7252_v45 = vld [vmem:[#allocation5 + $0x910] sm:$0xf]  ;;  %3246 = vmatpush.bf16.msra.mxu1 %v7541_v43  ;;  %3272 = vmatpush.bf16.msra.mxu3 %v6265_v48  ;;  %v3008_v55 = vpop.f32.mrf.mxu2 }
 0x173   :  { %v9448_v46 = vld [vmem:[#allocation5 + $0x92c] sm:$0xf0]  ;;  %v9244_v55 = vld [vmem:[#allocation5 + $0x2d4] sm:$0xf] }
 0x174   :  { %v7508_v47 = vld [vmem:[#allocation5 + $0xb10] sm:$0xf]  ;;  %v7253_v56 = vor.u32 %v9448_v46, %v7252_v45  ;;  %3259 = vmatpush.bf16.msra.mxu2 %v7797_v44 }
 0x175   :  { %v9512_v49 = vld [vmem:[#allocation5 + $0xb2c] sm:$0xf0] }
 0x176   :  { %v7764_v50 = vld [vmem:[#allocation5 + $0xd10] sm:$0xf]  ;;  %v7509_v59 = vor.u32 %v9512_v49, %v7508_v47  ;;  %3234 = vmatpush.bf16.msra.mxu0 %v7253_v56  ;;  %3273 = vmatpush.bf16.msra.mxu3 %v6233_v0  ;;  %v9276_v56 = vld [vmem:[#allocation5 + $0x3d4] sm:$0xf] }
 0x177   :  { %v9576_v51 = vld [vmem:[#allocation5 + $0xd2c] sm:$0xf0]  ;;  %v7094_v0 = vld [vmem:[#allocation5 + $0x7f0] sm:$0xf0] }
 0x178   :  { %v7765_v60 = vor.u32 %v9576_v51, %v7764_v50  ;;  %v7220_v61 = vld [vmem:[#allocation5 + $0x8d0] sm:$0xf]  ;;  %3247 = vmatpush.bf16.msra.mxu1 %v7509_v59  ;;  %v6137_v51 = vor.u32 %v9164_v39, %v6134_v42  ;;  %v9340_v59 = vld [vmem:[#allocation5 + $0x5d4] sm:$0xf] }
 0x179   :  { %v9440_v62 = vld [vmem:[#allocation5 + $0x8ec] sm:$0xf0]  ;;  %v9252_v42 = vld [vmem:[#allocation5 + $0x314] sm:$0xf] }
 0x17a   :  { %v7476_v63 = vld [vmem:[#allocation5 + $0xad0] sm:$0xf]  ;;  %v7221_v29 = vor.u32 %v9440_v62, %v7220_v61  ;;  %3260 = vmatpush.bf16.msra.mxu2 %v7765_v60  ;;  %3274 = vmatpush.bf16.msra.mxu3 %v6201_v15  ;;  %v3021_v60 = vpop.f32.mrf.mxu3  ;;  %v6838_v62 = vld [vmem:[#allocation5 + $0x5f0] sm:$0xf0] }
 0x17b   :  { %v9504_v2 = vld [vmem:[#allocation5 + $0xaec] sm:$0xf0]  ;;  %v3045_v60 = vpop.f32.mrf.mxu1 }
 0x17c   :  { %v7732_v3 = vld [vmem:[#allocation5 + $0xcd0] sm:$0xf]  ;;  %v7477_v9 = vor.u32 %v9504_v2, %v7476_v63  ;;  %3235 = vmatpush.bf16.msra.mxu0 %v7221_v29  ;;  %v9404_v63 = vld [vmem:[#allocation5 + $0x7d4] sm:$0xf]  ;;  %v6585_v29 = vor.u32 %v9276_v56, %v6582_v57 }
 0x17d   :  { %v9568_v4 = vld [vmem:[#allocation5 + $0xcec] sm:$0xf0]  ;;  %v6454_v56 = vld [vmem:[#allocation5 + $0x2f0] sm:$0xf0] }
 0x17e   :  { %v7733_v10 = vor.u32 %v9568_v4, %v7732_v3  ;;  %v7188_v11 = vld [vmem:[#allocation5 + $0x890] sm:$0xf]  ;;  %3248 = vmatpush.bf16.msra.mxu1 %v7477_v9  ;;  %3275 = vmatpush.bf16.msra.mxu3 %v6169_v35  ;;  %v9468_v4 = vld [vmem:[#allocation5 + $0x9d4] sm:$0xf]  ;;  %v6841_v9 = vor.u32 %v9340_v59, %v6838_v62 }
 0x17f   :  { %v9432_v12 = vld [vmem:[#allocation5 + $0x8ac] sm:$0xf0]  ;;  %v7353_v15 = vor.u32 %v9468_v4, %v7350_v5  ;;  %v9452_v35 = vld [vmem:[#allocation5 + $0x954] sm:$0xf]  ;;  %v6457_v5 = vor.u32 %v9244_v55, %v6454_v56 }
 0x180   :  { %v7444_v13 = vld [vmem:[#allocation5 + $0xa90] sm:$0xf]  ;;  %v7189_v58 = vor.u32 %v9432_v12, %v7188_v11  ;;  %3261 = vmatpush.bf16.msra.mxu2 %v7733_v10  ;;  %v7097_v10 = vor.u32 %v9404_v63, %v7094_v0  ;;  %v9268_v11 = vld [vmem:[#allocation5 + $0x394] sm:$0xf] }
 0x181   :  { %v9496_v16 = vld [vmem:[#allocation5 + $0xaac] sm:$0xf0]  ;;  %v6550_v12 = vld [vmem:[#allocation5 + $0x3b0] sm:$0xf0] }
 0x182   :  { %v7700_v17 = vld [vmem:[#allocation5 + $0xc90] sm:$0xf]  ;;  %v7445_v27 = vor.u32 %v9496_v16, %v7444_v13  ;;  %3236 = vmatpush.bf16.msra.mxu0 %v7189_v58  ;;  %3276 = vmatpush.bf16.msra.mxu3 %v6137_v51  ;;  %v9332_v13 = vld [vmem:[#allocation5 + $0x594] sm:$0xf]  ;;  %v6553_v21 = vor.u32 %v9268_v11, %v6550_v12  ;;  %v3058_v12 = vpop.f32.mrf.mxu2 }
 0x183   :  { %v9560_v18 = vld [vmem:[#allocation5 + $0xcac] sm:$0xf0]  ;;  %v6806_v16 = vld [vmem:[#allocation5 + $0x5b0] sm:$0xf0] }
 0x184   :  { %v7701_v28 = vor.u32 %v9560_v18, %v7700_v17  ;;  %v7156_v30 = vld [vmem:[#allocation5 + $0x850] sm:$0xf]  ;;  %3249 = vmatpush.bf16.msra.mxu1 %v7445_v27  ;;  %v9396_v17 = vld [vmem:[#allocation5 + $0x794] sm:$0xf]  ;;  %v6809_v22 = vor.u32 %v9332_v13, %v6806_v16 }
 0x185   :  { %v9424_v31 = vld [vmem:[#allocation5 + $0x86c] sm:$0xf0]  ;;  %v7062_v18 = vld [vmem:[#allocation5 + $0x7b0] sm:$0xf0] }
 0x186   :  { %v7412_v33 = vld [vmem:[#allocation5 + $0xa50] sm:$0xf]  ;;  %v7157_v43 = vor.u32 %v9424_v31, %v7156_v30  ;;  %3262 = vmatpush.bf16.msra.mxu2 %v7701_v28  ;;  %3277 = vmatpush.bf16.msra.mxu3 %v6105_v6  ;;  %v7065_v23 = vor.u32 %v9396_v17, %v7062_v18  ;;  %v9260_v58 = vld [vmem:[#allocation5 + $0x354] sm:$0xf]  ;;  %v7321_v28 = vor.u32 %v9460_v20, %v7318_v32  ;;  %v3071_v18 = vpop.f32.mrf.mxu3 }
 0x187   :  { %v9488_v36 = vld [vmem:[#allocation5 + $0xa6c] sm:$0xf0]  ;;  %v9324_v27 = vld [vmem:[#allocation5 + $0x554] sm:$0xf] }
 0x188   :  { %v7668_v37 = vld [vmem:[#allocation5 + $0xc50] sm:$0xf]  ;;  %v7413_v46 = vor.u32 %v9488_v36, %v7412_v33  ;;  %3237 = vmatpush.bf16.msra.mxu0 %v7157_v43  ;;  %v6774_v30 = vld [vmem:[#allocation5 + $0x570] sm:$0xf0] }
 0x189   :  { %v9552_v38 = vld [vmem:[#allocation5 + $0xc6c] sm:$0xf0]  ;;  %v9388_v31 = vld [vmem:[#allocation5 + $0x754] sm:$0xf]  ;;  %3278 = vmatmul.bf16.vlgmr.msra.gmra.mxu3 %v10128_v14 }
 0x18a   :  { %v7124_v44 = vld [vmem:[#allocation5 + $0x810] sm:$0xf]  ;;  %v7669_v47 = vor.u32 %v9552_v38, %v7668_v37  ;;  %3250 = vmatpush.bf16.msra.mxu1 %v7413_v46  ;;  %3322 = vmatpush.bf16.msrb.mxu3 %v7353_v15  ;;  %v7030_v33 = vld [vmem:[#allocation5 + $0x770] sm:$0xf0]  ;;  %v6521_v37 = vor.u32 %v9260_v58, %v6518_v25  ;;  %v6777_v38 = vor.u32 %v9324_v27, %v6774_v30 }
 0x18b   :  { %v9416_v45 = vld [vmem:[#allocation5 + $0x82c] sm:$0xf0]  ;;  %v7286_v36 = vld [vmem:[#allocation5 + $0x970] sm:$0xf0]  ;;  %v7033_v39 = vor.u32 %v9388_v31, %v7030_v33  ;;  %v3047_v31 = vpop.f32.mrf.mxu1 }
 0x18c   :  { %v7380_v48 = vld [vmem:[#allocation5 + $0xa10] sm:$0xf]  ;;  %v7125_v61 = vor.u32 %v9416_v45, %v7124_v44  ;;  %3263 = vmatpush.bf16.msra.mxu2 %v7669_v47  ;;  %v6486_v43 = vld [vmem:[#allocation5 + $0x330] sm:$0xf0]  ;;  %v7289_v45 = vor.u32 %v9452_v35, %v7286_v36  ;;  %v9201_v31 = vld [vmem:[#allocation5 + $0x174] sm:$0xf0] }
 0x18d   :  { %v9480_v49 = vld [vmem:[#allocation5 + $0xa2c] sm:$0xf0]  ;;  %v9316_v44 = vld [vmem:[#allocation5 + $0x514] sm:$0xf]  ;;  %v6489_v51 = vor.u32 %v9252_v42, %v6486_v43 }
 0x18e   :  { %v7636_v50 = vld [vmem:[#allocation5 + $0xc10] sm:$0xf]  ;;  %v7381_v2 = vor.u32 %v9480_v49, %v7380_v48  ;;  %3238 = vmatpush.bf16.msra.mxu0 %v7125_v61  ;;  %3323 = vmatpush.bf16.msrb.mxu3 %v7321_v28  ;;  %v6742_v46 = vld [vmem:[#allocation5 + $0x530] sm:$0xf0]  ;;  %v3073_v55 = vpop.f32.mrf.mxu3 }
 0x18f   :  { %v9544_v52 = vld [vmem:[#allocation5 + $0xc2c] sm:$0xf0]  ;;  %v9380_v47 = vld [vmem:[#allocation5 + $0x714] sm:$0xf]  ;;  %v6745_v53 = vor.u32 %v9316_v44, %v6742_v46 }
 0x190   :  { %v7637_v3 = vor.u32 %v9544_v52, %v7636_v50  ;;  %3251 = vmatpush.bf16.msra.mxu1 %v7381_v2  ;;  %v6998_v48 = vld [vmem:[#allocation5 + $0x730] sm:$0xf0]  ;;  %v3032_v52 = vpop.f32.mrf.mxu0 }
 0x191   :  { %3239 = vmatmul.bf16.vlgmr.msra.gmra.mxu0 %v10138_v40  ;;  %v9444_v49 = vld [vmem:[#allocation5 + $0x914] sm:$0xf]  ;;  %v7001_v54 = vor.u32 %v9380_v47, %v6998_v48  ;;  %v3033_v59 = vadd.f32 %v3032_v52, %v10183_v24 }
 0x192   :  { %3264 = vmatpush.bf16.msra.mxu2 %v7637_v3  ;;  %3283 = vmatpush.bf16.msrb.mxu0 %v6585_v29  ;;  %v7254_v50 = vld [vmem:[#allocation5 + $0x930] sm:$0xf0] }
 0x193   :  { %3252 = vmatmul.bf16.vlgmr.msra.gmra.mxu1 %v10140_v41  ;;  %v9308_v57 = vld [vmem:[#allocation5 + $0x4d4] sm:$0xf]  ;;  %3324 = vmatpush.bf16.msrb.mxu3 %v7289_v45  ;;  %v7257_v61 = vor.u32 %v9444_v49, %v7254_v50  ;;  %v3046_v4 = vadd.f32 %v3045_v60, %v3033_v59  ;;  %v3060_v50 = vpop.f32.mrf.mxu2 }
 0x194   :  { %3296 = vmatpush.bf16.msrb.mxu1 %v6841_v9  ;;  %v6710_v62 = vld [vmem:[#allocation5 + $0x4f0] sm:$0xf0]  ;;  %v9257_v50 = vld [vmem:[#allocation5 + $0x334] sm:$0xf0] }
 0x195   :  { %3265 = vmatmul.bf16.vlgmr.msra.gmra.mxu2 %v10136_v34  ;;  %v9372_v63 = vld [vmem:[#allocation5 + $0x6d4] sm:$0xf]  ;;  %v6713_v6 = vor.u32 %v9308_v57, %v6710_v62  ;;  %v3059_v17 = vadd.f32 %v3058_v12, %v3046_v4  ;;  %v6332_v62 = vld [vmem:[#allocation5 + $0x1d8] sm:$0xf] }
 0x196   :  { %3309 = vmatpush.bf16.msrb.mxu2 %v7097_v10  ;;  %3284 = vmatpush.bf16.msrb.mxu0 %v6553_v21  ;;  %v6966_v0 = vld [vmem:[#allocation5 + $0x6f0] sm:$0xf0]  ;;  %v9281_v4 = vld [vmem:[#allocation5 + $0x3f4] sm:$0xf0] }
 0x197   :  { %v9436_v2 = vld [vmem:[#allocation5 + $0x8d4] sm:$0xf]  ;;  %v6969_v29 = vor.u32 %v9372_v63, %v6966_v0  ;;  %3325 = vmatpush.bf16.msrb.mxu3 %v7257_v61  ;;  %v9217_v63 = vld [vmem:[#allocation5 + $0x1f4] sm:$0xf0] }
 0x198   :  { %3297 = vmatpush.bf16.msrb.mxu1 %v6809_v22  ;;  %v7222_v3 = vld [vmem:[#allocation5 + $0x8f0] sm:$0xf0]  ;;  %v10190_v22 = vadd.f32 %v3071_v18, %v3059_v17  ;;  %v6556_v17 = vld [vmem:[#allocation5 + $0x398] sm:$0xf] }
 0x199   :  { %v9236_v9 = vld [vmem:[#allocation5 + $0x294] sm:$0xf]  ;;  %v7225_v24 = vor.u32 %v9436_v2, %v7222_v3  ;;  %v6588_v3 = vld [vmem:[#allocation5 + $0x3d8] sm:$0xf] }
 0x19a   :  { %3310 = vmatpush.bf16.msrb.mxu2 %v7065_v23  ;;  %3285 = vmatpush.bf16.msrb.mxu0 %v6521_v37  ;;  %v6422_v10 = vld [vmem:[#allocation5 + $0x2b0] sm:$0xf0]  ;;  %v3034_v23 = vpop.f32.mrf.mxu0  ;;  %v9273_v18 = vld [vmem:[#allocation5 + $0x3b4] sm:$0xf0] }
 0x19b   :  { %v9300_v11 = vld [vmem:[#allocation5 + $0x494] sm:$0xf]  ;;  %v6425_v21 = vor.u32 %v9236_v9, %v6422_v10  ;;  %3326 = vmatpush.bf16.msrb.mxu3 %v7225_v24  ;;  %v6333_v9 = vor.u32 %v9217_v63, %v6332_v62  ;;  %v6589_v24 = vor.u32 %v9281_v4, %v6588_v3  ;;  %v6204_v62 = vld [vmem:[#allocation5 + $0xd8] sm:$0xf] }
 0x19c   :  { %3298 = vmatpush.bf16.msrb.mxu1 %v6777_v38  ;;  %v6678_v13 = vld [vmem:[#allocation5 + $0x4b0] sm:$0xf0]  ;;  %v9185_v63 = vld [vmem:[#allocation5 + $0xf4] sm:$0xf0] }
 0x19d   :  { %v9364_v15 = vld [vmem:[#allocation5 + $0x694] sm:$0xf]  ;;  %v6681_v58 = vor.u32 %v9300_v11, %v6678_v13  ;;  %v6205_v4 = vor.u32 %v9185_v63, %v6204_v62  ;;  %v9473_v62 = vld [vmem:[#allocation5 + $0x9f4] sm:$0xf0] }
 0x19e   :  { %3311 = vmatpush.bf16.msrb.mxu2 %v7033_v39  ;;  %3286 = vmatpush.bf16.msrb.mxu0 %v6489_v51  ;;  %v6934_v16 = vld [vmem:[#allocation5 + $0x6b0] sm:$0xf0] }
 0x19f   :  { %v9428_v20 = vld [vmem:[#allocation5 + $0x894] sm:$0xf]  ;;  %v6937_v25 = vor.u32 %v9364_v15, %v6934_v16  ;;  %v6300_v15 = vld [vmem:[#allocation5 + $0x198] sm:$0xf] }
 0x1a0   :  { %3299 = vmatpush.bf16.msrb.mxu1 %v6745_v53  ;;  %v7190_v32 = vld [vmem:[#allocation5 + $0x8b0] sm:$0xf0]  ;;  %v9209_v16 = vld [vmem:[#allocation5 + $0x1b4] sm:$0xf0] }
 0x1a1   :  { %v9228_v27 = vld [vmem:[#allocation5 + $0x254] sm:$0xf]  ;;  %v7193_v33 = vor.u32 %v9428_v20, %v7190_v32 }
 0x1a2   :  { %3312 = vmatpush.bf16.msrb.mxu2 %v7001_v54  ;;  %3287 = vmatpush.bf16.msrb.mxu0 %v6457_v5  ;;  %v6390_v28 = vld [vmem:[#allocation5 + $0x270] sm:$0xf0] }
 0x1a3   :  { %v9292_v30 = vld [vmem:[#allocation5 + $0x454] sm:$0xf]  ;;  %v6393_v42 = vor.u32 %v9228_v27, %v6390_v28  ;;  %3327 = vmatpush.bf16.msrb.mxu3 %v7193_v33  ;;  %v6557_v27 = vor.u32 %v9273_v18, %v6556_v17  ;;  %v6524_v33 = vld [vmem:[#allocation5 + $0x358] sm:$0xf] }
 0x1a4   :  { %3300 = vmatpush.bf16.msrb.mxu1 %v6713_v6  ;;  %v6646_v35 = vld [vmem:[#allocation5 + $0x470] sm:$0xf0] }
 0x1a5   :  { %v9356_v36 = vld [vmem:[#allocation5 + $0x654] sm:$0xf]  ;;  %v6649_v45 = vor.u32 %v9292_v30, %v6646_v35  ;;  %v6268_v30 = vld [vmem:[#allocation5 + $0x158] sm:$0xf] }
 0x1a6   :  { %3313 = vmatpush.bf16.msrb.mxu2 %v6969_v29  ;;  %v6902_v37 = vld [vmem:[#allocation5 + $0x670] sm:$0xf0]  ;;  %3288 = vmatpush.bf16.msrb.mxu0 %v6425_v21  ;;  %v6301_v21 = vor.u32 %v9209_v16, %v6300_v15  ;;  %v9265_v35 = vld [vmem:[#allocation5 + $0x374] sm:$0xf0] }
 0x1a7   :  { %v9420_v38 = vld [vmem:[#allocation5 + $0x854] sm:$0xf]  ;;  %v6905_v46 = vor.u32 %v9356_v36, %v6902_v37  ;;  %v6428_v15 = vld [vmem:[#allocation5 + $0x298] sm:$0xf] }
 0x1a8   :  { %v7158_v39 = vld [vmem:[#allocation5 + $0x870] sm:$0xf0]  ;;  %3301 = vmatpush.bf16.msrb.mxu1 %v6681_v58  ;;  %v9241_v16 = vld [vmem:[#allocation5 + $0x2b4] sm:$0xf0] }
 0x1a9   :  { %v9220_v43 = vld [vmem:[#allocation5 + $0x214] sm:$0xf]  ;;  %v7161_v51 = vor.u32 %v9420_v38, %v7158_v39  ;;  %v6269_v38 = vor.u32 %v9201_v31, %v6268_v30  ;;  %v6429_v30 = vor.u32 %v9241_v16, %v6428_v15  ;;  %v7580_v15 = vld [vmem:[#allocation5 + $0xb98] sm:$0xf] }
 0x1aa   :  { %v6358_v44 = vld [vmem:[#allocation5 + $0x230] sm:$0xf0]  ;;  %3314 = vmatpush.bf16.msrb.mxu2 %v6937_v25  ;;  %3289 = vmatpush.bf16.msrb.mxu0 %v6393_v42  ;;  %v9529_v16 = vld [vmem:[#allocation5 + $0xbb4] sm:$0xf0] }
 0x1ab   :  { %v9284_v47 = vld [vmem:[#allocation5 + $0x414] sm:$0xf]  ;;  %v6361_v60 = vor.u32 %v9220_v43, %v6358_v44  ;;  %3328 = vmatpush.bf16.msrb.mxu3 %v7161_v51  ;;  %v6525_v44 = vor.u32 %v9265_v35, %v6524_v33  ;;  %v6140_v33 = vld [vmem:[#allocation5 + $0x58] sm:$0xf] }
 0x1ac   :  { %v6614_v48 = vld [vmem:[#allocation5 + $0x430] sm:$0xf0]  ;;  %3302 = vmatpush.bf16.msrb.mxu1 %v6649_v45  ;;  %v9169_v35 = vld [vmem:[#allocation5 + $0x74] sm:$0xf0] }
 0x1ad   :  { %v9348_v49 = vld [vmem:[#allocation5 + $0x614] sm:$0xf]  ;;  %v6617_v0 = vor.u32 %v9284_v47, %v6614_v48  ;;  %v9193_v47 = vld [vmem:[#allocation5 + $0x134] sm:$0xf0]  ;;  %v3084_v48 = vpop.f32.mrf.mxu0 }
 0x1ae   :  { %v6870_v52 = vld [vmem:[#allocation5 + $0x630] sm:$0xf0]  ;;  %3315 = vmatpush.bf16.msrb.mxu2 %v6905_v46  ;;  %3290 = vmatpush.bf16.msrb.mxu0 %v6361_v60  ;;  %v6236_v46 = vld [vmem:[#allocation5 + $0x118] sm:$0xf]  ;;  %v10197_v51 = vadd.f32 %v3084_v48, %v10190_v22 }
 0x1af   :  { %v9412_v53 = vld [vmem:[#allocation5 + $0x814] sm:$0xf]  ;;  %v6873_v2 = vor.u32 %v9348_v49, %v6870_v52  ;;  %v6492_v49 = vld [vmem:[#allocation5 + $0x318] sm:$0xf] }
 0x1b0   :  { %v7126_v54 = vld [vmem:[#allocation5 + $0x830] sm:$0xf0]  ;;  %3303 = vmatpush.bf16.msrb.mxu1 %v6617_v0  ;;  %v6493_v60 = vor.u32 %v9257_v50, %v6492_v49  ;;  %v6460_v0 = vld [vmem:[#allocation5 + $0x2d8] sm:$0xf]  ;;  %vm3545_vm2 = vcmp.gt.f32.partialorder %v10197_v51, 0.0 }
 0x1b1   :  { %v9532_v56 = vld [vmem:[#allocation5 + $0xbd4] sm:$0xf]  ;;  %v7129_v5 = vor.u32 %v9412_v53, %v7126_v54  ;;  %3291 = vmatmul.bf16.vlgmr.msrb.gmra.mxu0 %v10131_v19  ;;  %v6237_v54 = vor.u32 %v9193_v47, %v6236_v46  ;;  %v6108_v47 = vld [vmem:[#allocation5 + $0x18] sm:$0xf] }
 0x1b2   :  { %v7606_v57 = vld [vmem:[#allocation5 + $0xbf0] sm:$0xf0]  ;;  %3316 = vmatpush.bf16.msrb.mxu2 %v6873_v2  ;;  %v9249_v2 = vld [vmem:[#allocation5 + $0x2f4] sm:$0xf0] }
 0x1b3   :  { %v9596_v59 = vld [vmem:[#allocation5 + $0xdd4] sm:$0xf]  ;;  %v7609_v6 = vor.u32 %v9532_v56, %v7606_v57  ;;  %3329 = vmatpush.bf16.msrb.mxu3 %v7129_v5  ;;  %3304 = vmatmul.bf16.vlgmr.msrb.gmra.mxu1 %v10124_v7  ;;  %v9161_v49 = vld [vmem:[#allocation5 + $0x34] sm:$0xf0] }
 0x1b4   :  { %v7862_v61 = vld [vmem:[#allocation5 + $0xdf0] sm:$0xf0]  ;;  %v6364_v50 = vld [vmem:[#allocation5 + $0x218] sm:$0xf] }
 0x1b5   :  { %v7865_v29 = vor.u32 %v9596_v59, %v7862_v61  ;;  %v9524_v10 = vld [vmem:[#allocation5 + $0xb94] sm:$0xf]  ;;  %3335 = vmatpush.bf16.msra.mxu0 %v7609_v6  ;;  %3317 = vmatmul.bf16.vlgmr.msrb.gmra.mxu2 %v10126_v8  ;;  %v3097_v59 = vpop.f32.mrf.mxu1  ;;  %v3086_v18 = vpop.f32.mrf.mxu0 }
 0x1b6   :  { %v7574_v11 = vld [vmem:[#allocation5 + $0xbb0] sm:$0xf0]  ;;  %3361 = vmatpush.bf16.msra.mxu2 %v6333_v9  ;;  %3330 = vmatmul.bf16.vlgmr.msrb.gmra.mxu3 %v10138_v40  ;;  %v6461_v9 = vor.u32 %v9249_v2, %v6460_v0  ;;  %v6109_v0 = vor.u32 %v9161_v49, %v6108_v47  ;;  %v7612_v2 = vld [vmem:[#allocation5 + $0xbd8] sm:$0xf] }
 0x1b7   :  { %v9588_v12 = vld [vmem:[#allocation5 + $0xd94] sm:$0xf]  ;;  %v7577_v20 = vor.u32 %v9524_v10, %v7574_v11  ;;  %3348 = vmatpush.bf16.msra.mxu1 %v7865_v29  ;;  %3374 = vmatpush.bf16.msra.mxu3 %v6589_v24  ;;  %v6172_v11 = vld [vmem:[#allocation5 + $0x98] sm:$0xf]  ;;  %v3110_v24 = vpop.f32.mrf.mxu2 }
 0x1b8   :  { %v7830_v13 = vld [vmem:[#allocation5 + $0xdb0] sm:$0xf0]  ;;  %v3111_v17 = vadd.f32 %v3110_v24, %v3097_v59  ;;  %v7324_v24 = vld [vmem:[#allocation5 + $0x998] sm:$0xf] }
 0x1b9   :  { %v7833_v32 = vor.u32 %v9588_v12, %v7830_v13  ;;  %v9516_v23 = vld [vmem:[#allocation5 + $0xb54] sm:$0xf]  ;;  %3336 = vmatpush.bf16.msra.mxu0 %v7577_v20  ;;  %v9177_v12 = vld [vmem:[#allocation5 + $0xb4] sm:$0xf0]  ;;  %v3123_v13 = vpop.f32.mrf.mxu3 }
 0x1ba   :  { %v7542_v58 = vld [vmem:[#allocation5 + $0xb70] sm:$0xf0]  ;;  %3362 = vmatpush.bf16.msra.mxu2 %v6301_v21  ;;  %v6173_v21 = vor.u32 %v9177_v12, %v6172_v11  ;;  %v9401_v12 = vld [vmem:[#allocation5 + $0x7b4] sm:$0xf0] }
 0x1bb   :  { %v9580_v25 = vld [vmem:[#allocation5 + $0xd54] sm:$0xf]  ;;  %v7545_v36 = vor.u32 %v9516_v23, %v7542_v58  ;;  %3349 = vmatpush.bf16.msra.mxu1 %v7833_v32  ;;  %3375 = vmatpush.bf16.msra.mxu3 %v6557_v27  ;;  %v10199_v27 = vadd.f32 %v3123_v13, %v3111_v17  ;;  %v9465_v13 = vld [vmem:[#allocation5 + $0x9b4] sm:$0xf0] }
 0x1bc   :  { %v7798_v28 = vld [vmem:[#allocation5 + $0xd70] sm:$0xf0]  ;;  %v7516_v47 = vld [vmem:[#allocation5 + $0xb18] sm:$0xf] }
 0x1bd   :  { %v7801_v37 = vor.u32 %v9580_v25, %v7798_v28  ;;  %v9508_v39 = vld [vmem:[#allocation5 + $0xb14] sm:$0xf]  ;;  %3337 = vmatpush.bf16.msra.mxu0 %v7545_v36  ;;  %v3099_v28 = vpop.f32.mrf.mxu1  ;;  %v6396_v36 = vld [vmem:[#allocation5 + $0x258] sm:$0xf] }
 0x1be   :  { %v7510_v42 = vld [vmem:[#allocation5 + $0xb30] sm:$0xf0]  ;;  %3363 = vmatpush.bf16.msra.mxu2 %v6269_v38  ;;  %v7292_v28 = vld [vmem:[#allocation5 + $0x958] sm:$0xf] }
 0x1bf   :  { %v9572_v43 = vld [vmem:[#allocation5 + $0xd14] sm:$0xf]  ;;  %v7513_v52 = vor.u32 %v9508_v39, %v7510_v42  ;;  %3350 = vmatpush.bf16.msra.mxu1 %v7801_v37  ;;  %3376 = vmatpush.bf16.msra.mxu3 %v6525_v44  ;;  %v9233_v37 = vld [vmem:[#allocation5 + $0x274] sm:$0xf0]  ;;  %v6141_v44 = vor.u32 %v9169_v35, %v6140_v33 }
 0x1c0   :  { %v7766_v45 = vld [vmem:[#allocation5 + $0xd30] sm:$0xf0]  ;;  %v6397_v48 = vor.u32 %v9233_v37, %v6396_v36  ;;  %v9521_v33 = vld [vmem:[#allocation5 + $0xb74] sm:$0xf0] }
 0x1c1   :  { %v7769_v53 = vor.u32 %v9572_v43, %v7766_v45  ;;  %v9500_v55 = vld [vmem:[#allocation5 + $0xad4] sm:$0xf]  ;;  %3338 = vmatpush.bf16.msra.mxu0 %v7513_v52  ;;  %v9225_v52 = vld [vmem:[#allocation5 + $0x234] sm:$0xf0] }
 0x1c2   :  { %v7478_v56 = vld [vmem:[#allocation5 + $0xaf0] sm:$0xf0]  ;;  %3364 = vmatpush.bf16.msra.mxu2 %v6237_v54  ;;  %v3125_v54 = vpop.f32.mrf.mxu3 }
 0x1c3   :  { %v9564_v57 = vld [vmem:[#allocation5 + $0xcd4] sm:$0xf]  ;;  %v7481_v3 = vor.u32 %v9500_v55, %v7478_v56  ;;  %3351 = vmatpush.bf16.msra.mxu1 %v7769_v53  ;;  %3377 = vmatpush.bf16.msra.mxu3 %v6493_v60  ;;  %v3112_v53 = vpop.f32.mrf.mxu2  ;;  %v6844_v55 = vld [vmem:[#allocation5 + $0x5d8] sm:$0xf] }
 0x1c4   :  { %v7734_v61 = vld [vmem:[#allocation5 + $0xcf0] sm:$0xf0]  ;;  %v9345_v56 = vld [vmem:[#allocation5 + $0x5f4] sm:$0xf0] }
 0x1c5   :  { %v7737_v22 = vor.u32 %v9564_v57, %v7734_v61  ;;  %v9492_v5 = vld [vmem:[#allocation5 + $0xa94] sm:$0xf]  ;;  %3339 = vmatpush.bf16.msra.mxu0 %v7481_v3  ;;  %v7100_v57 = vld [vmem:[#allocation5 + $0x7d8] sm:$0xf] }
 0x1c6   :  { %v7446_v6 = vld [vmem:[#allocation5 + $0xab0] sm:$0xf0]  ;;  %3365 = vmatpush.bf16.msra.mxu2 %v6205_v4  ;;  %v9409_v60 = vld [vmem:[#allocation5 + $0x7f4] sm:$0xf0]  ;;  %v6845_v4 = vor.u32 %v9345_v56, %v6844_v55 }
 0x1c7   :  { %v9556_v29 = vld [vmem:[#allocation5 + $0xc94] sm:$0xf]  ;;  %v7449_v20 = vor.u32 %v9492_v5, %v7446_v6  ;;  %3352 = vmatpush.bf16.msra.mxu1 %v7737_v22  ;;  %3378 = vmatpush.bf16.msra.mxu3 %v6461_v9  ;;  %v7356_v61 = vld [vmem:[#allocation5 + $0x9d8] sm:$0xf]  ;;  %v6365_v22 = vor.u32 %v9225_v52, %v6364_v50  ;;  %v7101_v5 = vor.u32 %v9409_v60, %v7100_v57  ;;  %v3136_v50 = vpop.f32.mrf.mxu0 }
 0x1c8   :  { %v7702_v10 = vld [vmem:[#allocation5 + $0xcb0] sm:$0xf0]  ;;  %v9537_v3 = vld [vmem:[#allocation5 + $0xbf4] sm:$0xf0]  ;;  %v7357_v6 = vor.u32 %v9473_v62, %v7356_v61  ;;  %v3137_v54 = vadd.f32 %v3136_v50, %v10199_v27 }
 0x1c9   :  { %v7705_v32 = vor.u32 %v9556_v29, %v7702_v10  ;;  %v9484_v23 = vld [vmem:[#allocation5 + $0xa54] sm:$0xf]  ;;  %3340 = vmatpush.bf16.msra.mxu0 %v7449_v20  ;;  %v6812_v29 = vld [vmem:[#allocation5 + $0x598] sm:$0xf]  ;;  %v7613_v11 = vor.u32 %v9537_v3, %v7612_v2  ;;  %v7325_v20 = vor.u32 %v9465_v13, %v7324_v24 }
 0x1ca   :  { %v7414_v58 = vld [vmem:[#allocation5 + $0xa70] sm:$0xf0]  ;;  %3366 = vmatpush.bf16.msra.mxu2 %v6173_v21  ;;  %v9337_v9 = vld [vmem:[#allocation5 + $0x5b4] sm:$0xf0] }
 0x1cb   :  { %v9548_v25 = vld [vmem:[#allocation5 + $0xc54] sm:$0xf]  ;;  %v7417_v38 = vor.u32 %v9484_v23, %v7414_v58  ;;  %3353 = vmatpush.bf16.msra.mxu1 %v7705_v32  ;;  %3379 = vmatpush.bf16.msra.mxu3 %v6429_v30  ;;  %v7068_v10 = vld [vmem:[#allocation5 + $0x798] sm:$0xf]  ;;  %v6813_v17 = vor.u32 %v9337_v9, %v6812_v29  ;;  %v7581_v58 = vor.u32 %v9529_v16, %v7580_v15 }
 0x1cc   :  { %v7670_v31 = vld [vmem:[#allocation5 + $0xc70] sm:$0xf0]  ;;  %v7069_v18 = vor.u32 %v9401_v12, %v7068_v10  ;;  %v6780_v32 = vld [vmem:[#allocation5 + $0x558] sm:$0xf]  ;;  %v3175_v15 = vpop.f32.mrf.mxu3 }
 0x1cd   :  { %v9476_v39 = vld [vmem:[#allocation5 + $0xa14] sm:$0xf]  ;;  %v7673_v43 = vor.u32 %v9548_v25, %v7670_v31  ;;  %3341 = vmatpush.bf16.msra.mxu0 %v7417_v38  ;;  %v9329_v21 = vld [vmem:[#allocation5 + $0x574] sm:$0xf0] }
 0x1ce   :  { %v7382_v42 = vld [vmem:[#allocation5 + $0xa30] sm:$0xf0]  ;;  %3367 = vmatpush.bf16.msra.mxu2 %v6141_v44  ;;  %v7036_v23 = vld [vmem:[#allocation5 + $0x758] sm:$0xf]  ;;  %v6781_v35 = vor.u32 %v9329_v21, %v6780_v32 }
 0x1cf   :  { %v9540_v45 = vld [vmem:[#allocation5 + $0xc14] sm:$0xf]  ;;  %v7385_v59 = vor.u32 %v9476_v39, %v7382_v42  ;;  %3354 = vmatpush.bf16.msra.mxu1 %v7673_v43  ;;  %3380 = vmatpush.bf16.msra.mxu3 %v6397_v48  ;;  %v9393_v25 = vld [vmem:[#allocation5 + $0x774] sm:$0xf0]  ;;  %v3138_v32 = vpop.f32.mrf.mxu0 }
 0x1d0   :  { %v7638_v46 = vld [vmem:[#allocation5 + $0xc30] sm:$0xf0]  ;;  %v9457_v30 = vld [vmem:[#allocation5 + $0x974] sm:$0xf0]  ;;  %v7037_v36 = vor.u32 %v9393_v25, %v7036_v23 }
 0x1d1   :  { %v7641_v63 = vor.u32 %v9540_v45, %v7638_v46  ;;  %3342 = vmatpush.bf16.msra.mxu0 %v7385_v59  ;;  %v7548_v31 = vld [vmem:[#allocation5 + $0xb58] sm:$0xf]  ;;  %v7293_v37 = vor.u32 %v9457_v30, %v7292_v28  ;;  %v3149_v59 = vpop.f32.mrf.mxu1 }
 0x1d2   :  { %3368 = vmatpush.bf16.msra.mxu2 %v6109_v0  ;;  %v6748_v38 = vld [vmem:[#allocation5 + $0x518] sm:$0xf]  ;;  %v7549_v43 = vor.u32 %v9521_v33, %v7548_v31  ;;  %v3150_v3 = vadd.f32 %v3149_v59, %v3137_v54  ;;  %v9213_v59 = vld [vmem:[#allocation5 + $0x1dc] sm:$0xf] }
 0x1d3   :  { %3355 = vmatpush.bf16.msra.mxu1 %v7641_v63  ;;  %3381 = vmatpush.bf16.msra.mxu3 %v6365_v22  ;;  %v9321_v39 = vld [vmem:[#allocation5 + $0x534] sm:$0xf0] }
 0x1d4   :  { %3343 = vmatmul.bf16.vlgmr.msra.gmra.mxu0 %v10140_v41  ;;  %v7004_v42 = vld [vmem:[#allocation5 + $0x718] sm:$0xf]  ;;  %v6749_v49 = vor.u32 %v9321_v39, %v6748_v38 }
 0x1d5   :  { %3387 = vmatpush.bf16.msrb.mxu0 %v6845_v4  ;;  %3369 = vmatmul.bf16.vlgmr.msra.gmra.mxu2 %v10128_v14  ;;  %v9385_v44 = vld [vmem:[#allocation5 + $0x734] sm:$0xf0] }
 0x1d6   :  { %3413 = vmatpush.bf16.msrb.mxu2 %v7357_v6  ;;  %3356 = vmatmul.bf16.vlgmr.msra.gmra.mxu1 %v10136_v34  ;;  %v7260_v45 = vld [vmem:[#allocation5 + $0x918] sm:$0xf]  ;;  %v7005_v52 = vor.u32 %v9385_v44, %v7004_v42  ;;  %v3162_v6 = vpop.f32.mrf.mxu2 }
 0x1d7   :  { %3400 = vmatpush.bf16.msrb.mxu1 %v7101_v5  ;;  %3426 = vmatpush.bf16.msrb.mxu3 %v7613_v11  ;;  %v9449_v46 = vld [vmem:[#allocation5 + $0x934] sm:$0xf0]  ;;  %v3163_v11 = vadd.f32 %v3162_v6, %v3150_v3  ;;  %v9341_v3 = vld [vmem:[#allocation5 + $0x5dc] sm:$0xf] }
 0x1d8   :  { %3382 = vmatmul.bf16.vlgmr.msra.gmra.mxu3 %v10131_v19  ;;  %v9513_v48 = vld [vmem:[#allocation5 + $0xb34] sm:$0xf0]  ;;  %v7261_v53 = vor.u32 %v9449_v46, %v7260_v45 }
 0x1d9   :  { %3388 = vmatpush.bf16.msrb.mxu0 %v6813_v17  ;;  %v6716_v55 = vld [vmem:[#allocation5 + $0x4d8] sm:$0xf]  ;;  %v7517_v60 = vor.u32 %v9513_v48, %v7516_v47  ;;  %v3151_v30 = vpop.f32.mrf.mxu1 }
 0x1da   :  { %3414 = vmatpush.bf16.msrb.mxu2 %v7325_v20  ;;  %v9313_v56 = vld [vmem:[#allocation5 + $0x4f4] sm:$0xf0]  ;;  %v10206_v20 = vadd.f32 %v3175_v15, %v3163_v11  ;;  %v9333_v15 = vld [vmem:[#allocation5 + $0x59c] sm:$0xf] }
 0x1db   :  { %3401 = vmatpush.bf16.msrb.mxu1 %v7069_v18  ;;  %3427 = vmatpush.bf16.msrb.mxu3 %v7581_v58  ;;  %v6972_v57 = vld [vmem:[#allocation5 + $0x6d8] sm:$0xf]  ;;  %v6717_v22 = vor.u32 %v9313_v56, %v6716_v55  ;;  %v3177_v55 = vpop.f32.mrf.mxu3  ;;  %v9261_v30 = vld [vmem:[#allocation5 + $0x35c] sm:$0xf] }
 0x1dc   :  { %v9377_v61 = vld [vmem:[#allocation5 + $0x6f4] sm:$0xf0]  ;;  %vm3546_vm3 = vcmp.gt.f32.partialorder %v10206_v20, 0.0 }
 0x1dd   :  { %3389 = vmatpush.bf16.msrb.mxu0 %v6781_v35  ;;  %v7228_v62 = vld [vmem:[#allocation5 + $0x8d8] sm:$0xf]  ;;  %v6973_v4 = vor.u32 %v9377_v61, %v6972_v57  ;;  %v6334_v61 = vld [vmem:[#allocation5 + $0x1f8] sm:$0xf0] }
 0x1de   :  { %3415 = vmatpush.bf16.msrb.mxu2 %v7293_v37  ;;  %v9441_v63 = vld [vmem:[#allocation5 + $0x8f4] sm:$0xf0]  ;;  %v6337_v6 = vor.u32 %v9213_v59, %v6334_v61  ;;  %v9181_v59 = vld [vmem:[#allocation5 + $0xdc] sm:$0xf] }
 0x1df   :  { %3402 = vmatpush.bf16.msrb.mxu1 %v7037_v36  ;;  %3428 = vmatpush.bf16.msrb.mxu3 %v7549_v43  ;;  %v7484_v0 = vld [vmem:[#allocation5 + $0xad8] sm:$0xf]  ;;  %v7229_v5 = vor.u32 %v9441_v63, %v7228_v62  ;;  %v9277_v62 = vld [vmem:[#allocation5 + $0x3dc] sm:$0xf] }
 0x1e0   :  { %v9505_v2 = vld [vmem:[#allocation5 + $0xaf4] sm:$0xf0]  ;;  %v6590_v63 = vld [vmem:[#allocation5 + $0x3f8] sm:$0xf0] }
 0x1e1   :  { %3390 = vmatpush.bf16.msrb.mxu0 %v6749_v49  ;;  %v6684_v27 = vld [vmem:[#allocation5 + $0x498] sm:$0xf]  ;;  %v7485_v10 = vor.u32 %v9505_v2, %v7484_v0  ;;  %v3164_v49 = vpop.f32.mrf.mxu2 }
 0x1e2   :  { %3416 = vmatpush.bf16.msrb.mxu2 %v7261_v53  ;;  %v9305_v29 = vld [vmem:[#allocation5 + $0x4b4] sm:$0xf0]  ;;  %v6750_v49 = vld [vmem:[#allocation5 + $0x538] sm:$0xf0] }
 0x1e3   :  { %3403 = vmatpush.bf16.msrb.mxu1 %v7005_v52  ;;  %v6940_v9 = vld [vmem:[#allocation5 + $0x698] sm:$0xf]  ;;  %3429 = vmatpush.bf16.msrb.mxu3 %v7517_v60  ;;  %v6685_v18 = vor.u32 %v9305_v29, %v6684_v27  ;;  %v6593_v27 = vor.u32 %v9277_v62, %v6590_v63  ;;  %v6206_v62 = vld [vmem:[#allocation5 + $0xf8] sm:$0xf0] }
 0x1e4   :  { %v9369_v12 = vld [vmem:[#allocation5 + $0x6b4] sm:$0xf0]  ;;  %v9245_v63 = vld [vmem:[#allocation5 + $0x2dc] sm:$0xf] }
 0x1e5   :  { %v7196_v24 = vld [vmem:[#allocation5 + $0x898] sm:$0xf]  ;;  %3391 = vmatpush.bf16.msrb.mxu0 %v6717_v22  ;;  %v6941_v21 = vor.u32 %v9369_v12, %v6940_v9  ;;  %v6846_v22 = vld [vmem:[#allocation5 + $0x5f8] sm:$0xf0] }
 0x1e6   :  { %v9433_v13 = vld [vmem:[#allocation5 + $0x8b4] sm:$0xf0]  ;;  %3417 = vmatpush.bf16.msrb.mxu2 %v7229_v5  ;;  %v6849_v11 = vor.u32 %v9341_v3, %v6846_v22  ;;  %v6302_v12 = vld [vmem:[#allocation5 + $0x1b8] sm:$0xf0] }
 0x1e7   :  { %v7452_v16 = vld [vmem:[#allocation5 + $0xa98] sm:$0xf]  ;;  %3404 = vmatpush.bf16.msrb.mxu1 %v6973_v4  ;;  %v7197_v23 = vor.u32 %v9433_v13, %v7196_v24  ;;  %3430 = vmatpush.bf16.msrb.mxu3 %v7485_v10  ;;  %v9205_v10 = vld [vmem:[#allocation5 + $0x19c] sm:$0xf] }
 0x1e8   :  { %v9497_v17 = vld [vmem:[#allocation5 + $0xab4] sm:$0xf0]  ;;  %v9269_v24 = vld [vmem:[#allocation5 + $0x39c] sm:$0xf] }
 0x1e9   :  { %v6652_v58 = vld [vmem:[#allocation5 + $0x458] sm:$0xf]  ;;  %v7453_v31 = vor.u32 %v9497_v17, %v7452_v16  ;;  %3392 = vmatpush.bf16.msrb.mxu0 %v6685_v18  ;;  %v6558_v13 = vld [vmem:[#allocation5 + $0x3b8] sm:$0xf0]  ;;  %v6305_v18 = vor.u32 %v9205_v10, %v6302_v12 }
 0x1ea   :  { %v9297_v25 = vld [vmem:[#allocation5 + $0x474] sm:$0xf0]  ;;  %3418 = vmatpush.bf16.msrb.mxu2 %v7197_v23  ;;  %v6814_v16 = vld [vmem:[#allocation5 + $0x5b8] sm:$0xf0]  ;;  %v6561_v32 = vor.u32 %v9269_v24, %v6558_v13 }
 0x1eb   :  { %v6908_v28 = vld [vmem:[#allocation5 + $0x658] sm:$0xf]  ;;  %v6653_v39 = vor.u32 %v9297_v25, %v6652_v58  ;;  %3405 = vmatpush.bf16.msrb.mxu1 %v6941_v21  ;;  %3431 = vmatpush.bf16.msrb.mxu3 %v7453_v31  ;;  %v9197_v58 = vld [vmem:[#allocation5 + $0x15c] sm:$0xf]  ;;  %v6817_v25 = vor.u32 %v9333_v15, %v6814_v16 }
 0x1ec   :  { %v9361_v33 = vld [vmem:[#allocation5 + $0x674] sm:$0xf0]  ;;  %v6526_v31 = vld [vmem:[#allocation5 + $0x378] sm:$0xf0] }
 0x1ed   :  { %v7164_v35 = vld [vmem:[#allocation5 + $0x858] sm:$0xf]  ;;  %v6909_v44 = vor.u32 %v9361_v33, %v6908_v28  ;;  %3393 = vmatpush.bf16.msrb.mxu0 %v6653_v39  ;;  %v6270_v28 = vld [vmem:[#allocation5 + $0x178] sm:$0xf0] }
 0x1ee   :  { %v9425_v36 = vld [vmem:[#allocation5 + $0x874] sm:$0xf0]  ;;  %v9325_v33 = vld [vmem:[#allocation5 + $0x55c] sm:$0xf] }
 0x1ef   :  { %v7420_v37 = vld [vmem:[#allocation5 + $0xa58] sm:$0xf]  ;;  %v7165_v45 = vor.u32 %v9425_v36, %v7164_v35  ;;  %3406 = vmatpush.bf16.msrb.mxu1 %v6909_v44  ;;  %v6782_v35 = vld [vmem:[#allocation5 + $0x578] sm:$0xf0] }
 0x1f0   :  { %v9489_v38 = vld [vmem:[#allocation5 + $0xa74] sm:$0xf0]  ;;  %v6785_v44 = vor.u32 %v9325_v33, %v6782_v35  ;;  %v6718_v3 = vld [vmem:[#allocation5 + $0x4f8] sm:$0xf0] }
 0x1f1   :  { %v6620_v42 = vld [vmem:[#allocation5 + $0x418] sm:$0xf]  ;;  %v7421_v50 = vor.u32 %v9489_v38, %v7420_v37  ;;  %3419 = vmatpush.bf16.msrb.mxu2 %v7165_v45  ;;  %v6273_v37 = vor.u32 %v9197_v58, %v6270_v28  ;;  %v6529_v38 = vor.u32 %v9261_v30, %v6526_v31  ;;  %v6238_v45 = vld [vmem:[#allocation5 + $0x138] sm:$0xf0] }
 0x1f2   :  { %v9289_v43 = vld [vmem:[#allocation5 + $0x434] sm:$0xf0]  ;;  %v9237_v12 = vld [vmem:[#allocation5 + $0x29c] sm:$0xf] }
 0x1f3   :  { %v6876_v46 = vld [vmem:[#allocation5 + $0x618] sm:$0xf]  ;;  %v6621_v60 = vor.u32 %v9289_v43, %v6620_v42  ;;  %3432 = vmatpush.bf16.msrb.mxu3 %v7421_v50  ;;  %v9189_v43 = vld [vmem:[#allocation5 + $0x11c] sm:$0xf] }
 0x1f4   :  { %v9353_v47 = vld [vmem:[#allocation5 + $0x634] sm:$0xf0]  ;;  %v6430_v24 = vld [vmem:[#allocation5 + $0x2b8] sm:$0xf0] }
 0x1f5   :  { %v7132_v48 = vld [vmem:[#allocation5 + $0x818] sm:$0xf]  ;;  %v6877_v0 = vor.u32 %v9353_v47, %v6876_v46  ;;  %3394 = vmatpush.bf16.msrb.mxu0 %v6621_v60  ;;  %v9253_v46 = vld [vmem:[#allocation5 + $0x31c] sm:$0xf] }
 0x1f6   :  { %v9417_v52 = vld [vmem:[#allocation5 + $0x834] sm:$0xf0]  ;;  %v6494_v47 = vld [vmem:[#allocation5 + $0x338] sm:$0xf0] }
 0x1f7   :  { %v7388_v53 = vld [vmem:[#allocation5 + $0xa18] sm:$0xf]  ;;  %v7133_v2 = vor.u32 %v9417_v52, %v7132_v48  ;;  %3407 = vmatpush.bf16.msrb.mxu1 %v6877_v0  ;;  %v9317_v48 = vld [vmem:[#allocation5 + $0x51c] sm:$0xf]  ;;  %v3188_v52 = vpop.f32.mrf.mxu0  ;;  %v6497_v55 = vor.u32 %v9253_v46, %v6494_v47 }
 0x1f8   :  { %v9481_v54 = vld [vmem:[#allocation5 + $0xa34] sm:$0xf0]  ;;  %3395 = vmatmul.bf16.vlgmr.msrb.gmra.mxu0 %v10124_v7  ;;  %v6753_v61 = vor.u32 %v9317_v48, %v6750_v49  ;;  %v6462_v0 = vld [vmem:[#allocation5 + $0x2f8] sm:$0xf0] }
 0x1f9   :  { %v7868_v56 = vld [vmem:[#allocation5 + $0xdd8] sm:$0xf]  ;;  %v7389_v4 = vor.u32 %v9481_v54, %v7388_v53  ;;  %3420 = vmatpush.bf16.msrb.mxu2 %v7133_v2  ;;  %v3201_v53 = vpop.f32.mrf.mxu1  ;;  %v6241_v54 = vor.u32 %v9189_v43, %v6238_v45  ;;  %v9309_v2 = vld [vmem:[#allocation5 + $0x4dc] sm:$0xf] }
 0x1fa   :  { %v9601_v57 = vld [vmem:[#allocation5 + $0xdf4] sm:$0xf0]  ;;  %3408 = vmatmul.bf16.vlgmr.msrb.gmra.mxu1 %v10126_v8  ;;  %v3202_v60 = vadd.f32 %v3201_v53, %v3188_v52  ;;  %v6721_v10 = vor.u32 %v9309_v2, %v6718_v3  ;;  %v9301_v15 = vld [vmem:[#allocation5 + $0x49c] sm:$0xf] }
 0x1fb   :  { %v7869_v5 = vor.u32 %v9601_v57, %v7868_v56  ;;  %v7836_v29 = vld [vmem:[#allocation5 + $0xd98] sm:$0xf]  ;;  %3433 = vmatpush.bf16.msrb.mxu3 %v7389_v4  ;;  %3452 = vmatpush.bf16.msra.mxu1 %v6337_v6  ;;  %v6209_v4 = vor.u32 %v9181_v59, %v6206_v62  ;;  %v6686_v16 = vld [vmem:[#allocation5 + $0x4b8] sm:$0xf0] }
 0x1fc   :  { %v9593_v9 = vld [vmem:[#allocation5 + $0xdb4] sm:$0xf0]  ;;  %3421 = vmatmul.bf16.vlgmr.msrb.gmra.mxu2 %v10138_v40  ;;  %v9165_v31 = vld [vmem:[#allocation5 + $0x5c] sm:$0xf]  ;;  %v6689_v33 = vor.u32 %v9301_v15, %v6686_v16 }
 0x1fd   :  { %3439 = vmatpush.bf16.msra.mxu0 %v7869_v5  ;;  %v7837_v17 = vor.u32 %v9593_v9, %v7836_v29  ;;  %3465 = vmatpush.bf16.msra.mxu2 %v6593_v27  ;;  %v7804_v21 = vld [vmem:[#allocation5 + $0xd58] sm:$0xf]  ;;  %v6465_v5 = vor.u32 %v9245_v63, %v6462_v0  ;;  %v9173_v29 = vld [vmem:[#allocation5 + $0x9c] sm:$0xf]  ;;  %v3214_v9 = vpop.f32.mrf.mxu2 }
 0x1fe   :  { %v9585_v23 = vld [vmem:[#allocation5 + $0xd74] sm:$0xf0]  ;;  %3434 = vmatmul.bf16.vlgmr.msrb.gmra.mxu3 %v10140_v41  ;;  %v3215_v13 = vadd.f32 %v3214_v9, %v3202_v60  ;;  %v6142_v35 = vld [vmem:[#allocation5 + $0x78] sm:$0xf0] }
 0x1ff   :  { %3478 = vmatpush.bf16.msra.mxu3 %v6849_v11  ;;  %v7805_v36 = vor.u32 %v9585_v23, %v7804_v21  ;;  %3453 = vmatpush.bf16.msra.mxu1 %v6305_v18  ;;  %v7772_v39 = vld [vmem:[#allocation5 + $0xd18] sm:$0xf]  ;;  %v6174_v11 = vld [vmem:[#allocation5 + $0xb8] sm:$0xf0]  ;;  %v6145_v45 = vor.u32 %v9165_v31, %v6142_v35 }
 0x200   :  { %v9577_v42 = vld [vmem:[#allocation5 + $0xd34] sm:$0xf0]  ;;  %v6177_v58 = vor.u32 %v9173_v29, %v6174_v11  ;;  %v9157_v47 = vld [vmem:[#allocation5 + $0x1c] sm:$0xf] }
 0x201   :  { %3440 = vmatpush.bf16.msra.mxu0 %v7837_v17  ;;  %3466 = vmatpush.bf16.msra.mxu2 %v6561_v32  ;;  %v7773_v50 = vor.u32 %v9577_v42, %v7772_v39  ;;  %v7740_v56 = vld [vmem:[#allocation5 + $0xcd8] sm:$0xf]  ;;  %v3227_v17 = vpop.f32.mrf.mxu3  ;;  %v3190_v32 = vpop.f32.mrf.mxu0  ;;  %v6654_v39 = vld [vmem:[#allocation5 + $0x478] sm:$0xf0] }
 0x202   :  { %v9569_v57 = vld [vmem:[#allocation5 + $0xcf4] sm:$0xf0]  ;;  %v3203_v21 = vpop.f32.mrf.mxu1  ;;  %v10212_v23 = vadd.f32 %v3227_v17, %v3215_v13  ;;  %v6110_v48 = vld [vmem:[#allocation5 + $0x38] sm:$0xf0] }
 0x203   :  { %3479 = vmatpush.bf16.msra.mxu3 %v6817_v25  ;;  %3454 = vmatpush.bf16.msra.mxu1 %v6273_v37  ;;  %v7741_v22 = vor.u32 %v9569_v57, %v7740_v56  ;;  %v7708_v6 = vld [vmem:[#allocation5 + $0xc98] sm:$0xf]  ;;  %v6433_v25 = vor.u32 %v9237_v12, %v6430_v24  ;;  %v6398_v37 = vld [vmem:[#allocation5 + $0x278] sm:$0xf0]  ;;  %v6113_v2 = vor.u32 %v9157_v47, %v6110_v48 }
 0x204   :  { %v9561_v27 = vld [vmem:[#allocation5 + $0xcb4] sm:$0xf0]  ;;  %v9221_v49 = vld [vmem:[#allocation5 + $0x21c] sm:$0xf] }
 0x205   :  { %3441 = vmatpush.bf16.msra.mxu0 %v7805_v36  ;;  %3467 = vmatpush.bf16.msra.mxu2 %v6529_v38  ;;  %v7709_v18 = vor.u32 %v9561_v27, %v7708_v6  ;;  %v7676_v28 = vld [vmem:[#allocation5 + $0xc58] sm:$0xf]  ;;  %v9229_v36 = vld [vmem:[#allocation5 + $0x25c] sm:$0xf] }
 0x206   :  { %v9553_v30 = vld [vmem:[#allocation5 + $0xc74] sm:$0xf0]  ;;  %v9293_v38 = vld [vmem:[#allocation5 + $0x45c] sm:$0xf]  ;;  %v6401_v46 = vor.u32 %v9229_v36, %v6398_v37 }
 0x207   :  { %3480 = vmatpush.bf16.msra.mxu3 %v6785_v44  ;;  %3455 = vmatpush.bf16.msra.mxu1 %v6241_v54  ;;  %v7677_v42 = vor.u32 %v9553_v30, %v7676_v28  ;;  %v7644_v43 = vld [vmem:[#allocation5 + $0xc18] sm:$0xf]  ;;  %v6657_v52 = vor.u32 %v9293_v38, %v6654_v39  ;;  %v6366_v53 = vld [vmem:[#allocation5 + $0x238] sm:$0xf0] }
 0x208   :  { %v9545_v44 = vld [vmem:[#allocation5 + $0xc34] sm:$0xf0]  ;;  %v9285_v54 = vld [vmem:[#allocation5 + $0x41c] sm:$0xf]  ;;  %v6369_v3 = vor.u32 %v9221_v49, %v6366_v53 }
 0x209   :  { %3442 = vmatpush.bf16.msra.mxu0 %v7773_v50  ;;  %3468 = vmatpush.bf16.msra.mxu2 %v6497_v55  ;;  %v3216_v50 = vpop.f32.mrf.mxu2  ;;  %v6622_v55 = vld [vmem:[#allocation5 + $0x438] sm:$0xf0]  ;;  %v3229_v60 = vpop.f32.mrf.mxu3 }
 0x20a   :  { %v9405_v56 = vld [vmem:[#allocation5 + $0x7dc] sm:$0xf] }
 0x20b   :  { %3481 = vmatpush.bf16.msra.mxu3 %v6753_v61  ;;  %3456 = vmatpush.bf16.msra.mxu1 %v6209_v4  ;;  %v7102_v57 = vld [vmem:[#allocation5 + $0x7f8] sm:$0xf0]  ;;  %v7645_v61 = vor.u32 %v9545_v44, %v7644_v43 }
 0x20c   :  { %v9469_v59 = vld [vmem:[#allocation5 + $0x9dc] sm:$0xf]  ;;  %v7105_v6 = vor.u32 %v9405_v56, %v7102_v57 }
 0x20d   :  { %3443 = vmatpush.bf16.msra.mxu0 %v7741_v22  ;;  %3469 = vmatpush.bf16.msra.mxu2 %v6465_v5  ;;  %v7358_v62 = vld [vmem:[#allocation5 + $0x9f8] sm:$0xf0]  ;;  %v6625_v5 = vor.u32 %v9285_v54, %v6622_v55 }
 0x20e   :  { %v9533_v63 = vld [vmem:[#allocation5 + $0xbdc] sm:$0xf]  ;;  %v7361_v27 = vor.u32 %v9469_v59, %v7358_v62 }
 0x20f   :  { %3482 = vmatpush.bf16.msra.mxu3 %v6721_v10  ;;  %3457 = vmatpush.bf16.msra.mxu1 %v6177_v58  ;;  %v7614_v0 = vld [vmem:[#allocation5 + $0xbf8] sm:$0xf0] }
 0x210   :  { %v9597_v22 = vld [vmem:[#allocation5 + $0xddc] sm:$0xf]  ;;  %v7617_v29 = vor.u32 %v9533_v63, %v7614_v0  ;;  %v3253_v53 = vpop.f32.mrf.mxu1 }
 0x211   :  { %3444 = vmatpush.bf16.msra.mxu0 %v7709_v18  ;;  %3470 = vmatpush.bf16.msra.mxu2 %v6433_v25  ;;  %v7870_v4 = vld [vmem:[#allocation5 + $0xdf8] sm:$0xf0] }
 0x212   :  { %v9397_v9 = vld [vmem:[#allocation5 + $0x79c] sm:$0xf]  ;;  %v7873_v12 = vor.u32 %v9597_v22, %v7870_v4 }
 0x213   :  { %3483 = vmatpush.bf16.msra.mxu3 %v6689_v33  ;;  %3458 = vmatpush.bf16.msra.mxu1 %v6145_v45  ;;  %v7070_v10 = vld [vmem:[#allocation5 + $0x7b8] sm:$0xf0] }
 0x214   :  { %v9461_v11 = vld [vmem:[#allocation5 + $0x99c] sm:$0xf]  ;;  %v7073_v18 = vor.u32 %v9397_v9, %v7070_v10 }
 0x215   :  { %3445 = vmatpush.bf16.msra.mxu0 %v7677_v42  ;;  %3471 = vmatpush.bf16.msra.mxu2 %v6401_v46  ;;  %v7326_v24 = vld [vmem:[#allocation5 + $0x9b8] sm:$0xf0] }
 0x216   :  { %v9525_v13 = vld [vmem:[#allocation5 + $0xb9c] sm:$0xf]  ;;  %v7329_v32 = vor.u32 %v9461_v11, %v7326_v24 }
 0x217   :  { %3484 = vmatpush.bf16.msra.mxu3 %v6657_v52  ;;  %v7582_v15 = vld [vmem:[#allocation5 + $0xbb8] sm:$0xf0]  ;;  %3459 = vmatpush.bf16.msra.mxu1 %v6113_v2  ;;  %v3240_v52 = vpop.f32.mrf.mxu0 }
 0x218   :  { %v9589_v16 = vld [vmem:[#allocation5 + $0xd9c] sm:$0xf]  ;;  %v7585_v21 = vor.u32 %v9525_v13, %v7582_v15  ;;  %v3241_v55 = vadd.f32 %v3240_v52, %v10212_v23 }
 0x219   :  { %3446 = vmatpush.bf16.msra.mxu0 %v7645_v61  ;;  %3472 = vmatpush.bf16.msra.mxu2 %v6369_v3  ;;  %v7838_v17 = vld [vmem:[#allocation5 + $0xdb8] sm:$0xf0] }
 0x21a   :  { %v9389_v58 = vld [vmem:[#allocation5 + $0x75c] sm:$0xf]  ;;  %v7841_v30 = vor.u32 %v9589_v16, %v7838_v17  ;;  %3460 = vmatmul.bf16.vlgmr.msra.gmra.mxu1 %v10128_v14  ;;  %v3254_v3 = vadd.f32 %v3253_v53, %v3241_v55  ;;  %v10221_v16 = vpop.f32.mrf.mxu3  ;;  %v7988_v53 = vld [vmem:[#allocation7 + $0xe0] sm:$0xf] }
 0x21b   :  { %3485 = vmatpush.bf16.msra.mxu3 %v6625_v5  ;;  %3504 = vmatpush.bf16.msrb.mxu1 %v7361_v27  ;;  %v7038_v25 = vld [vmem:[#allocation5 + $0x778] sm:$0xf0] }
 0x21c   :  { %v9453_v28 = vld [vmem:[#allocation5 + $0x95c] sm:$0xf]  ;;  %3447 = vmatmul.bf16.vlgmr.msra.gmra.mxu0 %v10136_v34  ;;  %3473 = vmatmul.bf16.vlgmr.msra.gmra.mxu2 %v10131_v19  ;;  %v7041_v38 = vor.u32 %v9389_v58, %v7038_v25 }
 0x21d   :  { %3491 = vmatpush.bf16.msrb.mxu0 %v7105_v6  ;;  %3517 = vmatpush.bf16.msrb.mxu2 %v7617_v29  ;;  %v7294_v31 = vld [vmem:[#allocation5 + $0x978] sm:$0xf0]  ;;  %v3266_v6 = vpop.f32.mrf.mxu2 }
 0x21e   :  { %v9517_v33 = vld [vmem:[#allocation5 + $0xb5c] sm:$0xf]  ;;  %3486 = vmatmul.bf16.vlgmr.msra.gmra.mxu3 %v10124_v7  ;;  %v7297_v39 = vor.u32 %v9453_v28, %v7294_v31  ;;  %v10219_v10 = vadd.f32 %v3266_v6, %v3254_v3  ;;  %v9628_v6 = vld [vmem:[#allocation7 + $0xcc] sm:$0xf0] }
 0x21f   :  { %3530 = vmatpush.bf16.msrb.mxu3 %v7873_v12  ;;  %v7550_v35 = vld [vmem:[#allocation5 + $0xb78] sm:$0xf0]  ;;  %3505 = vmatpush.bf16.msrb.mxu1 %v7329_v32  ;;  %v3255_v32 = vpop.f32.mrf.mxu1 }
 0x220   :  { %v9581_v36 = vld [vmem:[#allocation5 + $0xd5c] sm:$0xf]  ;;  %v7553_v42 = vor.u32 %v9517_v33, %v7550_v35  ;;  %v9624_v32 = vld [vmem:[#allocation7 + $0xac] sm:$0xf0]  ;;  %vm3547_vm4 = vcmp.gt.f32.partialorder %v10219_v10, 0.0 }
 0x221   :  { %v7806_v37 = vld [vmem:[#allocation5 + $0xd78] sm:$0xf0]  ;;  %3492 = vmatpush.bf16.msrb.mxu0 %v7073_v18  ;;  %3518 = vmatpush.bf16.msrb.mxu2 %v7585_v21  ;;  %v3242_v18 = vpop.f32.mrf.mxu0 }
 0x222   :  { %v9381_v43 = vld [vmem:[#allocation5 + $0x71c] sm:$0xf]  ;;  %v7809_v46 = vor.u32 %v9581_v36, %v7806_v37  ;;  %v3281_v55 = vpop.f32.mrf.mxu3  ;;  %v7956_v18 = vld [vmem:[#allocation7 + $0xa0] sm:$0xf] }
 0x223   :  { %v7006_v44 = vld [vmem:[#allocation5 + $0x738] sm:$0xf0]  ;;  %3531 = vmatpush.bf16.msrb.mxu3 %v7841_v30  ;;  %3506 = vmatpush.bf16.msrb.mxu1 %v7297_v39  ;;  %v8308_v55 = vld [vmem:[#allocation7 + $0x360] sm:$0xf] }
 0x224   :  { %v9445_v45 = vld [vmem:[#allocation5 + $0x91c] sm:$0xf]  ;;  %v7009_v7 = vor.u32 %v9381_v43, %v7006_v44 }
 0x225   :  { %v7262_v47 = vld [vmem:[#allocation5 + $0x938] sm:$0xf0]  ;;  %3493 = vmatpush.bf16.msrb.mxu0 %v7041_v38  ;;  %3519 = vmatpush.bf16.msrb.mxu2 %v7553_v42 }
 0x226   :  { %v9509_v48 = vld [vmem:[#allocation5 + $0xb1c] sm:$0xf]  ;;  %v7265_v14 = vor.u32 %v9445_v45, %v7262_v47 }
 0x227   :  { %v7518_v19 = vld [vmem:[#allocation5 + $0xb38] sm:$0xf0]  ;;  %3532 = vmatpush.bf16.msrb.mxu3 %v7809_v46 }
 0x228   :  { %v9573_v49 = vld [vmem:[#allocation5 + $0xd1c] sm:$0xf]  ;;  %v7521_v54 = vor.u32 %v9509_v48, %v7518_v19  ;;  %3507 = vmatpush.bf16.msrb.mxu1 %v7265_v14  ;;  %v3268_v19 = vpop.f32.mrf.mxu2  ;;  %v9632_v14 = vld [vmem:[#allocation7 + $0xec] sm:$0xf0] }
 0x229   :  { %v7774_v50 = vld [vmem:[#allocation5 + $0xd38] sm:$0xf0]  ;;  %3494 = vmatpush.bf16.msrb.mxu0 %v7009_v7  ;;  %v7989_v3 = vor.u32 %v9632_v14, %v7988_v53  ;;  %v7924_v19 = vld [vmem:[#allocation7 + $0x60] sm:$0xf]  ;;  %v9648_v53 = vld [vmem:[#allocation7 + $0x16c] sm:$0xf0] }
 0x22a   :  { %v9373_v56 = vld [vmem:[#allocation5 + $0x6dc] sm:$0xf]  ;;  %v7777_v60 = vor.u32 %v9573_v49, %v7774_v50  ;;  %3520 = vmatpush.bf16.msrb.mxu2 %v7521_v54  ;;  %v8116_v54 = vld [vmem:[#allocation7 + $0x1e0] sm:$0xf] }
 0x22b   :  { %v6974_v57 = vld [vmem:[#allocation5 + $0x6f8] sm:$0xf0]  ;;  %v8180_v14 = vld [vmem:[#allocation7 + $0x260] sm:$0xf] }
 0x22c   :  { %v9437_v59 = vld [vmem:[#allocation5 + $0x8dc] sm:$0xf]  ;;  %v6977_v22 = vor.u32 %v9373_v56, %v6974_v57  ;;  %3533 = vmatpush.bf16.msrb.mxu3 %v7777_v60  ;;  %v9664_v57 = vld [vmem:[#allocation7 + $0x1ec] sm:$0xf0] }
 0x22d   :  { %v7230_v61 = vld [vmem:[#allocation5 + $0x8f8] sm:$0xf0]  ;;  %v9696_v60 = vld [vmem:[#allocation7 + $0x2ec] sm:$0xf0] }
 0x22e   :  { %v9501_v62 = vld [vmem:[#allocation5 + $0xadc] sm:$0xf]  ;;  %v7233_v4 = vor.u32 %v9437_v59, %v7230_v61  ;;  %3495 = vmatpush.bf16.msrb.mxu0 %v6977_v22  ;;  %v8244_v59 = vld [vmem:[#allocation7 + $0x2e0] sm:$0xf]  ;;  %v8117_v22 = vor.u32 %v9664_v57, %v8116_v54  ;;  %v9680_v54 = vld [vmem:[#allocation7 + $0x26c] sm:$0xf0] }
 0x22f   :  { %v7486_v63 = vld [vmem:[#allocation5 + $0xaf8] sm:$0xf0] }
 0x230   :  { %v9565_v0 = vld [vmem:[#allocation5 + $0xcdc] sm:$0xf]  ;;  %v7489_v5 = vor.u32 %v9501_v62, %v7486_v63  ;;  %3508 = vmatpush.bf16.msrb.mxu1 %v7233_v4  ;;  %v8372_v63 = vld [vmem:[#allocation7 + $0x3e0] sm:$0xf]  ;;  %v8245_v4 = vor.u32 %v9696_v60, %v8244_v59  ;;  %v8181_v60 = vor.u32 %v9680_v54, %v8180_v14 }
 0x231   :  { %v7742_v2 = vld [vmem:[#allocation5 + $0xcf8] sm:$0xf0] }
 0x232   :  { %v9365_v27 = vld [vmem:[#allocation5 + $0x69c] sm:$0xf]  ;;  %v7745_v9 = vor.u32 %v9565_v0, %v7742_v2  ;;  %3521 = vmatpush.bf16.msrb.mxu2 %v7489_v5  ;;  %v9728_v0 = vld [vmem:[#allocation7 + $0x3ec] sm:$0xf0]  ;;  %v7972_v5 = vld [vmem:[#allocation7 + $0xc0] sm:$0xf] }
 0x233   :  { %v6942_v23 = vld [vmem:[#allocation5 + $0x6b8] sm:$0xf0] }
 0x234   :  { %v9429_v29 = vld [vmem:[#allocation5 + $0x89c] sm:$0xf]  ;;  %v6945_v17 = vor.u32 %v9365_v27, %v6942_v23  ;;  %3534 = vmatpush.bf16.msrb.mxu3 %v7745_v9  ;;  %v8100_v27 = vld [vmem:[#allocation7 + $0x1c0] sm:$0xf]  ;;  %v8373_v23 = vor.u32 %v9728_v0, %v8372_v63 }
 0x235   :  { %v7198_v11 = vld [vmem:[#allocation5 + $0x8b8] sm:$0xf0]  ;;  %v8228_v9 = vld [vmem:[#allocation7 + $0x2c0] sm:$0xf] }
 0x236   :  { %v9493_v12 = vld [vmem:[#allocation5 + $0xa9c] sm:$0xf]  ;;  %v7201_v21 = vor.u32 %v9429_v29, %v7198_v11  ;;  %3496 = vmatpush.bf16.msrb.mxu0 %v6945_v17  ;;  %v9660_v29 = vld [vmem:[#allocation7 + $0x1cc] sm:$0xf0]  ;;  %v8036_v63 = vld [vmem:[#allocation7 + $0x140] sm:$0xf] }
 0x237   :  { %v7454_v24 = vld [vmem:[#allocation5 + $0xab8] sm:$0xf0]  ;;  %v9692_v11 = vld [vmem:[#allocation7 + $0x2cc] sm:$0xf0] }
 0x238   :  { %v9557_v13 = vld [vmem:[#allocation5 + $0xc9c] sm:$0xf]  ;;  %v7457_v58 = vor.u32 %v9493_v12, %v7454_v24  ;;  %3509 = vmatpush.bf16.msrb.mxu1 %v7201_v21  ;;  %v8356_v12 = vld [vmem:[#allocation7 + $0x3c0] sm:$0xf]  ;;  %v9724_v24 = vld [vmem:[#allocation7 + $0x3cc] sm:$0xf0]  ;;  %v8229_v17 = vor.u32 %v9692_v11, %v8228_v9  ;;  %v10231_v0 = vpop.f32.mrf.mxu2 }
 0x239   :  { %v7710_v15 = vld [vmem:[#allocation5 + $0xcb8] sm:$0xf0]  ;;  %v8084_v21 = vld [vmem:[#allocation7 + $0x1a0] sm:$0xf] }
 0x23a   :  { %v9357_v25 = vld [vmem:[#allocation5 + $0x65c] sm:$0xf]  ;;  %v7713_v31 = vor.u32 %v9557_v13, %v7710_v15  ;;  %3522 = vmatpush.bf16.msrb.mxu2 %v7457_v58  ;;  %v7973_v13 = vor.u32 %v9628_v6, %v7972_v5  ;;  %v8101_v15 = vor.u32 %v9660_v29, %v8100_v27  ;;  %v8357_v58 = vor.u32 %v9724_v24, %v8356_v12  ;;  %v10233_v5 = vpop.f32.mrf.mxu3  ;;  %v8292_v6 = vld [vmem:[#allocation7 + $0x340] sm:$0xf]  ;;  %v9708_v27 = vld [vmem:[#allocation7 + $0x34c] sm:$0xf0] }
 0x23b   :  { %v6910_v28 = vld [vmem:[#allocation5 + $0x678] sm:$0xf0]  ;;  %v7892_v24 = vld [vmem:[#allocation7 + $0x20] sm:$0xf] }
 0x23c   :  { %v9421_v30 = vld [vmem:[#allocation5 + $0x85c] sm:$0xf]  ;;  %v6913_v39 = vor.u32 %v9357_v25, %v6910_v28  ;;  %3535 = vmatpush.bf16.msrb.mxu3 %v7713_v31  ;;  %v9656_v25 = vld [vmem:[#allocation7 + $0x1ac] sm:$0xf0]  ;;  %v8212_v28 = vld [vmem:[#allocation7 + $0x2a0] sm:$0xf] }
 0x23d   :  { %v7166_v33 = vld [vmem:[#allocation5 + $0x878] sm:$0xf0]  ;;  %v8340_v31 = vld [vmem:[#allocation7 + $0x3a0] sm:$0xf] }
 0x23e   :  { %v9485_v35 = vld [vmem:[#allocation5 + $0xa5c] sm:$0xf]  ;;  %v7169_v44 = vor.u32 %v9421_v30, %v7166_v33  ;;  %3497 = vmatpush.bf16.msrb.mxu0 %v6913_v39  ;;  %v9688_v30 = vld [vmem:[#allocation7 + $0x2ac] sm:$0xf0]  ;;  %v8068_v39 = vld [vmem:[#allocation7 + $0x180] sm:$0xf] }
 0x23f   :  { %v7422_v36 = vld [vmem:[#allocation5 + $0xa78] sm:$0xf0]  ;;  %v9720_v33 = vld [vmem:[#allocation7 + $0x3ac] sm:$0xf0] }
 0x240   :  { %v9549_v37 = vld [vmem:[#allocation5 + $0xc5c] sm:$0xf]  ;;  %v7425_v45 = vor.u32 %v9485_v35, %v7422_v36  ;;  %3510 = vmatpush.bf16.msrb.mxu1 %v7169_v44  ;;  %v7957_v35 = vor.u32 %v9624_v32, %v7956_v18  ;;  %v8085_v36 = vor.u32 %v9656_v25, %v8084_v21  ;;  %v8196_v44 = vld [vmem:[#allocation7 + $0x280] sm:$0xf]  ;;  %v8293_v18 = vor.u32 %v9708_v27, %v8292_v6  ;;  %v9640_v32 = vld [vmem:[#allocation7 + $0x12c] sm:$0xf0] }
 0x241   :  { %v7678_v38 = vld [vmem:[#allocation5 + $0xc78] sm:$0xf0]  ;;  %v8148_v21 = vld [vmem:[#allocation7 + $0x220] sm:$0xf]  ;;  %v3552_v25 = vmul.f32 0.2, %v10181_v1 }
 0x242   :  { %v9349_v42 = vld [vmem:[#allocation5 + $0x61c] sm:$0xf]  ;;  %v7681_v49 = vor.u32 %v9549_v37, %v7678_v38  ;;  %3523 = vmatpush.bf16.msrb.mxu2 %v7425_v45  ;;  %v8213_v37 = vor.u32 %v9688_v30, %v8212_v28  ;;  %v7940_v38 = vld [vmem:[#allocation7 + $0x80] sm:$0xf]  ;;  %v9704_v30 = vld [vmem:[#allocation7 + $0x32c] sm:$0xf0] }
 0x243   :  { %v6878_v43 = vld [vmem:[#allocation5 + $0x638] sm:$0xf0]  ;;  %v8324_v45 = vld [vmem:[#allocation7 + $0x380] sm:$0xf] }
 0x244   :  { %v9413_v46 = vld [vmem:[#allocation5 + $0x81c] sm:$0xf]  ;;  %v6881_v56 = vor.u32 %v9349_v42, %v6878_v43  ;;  %3536 = vmatpush.bf16.msrb.mxu3 %v7681_v49  ;;  %v8341_v42 = vor.u32 %v9720_v33, %v8340_v31  ;;  %v9652_v43 = vld [vmem:[#allocation7 + $0x18c] sm:$0xf0]  ;;  %v8276_v28 = vld [vmem:[#allocation7 + $0x320] sm:$0xf] }
 0x245   :  { %v7134_v47 = vld [vmem:[#allocation5 + $0x838] sm:$0xf0]  ;;  %v9616_v49 = vld [vmem:[#allocation7 + $0x6c] sm:$0xf0]  ;;  %v3553_v31 = vmul.f32 0.2, %v10197_v51 }
 0x246   :  { %v9477_v48 = vld [vmem:[#allocation5 + $0xa1c] sm:$0xf]  ;;  %v7137_v61 = vor.u32 %v9413_v46, %v7134_v47  ;;  %3498 = vmatpush.bf16.msrb.mxu0 %v6881_v56  ;;  %v10227_v47 = vpop.f32.mrf.mxu0  ;;  %v9712_v56 = vld [vmem:[#allocation7 + $0x36c] sm:$0xf0]  ;;  %v7925_v57 = vor.u32 %v9616_v49, %v7924_v19  ;;  %v3554_v19 = vmul.f32 0.2, %v10206_v20 }
 0x247   :  { %v7390_v50 = vld [vmem:[#allocation5 + $0xa38] sm:$0xf0] }
 0x248   :  { %v9541_v7 = vld [vmem:[#allocation5 + $0xc1c] sm:$0xf]  ;;  %v7393_v62 = vor.u32 %v9477_v48, %v7390_v50  ;;  %3511 = vmatpush.bf16.msrb.mxu1 %v7137_v61  ;;  %v8052_v50 = vld [vmem:[#allocation7 + $0x160] sm:$0xf] }
 0x249   :  { %v7646_v52 = vld [vmem:[#allocation5 + $0xc38] sm:$0xf0]  ;;  %3499 = vmatmul.bf16.vlgmr.msrb.gmra.mxu0 %v10126_v8  ;;  %v9620_v8 = vld [vmem:[#allocation7 + $0x8c] sm:$0xf0]  ;;  %v8053_v59 = vor.u32 %v9648_v53, %v8052_v50  ;;  %v7908_v61 = vld [vmem:[#allocation7 + $0x40] sm:$0xf] }
 0x24a   :  { %v7649_v2 = vor.u32 %v9541_v7, %v7646_v52  ;;  %3524 = vmatpush.bf16.msrb.mxu2 %v7393_v62  ;;  %5111 = vmatpush.bf16.msra.mxu0 %v7989_v3  ;;  %v7941_v46 = vor.u32 %v9620_v8, %v7940_v38  ;;  %v10229_v7 = vpop.f32.mrf.mxu1  ;;  %v9612_v62 = vld [vmem:[#allocation7 + $0x4c] sm:$0xf0]  ;;  %v8004_v8 = vld [vmem:[#allocation7 + $0x100] sm:$0xf] }
 0x24b   :  { %3512 = vmatmul.bf16.vlgmr.msrb.gmra.mxu1 %v10138_v40  ;;  %v9684_v40 = vld [vmem:[#allocation7 + $0x28c] sm:$0xf0]  ;;  %v7909_v29 = vor.u32 %v9612_v62, %v7908_v61  ;;  %v8628_v50 = vld [vmem:[#allocation7 + $0x5e0] sm:$0xf]  ;;  %v3561_v61 = vsel %vm3545_vm2, %v10197_v51, %v3553_v31 }
 0x24c   :  { %3537 = vmatpush.bf16.msrb.mxu3 %v7649_v2  ;;  %5124 = vmatpush.bf16.msra.mxu1 %v8117_v22  ;;  %v8197_v48 = vor.u32 %v9684_v40, %v8196_v44  ;;  %v8309_v2 = vor.u32 %v9712_v56, %v8308_v55  ;;  %v9644_v3 = vld [vmem:[#allocation7 + $0x14c] sm:$0xf0]  ;;  %v8164_v22 = vld [vmem:[#allocation7 + $0x240] sm:$0xf]  ;;  %v10259_v27 = vpack.c.bf16 %v3561_v61, %v3561_v61 }
 0x24d   :  { %3525 = vmatmul.bf16.vlgmr.msrb.gmra.mxu2 %v10140_v41  ;;  %v9716_v41 = vld [vmem:[#allocation7 + $0x38c] sm:$0xf0]  ;;  %v8037_v11 = vor.u32 %v9644_v3, %v8036_v63  ;;  %v8132_v44 = vld [vmem:[#allocation7 + $0x200] sm:$0xf] }
 0x24e   :  { %5137 = vmatpush.bf16.msra.mxu2 %v8245_v4  ;;  %5112 = vmatpush.bf16.msra.mxu0 %v7973_v13  ;;  %v8325_v52 = vor.u32 %v9716_v41, %v8324_v45  ;;  %v9676_v4 = vld [vmem:[#allocation7 + $0x24c] sm:$0xf0]  ;;  %v3294_v9 = vpop.f32.mrf.mxu0  ;;  %v8260_v45 = vld [vmem:[#allocation7 + $0x300] sm:$0xf]  ;;  %v3333_v41 = vpop.f32.mrf.mxu3 }
 0x24f   :  { %3538 = vmatmul.bf16.vlgmr.msrb.gmra.mxu3 %v10136_v34  ;;  %v8069_v34 = vor.u32 %v9652_v43, %v8068_v39  ;;  %v8165_v12 = vor.u32 %v9676_v4, %v8164_v22  ;;  %v9608_v13 = vld [vmem:[#allocation7 + $0x2c] sm:$0xf0]  ;;  %v8277_v43 = vor.u32 %v9704_v30, %v8276_v28  ;;  %v8484_v63 = vld [vmem:[#allocation7 + $0x4c0] sm:$0xf] }
 0x250   :  { %5150 = vmatpush.bf16.msra.mxu3 %v8373_v23  ;;  %5125 = vmatpush.bf16.msra.mxu1 %v8101_v15  ;;  %v3551_v23 = vmul.f32 0.2, %v10165_v26  ;;  %v8020_v15 = vld [vmem:[#allocation7 + $0x120] sm:$0xf]  ;;  %v7893_v33 = vor.u32 %v9608_v13, %v7892_v24  ;;  %v9604_v38 = vld [vmem:[#allocation7 + $0xc] sm:$0xf0] }
 0x251   :  { %v9636_v39 = vld [vmem:[#allocation7 + $0x10c] sm:$0xf0]  ;;  %v8612_v3 = vld [vmem:[#allocation7 + $0x5c0] sm:$0xf] }
 0x252   :  { %5138 = vmatpush.bf16.msra.mxu2 %v8229_v17  ;;  %5113 = vmatpush.bf16.msra.mxu0 %v7957_v35  ;;  %v3307_v17 = vpop.f32.mrf.mxu1  ;;  %v7876_v35 = vld [vmem:[#allocation7] sm:$0xf]  ;;  %v9668_v40 = vld [vmem:[#allocation7 + $0x20c] sm:$0xf0]  ;;  %v8005_v53 = vor.u32 %v9636_v39, %v8004_v8  ;;  %v3559_v54 = vsel %vm3543_vm0, %v10165_v26, %v3551_v23  ;;  %v3562_v26 = vsel %vm3546_vm3, %v10206_v20, %v3554_v19  ;;  %vm6073_vm3 = vcmask 7168  }
 0x253   :  { %v7877_v49 = vor.u32 %v9604_v38, %v7876_v35  ;;  %v8133_v14 = vor.u32 %v9668_v40, %v8132_v44  ;;  %v9788_v22 = vld [vmem:[#allocation7 + $0x5cc] sm:$0xf0]  ;;  %v10255_v4 = vpack.c.bf16 %v3559_v54, %v3559_v54  ;;  %v8740_v23 = vld [vmem:[#allocation7 + $0x6c0] sm:$0xf]  ;;  %v10261_v9 = vpack.c.bf16 %v3562_v26, %v3562_v26 }
 0x254   :  { %5151 = vmatpush.bf16.msra.mxu3 %v8357_v58  ;;  %5126 = vmatpush.bf16.msra.mxu1 %v8085_v36  ;;  %v9672_v58 = vld [vmem:[#allocation7 + $0x22c] sm:$0xf0]  ;;  %v8021_v36 = vor.u32 %v9640_v32, %v8020_v15  ;;  %v3293_v20 = vadd.f32 %v10227_v47, %v10221_v16  ;;  %v8596_v13 = vld [vmem:[#allocation7 + $0x5a0] sm:$0xf]  ;;  %v3555_v26 = vmul.f32 0.2, %v10219_v10 }
 0x255   :  { %v9752_v24 = vld [vmem:[#allocation7 + $0x4ac] sm:$0xf0]  ;;  %v8724_v32 = vld [vmem:[#allocation7 + $0x6a0] sm:$0xf] }
 0x256   :  { %5139 = vmatpush.bf16.msra.mxu2 %v8213_v37  ;;  %5114 = vmatpush.bf16.msra.mxu0 %v7941_v46  ;;  %v8149_v37 = vor.u32 %v9672_v58, %v8148_v21  ;;  %v9700_v46 = vld [vmem:[#allocation7 + $0x30c] sm:$0xf0]  ;;  %v3306_v47 = vadd.f32 %v10229_v7, %v3293_v20  ;;  %v8452_v58 = vld [vmem:[#allocation7 + $0x480] sm:$0xf]  ;;  %v3344_v31 = vpop.f32.mrf.mxu0 }
 0x257   :  { %v8261_v55 = vor.u32 %v9700_v46, %v8260_v45  ;;  %v9784_v15 = vld [vmem:[#allocation7 + $0x5ac] sm:$0xf0]  ;;  %v8580_v28 = vld [vmem:[#allocation7 + $0x580] sm:$0xf] }
 0x258   :  { %5152 = vmatpush.bf16.msra.mxu3 %v8341_v42  ;;  %5127 = vmatpush.bf16.msra.mxu1 %v8069_v34  ;;  %v3320_v42 = vpop.f32.mrf.mxu2  ;;  %v8500_v34 = vld [vmem:[#allocation7 + $0x4e0] sm:$0xf]  ;;  %v9816_v16 = vld [vmem:[#allocation7 + $0x6ac] sm:$0xf0]  ;;  %v8597_v21 = vor.u32 %v9784_v15, %v8596_v13  ;;  %v3319_v8 = vadd.f32 %v10231_v0, %v3306_v47  ;;  %v9630_v13 = vld [vmem:[#allocation7 + $0xe4] sm:$0xf] }
 0x259   :  { %v9780_v30 = vld [vmem:[#allocation7 + $0x58c] sm:$0xf0]  ;;  %v8436_v42 = vld [vmem:[#allocation7 + $0x460] sm:$0xf]  ;;  %v7990_v15 = vld [vmem:[#allocation7 + $0xf0] sm:$0xf0] }
 0x25a   :  { %5140 = vmatpush.bf16.msra.mxu2 %v8197_v48  ;;  %5115 = vmatpush.bf16.msra.mxu0 %v7925_v57  ;;  %v9760_v48 = vld [vmem:[#allocation7 + $0x4ec] sm:$0xf0]  ;;  %v8756_v57 = vld [vmem:[#allocation7 + $0x6e0] sm:$0xf]  ;;  %v8581_v39 = vor.u32 %v9780_v30, %v8580_v28  ;;  %v9662_v47 = vld [vmem:[#allocation7 + $0x1e4] sm:$0xf] }
 0x25b   :  { %v8501_v56 = vor.u32 %v9760_v48, %v8500_v34  ;;  %v9812_v38 = vld [vmem:[#allocation7 + $0x68c] sm:$0xf0]  ;;  %v8692_v41 = vld [vmem:[#allocation7 + $0x660] sm:$0xf]  ;;  %v3332_v34 = vadd.f32 %v10233_v5, %v3319_v8  ;;  %v10274_v54 = vpop.f32.mrf.mxu3  ;;  %v8246_v8 = vld [vmem:[#allocation7 + $0x2f0] sm:$0xf0] }
 0x25c   :  { %5153 = vmatpush.bf16.msra.mxu3 %v8325_v52  ;;  %5128 = vmatpush.bf16.msra.mxu1 %v8053_v59  ;;  %v9792_v52 = vld [vmem:[#allocation7 + $0x5ec] sm:$0xf0]  ;;  %v8420_v19 = vld [vmem:[#allocation7 + $0x440] sm:$0xf] }
 0x25d   :  { %v9824_v59 = vld [vmem:[#allocation7 + $0x6ec] sm:$0xf0]  ;;  %v8629_v62 = vor.u32 %v9792_v52, %v8628_v50  ;;  %v8548_v50 = vld [vmem:[#allocation7 + $0x540] sm:$0xf] }
 0x25e   :  { %5141 = vmatpush.bf16.msra.mxu2 %v8181_v60  ;;  %5116 = vmatpush.bf16.msra.mxu0 %v7909_v29  ;;  %v3560_v60 = vsel %vm3544_vm1, %v10181_v1, %v3552_v25  ;;  %v8757_v6 = vor.u32 %v9824_v59, %v8756_v57  ;;  %v9820_v29 = vld [vmem:[#allocation7 + $0x6cc] sm:$0xf0]  ;;  %v8676_v57 = vld [vmem:[#allocation7 + $0x640] sm:$0xf] }
 0x25f   :  { %v10257_v1 = vpack.c.bf16 %v3560_v60, %v3560_v60  ;;  %v8741_v17 = vor.u32 %v9820_v29, %v8740_v23  ;;  %v9748_v25 = vld [vmem:[#allocation7 + $0x48c] sm:$0xf0]  ;;  %v8404_v61 = vld [vmem:[#allocation7 + $0x420] sm:$0xf] }
 0x260   :  { %5154 = vmatpush.bf16.msra.mxu3 %v8309_v2  ;;  %5129 = vmatpush.bf16.msra.mxu1 %v8037_v11  ;;  %v9756_v2 = vld [vmem:[#allocation7 + $0x4cc] sm:$0xf0]  ;;  %v8613_v11 = vor.u32 %v9788_v22, %v8612_v3  ;;  %v8453_v35 = vor.u32 %v9748_v25, %v8452_v58  ;;  %v10272_v52 = vpop.f32.mrf.mxu2  ;;  %v8388_v22 = vld [vmem:[#allocation7 + $0x400] sm:$0xf] }
 0x261   :  { %v8485_v51 = vor.u32 %v9756_v2, %v8484_v63  ;;  %v9744_v7 = vld [vmem:[#allocation7 + $0x46c] sm:$0xf0]  ;;  %v8532_v63 = vld [vmem:[#allocation7 + $0x520] sm:$0xf] }
 0x262   :  { %5142 = vmatpush.bf16.msra.mxu2 %v8165_v12  ;;  %5117 = vmatpush.bf16.msra.mxu0 %v7893_v33  ;;  %v8468_v12 = vld [vmem:[#allocation7 + $0x4a0] sm:$0xf]  ;;  %v8725_v33 = vor.u32 %v9816_v16, %v8724_v32  ;;  %v9776_v44 = vld [vmem:[#allocation7 + $0x56c] sm:$0xf0]  ;;  %v8437_v45 = vor.u32 %v9744_v7, %v8436_v42  ;;  %v7974_v7 = vld [vmem:[#allocation7 + $0xd0] sm:$0xf0] }
 0x263   :  { %v9808_v46 = vld [vmem:[#allocation7 + $0x66c] sm:$0xf0]  ;;  %v8660_v29 = vld [vmem:[#allocation7 + $0x620] sm:$0xf]  ;;  %v3385_v25 = vpop.f32.mrf.mxu3 }
 0x264   :  { %5155 = vmatpush.bf16.msra.mxu3 %v8293_v18  ;;  %5130 = vmatpush.bf16.msra.mxu1 %v8021_v36  ;;  %v8469_v18 = vor.u32 %v9752_v24, %v8468_v12  ;;  %v3357_v36 = vpop.f32.mrf.mxu1  ;;  %v9772_v0 = vld [vmem:[#allocation7 + $0x54c] sm:$0xf0]  ;;  %v8516_v12 = vld [vmem:[#allocation7 + $0x500] sm:$0xf] }
 0x265   :  { %v9804_v59 = vld [vmem:[#allocation7 + $0x64c] sm:$0xf0]  ;;  %v8549_v5 = vor.u32 %v9772_v0, %v8548_v50  ;;  %v9622_v50 = vld [vmem:[#allocation7 + $0xa4] sm:$0xf]  ;;  %v8230_v0 = vld [vmem:[#allocation7 + $0x2d0] sm:$0xf0] }
 0x266   :  { %5143 = vmatpush.bf16.msra.mxu2 %v8149_v37  ;;  %5118 = vmatpush.bf16.msra.mxu0 %v7877_v49  ;;  %v8708_v37 = vld [vmem:[#allocation7 + $0x680] sm:$0xf]  ;;  %v9740_v49 = vld [vmem:[#allocation7 + $0x44c] sm:$0xf0] }
 0x267   :  { %v8709_v40 = vor.u32 %v9812_v38, %v8708_v37  ;;  %v9768_v2 = vld [vmem:[#allocation7 + $0x52c] sm:$0xf0]  ;;  %v9626_v37 = vld [vmem:[#allocation7 + $0xc4] sm:$0xf] }
 0x268   :  { %5156 = vmatpush.bf16.msra.mxu3 %v8277_v43  ;;  %5131 = vmatpush.bf16.msra.mxu1 %v8005_v53  ;;  %v8564_v43 = vld [vmem:[#allocation7 + $0x560] sm:$0xf]  ;;  %v3345_v53 = vadd.f32 %v3344_v31, %v3332_v34  ;;  %v9732_v23 = vld [vmem:[#allocation7 + $0x40c] sm:$0xf0]  ;;  %v9694_v38 = vld [vmem:[#allocation7 + $0x2e4] sm:$0xf] }
 0x269   :  { %5119 = vmatmul.bf16.vlgmr.msra.gmra.mxu0 %v10255_v4  ;;  %v8565_v48 = vor.u32 %v9776_v44, %v8564_v43  ;;  %v9800_v20 = vld [vmem:[#allocation7 + $0x62c] sm:$0xf0]  ;;  %v8389_v30 = vor.u32 %v9732_v23, %v8388_v22  ;;  %v8644_v31 = vld [vmem:[#allocation7 + $0x600] sm:$0xf]  ;;  %v7942_v22 = vld [vmem:[#allocation7 + $0x90] sm:$0xf0] }
 0x26a   :  { %5144 = vmatpush.bf16.msra.mxu2 %v8133_v14  ;;  %5163 = vmatpush.bf16.msrb.mxu0 %v8501_v56  ;;  %v8693_v14 = vor.u32 %v9808_v46, %v8692_v41  ;;  %v8421_v56 = vor.u32 %v9740_v49, %v8420_v19  ;;  %v3358_v3 = vadd.f32 %v3357_v36, %v3345_v53  ;;  %v9764_v24 = vld [vmem:[#allocation7 + $0x50c] sm:$0xf0]  ;;  %v8868_v43 = vld [vmem:[#allocation7 + $0x7c0] sm:$0xf]  ;;  %v8102_v41 = vld [vmem:[#allocation7 + $0x1d0] sm:$0xf0] }
 0x26b   :  { %5132 = vmatmul.bf16.vlgmr.msra.gmra.mxu1 %v10257_v1  ;;  %v9856_v32 = vld [vmem:[#allocation7 + $0x7ec] sm:$0xf0]  ;;  %v8661_v58 = vor.u32 %v9800_v20, %v8660_v29  ;;  %v7993_v36 = vor.u32 %v9630_v13, %v7990_v15  ;;  %v7977_v49 = vor.u32 %v9626_v37, %v7974_v7  ;;  %v9650_v23 = vld [vmem:[#allocation7 + $0x184] sm:$0xf]  ;;  %v8070_v29 = vld [vmem:[#allocation7 + $0x190] sm:$0xf0] }
 0x26c   :  { %5157 = vmatpush.bf16.msra.mxu3 %v8261_v55  ;;  %5176 = vmatpush.bf16.msrb.mxu1 %v8629_v62  ;;  %v3346_v55 = vpop.f32.mrf.mxu0  ;;  %v3359_v60 = vpop.f32.mrf.mxu1  ;;  %v9736_v62 = vld [vmem:[#allocation7 + $0x42c] sm:$0xf0]  ;;  %v3556_v16 = vmul.f32 0.2, %v3358_v3  ;;  %vm3548_vm5 = vcmp.gt.f32.partialorder %v3358_v3, 0.0 }
 0x26d   :  { %5145 = vmatmul.bf16.vlgmr.msra.gmra.mxu2 %v10259_v27  ;;  %v9852_v44 = vld [vmem:[#allocation7 + $0x7cc] sm:$0xf0]  ;;  %v7958_v55 = vld [vmem:[#allocation7 + $0xb0] sm:$0xf0]  ;;  %v9682_v13 = vld [vmem:[#allocation7 + $0x284] sm:$0xf] }
 0x26e   :  { %5189 = vmatpush.bf16.msrb.mxu2 %v8757_v6  ;;  %5164 = vmatpush.bf16.msrb.mxu0 %v8485_v51  ;;  %v8677_v6 = vor.u32 %v9804_v59, %v8676_v57  ;;  %v8405_v51 = vor.u32 %v9736_v62, %v8404_v61  ;;  %v8869_v34 = vor.u32 %v9852_v44, %v8868_v43  ;;  %v9848_v57 = vld [vmem:[#allocation7 + $0x7ac] sm:$0xf0]  ;;  %v9654_v59 = vld [vmem:[#allocation7 + $0x1a4] sm:$0xf]  ;;  %v8086_v60 = vld [vmem:[#allocation7 + $0x1b0] sm:$0xf0] }
 0x26f   :  { %5158 = vmatmul.bf16.vlgmr.msra.gmra.mxu3 %v10261_v9  ;;  %v7961_v62 = vor.u32 %v9622_v50, %v7958_v55  ;;  %v8198_v15 = vld [vmem:[#allocation7 + $0x290] sm:$0xf0]  ;;  %v9638_v55 = vld [vmem:[#allocation7 + $0x124] sm:$0xf] }
 0x270   :  { %5177 = vmatpush.bf16.msrb.mxu1 %v8613_v11  ;;  %v8533_v11 = vor.u32 %v9768_v2, %v8532_v63  ;;  %v9618_v63 = vld [vmem:[#allocation7 + $0x84] sm:$0xf]  ;;  %v8038_v7 = vld [vmem:[#allocation7 + $0x150] sm:$0xf0] }
 0x271   :  { %v9686_v2 = vld [vmem:[#allocation7 + $0x2a4] sm:$0xf]  ;;  %v7894_v50 = vld [vmem:[#allocation7 + $0x30] sm:$0xf0] }
 0x272   :  { %5190 = vmatpush.bf16.msrb.mxu2 %v8741_v17  ;;  %5165 = vmatpush.bf16.msrb.mxu0 %v8469_v18  ;;  %v3372_v17 = vpop.f32.mrf.mxu2  ;;  %v8884_v18 = vld [vmem:[#allocation7 + $0x7e0] sm:$0xf] }
 0x273   :  { %v8885_v28 = vor.u32 %v9856_v32, %v8884_v18  ;;  %v8073_v17 = vor.u32 %v9650_v23, %v8070_v29  ;;  %v7926_v18 = vld [vmem:[#allocation7 + $0x70] sm:$0xf0]  ;;  %v8772_v23 = vld [vmem:[#allocation7 + $0x700] sm:$0xf]  ;;  %v9828_v29 = vld [vmem:[#allocation7 + $0x70c] sm:$0xf0] }
 0x274   :  { %5178 = vmatpush.bf16.msrb.mxu1 %v8597_v21  ;;  %v8118_v21 = vld [vmem:[#allocation7 + $0x1f0] sm:$0xf0] }
 0x275   :  { %5202 = vmatpush.bf16.msrb.mxu3 %v8885_v28  ;;  %v8121_v42 = vor.u32 %v9662_v47, %v8118_v21  ;;  %v10288_v32 = vpop.f32.mrf.mxu0  ;;  %v9840_v47 = vld [vmem:[#allocation7 + $0x76c] sm:$0xf0]  ;;  %v9646_v21 = vld [vmem:[#allocation7 + $0x164] sm:$0xf] }
 0x276   :  { %5191 = vmatpush.bf16.msrb.mxu2 %v8725_v33  ;;  %5166 = vmatpush.bf16.msrb.mxu0 %v8453_v35  ;;  %v9796_v33 = vld [vmem:[#allocation7 + $0x60c] sm:$0xf0]  ;;  %v8517_v35 = vor.u32 %v9764_v24, %v8516_v12  ;;  %v7945_v12 = vor.u32 %v9618_v63, %v7942_v22  ;;  %v9614_v24 = vld [vmem:[#allocation7 + $0x64] sm:$0xf]  ;;  %v3384_v22 = vadd.f32 %v10274_v54, %v10272_v52  ;;  %v8134_v54 = vld [vmem:[#allocation7 + $0x210] sm:$0xf0] }
 0x277   :  { %v8645_v46 = vor.u32 %v9796_v33, %v8644_v31  ;;  %v10290_v25 = vpop.f32.mrf.mxu1  ;;  %v7929_v31 = vor.u32 %v9614_v24, %v7926_v18  ;;  %v9610_v33 = vld [vmem:[#allocation7 + $0x44] sm:$0xf] }
 0x278   :  { %5179 = vmatpush.bf16.msrb.mxu1 %v8581_v39  ;;  %v3563_v39 = vsel %vm3547_vm4, %v10219_v10, %v3555_v26  ;;  %v9690_v10 = vld [vmem:[#allocation7 + $0x2c4] sm:$0xf]  ;;  %v8214_v26 = vld [vmem:[#allocation7 + $0x2b0] sm:$0xf0] }
 0x279   :  { %v10282_v19 = vpack.c.bf16 %v3563_v39, %v3563_v39  ;;  %5203 = vmatpush.bf16.msrb.mxu3 %v8869_v34  ;;  %v8233_v61 = vor.u32 %v9690_v10, %v8230_v0  ;;  %v9836_v39 = vld [vmem:[#allocation7 + $0x74c] sm:$0xf0]  ;;  %v9674_v34 = vld [vmem:[#allocation7 + $0x244] sm:$0xf]  ;;  %v8788_v0 = vld [vmem:[#allocation7 + $0x720] sm:$0xf] }
 0x27a   :  { %5192 = vmatpush.bf16.msrb.mxu2 %v8709_v40  ;;  %5167 = vmatpush.bf16.msrb.mxu0 %v8437_v45  ;;  %v3564_v40 = vsel %vm3548_vm5, %v3358_v3, %v3556_v16  ;;  %v9658_v45 = vld [vmem:[#allocation7 + $0x1c4] sm:$0xf]  ;;  %v8089_v3 = vor.u32 %v9654_v59, %v8086_v60  ;;  %v8820_v16 = vld [vmem:[#allocation7 + $0x760] sm:$0xf] }
 0x27b   :  { %v10284_v53 = vpack.c.bf16 %v3564_v40, %v3564_v40  ;;  %v8821_v28 = vor.u32 %v9840_v47, %v8820_v16  ;;  %v9602_v60 = vld [vmem:[#allocation7 + $0x4] sm:$0xf] }
 0x27c   :  { %5180 = vmatpush.bf16.msrb.mxu1 %v8565_v48  ;;  %v8249_v48 = vor.u32 %v9694_v38, %v8246_v8  ;;  %v7910_v38 = vld [vmem:[#allocation7 + $0x50] sm:$0xf0]  ;;  %v8804_v8 = vld [vmem:[#allocation7 + $0x740] sm:$0xf]  ;;  %v9634_v63 = vld [vmem:[#allocation7 + $0x104] sm:$0xf] }
 0x27d   :  { %v8805_v44 = vor.u32 %v9836_v39, %v8804_v8  ;;  %v3398_v10 = vpop.f32.mrf.mxu0  ;;  %v9726_v24 = vld [vmem:[#allocation7 + $0x3e4] sm:$0xf]  ;;  %v8614_v8 = vld [vmem:[#allocation7 + $0x5d0] sm:$0xf0] }
 0x27e   :  { %5193 = vmatpush.bf16.msrb.mxu2 %v8693_v14  ;;  %5168 = vmatpush.bf16.msrb.mxu0 %v8421_v56  ;;  %v8105_v14 = vor.u32 %v9658_v45, %v8102_v41  ;;  %v8852_v56 = vld [vmem:[#allocation7 + $0x7a0] sm:$0xf]  ;;  %v7913_v41 = vor.u32 %v9610_v33, %v7910_v38  ;;  %v9666_v52 = vld [vmem:[#allocation7 + $0x204] sm:$0xf] }
 0x27f   :  { %v10292_v43 = vpop.f32.mrf.mxu2  ;;  %v9786_v38 = vld [vmem:[#allocation7 + $0x5c4] sm:$0xf]  ;;  %v8137_v39 = vor.u32 %v9666_v52, %v8134_v54  ;;  %v8550_v54 = vld [vmem:[#allocation7 + $0x550] sm:$0xf0] }
 0x280   :  { %5181 = vmatpush.bf16.msrb.mxu1 %v8549_v5  ;;  %v8853_v5 = vor.u32 %v9848_v57, %v8852_v56  ;;  %v8022_v56 = vld [vmem:[#allocation7 + $0x130] sm:$0xf0]  ;;  %v3411_v57 = vpop.f32.mrf.mxu1  ;;  %v9770_v52 = vld [vmem:[#allocation7 + $0x544] sm:$0xf] }
 0x281   :  { %v10294_v40 = vpop.f32.mrf.mxu3  ;;  %v8326_v57 = vld [vmem:[#allocation7 + $0x390] sm:$0xf0] }
 0x282   :  { %5194 = vmatpush.bf16.msrb.mxu2 %v8677_v6  ;;  %5169 = vmatpush.bf16.msrb.mxu0 %v8405_v51  ;;  %v8836_v6 = vld [vmem:[#allocation7 + $0x780] sm:$0xf]  ;;  %v9844_v51 = vld [vmem:[#allocation7 + $0x78c] sm:$0xf0] }
 0x283   :  { %5204 = vmatpush.bf16.msrb.mxu3 %v8853_v5  ;;  %v8837_v20 = vor.u32 %v9844_v51, %v8836_v6  ;;  %v7878_v5 = vld [vmem:[#allocation7 + $0x10] sm:$0xf0]  ;;  %v8025_v6 = vor.u32 %v9638_v55, %v8022_v56  ;;  %v9758_v51 = vld [vmem:[#allocation7 + $0x4e4] sm:$0xf] }
 0x284   :  { %5182 = vmatpush.bf16.msrb.mxu1 %v8533_v11  ;;  %v8217_v11 = vor.u32 %v9686_v2, %v8214_v26  ;;  %v8006_v2 = vld [vmem:[#allocation7 + $0x110] sm:$0xf0]  ;;  %v9670_v26 = vld [vmem:[#allocation7 + $0x224] sm:$0xf] }
 0x285   :  { %v8454_v55 = vld [vmem:[#allocation7 + $0x490] sm:$0xf0]  ;;  %v9714_v56 = vld [vmem:[#allocation7 + $0x384] sm:$0xf] }
 0x286   :  { %5195 = vmatpush.bf16.msrb.mxu2 %v8661_v58  ;;  %5170 = vmatpush.bf16.msrb.mxu0 %v8389_v30  ;;  %v8054_v58 = vld [vmem:[#allocation7 + $0x170] sm:$0xf0]  ;;  %v8201_v30 = vor.u32 %v9682_v13, %v8198_v15  ;;  %v9790_v15 = vld [vmem:[#allocation7 + $0x5e4] sm:$0xf] }
 0x287   :  { %5205 = vmatpush.bf16.msrb.mxu3 %v8837_v20  ;;  %v8057_v37 = vor.u32 %v9646_v21, %v8054_v58  ;;  %v8502_v20 = vld [vmem:[#allocation7 + $0x4f0] sm:$0xf0]  ;;  %v7881_v21 = vor.u32 %v9602_v60, %v7878_v5  ;;  %v3397_v58 = vadd.f32 %v10288_v32, %v3384_v22  ;;  %v8329_v5 = vor.u32 %v9714_v56, %v8326_v57 }
 0x288   :  { %5183 = vmatpush.bf16.msrb.mxu1 %v8517_v35  ;;  %v9678_v35 = vld [vmem:[#allocation7 + $0x264] sm:$0xf]  ;;  %v8374_v13 = vld [vmem:[#allocation7 + $0x3f0] sm:$0xf0] }
 0x289   :  { %5171 = vmatmul.bf16.vlgmr.msrb.gmra.mxu0 %v10282_v19  ;;  %v3437_v16 = vpop.f32.mrf.mxu3  ;;  %v8377_v47 = vor.u32 %v9726_v24, %v8374_v13  ;;  %v8582_v60 = vld [vmem:[#allocation7 + $0x590] sm:$0xf0]  ;;  %v9738_v13 = vld [vmem:[#allocation7 + $0x444] sm:$0xf] }
 0x28a   :  { %5215 = vmatpush.bf16.msra.mxu0 %v7993_v36  ;;  %5196 = vmatpush.bf16.msrb.mxu2 %v8645_v46  ;;  %v8182_v36 = vld [vmem:[#allocation7 + $0x270] sm:$0xf0]  ;;  %v9606_v46 = vld [vmem:[#allocation7 + $0x24] sm:$0xf] }
 0x28b   :  { %5184 = vmatmul.bf16.vlgmr.msrb.gmra.mxu1 %v10284_v53  ;;  %5206 = vmatpush.bf16.msrb.mxu3 %v8821_v28  ;;  %v8185_v45 = vor.u32 %v9678_v35, %v8182_v36  ;;  %v8009_v28 = vor.u32 %v9634_v63, %v8006_v2  ;;  %v8486_v35 = vld [vmem:[#allocation7 + $0x4d0] sm:$0xf0]  ;;  %v9722_v36 = vld [vmem:[#allocation7 + $0x3c4] sm:$0xf] }
 0x28c   :  { %5228 = vmatpush.bf16.msra.mxu1 %v8121_v42  ;;  %v9642_v42 = vld [vmem:[#allocation7 + $0x144] sm:$0xf]  ;;  %v8310_v22 = vld [vmem:[#allocation7 + $0x370] sm:$0xf0] }
 0x28d   :  { %v9742_v63 = vld [vmem:[#allocation7 + $0x464] sm:$0xf]  ;;  %v8294_v16 = vld [vmem:[#allocation7 + $0x350] sm:$0xf0] }
 0x28e   :  { %5241 = vmatpush.bf16.msra.mxu2 %v8249_v48  ;;  %5216 = vmatpush.bf16.msra.mxu0 %v7977_v49  ;;  %v8166_v48 = vld [vmem:[#allocation7 + $0x250] sm:$0xf0]  ;;  %v8041_v49 = vor.u32 %v9642_v42, %v8038_v7  ;;  %v3410_v7 = vadd.f32 %v10290_v25, %v3397_v58 }
 0x28f   :  { %5207 = vmatpush.bf16.msrb.mxu3 %v8805_v44  ;;  %v9750_v44 = vld [vmem:[#allocation7 + $0x4a4] sm:$0xf]  ;;  %v8262_v56 = vld [vmem:[#allocation7 + $0x310] sm:$0xf0] }
 0x290   :  { %5229 = vmatpush.bf16.msra.mxu1 %v8105_v14  ;;  %v9832_v14 = vld [vmem:[#allocation7 + $0x72c] sm:$0xf0]  ;;  %v3423_v25 = vadd.f32 %v10292_v43, %v3410_v7  ;;  %v8278_v7 = vld [vmem:[#allocation7 + $0x330] sm:$0xf0] }
 0x291   :  { %v8789_v59 = vor.u32 %v9832_v14, %v8788_v0  ;;  %v9746_v0 = vld [vmem:[#allocation7 + $0x484] sm:$0xf] }
 0x292   :  { %5242 = vmatpush.bf16.msra.mxu2 %v8233_v61  ;;  %5217 = vmatpush.bf16.msra.mxu0 %v7961_v62  ;;  %v8169_v61 = vor.u32 %v9674_v34, %v8166_v48  ;;  %v7897_v62 = vor.u32 %v9606_v46, %v7894_v50  ;;  %v9718_v46 = vld [vmem:[#allocation7 + $0x3a4] sm:$0xf]  ;;  %v8342_v34 = vld [vmem:[#allocation7 + $0x3b0] sm:$0xf0] }
 0x293   :  { %5208 = vmatpush.bf16.msrb.mxu3 %v8789_v59  ;;  %v9782_v48 = vld [vmem:[#allocation7 + $0x5a4] sm:$0xf]  ;;  %v8345_v50 = vor.u32 %v9718_v46, %v8342_v34  ;;  %v8726_v34 = vld [vmem:[#allocation7 + $0x6b0] sm:$0xf0] }
 0x294   :  { %5230 = vmatpush.bf16.msra.mxu1 %v8089_v3  ;;  %v8150_v3 = vld [vmem:[#allocation7 + $0x230] sm:$0xf0]  ;;  %v9778_v59 = vld [vmem:[#allocation7 + $0x584] sm:$0xf] }
 0x295   :  { %v8153_v18 = vor.u32 %v9670_v26, %v8150_v3  ;;  %v8585_v43 = vor.u32 %v9778_v59, %v8582_v60  ;;  %v8438_v26 = vld [vmem:[#allocation7 + $0x470] sm:$0xf0]  ;;  %v9710_v3 = vld [vmem:[#allocation7 + $0x364] sm:$0xf]  ;;  %v7996_v59 = vld [vmem:[#allocation7 + $0xe8] sm:$0xf] }
 0x296   :  { %5243 = vmatpush.bf16.msra.mxu2 %v8217_v11  ;;  %5218 = vmatpush.bf16.msra.mxu0 %v7945_v12  ;;  %v3424_v11 = vpop.f32.mrf.mxu2  ;;  %v8773_v12 = vor.u32 %v9828_v29, %v8772_v23  ;;  %v8566_v23 = vld [vmem:[#allocation7 + $0x570] sm:$0xf0]  ;;  %v8313_v29 = vor.u32 %v9710_v3, %v8310_v22  ;;  %v8441_v24 = vor.u32 %v9742_v63, %v8438_v26  ;;  %v9814_v46 = vld [vmem:[#allocation7 + $0x6a4] sm:$0xf]  ;;  %v9633_v60 = vld [vmem:[#allocation7 + $0xf4] sm:$0xf0] }
 0x297   :  { %v8758_v11 = vld [vmem:[#allocation7 + $0x6f0] sm:$0xf0]  ;;  %v8729_v57 = vor.u32 %v9814_v46, %v8726_v34  ;;  %v9810_v63 = vld [vmem:[#allocation7 + $0x684] sm:$0xf]  ;;  %v7932_v46 = vld [vmem:[#allocation7 + $0x68] sm:$0xf] }
 0x298   :  { %5231 = vmatpush.bf16.msra.mxu1 %v8073_v17  ;;  %v8630_v17 = vld [vmem:[#allocation7 + $0x5f0] sm:$0xf0]  ;;  %5209 = vmatpush.bf16.msrb.mxu3 %v8773_v12  ;;  %v10304_v12 = vpop.f32.mrf.mxu1  ;;  %v9617_v34 = vld [vmem:[#allocation7 + $0x74] sm:$0xf0] }
 0x299   :  { %v8633_v33 = vor.u32 %v9790_v15, %v8630_v17  ;;  %v3448_v2 = vpop.f32.mrf.mxu0  ;;  %v8422_v17 = vld [vmem:[#allocation7 + $0x450] sm:$0xf0] }
 0x29a   :  { %5244 = vmatpush.bf16.msra.mxu2 %v8201_v30  ;;  %5219 = vmatpush.bf16.msra.mxu0 %v7929_v31  ;;  %v8505_v30 = vor.u32 %v9758_v51, %v8502_v20  ;;  %v9754_v31 = vld [vmem:[#allocation7 + $0x4c4] sm:$0xf] }
 0x29b   :  { %v8489_v32 = vor.u32 %v9754_v31, %v8486_v35  ;;  %v9774_v51 = vld [vmem:[#allocation7 + $0x564] sm:$0xf]  ;;  %v8742_v31 = vld [vmem:[#allocation7 + $0x6d0] sm:$0xf0] }
 0x29c   :  { %5232 = vmatpush.bf16.msra.mxu1 %v8057_v37  ;;  %5254 = vmatpush.bf16.msra.mxu3 %v8377_v47  ;;  %v8358_v37 = vld [vmem:[#allocation7 + $0x3d0] sm:$0xf0]  ;;  %v9822_v20 = vld [vmem:[#allocation7 + $0x6e4] sm:$0xf]  ;;  %v8569_v15 = vor.u32 %v9774_v51, %v8566_v23 }
 0x29d   :  { %v8361_v42 = vor.u32 %v9722_v36, %v8358_v37  ;;  %v9734_v37 = vld [vmem:[#allocation7 + $0x424] sm:$0xf] }
 0x29e   :  { %5245 = vmatpush.bf16.msra.mxu2 %v8185_v45  ;;  %5220 = vmatpush.bf16.msra.mxu0 %v7913_v41  ;;  %v8617_v45 = vor.u32 %v9786_v38, %v8614_v8  ;;  %v8470_v41 = vld [vmem:[#allocation7 + $0x4b0] sm:$0xf0]  ;;  %v8553_v38 = vor.u32 %v9770_v52, %v8550_v54  ;;  %v9657_v52 = vld [vmem:[#allocation7 + $0x1b4] sm:$0xf0]  ;;  %v9802_v54 = vld [vmem:[#allocation7 + $0x644] sm:$0xf] }
 0x29f   :  { %v8473_v10 = vor.u32 %v9750_v44, %v8470_v41  ;;  %v10308_v35 = vpop.f32.mrf.mxu2  ;;  %v8406_v8 = vld [vmem:[#allocation7 + $0x430] sm:$0xf0]  ;;  %v9766_v44 = vld [vmem:[#allocation7 + $0x524] sm:$0xf] }
 0x2a0   :  { %5233 = vmatpush.bf16.msra.mxu1 %v8041_v49  ;;  %5255 = vmatpush.bf16.msra.mxu3 %v8361_v42  ;;  %v8598_v49 = vld [vmem:[#allocation7 + $0x5b0] sm:$0xf0]  ;;  %v9702_v42 = vld [vmem:[#allocation7 + $0x324] sm:$0xf] }
 0x2a1   :  { %v8601_v14 = vor.u32 %v9782_v48, %v8598_v49  ;;  %v10310_v36 = vpop.f32.mrf.mxu3  ;;  %v8281_v41 = vor.u32 %v9702_v42, %v8278_v7  ;;  %v3463_v48 = vpop.f32.mrf.mxu1  ;;  %v8409_v49 = vor.u32 %v9734_v37, %v8406_v8  ;;  %v7948_v37 = vld [vmem:[#allocation7 + $0x88] sm:$0xf]  ;;  %v9653_v42 = vld [vmem:[#allocation7 + $0x194] sm:$0xf0]  ;;  %v9798_v7 = vld [vmem:[#allocation7 + $0x624] sm:$0xf] }
 0x2a2   :  { %5246 = vmatpush.bf16.msra.mxu2 %v8169_v61  ;;  %5221 = vmatpush.bf16.msra.mxu0 %v7897_v62  ;;  %v3436_v61 = vadd.f32 %v10294_v40, %v3423_v25  ;;  %v8457_v62 = vor.u32 %v9746_v0, %v8454_v55  ;;  %v8390_v25 = vld [vmem:[#allocation7 + $0x410] sm:$0xf0]  ;;  %v9698_v55 = vld [vmem:[#allocation7 + $0x304] sm:$0xf]  ;;  %v8076_v8 = vld [vmem:[#allocation7 + $0x188] sm:$0xf] }
 0x2a3   :  { %v8060_v48 = vld [vmem:[#allocation7 + $0x168] sm:$0xf] }
 0x2a4   :  { %5234 = vmatpush.bf16.msra.mxu1 %v8025_v6  ;;  %5256 = vmatpush.bf16.msra.mxu3 %v8345_v50  ;;  %v3449_v6 = vadd.f32 %v3448_v2, %v3436_v61  ;;  %v9730_v50 = vld [vmem:[#allocation7 + $0x404] sm:$0xf]  ;;  %v8265_v61 = vor.u32 %v9698_v55, %v8262_v56  ;;  %v8710_v2 = vld [vmem:[#allocation7 + $0x690] sm:$0xf0]  ;;  %v7933_v56 = vor.u32 %v9617_v34, %v7932_v46 }
 0x2a5   :  { %v8713_v23 = vor.u32 %v9810_v63, %v8710_v2  ;;  %v9645_v63 = vld [vmem:[#allocation7 + $0x154] sm:$0xf0] }
 0x2a6   :  { %5247 = vmatpush.bf16.msra.mxu2 %v8153_v18  ;;  %5222 = vmatpush.bf16.msra.mxu0 %v7881_v21  ;;  %vm3549_vm6 = vcmp.gt.f32.partialorder %v3449_v6, 0.0  ;;  %v3557_v40 = vmul.f32 0.2, %v3449_v6  ;;  %v9706_v18 = vld [vmem:[#allocation7 + $0x344] sm:$0xf]  ;;  %v8761_v21 = vor.u32 %v9822_v20, %v8758_v11 }
 0x2a7   :  { %v8297_v58 = vor.u32 %v9706_v18, %v8294_v16  ;;  %v3476_v26 = vpop.f32.mrf.mxu2  ;;  %v9629_v20 = vld [vmem:[#allocation7 + $0xd4] sm:$0xf0]  ;;  %v8108_v11 = vld [vmem:[#allocation7 + $0x1c8] sm:$0xf] }
 0x2a8   :  { %5235 = vmatpush.bf16.msra.mxu1 %v8009_v28  ;;  %5257 = vmatpush.bf16.msra.mxu3 %v8329_v5  ;;  %v3565_v47 = vsel %vm3549_vm6, %v3449_v6, %v3557_v40  ;;  %v8124_v5 = vld [vmem:[#allocation7 + $0x1e8] sm:$0xf]  ;;  %v7997_v6 = vor.u32 %v9633_v60, %v7996_v59  ;;  %v9661_v40 = vld [vmem:[#allocation7 + $0x1d4] sm:$0xf0] }
 0x2a9   :  { %5223 = vmatmul.bf16.vlgmr.msra.gmra.mxu0 %v10255_v4  ;;  %v10306_v28 = vpack.c.bf16 %v3565_v47, %v3565_v47  ;;  %v3489_v3 = vpop.f32.mrf.mxu3  ;;  %v7964_v16 = vld [vmem:[#allocation7 + $0xa8] sm:$0xf]  ;;  %v9625_v47 = vld [vmem:[#allocation7 + $0xb4] sm:$0xf0] }
 0x2aa   :  { %5267 = vmatpush.bf16.msrb.mxu0 %v8505_v30  ;;  %5248 = vmatpush.bf16.msra.mxu2 %v8137_v39  ;;  %v9818_v30 = vld [vmem:[#allocation7 + $0x6c4] sm:$0xf]  ;;  %v3450_v39 = vpop.f32.mrf.mxu0  ;;  %v7916_v60 = vld [vmem:[#allocation7 + $0x48] sm:$0xf]  ;;  %v9693_v2 = vld [vmem:[#allocation7 + $0x2d4] sm:$0xf0] }
 0x2ab   :  { %5236 = vmatmul.bf16.vlgmr.msra.gmra.mxu1 %v10257_v1  ;;  %5197 = vmatmul.bf16.vlgmr.msrb.gmra.mxu2 %v10306_v28  ;;  %v3475_v39 = vadd.f32 %v10308_v35, %v10304_v12  ;;  %v8252_v12 = vld [vmem:[#allocation7 + $0x2e8] sm:$0xf]  ;;  %v9697_v35 = vld [vmem:[#allocation7 + $0x2f4] sm:$0xf0] }
 0x2ac   :  { %5280 = vmatpush.bf16.msrb.mxu1 %v8633_v33  ;;  %5258 = vmatpush.bf16.msra.mxu3 %v8313_v29  ;;  %v8425_v33 = vor.u32 %v9738_v13, %v8422_v17  ;;  %v7980_v29 = vld [vmem:[#allocation7 + $0xc8] sm:$0xf]  ;;  %v8694_v13 = vld [vmem:[#allocation7 + $0x670] sm:$0xf0]  ;;  %v8109_v17 = vor.u32 %v9661_v40, %v8108_v11 }
 0x2ad   :  { %v8028_v40 = vld [vmem:[#allocation7 + $0x128] sm:$0xf] }
 0x2ae   :  { %5268 = vmatpush.bf16.msrb.mxu0 %v8489_v32  ;;  %5293 = vmatpush.bf16.msrb.mxu2 %v8761_v21  ;;  %v8745_v32 = vor.u32 %v9818_v30, %v8742_v31  ;;  %v8092_v21 = vld [vmem:[#allocation7 + $0x1a8] sm:$0xf]  ;;  %v7965_v30 = vor.u32 %v9625_v47, %v7964_v16  ;;  %v9689_v16 = vld [vmem:[#allocation7 + $0x2b4] sm:$0xf0] }
 0x2af   :  { %v8093_v31 = vor.u32 %v9657_v52, %v8092_v21  ;;  %v7884_v52 = vld [vmem:[#allocation7 + $0x8] sm:$0xf] }
 0x2b0   :  { %5281 = vmatpush.bf16.msrb.mxu1 %v8617_v45  ;;  %v8534_v45 = vld [vmem:[#allocation7 + $0x530] sm:$0xf0]  ;;  %5259 = vmatpush.bf16.msra.mxu3 %v8297_v58 }
 0x2b1   :  { %v8537_v0 = vor.u32 %v9766_v44, %v8534_v45  ;;  %v8678_v58 = vld [vmem:[#allocation7 + $0x650] sm:$0xf0]  ;;  %v8077_v45 = vor.u32 %v9653_v42, %v8076_v8  ;;  %v9793_v42 = vld [vmem:[#allocation7 + $0x5f4] sm:$0xf0] }
 0x2b2   :  { %5269 = vmatpush.bf16.msrb.mxu0 %v8473_v10  ;;  %v9762_v10 = vld [vmem:[#allocation7 + $0x504] sm:$0xf]  ;;  %5294 = vmatpush.bf16.msrb.mxu2 %v8745_v32  ;;  %v8662_v32 = vld [vmem:[#allocation7 + $0x630] sm:$0xf0] }
 0x2b4   :  { %5282 = vmatpush.bf16.msrb.mxu1 %v8601_v14  ;;  %v8518_v14 = vld [vmem:[#allocation7 + $0x510] sm:$0xf0]  ;;  %5260 = vmatpush.bf16.msra.mxu3 %v8281_v41  ;;  %v8665_v41 = vor.u32 %v9798_v7, %v8662_v32  ;;  %v8204_v7 = vld [vmem:[#allocation7 + $0x288] sm:$0xf]  ;;  %v9685_v32 = vld [vmem:[#allocation7 + $0x294] sm:$0xf0] }
 0x2b5   :  { %v8521_v22 = vor.u32 %v9762_v10, %v8518_v14  ;;  %v9794_v10 = vld [vmem:[#allocation7 + $0x604] sm:$0xf] }
 0x2b6   :  { %5270 = vmatpush.bf16.msrb.mxu0 %v8457_v62  ;;  %v9665_v62 = vld [vmem:[#allocation7 + $0x1f4] sm:$0xf0]  ;;  %5295 = vmatpush.bf16.msrb.mxu2 %v8729_v57 }
 0x2b7   :  { %v8125_v51 = vor.u32 %v9665_v62, %v8124_v5  ;;  %v9613_v5 = vld [vmem:[#allocation7 + $0x54] sm:$0xf0]  ;;  %v8044_v62 = vld [vmem:[#allocation7 + $0x148] sm:$0xf] }
 0x2b8   :  { %5283 = vmatpush.bf16.msrb.mxu1 %v8585_v43  ;;  %v8393_v43 = vor.u32 %v9730_v50, %v8390_v25  ;;  %5261 = vmatpush.bf16.msra.mxu3 %v8265_v61  ;;  %v9649_v25 = vld [vmem:[#allocation7 + $0x174] sm:$0xf0]  ;;  %v8253_v61 = vor.u32 %v9697_v35, %v8252_v12  ;;  %v7917_v26 = vor.u32 %v9613_v5, %v7916_v60  ;;  %v8492_v12 = vld [vmem:[#allocation7 + $0x4c8] sm:$0xf] }
 0x2b9   :  { %v8061_v57 = vor.u32 %v9649_v25, %v8060_v48  ;;  %v8870_v25 = vld [vmem:[#allocation7 + $0x7d0] sm:$0xf0]  ;;  %v9757_v35 = vld [vmem:[#allocation7 + $0x4d4] sm:$0xf0] }
 0x2ba   :  { %5271 = vmatpush.bf16.msrb.mxu0 %v8441_v24  ;;  %v9806_v24 = vld [vmem:[#allocation7 + $0x664] sm:$0xf]  ;;  %5296 = vmatpush.bf16.msrb.mxu2 %v8713_v23  ;;  %v8493_v5 = vor.u32 %v9757_v35, %v8492_v12  ;;  %v8556_v12 = vld [vmem:[#allocation7 + $0x548] sm:$0xf]  ;;  %v9773_v35 = vld [vmem:[#allocation7 + $0x554] sm:$0xf0] }
 0x2bb   :  { %v8697_v18 = vor.u32 %v9806_v24, %v8694_v13  ;;  %5249 = vmatmul.bf16.vlgmr.msra.gmra.mxu2 %v10259_v27  ;;  %v9641_v24 = vld [vmem:[#allocation7 + $0x134] sm:$0xf0] }
 0x2bc   :  { %5284 = vmatpush.bf16.msrb.mxu1 %v8569_v15  ;;  %v7981_v15 = vor.u32 %v9629_v20, %v7980_v29 }
 0x2be   :  { %5272 = vmatpush.bf16.msrb.mxu0 %v8425_v33  ;;  %5297 = vmatpush.bf16.msrb.mxu2 %v8697_v18  ;;  %v8681_v33 = vor.u32 %v9802_v54, %v8678_v58  ;;  %v8220_v18 = vld [vmem:[#allocation7 + $0x2a8] sm:$0xf]  ;;  %v9605_v54 = vld [vmem:[#allocation7 + $0x14] sm:$0xf0] }
 0x2bf   :  { %v8012_v58 = vld [vmem:[#allocation7 + $0x108] sm:$0xf]  ;;  %v8221_v8 = vor.u32 %v9689_v16, %v8220_v18  ;;  %v9673_v16 = vld [vmem:[#allocation7 + $0x234] sm:$0xf0] }
 0x2c0   :  { %5285 = vmatpush.bf16.msrb.mxu1 %v8553_v38  ;;  %v9621_v38 = vld [vmem:[#allocation7 + $0x94] sm:$0xf0]  ;;  %v8156_v18 = vld [vmem:[#allocation7 + $0x228] sm:$0xf] }
 0x2c1   :  { %v7949_v44 = vor.u32 %v9621_v38, %v7948_v37  ;;  %v9761_v37 = vld [vmem:[#allocation7 + $0x4f4] sm:$0xf0] }
 0x2c2   :  { %5273 = vmatpush.bf16.msrb.mxu0 %v8409_v49  ;;  %5298 = vmatpush.bf16.msrb.mxu2 %v8681_v33  ;;  %v3488_v49 = vadd.f32 %v10310_v36, %v3475_v39  ;;  %v8236_v36 = vld [vmem:[#allocation7 + $0x2c8] sm:$0xf] }
 0x2c3   :  { %v8237_v11 = vor.u32 %v9693_v2, %v8236_v36  ;;  %v8508_v33 = vld [vmem:[#allocation7 + $0x4e8] sm:$0xf] }
 0x2c4   :  { %5286 = vmatpush.bf16.msrb.mxu1 %v8537_v0  ;;  %v8646_v0 = vld [vmem:[#allocation7 + $0x610] sm:$0xf0]  ;;  %v8636_v39 = vld [vmem:[#allocation7 + $0x5e8] sm:$0xf] }
 0x2c5   :  { %v8649_v59 = vor.u32 %v9794_v10, %v8646_v0  ;;  %v8637_v0 = vor.u32 %v9793_v42, %v8636_v39  ;;  %v8476_v2 = vld [vmem:[#allocation7 + $0x4a8] sm:$0xf]  ;;  %v9669_v42 = vld [vmem:[#allocation7 + $0x214] sm:$0xf0] }
 0x2c6   :  { %5274 = vmatpush.bf16.msrb.mxu0 %v8393_v43  ;;  %v3500_v50 = vpop.f32.mrf.mxu0  ;;  %5299 = vmatpush.bf16.msrb.mxu2 %v8665_v41  ;;  %v7885_v41 = vor.u32 %v9605_v54, %v7884_v52  ;;  %v9838_v52 = vld [vmem:[#allocation7 + $0x764] sm:$0xf]  ;;  %v8822_v54 = vld [vmem:[#allocation7 + $0x770] sm:$0xf0]  ;;  %v8140_v39 = vld [vmem:[#allocation7 + $0x208] sm:$0xf] }
 0x2c7   :  { %v3501_v55 = vadd.f32 %v3500_v50, %v3488_v49  ;;  %v8509_v49 = vor.u32 %v9761_v37, %v8508_v33  ;;  %v9850_v50 = vld [vmem:[#allocation7 + $0x7c4] sm:$0xf]  ;;  %v9745_v33 = vld [vmem:[#allocation7 + $0x474] sm:$0xf0]  ;;  %v8572_v37 = vld [vmem:[#allocation7 + $0x568] sm:$0xf] }
 0x2c8   :  { %5287 = vmatpush.bf16.msrb.mxu1 %v8521_v22  ;;  %v3513_v14 = vpop.f32.mrf.mxu1  ;;  %v8045_v22 = vor.u32 %v9645_v63, %v8044_v62  ;;  %v8873_v60 = vor.u32 %v9850_v50, %v8870_v25  ;;  %v8854_v62 = vld [vmem:[#allocation7 + $0x7b0] sm:$0xf0]  ;;  %v8141_v25 = vor.u32 %v9669_v42, %v8140_v39  ;;  %v8716_v39 = vld [vmem:[#allocation7 + $0x688] sm:$0xf]  ;;  %v9813_v42 = vld [vmem:[#allocation7 + $0x694] sm:$0xf0] }
 0x2c9   :  { %5275 = vmatmul.bf16.vlgmr.msrb.gmra.mxu0 %v10282_v19  ;;  %v3514_v43 = vadd.f32 %v3513_v14, %v3501_v55  ;;  %v8205_v14 = vor.u32 %v9685_v32, %v8204_v7  ;;  %v8620_v55 = vld [vmem:[#allocation7 + $0x5c8] sm:$0xf]  ;;  %v8825_v32 = vor.u32 %v9838_v52, %v8822_v54  ;;  %v9765_v54 = vld [vmem:[#allocation7 + $0x514] sm:$0xf0] }
 0x2ca   :  { %5319 = vmatpush.bf16.msra.mxu0 %v7997_v6  ;;  %5300 = vmatpush.bf16.msrb.mxu2 %v8649_v59  ;;  %v7900_v6 = vld [vmem:[#allocation7 + $0x28] sm:$0xf]  ;;  %v9681_v59 = vld [vmem:[#allocation7 + $0x274] sm:$0xf0] }
 0x2cb   :  { %5288 = vmatmul.bf16.vlgmr.msrb.gmra.mxu1 %v10284_v53 }
 0x2cc   :  { %5332 = vmatpush.bf16.msra.mxu1 %v8125_v51  ;;  %v9609_v51 = vld [vmem:[#allocation7 + $0x34] sm:$0xf0] }
 0x2cd   :  { %5301 = vmatmul.bf16.vlgmr.msrb.gmra.mxu2 %v10306_v28  ;;  %v7901_v21 = vor.u32 %v9609_v51, %v7900_v6  ;;  %v9677_v6 = vld [vmem:[#allocation7 + $0x254] sm:$0xf0] }
 0x2ce   :  { %5320 = vmatpush.bf16.msra.mxu0 %v7981_v15  ;;  %v3502_v20 = vpop.f32.mrf.mxu0  ;;  %5345 = vmatpush.bf16.msra.mxu2 %v8253_v61  ;;  %v9854_v15 = vld [vmem:[#allocation7 + $0x7e4] sm:$0xf] }
 0x2cf   :  { %v9846_v61 = vld [vmem:[#allocation7 + $0x7a4] sm:$0xf]  ;;  %v8838_v20 = vld [vmem:[#allocation7 + $0x790] sm:$0xf0] }
 0x2d0   :  { %5333 = vmatpush.bf16.msra.mxu1 %v8109_v17  ;;  %v3526_v3 = vpop.f32.mrf.mxu2  ;;  %v3515_v13 = vpop.f32.mrf.mxu1  ;;  %v8886_v17 = vld [vmem:[#allocation7 + $0x7f0] sm:$0xf0]  ;;  %v8857_v51 = vor.u32 %v9846_v61, %v8854_v62  ;;  %v8557_v62 = vor.u32 %v9773_v35, %v8556_v12  ;;  %v8700_v12 = vld [vmem:[#allocation7 + $0x668] sm:$0xf]  ;;  %v9809_v35 = vld [vmem:[#allocation7 + $0x674] sm:$0xf0] }
 0x2d1   :  { %v3527_v23 = vadd.f32 %v3526_v3, %v3514_v43  ;;  %v9753_v43 = vld [vmem:[#allocation7 + $0x4b4] sm:$0xf0] }
 0x2d2   :  { %5321 = vmatpush.bf16.msra.mxu0 %v7965_v30  ;;  %v3539_v29 = vpop.f32.mrf.mxu3  ;;  %v8029_v30 = vor.u32 %v9641_v24, %v8028_v40  ;;  %5346 = vmatpush.bf16.msra.mxu2 %v8237_v11  ;;  %v9785_v3 = vld [vmem:[#allocation7 + $0x5b4] sm:$0xf0]  ;;  %v8460_v24 = vld [vmem:[#allocation7 + $0x488] sm:$0xf] }
 0x2d3   :  { %v3540_v47 = vadd.f32 %v3539_v29, %v3527_v23  ;;  %v8477_v23 = vor.u32 %v9753_v43, %v8476_v2  ;;  %v9842_v29 = vld [vmem:[#allocation7 + $0x784] sm:$0xf]  ;;  %v9749_v13 = vld [vmem:[#allocation7 + $0x494] sm:$0xf0] }
 0x2d4   :  { %5334 = vmatpush.bf16.msra.mxu1 %v8093_v31  ;;  %v9637_v31 = vld [vmem:[#allocation7 + $0x114] sm:$0xf0] }
 0x2d5   :  { %vm3550_vm7 = vcmp.gt.f32.partialorder %v3540_v47, 0.0  ;;  %v3558_v38 = vmul.f32 0.2, %v3540_v47  ;;  %v8013_v48 = vor.u32 %v9637_v31, %v8012_v58  ;;  %v8444_v31 = vld [vmem:[#allocation7 + $0x468] sm:$0xf] }
 0x2d6   :  { %5322 = vmatpush.bf16.msra.mxu0 %v7949_v44  ;;  %5347 = vmatpush.bf16.msra.mxu2 %v8221_v8  ;;  %v9777_v8 = vld [vmem:[#allocation7 + $0x574] sm:$0xf0] }
 0x2d7   :  { %v3566_v44 = vsel %vm3550_vm7, %v3540_v47, %v3558_v38  ;;  %v8841_v47 = vor.u32 %v9842_v29, %v8838_v20  ;;  %v8573_v50 = vor.u32 %v9777_v8, %v8572_v37  ;;  %v9826_v29 = vld [vmem:[#allocation7 + $0x704] sm:$0xf]  ;;  %v8732_v20 = vld [vmem:[#allocation7 + $0x6a8] sm:$0xf]  ;;  %v8126_v37 = vld [vmem:[#allocation7 + $0x1f8] sm:$0xf0] }
 0x2d8   :  { %5335 = vmatpush.bf16.msra.mxu1 %v8077_v45  ;;  %v8889_v45 = vor.u32 %v9854_v15, %v8886_v17  ;;  %v10320_v46 = vpack.c.bf16 %v3566_v44, %v3566_v44  ;;  %v3528_v34 = vpop.f32.mrf.mxu2  ;;  %v8588_v15 = vld [vmem:[#allocation7 + $0x588] sm:$0xf]  ;;  %v9781_v17 = vld [vmem:[#allocation7 + $0x594] sm:$0xf0] }
 0x2d9   :  { %v8589_v58 = vor.u32 %v9781_v17, %v8588_v15  ;;  %v8764_v44 = vld [vmem:[#allocation7 + $0x6e8] sm:$0xf]  ;;  %v8445_v34 = vor.u32 %v9745_v33, %v8444_v31  ;;  %v9729_v17 = vld [vmem:[#allocation7 + $0x3f4] sm:$0xf0]  ;;  %v9663_v33 = vld [vmem:[#allocation7 + $0x1ec] sm:$0xf] }
 0x2da   :  { %5323 = vmatpush.bf16.msra.mxu0 %v7933_v56  ;;  %v3541_v10 = vpop.f32.mrf.mxu3  ;;  %5210 = vmatmul.bf16.vlgmr.msrb.gmra.mxu3 %v10320_v46  ;;  %v9789_v56 = vld [vmem:[#allocation7 + $0x5d4] sm:$0xf0]  ;;  %v8380_v15 = vld [vmem:[#allocation7 + $0x3e8] sm:$0xf] }
 0x2db   :  { %5306 = vmatpush.bf16.msrb.mxu3 %v8889_v45  ;;  %5348 = vmatpush.bf16.msra.mxu2 %v8205_v14  ;;  %v8621_v63 = vor.u32 %v9789_v56, %v8620_v55  ;;  %v9825_v45 = vld [vmem:[#allocation7 + $0x6f4] sm:$0xf0]  ;;  %v8428_v10 = vld [vmem:[#allocation7 + $0x448] sm:$0xf] }
 0x2dc   :  { %5336 = vmatpush.bf16.msra.mxu1 %v8061_v57  ;;  %v8188_v57 = vld [vmem:[#allocation7 + $0x268] sm:$0xf]  ;;  %v8765_v14 = vor.u32 %v9825_v45, %v8764_v44 }
 0x2dd   :  { %v8189_v36 = vor.u32 %v9681_v59, %v8188_v57  ;;  %v8748_v56 = vld [vmem:[#allocation7 + $0x6c8] sm:$0xf]  ;;  %v9821_v57 = vld [vmem:[#allocation7 + $0x6d4] sm:$0xf0] }
 0x2de   :  { %5324 = vmatpush.bf16.msra.mxu0 %v7917_v26  ;;  %v8604_v26 = vld [vmem:[#allocation7 + $0x5a8] sm:$0xf] }
 0x2df   :  { %5307 = vmatpush.bf16.msrb.mxu3 %v8873_v60  ;;  %5349 = vmatpush.bf16.msra.mxu2 %v8189_v36  ;;  %v8605_v11 = vor.u32 %v9785_v3, %v8604_v26  ;;  %v9830_v60 = vld [vmem:[#allocation7 + $0x724] sm:$0xf]  ;;  %v9737_v36 = vld [vmem:[#allocation7 + $0x434] sm:$0xf0]  ;;  %v8749_v3 = vor.u32 %v9821_v57, %v8748_v56  ;;  %v8364_v45 = vld [vmem:[#allocation7 + $0x3c8] sm:$0xf] }
 0x2e0   :  { %5337 = vmatpush.bf16.msra.mxu1 %v8045_v22  ;;  %v8172_v22 = vld [vmem:[#allocation7 + $0x248] sm:$0xf]  ;;  %v9721_v57 = vld [vmem:[#allocation7 + $0x3b4] sm:$0xf0] }
 0x2e1   :  { %v8173_v40 = vor.u32 %v9677_v6, %v8172_v22  ;;  %v8540_v22 = vld [vmem:[#allocation7 + $0x528] sm:$0xf]  ;;  %v9769_v6 = vld [vmem:[#allocation7 + $0x534] sm:$0xf0] }
 0x2e2   :  { %5325 = vmatpush.bf16.msra.mxu0 %v7901_v21  ;;  %v8461_v21 = vor.u32 %v9749_v13, %v8460_v24  ;;  %v8774_v13 = vld [vmem:[#allocation7 + $0x710] sm:$0xf0]  ;;  %v8348_v56 = vld [vmem:[#allocation7 + $0x3a8] sm:$0xf] }
 0x2e3   :  { %5308 = vmatpush.bf16.msrb.mxu3 %v8857_v51  ;;  %5350 = vmatpush.bf16.msra.mxu2 %v8173_v40  ;;  %v8777_v31 = vor.u32 %v9826_v29, %v8774_v13  ;;  %v8668_v13 = vld [vmem:[#allocation7 + $0x628] sm:$0xf] }
 0x2e4   :  { %5338 = vmatpush.bf16.msra.mxu1 %v8029_v30  ;;  %v8157_v30 = vor.u32 %v9673_v16, %v8156_v18  ;;  %v8541_v18 = vor.u32 %v9769_v6, %v8540_v22  ;;  %v8396_v16 = vld [vmem:[#allocation7 + $0x408] sm:$0xf]  ;;  %v9717_v22 = vld [vmem:[#allocation7 + $0x394] sm:$0xf0] }
 0x2e6   :  { %5326 = vmatpush.bf16.msra.mxu0 %v7885_v41  ;;  %v5120_v38 = vpop.f32.mrf.mxu0 }
 0x2e7   :  { %5309 = vmatpush.bf16.msrb.mxu3 %v8841_v47  ;;  %5351 = vmatpush.bf16.msra.mxu2 %v8157_v30  ;;  %v9733_v47 = vld [vmem:[#allocation7 + $0x414] sm:$0xf0]  ;;  %v7998_v30 = vld [vmem:[#allocation7 + $0xf8] sm:$0xf0] }
 0x2e8   :  { %5339 = vmatpush.bf16.msra.mxu1 %v8013_v48  ;;  %v5133_v7 = vpop.f32.mrf.mxu1  ;;  %v9834_v48 = vld [vmem:[#allocation7 + $0x744] sm:$0xf]  ;;  %v8397_v8 = vor.u32 %v9733_v47, %v8396_v16  ;;  %v9713_v16 = vld [vmem:[#allocation7 + $0x374] sm:$0xf0] }
 0x2e9   :  { %5327 = vmatmul.bf16.vlgmr.msra.gmra.mxu0 %v10255_v4  ;;  %v5134_v41 = vadd.f32 %v5133_v7, %v5120_v38  ;;  %v8381_v38 = vor.u32 %v9729_v17, %v8380_v15  ;;  %v9801_v15 = vld [vmem:[#allocation7 + $0x634] sm:$0xf0] }
 0x2ea   :  { %5371 = vmatpush.bf16.msrb.mxu0 %v8509_v49  ;;  %v8806_v49 = vld [vmem:[#allocation7 + $0x750] sm:$0xf0]  ;;  %5262 = vmatmul.bf16.vlgmr.msra.gmra.mxu3 %v10261_v9 }
 0x2eb   :  { %5340 = vmatmul.bf16.vlgmr.msra.gmra.mxu1 %v10257_v1  ;;  %5310 = vmatpush.bf16.msrb.mxu3 %v8825_v32  ;;  %v8809_v55 = vor.u32 %v9834_v48, %v8806_v49  ;;  %v8129_v48 = vor.u32 %v9663_v33, %v8126_v37  ;;  %v9627_v49 = vld [vmem:[#allocation7 + $0xcc] sm:$0xf]  ;;  %v8300_v37 = vld [vmem:[#allocation7 + $0x348] sm:$0xf] }
 0x2ec   :  { %5384 = vmatpush.bf16.msrb.mxu1 %v8637_v0  ;;  %v9741_v0 = vld [vmem:[#allocation7 + $0x454] sm:$0xf0]  ;;  %5352 = vmatpush.bf16.msra.mxu2 %v8141_v25  ;;  %v8717_v25 = vor.u32 %v9813_v42, %v8716_v39 }
 0x2ed   :  { %v8429_v59 = vor.u32 %v9741_v0, %v8428_v10  ;;  %v9659_v10 = vld [vmem:[#allocation7 + $0x1cc] sm:$0xf]  ;;  %v8110_v0 = vld [vmem:[#allocation7 + $0x1d8] sm:$0xf0] }
 0x2ee   :  { %5372 = vmatpush.bf16.msrb.mxu0 %v8493_v5  ;;  %v8790_v5 = vld [vmem:[#allocation7 + $0x730] sm:$0xf0]  ;;  %v5122_v26 = vpop.f32.mrf.mxu0 }
 0x2ef   :  { %5311 = vmatpush.bf16.msrb.mxu3 %v8809_v55  ;;  %5353 = vmatmul.bf16.vlgmr.msra.gmra.mxu2 %v10259_v27 }
 0x2f0   :  { %5385 = vmatpush.bf16.msrb.mxu1 %v8621_v63  ;;  %v5146_v61 = vpop.f32.mrf.mxu2  ;;  %v8412_v63 = vld [vmem:[#allocation7 + $0x428] sm:$0xf]  ;;  %5397 = vmatpush.bf16.msrb.mxu2 %v8765_v14  ;;  %v5135_v51 = vpop.f32.mrf.mxu1 }
 0x2f1   :  { %v5147_v2 = vadd.f32 %v5146_v61, %v5134_v41  ;;  %v8413_v24 = vor.u32 %v9737_v36, %v8412_v63  ;;  %v9725_v41 = vld [vmem:[#allocation7 + $0x3d4] sm:$0xf0]  ;;  %v8701_v61 = vor.u32 %v9809_v35, %v8700_v12  ;;  %v8094_v63 = vld [vmem:[#allocation7 + $0x1b8] sm:$0xf0]  ;;  %v8349_v36 = vor.u32 %v9721_v57, %v8348_v56  ;;  %v9619_v51 = vld [vmem:[#allocation7 + $0x8c] sm:$0xf] }
 0x2f2   :  { %5373 = vmatpush.bf16.msrb.mxu0 %v8477_v23  ;;  %v5159_v43 = vpop.f32.mrf.mxu3  ;;  %v8793_v23 = vor.u32 %v9830_v60, %v8790_v5  ;;  %v8365_v14 = vor.u32 %v9725_v41, %v8364_v45  ;;  %v9623_v60 = vld [vmem:[#allocation7 + $0xac] sm:$0xf]  ;;  %v7966_v5 = vld [vmem:[#allocation7 + $0xb8] sm:$0xf0]  ;;  %v9705_v35 = vld [vmem:[#allocation7 + $0x334] sm:$0xf0] }
 0x2f3   :  { %v10326_v40 = vadd.f32 %v5159_v43, %v5147_v2  ;;  %v8684_v2 = vld [vmem:[#allocation7 + $0x648] sm:$0xf]  ;;  %v9805_v43 = vld [vmem:[#allocation7 + $0x654] sm:$0xf0]  ;;  %v7969_v26 = vor.u32 %v9623_v60, %v7966_v5  ;;  %v8254_v45 = vld [vmem:[#allocation7 + $0x2f8] sm:$0xf0] }
 0x2f4   :  { %5386 = vmatpush.bf16.msrb.mxu1 %v8605_v11  ;;  %v9817_v11 = vld [vmem:[#allocation7 + $0x6b4] sm:$0xf0]  ;;  %5398 = vmatpush.bf16.msrb.mxu2 %v8749_v3  ;;  %v8332_v3 = vld [vmem:[#allocation7 + $0x388] sm:$0xf]  ;;  %v8685_v29 = vor.u32 %v9805_v43, %v8684_v2  ;;  %v8238_v56 = vld [vmem:[#allocation7 + $0x2d8] sm:$0xf0] }
 0x2f5   :  { %v8733_v52 = vor.u32 %v9817_v11, %v8732_v20  ;;  %5312 = vmatpush.bf16.msrb.mxu3 %v8793_v23  ;;  %v7950_v23 = vld [vmem:[#allocation7 + $0x98] sm:$0xf0]  ;;  %v9651_v20 = vld [vmem:[#allocation7 + $0x18c] sm:$0xf]  ;;  %v8268_v2 = vld [vmem:[#allocation7 + $0x308] sm:$0xf] }
 0x2f6   :  { %5374 = vmatpush.bf16.msrb.mxu0 %v8461_v21  ;;  %v8524_v21 = vld [vmem:[#allocation7 + $0x508] sm:$0xf]  ;;  %v8078_v11 = vld [vmem:[#allocation7 + $0x198] sm:$0xf0]  ;;  %v7953_v17 = vor.u32 %v9619_v51, %v7950_v23  ;;  %v9639_v5 = vld [vmem:[#allocation7 + $0x12c] sm:$0xf] }
 0x2f7   :  { %v8525_v32 = vor.u32 %v9765_v54, %v8524_v21  ;;  %v8081_v47 = vor.u32 %v9651_v20, %v8078_v11  ;;  %v9615_v21 = vld [vmem:[#allocation7 + $0x6c] sm:$0xf]  ;;  %v8669_v54 = vor.u32 %v9801_v15, %v8668_v13  ;;  %v7902_v60 = vld [vmem:[#allocation7 + $0x38] sm:$0xf0]  ;;  %v9701_v43 = vld [vmem:[#allocation7 + $0x314] sm:$0xf0] }
 0x2f8   :  { %5387 = vmatpush.bf16.msrb.mxu1 %v8589_v58  ;;  %v9631_v58 = vld [vmem:[#allocation7 + $0xec] sm:$0xf]  ;;  %v5148_v7 = vpop.f32.mrf.mxu2  ;;  %5399 = vmatpush.bf16.msrb.mxu2 %v8733_v52  ;;  %v7934_v52 = vld [vmem:[#allocation7 + $0x78] sm:$0xf0] }
 0x2f9   :  { %v8001_v44 = vor.u32 %v9631_v58, %v7998_v30  ;;  %5313 = vmatpush.bf16.msrb.mxu3 %v8777_v31  ;;  %v9647_v58 = vld [vmem:[#allocation7 + $0x16c] sm:$0xf]  ;;  %v8062_v30 = vld [vmem:[#allocation7 + $0x178] sm:$0xf0]  ;;  %v7937_v7 = vor.u32 %v9615_v21, %v7934_v52 }
 0x2fa   :  { %5375 = vmatpush.bf16.msrb.mxu0 %v8445_v34  ;;  %v5161_v34 = vpop.f32.mrf.mxu3  ;;  %v8065_v41 = vor.u32 %v9647_v58, %v8062_v30  ;;  %v9687_v51 = vld [vmem:[#allocation7 + $0x2ac] sm:$0xf]  ;;  %v8222_v23 = vld [vmem:[#allocation7 + $0x2b8] sm:$0xf0] }
 0x2fb   :  { %v9611_v34 = vld [vmem:[#allocation7 + $0x4c] sm:$0xf]  ;;  %v7886_v11 = vld [vmem:[#allocation7 + $0x18] sm:$0xf0] }
 0x2fc   :  { %5388 = vmatpush.bf16.msrb.mxu1 %v8573_v50  ;;  %v7982_v50 = vld [vmem:[#allocation7 + $0xd8] sm:$0xf0]  ;;  %5314 = vmatmul.bf16.vlgmr.msrb.gmra.mxu3 %v10320_v46  ;;  %v9603_v20 = vld [vmem:[#allocation7 + $0xc] sm:$0xf] }
 0x2fd   :  { %5358 = vmatpush.bf16.msra.mxu3 %v8381_v38  ;;  %v7985_v55 = vor.u32 %v9627_v49, %v7982_v50  ;;  %5400 = vmatpush.bf16.msrb.mxu2 %v8717_v25  ;;  %v8652_v38 = vld [vmem:[#allocation7 + $0x608] sm:$0xf]  ;;  %v9643_v25 = vld [vmem:[#allocation7 + $0x14c] sm:$0xf]  ;;  %v8014_v13 = vld [vmem:[#allocation7 + $0x118] sm:$0xf0] }
 0x2fe   :  { %5376 = vmatpush.bf16.msrb.mxu0 %v8429_v59  ;;  %v8113_v59 = vor.u32 %v9659_v10, %v8110_v0  ;;  %v8046_v10 = vld [vmem:[#allocation7 + $0x158] sm:$0xf0]  ;;  %v9759_v15 = vld [vmem:[#allocation7 + $0x4ec] sm:$0xf] }
 0x2ff   :  { %v8049_v57 = vor.u32 %v9643_v25, %v8046_v10  ;;  %v8638_v21 = vld [vmem:[#allocation7 + $0x5f8] sm:$0xf0]  ;;  %v9683_v58 = vld [vmem:[#allocation7 + $0x28c] sm:$0xf]  ;;  %v9849_v25 = vld [vmem:[#allocation7 + $0x7b4] sm:$0xf0] }
 0x300   :  { %5389 = vmatpush.bf16.msrb.mxu1 %v8557_v62  ;;  %v9655_v62 = vld [vmem:[#allocation7 + $0x1ac] sm:$0xf]  ;;  %v8206_v30 = vld [vmem:[#allocation7 + $0x298] sm:$0xf0] }
 0x301   :  { %5359 = vmatpush.bf16.msra.mxu3 %v8365_v14  ;;  %v8097_v6 = vor.u32 %v9655_v62, %v8094_v63  ;;  %5401 = vmatpush.bf16.msrb.mxu2 %v8701_v61  ;;  %v8030_v61 = vld [vmem:[#allocation7 + $0x138] sm:$0xf0] }
 0x302   :  { %5377 = vmatpush.bf16.msrb.mxu0 %v8413_v24  ;;  %v8333_v24 = vor.u32 %v9717_v22, %v8332_v3 }
 0x304   :  { %5390 = vmatpush.bf16.msrb.mxu1 %v8541_v18  ;;  %v8316_v18 = vld [vmem:[#allocation7 + $0x368] sm:$0xf] }
 0x305   :  { %5360 = vmatpush.bf16.msra.mxu3 %v8349_v36  ;;  %5402 = vmatpush.bf16.msrb.mxu2 %v8685_v29  ;;  %v8317_v33 = vor.u32 %v9713_v16, %v8316_v18  ;;  %v8033_v29 = vor.u32 %v9639_v5, %v8030_v61  ;;  %v8269_v18 = vor.u32 %v9701_v43, %v8268_v2  ;;  %v9845_v5 = vld [vmem:[#allocation7 + $0x794] sm:$0xf0]  ;;  %v8590_v2 = vld [vmem:[#allocation7 + $0x598] sm:$0xf0] }
 0x306   :  { %5378 = vmatpush.bf16.msrb.mxu0 %v8397_v8  ;;  %v5172_v31 = vpop.f32.mrf.mxu0  ;;  %v9797_v8 = vld [vmem:[#allocation7 + $0x614] sm:$0xf0]  ;;  %v8225_v16 = vor.u32 %v9687_v51, %v8222_v23  ;;  %v9743_v23 = vld [vmem:[#allocation7 + $0x46c] sm:$0xf] }
 0x307   :  { %v5173_v39 = vadd.f32 %v5172_v31, %v10326_v40  ;;  %v8653_v50 = vor.u32 %v9797_v8, %v8652_v38  ;;  %v8284_v40 = vld [vmem:[#allocation7 + $0x328] sm:$0xf]  ;;  %v9853_v38 = vld [vmem:[#allocation7 + $0x7d4] sm:$0xf0] }
 0x308   :  { %5391 = vmatpush.bf16.msrb.mxu1 %v8525_v32  ;;  %v5185_v42 = vpop.f32.mrf.mxu1  ;;  %v9709_v32 = vld [vmem:[#allocation7 + $0x354] sm:$0xf0]  ;;  %v8285_v63 = vor.u32 %v9705_v35, %v8284_v40  ;;  %v8606_v35 = vld [vmem:[#allocation7 + $0x5b8] sm:$0xf0] }
 0x309   :  { %5379 = vmatmul.bf16.vlgmr.msrb.gmra.mxu0 %v10282_v19  ;;  %5361 = vmatpush.bf16.msra.mxu3 %v8333_v24  ;;  %v10333_v49 = vadd.f32 %v5185_v42, %v5173_v39  ;;  %v8301_v0 = vor.u32 %v9709_v32, %v8300_v37  ;;  %v9635_v24 = vld [vmem:[#allocation7 + $0x10c] sm:$0xf]  ;;  %v8876_v37 = vld [vmem:[#allocation7 + $0x7c8] sm:$0xf]  ;;  %v8494_v42 = vld [vmem:[#allocation7 + $0x4d8] sm:$0xf0] }
 0x30a   :  { %5423 = vmatpush.bf16.msra.mxu0 %v8001_v44  ;;  %v9695_v44 = vld [vmem:[#allocation7 + $0x2ec] sm:$0xf]  ;;  %5403 = vmatpush.bf16.msrb.mxu2 %v8669_v54  ;;  %v7889_v54 = vor.u32 %v9603_v20, %v7886_v11  ;;  %v8017_v31 = vor.u32 %v9635_v24, %v8014_v13  ;;  %v8574_v24 = vld [vmem:[#allocation7 + $0x578] sm:$0xf0] }
 0x30b   :  { %5392 = vmatmul.bf16.vlgmr.msrb.gmra.mxu1 %v10284_v53  ;;  %v8257_v14 = vor.u32 %v9695_v44, %v8254_v45  ;;  %v9755_v39 = vld [vmem:[#allocation7 + $0x4cc] sm:$0xf]  ;;  %v8622_v44 = vld [vmem:[#allocation7 + $0x5d8] sm:$0xf0]  ;;  %v8877_v45 = vor.u32 %v9853_v38, %v8876_v37 }
 0x30c   :  { %5436 = vmatpush.bf16.msra.mxu1 %v8129_v48  ;;  %v7918_v48 = vld [vmem:[#allocation7 + $0x58] sm:$0xf0]  ;;  %v9787_v32 = vld [vmem:[#allocation7 + $0x5cc] sm:$0xf] }
 0x30d   :  { %5362 = vmatpush.bf16.msra.mxu3 %v8317_v33  ;;  %v7921_v12 = vor.u32 %v9611_v34, %v7918_v48  ;;  %v8190_v34 = vld [vmem:[#allocation7 + $0x278] sm:$0xf0]  ;;  %v8497_v48 = vor.u32 %v9755_v39, %v8494_v42  ;;  %v8625_v10 = vor.u32 %v9787_v32, %v8622_v44  ;;  %v9775_v11 = vld [vmem:[#allocation7 + $0x56c] sm:$0xf]  ;;  %v8796_v32 = vld [vmem:[#allocation7 + $0x728] sm:$0xf] }
 0x30e   :  { %5424 = vmatpush.bf16.msra.mxu0 %v7985_v55  ;;  %v9691_v55 = vld [vmem:[#allocation7 + $0x2cc] sm:$0xf]  ;;  %5404 = vmatpush.bf16.msrb.mxu2 %v8653_v50  ;;  %v5174_v62 = vpop.f32.mrf.mxu0  ;;  %v8860_v50 = vld [vmem:[#allocation7 + $0x7a8] sm:$0xf]  ;;  %v8430_v37 = vld [vmem:[#allocation7 + $0x458] sm:$0xf0] }
 0x30f   :  { %v8241_v36 = vor.u32 %v9691_v55, %v8238_v56  ;;  %v8861_v55 = vor.u32 %v9849_v25, %v8860_v50  ;;  %v9675_v56 = vld [vmem:[#allocation7 + $0x24c] sm:$0xf]  ;;  %v8558_v39 = vld [vmem:[#allocation7 + $0x558] sm:$0xf0] }
 0x310   :  { %5437 = vmatpush.bf16.msra.mxu1 %v8113_v59  ;;  %v9607_v59 = vld [vmem:[#allocation7 + $0x2c] sm:$0xf]  ;;  %v5187_v3 = vpop.f32.mrf.mxu1  ;;  %v8414_v25 = vld [vmem:[#allocation7 + $0x438] sm:$0xf0] }
 0x311   :  { %5363 = vmatpush.bf16.msra.mxu3 %v8301_v0  ;;  %v7905_v22 = vor.u32 %v9607_v59, %v7902_v60  ;;  %5405 = vmatmul.bf16.vlgmr.msrb.gmra.mxu2 %v10306_v28  ;;  %v9751_v0 = vld [vmem:[#allocation7 + $0x4ac] sm:$0xf]  ;;  %v8844_v60 = vld [vmem:[#allocation7 + $0x788] sm:$0xf]  ;;  %v8158_v3 = vld [vmem:[#allocation7 + $0x238] sm:$0xf0] }
 0x312   :  { %5425 = vmatpush.bf16.msra.mxu0 %v7969_v26  ;;  %5449 = vmatpush.bf16.msra.mxu2 %v8257_v14  ;;  %v8892_v26 = vld [vmem:[#allocation7 + $0x7e8] sm:$0xf]  ;;  %v8478_v14 = vld [vmem:[#allocation7 + $0x4b8] sm:$0xf0]  ;;  %v9747_v62 = vld [vmem:[#allocation7 + $0x48c] sm:$0xf]  ;;  %v8845_v43 = vor.u32 %v9845_v5, %v8844_v60 }
 0x313   :  { %v8481_v59 = vor.u32 %v9751_v0, %v8478_v14  ;;  %v9735_v50 = vld [vmem:[#allocation7 + $0x42c] sm:$0xf]  ;;  %v8542_v0 = vld [vmem:[#allocation7 + $0x538] sm:$0xf0] }
 0x314   :  { %5438 = vmatpush.bf16.msra.mxu1 %v8097_v6  ;;  %v9857_v6 = vld [vmem:[#allocation7 + $0x7f4] sm:$0xf0]  ;;  %v8382_v60 = vld [vmem:[#allocation7 + $0x3f8] sm:$0xf0]  ;;  %v9815_v5 = vld [vmem:[#allocation7 + $0x6ac] sm:$0xf] }
 0x315   :  { %5364 = vmatpush.bf16.msra.mxu3 %v8285_v63  ;;  %v8893_v52 = vor.u32 %v9857_v6, %v8892_v26  ;;  %v8462_v63 = vld [vmem:[#allocation7 + $0x498] sm:$0xf0]  ;;  %v9671_v26 = vld [vmem:[#allocation7 + $0x22c] sm:$0xf]  ;;  %v9841_v6 = vld [vmem:[#allocation7 + $0x774] sm:$0xf0] }
 0x316   :  { %5426 = vmatpush.bf16.msra.mxu0 %v7953_v17  ;;  %v8510_v17 = vld [vmem:[#allocation7 + $0x4f8] sm:$0xf0]  ;;  %5450 = vmatpush.bf16.msra.mxu2 %v8241_v36  ;;  %v9779_v36 = vld [vmem:[#allocation7 + $0x58c] sm:$0xf]  ;;  %v8161_v20 = vor.u32 %v9671_v26, %v8158_v3  ;;  %v9873_v26 = vld [vmem:[#allocation8 + $0x74] sm:$0xf0] }
 0x317   :  { %v8513_v33 = vor.u32 %v9759_v15, %v8510_v17  ;;  %v8593_v51 = vor.u32 %v9779_v36, %v8590_v2  ;;  %v8812_v17 = vld [vmem:[#allocation7 + $0x748] sm:$0xf]  ;;  %v9763_v36 = vld [vmem:[#allocation7 + $0x50c] sm:$0xf]  ;;  %v8526_v2 = vld [vmem:[#allocation7 + $0x518] sm:$0xf0] }
 0x318   :  { %5439 = vmatpush.bf16.msra.mxu1 %v8081_v47  ;;  %v9791_v47 = vld [vmem:[#allocation7 + $0x5ec] sm:$0xf] }
 0x319   :  { %v8641_v8 = vor.u32 %v9791_v47, %v8638_v21  ;;  %5365 = vmatpush.bf16.msra.mxu3 %v8269_v18  ;;  %v9667_v18 = vld [vmem:[#allocation7 + $0x20c] sm:$0xf] }
 0x31a   :  { %5427 = vmatpush.bf16.msra.mxu0 %v7937_v7  ;;  %5451 = vmatpush.bf16.msra.mxu2 %v8225_v16  ;;  %v8209_v7 = vor.u32 %v9683_v58, %v8206_v30  ;;  %v8142_v16 = vld [vmem:[#allocation7 + $0x218] sm:$0xf0] }
 0x31b   :  { %v8766_v58 = vld [vmem:[#allocation7 + $0x6f8] sm:$0xf0]  ;;  %v8145_v38 = vor.u32 %v9667_v18, %v8142_v16  ;;  %v9807_v18 = vld [vmem:[#allocation7 + $0x66c] sm:$0xf] }
 0x31c   :  { %5440 = vmatpush.bf16.msra.mxu1 %v8065_v41  ;;  %v9679_v41 = vld [vmem:[#allocation7 + $0x26c] sm:$0xf]  ;;  %5366 = vmatmul.bf16.vlgmr.msra.gmra.mxu3 %v10261_v9  ;;  %v8702_v16 = vld [vmem:[#allocation7 + $0x678] sm:$0xf0] }
 0x31d   :  { %5410 = vmatpush.bf16.msrb.mxu3 %v8893_v52  ;;  %v8193_v40 = vor.u32 %v9679_v41, %v8190_v34  ;;  %v9837_v52 = vld [vmem:[#allocation7 + $0x754] sm:$0xf0]  ;;  %v9819_v41 = vld [vmem:[#allocation7 + $0x6cc] sm:$0xf]  ;;  %v8750_v34 = vld [vmem:[#allocation7 + $0x6d8] sm:$0xf0] }
 0x31e   :  { %5428 = vmatpush.bf16.msra.mxu0 %v7921_v12  ;;  %5452 = vmatpush.bf16.msra.mxu2 %v8209_v7  ;;  %v9783_v12 = vld [vmem:[#allocation7 + $0x5ac] sm:$0xf]  ;;  %v8813_v42 = vor.u32 %v9837_v52, %v8812_v17 }
 0x31f   :  { %v8609_v61 = vor.u32 %v9783_v12, %v8606_v35  ;;  %v8753_v12 = vor.u32 %v9819_v41, %v8750_v34  ;;  %v8780_v35 = vld [vmem:[#allocation7 + $0x708] sm:$0xf] }
 0x320   :  { %5441 = vmatpush.bf16.msra.mxu1 %v8049_v57  ;;  %v8174_v57 = vld [vmem:[#allocation7 + $0x258] sm:$0xf0]  ;;  %v9867_v41 = vld [vmem:[#allocation8 + $0x44] sm:$0xf0] }
 0x321   :  { %5411 = vmatpush.bf16.msrb.mxu3 %v8877_v45  ;;  %v9833_v45 = vld [vmem:[#allocation7 + $0x734] sm:$0xf0] }
 0x322   :  { %5429 = vmatpush.bf16.msra.mxu0 %v7905_v22  ;;  %5453 = vmatpush.bf16.msra.mxu2 %v8193_v40  ;;  %v8828_v22 = vld [vmem:[#allocation7 + $0x768] sm:$0xf]  ;;  %v8797_v40 = vor.u32 %v9833_v45, %v8796_v32  ;;  %v9020_v32 = vld [vmem:[#allocation8 + $0xf0] sm:$0xf]  ;;  %v8932_v45 = vld [vmem:[#allocation8 + $0x40] sm:$0xf] }
 0x323   :  { %v8829_v15 = vor.u32 %v9841_v6, %v8828_v22 }
 0x324   :  { %5442 = vmatpush.bf16.msra.mxu1 %v8033_v29  ;;  %v8446_v29 = vld [vmem:[#allocation7 + $0x478] sm:$0xf0] }
 0x325   :  { %5412 = vmatpush.bf16.msrb.mxu3 %v8861_v55  ;;  %v8449_v21 = vor.u32 %v9743_v23, %v8446_v29  ;;  %v9829_v55 = vld [vmem:[#allocation7 + $0x714] sm:$0xf0]  ;;  %v8718_v23 = vld [vmem:[#allocation7 + $0x698] sm:$0xf0]  ;;  %v8529_v29 = vor.u32 %v9763_v36, %v8526_v2  ;;  %v9004_v2 = vld [vmem:[#allocation8 + $0xd0] sm:$0xf] }
 0x326   :  { %5430 = vmatpush.bf16.msra.mxu0 %v7889_v54  ;;  %v5224_v13 = vpop.f32.mrf.mxu0  ;;  %v9823_v54 = vld [vmem:[#allocation7 + $0x6ec] sm:$0xf]  ;;  %v8781_v3 = vor.u32 %v9829_v55, %v8780_v35  ;;  %v9865_v35 = vld [vmem:[#allocation8 + $0x34] sm:$0xf0] }
 0x327   :  { %v8769_v7 = vor.u32 %v9823_v54, %v8766_v58  ;;  %v8940_v54 = vld [vmem:[#allocation8 + $0x50] sm:$0xf]  ;;  %v9869_v58 = vld [vmem:[#allocation8 + $0x54] sm:$0xf0] }
 0x328   :  { %5443 = vmatpush.bf16.msra.mxu1 %v8017_v31  ;;  %v5237_v47 = vpop.f32.mrf.mxu1  ;;  %v8577_v31 = vor.u32 %v9775_v11, %v8574_v24  ;;  %v8948_v24 = vld [vmem:[#allocation8 + $0x60] sm:$0xf] }
 0x329   :  { %5431 = vmatmul.bf16.vlgmr.msra.gmra.mxu0 %v10255_v4  ;;  %v8177_v4 = vor.u32 %v9675_v56, %v8174_v57  ;;  %5413 = vmatpush.bf16.msrb.mxu3 %v8845_v43  ;;  %v10339_v30 = vadd.f32 %v5237_v47, %v5224_v13  ;;  %v9727_v56 = vld [vmem:[#allocation7 + $0x3ec] sm:$0xf]  ;;  %v8956_v43 = vld [vmem:[#allocation8 + $0x70] sm:$0xf]  ;;  %v9871_v13 = vld [vmem:[#allocation8 + $0x64] sm:$0xf0] }
 0x32a   :  { %5475 = vmatpush.bf16.msrb.mxu0 %v8513_v33  ;;  %v9739_v33 = vld [vmem:[#allocation7 + $0x44c] sm:$0xf]  ;;  %v8385_v22 = vor.u32 %v9727_v56, %v8382_v60  ;;  %v8957_v11 = vor.u32 %v9873_v26, %v8956_v43  ;;  %v8949_v52 = vor.u32 %v9871_v13, %v8948_v24  ;;  %v9885_v43 = vld [vmem:[#allocation8 + $0xd4] sm:$0xf0]  ;;  %v8916_v26 = vld [vmem:[#allocation8 + $0x20] sm:$0xf] }
 0x32b   :  { %5444 = vmatmul.bf16.vlgmr.msra.gmra.mxu1 %v10257_v1  ;;  %v8465_v1 = vor.u32 %v9747_v62, %v8462_v63  ;;  %5454 = vmatpush.bf16.msra.mxu2 %v8177_v4  ;;  %v8433_v44 = vor.u32 %v9739_v33, %v8430_v37  ;;  %v9731_v63 = vld [vmem:[#allocation7 + $0x40c] sm:$0xf]  ;;  %v8398_v4 = vld [vmem:[#allocation7 + $0x418] sm:$0xf0]  ;;  %v9861_v24 = vld [vmem:[#allocation8 + $0x14] sm:$0xf0] }
 0x32c   :  { %5488 = vmatpush.bf16.msrb.mxu1 %v8641_v8  ;;  %v9771_v8 = vld [vmem:[#allocation7 + $0x54c] sm:$0xf]  ;;  %v8401_v6 = vor.u32 %v9731_v63, %v8398_v4  ;;  %v8302_v4 = vld [vmem:[#allocation7 + $0x358] sm:$0xf0] }
 0x32d   :  { %5414 = vmatpush.bf16.msrb.mxu3 %v8829_v15  ;;  %v9719_v47 = vld [vmem:[#allocation7 + $0x3ac] sm:$0xf] }
 0x32e   :  { %5476 = vmatpush.bf16.msrb.mxu0 %v8497_v48  ;;  %v8561_v48 = vor.u32 %v9771_v8, %v8558_v39  ;;  %v5226_v14 = vpop.f32.mrf.mxu0  ;;  %v10345_v33 = vpop.f32.mrf.mxu2  ;;  %v9803_v8 = vld [vmem:[#allocation7 + $0x64c] sm:$0xf]  ;;  %v8686_v39 = vld [vmem:[#allocation7 + $0x658] sm:$0xf0] }
 0x32f   :  { %5455 = vmatpush.bf16.msra.mxu2 %v8161_v20  ;;  %v9723_v20 = vld [vmem:[#allocation7 + $0x3cc] sm:$0xf]  ;;  %v9012_v14 = vld [vmem:[#allocation8 + $0xe0] sm:$0xf] }
 0x330   :  { %5489 = vmatpush.bf16.msrb.mxu1 %v8625_v10  ;;  %v9767_v10 = vld [vmem:[#allocation7 + $0x52c] sm:$0xf]  ;;  %v5239_v57 = vpop.f32.mrf.mxu1 }
 0x331   :  { %5415 = vmatpush.bf16.msrb.mxu3 %v8813_v42  ;;  %v8545_v62 = vor.u32 %v9767_v10, %v8542_v0  ;;  %v8334_v42 = vld [vmem:[#allocation7 + $0x398] sm:$0xf0]  ;;  %v8933_v0 = vor.u32 %v9867_v41, %v8932_v45  ;;  %v8980_v41 = vld [vmem:[#allocation8 + $0xa0] sm:$0xf] }
 0x332   :  { %5477 = vmatpush.bf16.msrb.mxu0 %v8481_v59  ;;  %v8417_v59 = vor.u32 %v9735_v50, %v8414_v25  ;;  %v9711_v50 = vld [vmem:[#allocation7 + $0x36c] sm:$0xf]  ;;  %v8670_v25 = vld [vmem:[#allocation7 + $0x638] sm:$0xf0] }
 0x333   :  { %5456 = vmatpush.bf16.msra.mxu2 %v8145_v38  ;;  %v9715_v38 = vld [vmem:[#allocation7 + $0x38c] sm:$0xf]  ;;  %v8318_v10 = vld [vmem:[#allocation7 + $0x378] sm:$0xf0] }
 0x334   :  { %5490 = vmatpush.bf16.msrb.mxu1 %v8609_v61  ;;  %v8734_v61 = vld [vmem:[#allocation7 + $0x6b8] sm:$0xf0]  ;;  %v8321_v60 = vor.u32 %v9711_v50, %v8318_v10 }
 0x335   :  { %5416 = vmatpush.bf16.msrb.mxu3 %v8797_v40  ;;  %v9887_v40 = vld [vmem:[#allocation8 + $0xe4] sm:$0xf0] }
 0x336   :  { %5478 = vmatpush.bf16.msrb.mxu0 %v8465_v1  ;;  %5457 = vmatmul.bf16.vlgmr.msra.gmra.mxu2 %v10259_v27  ;;  %v8737_v1 = vor.u32 %v9815_v5, %v8734_v61  ;;  %v8366_v27 = vld [vmem:[#allocation7 + $0x3d8] sm:$0xf0]  ;;  %v9013_v55 = vor.u32 %v9887_v40, %v9012_v14  ;;  %v9707_v5 = vld [vmem:[#allocation7 + $0x34c] sm:$0xf]  ;;  %v8972_v14 = vld [vmem:[#allocation8 + $0x90] sm:$0xf] }
 0x337   :  { %5501 = vmatpush.bf16.msrb.mxu2 %v8769_v7  ;;  %v8369_v17 = vor.u32 %v9723_v20, %v8366_v27  ;;  %v8941_v7 = vor.u32 %v9869_v58, %v8940_v54  ;;  %v9795_v61 = vld [vmem:[#allocation7 + $0x60c] sm:$0xf]  ;;  %v8996_v20 = vld [vmem:[#allocation8 + $0xc0] sm:$0xf]  ;;  %v9883_v27 = vld [vmem:[#allocation8 + $0xc4] sm:$0xf0] }
 0x338   :  { %5491 = vmatpush.bf16.msrb.mxu1 %v8593_v51  ;;  %v9811_v51 = vld [vmem:[#allocation7 + $0x68c] sm:$0xf]  ;;  %v8997_v13 = vor.u32 %v9883_v27, %v8996_v20  ;;  %v8988_v58 = vld [vmem:[#allocation8 + $0xb0] sm:$0xf]  ;;  %v9877_v40 = vld [vmem:[#allocation8 + $0x94] sm:$0xf0] }
 0x339   :  { %5417 = vmatpush.bf16.msrb.mxu3 %v8781_v3  ;;  %v8721_v15 = vor.u32 %v9811_v51, %v8718_v23  ;;  %v9863_v3 = vld [vmem:[#allocation8 + $0x24] sm:$0xf0]  ;;  %v9703_v51 = vld [vmem:[#allocation7 + $0x32c] sm:$0xf]  ;;  %v8286_v23 = vld [vmem:[#allocation7 + $0x338] sm:$0xf0] }
 0x33a   :  { %5479 = vmatpush.bf16.msrb.mxu0 %v8449_v21  ;;  %v8350_v21 = vld [vmem:[#allocation7 + $0x3b8] sm:$0xf0]  ;;  %v9886_v27 = vld [vmem:[#allocation8 + $0xe4] sm:$0xf] }
 0x33b   :  { %5502 = vmatpush.bf16.msrb.mxu2 %v8753_v12  ;;  %v8353_v37 = vor.u32 %v9719_v47, %v8350_v21  ;;  %v8924_v12 = vld [vmem:[#allocation8 + $0x30] sm:$0xf]  ;;  %v8270_v47 = vld [vmem:[#allocation7 + $0x318] sm:$0xf0] }
 0x33c   :  { %5492 = vmatpush.bf16.msrb.mxu1 %v8577_v31  ;;  %5418 = vmatmul.bf16.vlgmr.msrb.gmra.mxu3 %v10320_v46  ;;  %v8705_v31 = vor.u32 %v9807_v18, %v8702_v16  ;;  %v8925_v36 = vor.u32 %v9865_v35, %v8924_v12  ;;  %v8289_v18 = vor.u32 %v9703_v51, %v8286_v23  ;;  %v9699_v16 = vld [vmem:[#allocation7 + $0x30c] sm:$0xf]  ;;  %v8862_v35 = vld [vmem:[#allocation7 + $0x7b8] sm:$0xf0] }
 0x33d   :  { %5462 = vmatpush.bf16.msra.mxu3 %v8385_v22  ;;  %v9847_v12 = vld [vmem:[#allocation7 + $0x7ac] sm:$0xf] }
 0x33e   :  { %5480 = vmatpush.bf16.msrb.mxu0 %v8433_v44  ;;  %v9889_v44 = vld [vmem:[#allocation8 + $0xf4] sm:$0xf0]  ;;  %v9839_v23 = vld [vmem:[#allocation7 + $0x76c] sm:$0xf] }
 0x33f   :  { %5503 = vmatpush.bf16.msrb.mxu2 %v8737_v1  ;;  %v9021_v34 = vor.u32 %v9889_v44, %v9020_v32  ;;  %v9005_v1 = vor.u32 %v9885_v43, %v9004_v2  ;;  %v8273_v32 = vor.u32 %v9699_v16, %v8270_v47  ;;  %v9835_v47 = vld [vmem:[#allocation7 + $0x74c] sm:$0xf] }
 0x340   :  { %5493 = vmatpush.bf16.msrb.mxu1 %v8561_v48  ;;  %v8337_v48 = vor.u32 %v9715_v38, %v8334_v42  ;;  %v8900_v38 = vld [vmem:[#allocation8] sm:$0xf]  ;;  %v9872_v42 = vld [vmem:[#allocation8 + $0x74] sm:$0xf] }
 0x341   :  { %5463 = vmatpush.bf16.msra.mxu3 %v8369_v17 }
 0x342   :  { %5481 = vmatpush.bf16.msrb.mxu0 %v8417_v59  ;;  %v5200_v59 = vpop.f32.mrf.mxu2 }
 0x343   :  { %5504 = vmatpush.bf16.msrb.mxu2 %v8721_v15  ;;  %v9868_v59 = vld [vmem:[#allocation8 + $0x54] sm:$0xf] }
 0x344   :  { %5494 = vmatpush.bf16.msrb.mxu1 %v8545_v62  ;;  %v8654_v62 = vld [vmem:[#allocation7 + $0x618] sm:$0xf0] }
 0x345   :  { %5464 = vmatpush.bf16.msra.mxu3 %v8353_v37  ;;  %v8657_v22 = vor.u32 %v9795_v61, %v8654_v62  ;;  %v8894_v37 = vld [vmem:[#allocation7 + $0x7f8] sm:$0xf0]  ;;  %v9843_v61 = vld [vmem:[#allocation7 + $0x78c] sm:$0xf]  ;;  %v8964_v62 = vld [vmem:[#allocation8 + $0x80] sm:$0xf] }
 0x346   :  { %5482 = vmatpush.bf16.msrb.mxu0 %v8401_v6  ;;  %v10347_v57 = vpop.f32.mrf.mxu0  ;;  %v8305_v6 = vor.u32 %v9707_v5, %v8302_v4  ;;  %v8865_v5 = vor.u32 %v9847_v12, %v8862_v35  ;;  %v9875_v4 = vld [vmem:[#allocation8 + $0x84] sm:$0xf0]  ;;  %v8782_v12 = vld [vmem:[#allocation7 + $0x718] sm:$0xf0] }
 0x347   :  { %5505 = vmatpush.bf16.msrb.mxu2 %v8705_v31  ;;  %v9881_v31 = vld [vmem:[#allocation8 + $0xb4] sm:$0xf0]  ;;  %v8965_v43 = vor.u32 %v9875_v4, %v8964_v62  ;;  %v9878_v4 = vld [vmem:[#allocation8 + $0xa4] sm:$0xf] }
 0x348   :  { %5495 = vmatpush.bf16.msrb.mxu1 %v8529_v29  ;;  %v10349_v63 = vpop.f32.mrf.mxu1  ;;  %v8917_v29 = vor.u32 %v9863_v3, %v8916_v26  ;;  %v9888_v26 = vld [vmem:[#allocation8 + $0xf4] sm:$0xf]  ;;  %v9022_v3 = vld [vmem:[#allocation8 + $0xf8] sm:$0xf0] }
 0x349   :  { %5483 = vmatmul.bf16.vlgmr.msrb.gmra.mxu0 %v10282_v19  ;;  %v8689_v19 = vor.u32 %v9803_v8, %v8686_v39  ;;  %5465 = vmatpush.bf16.msra.mxu3 %v8337_v48  ;;  %v9859_v8 = vld [vmem:[#allocation8 + $0x4] sm:$0xf0]  ;;  %v8989_v39 = vor.u32 %v9881_v31, %v8988_v58  ;;  %v8878_v48 = vld [vmem:[#allocation7 + $0x7d8] sm:$0xf0]  ;;  %v9884_v31 = vld [vmem:[#allocation8 + $0xd4] sm:$0xf] }
 0x34a   :  { %5927 = vmatpush.bf16.msra.mxu0 %v8957_v11  ;;  %v8908_v11 = vld [vmem:[#allocation8 + $0x10] sm:$0xf]  ;;  %v10351_v17 = vpop.f32.mrf.mxu2  ;;  %v8901_v45 = vor.u32 %v9859_v8, %v8900_v38 }
 0x34b   :  { %5496 = vmatmul.bf16.vlgmr.msrb.gmra.mxu1 %v10284_v53  ;;  %v9799_v53 = vld [vmem:[#allocation7 + $0x62c] sm:$0xf]  ;;  %5506 = vmatpush.bf16.msrb.mxu2 %v8689_v19  ;;  %v8909_v54 = vor.u32 %v9861_v24, %v8908_v11  ;;  %v9864_v24 = vld [vmem:[#allocation8 + $0x34] sm:$0xf] }
 0x34c   :  { %5940 = vmatpush.bf16.msra.mxu1 %v9021_v34  ;;  %v8673_v56 = vor.u32 %v9799_v53, %v8670_v25  ;;  %v9879_v34 = vld [vmem:[#allocation8 + $0xa4] sm:$0xf0]  ;;  %v9851_v19 = vld [vmem:[#allocation7 + $0x7cc] sm:$0xf]  ;;  %v9870_v25 = vld [vmem:[#allocation8 + $0x64] sm:$0xf] }
 0x34d   :  { %5466 = vmatpush.bf16.msra.mxu3 %v8321_v60  ;;  %v8981_v53 = vor.u32 %v9879_v34, %v8980_v41  ;;  %v8942_v60 = vld [vmem:[#allocation8 + $0x58] sm:$0xf0]  ;;  %v9014_v11 = vld [vmem:[#allocation8 + $0xe8] sm:$0xf0] }
 0x34e   :  { %5928 = vmatpush.bf16.msra.mxu0 %v8949_v52  ;;  %v5278_v15 = vpop.f32.mrf.mxu0  ;;  %v9855_v52 = vld [vmem:[#allocation7 + $0x7ec] sm:$0xf]  ;;  %v8945_v2 = vor.u32 %v9868_v59, %v8942_v60  ;;  %v8798_v34 = vld [vmem:[#allocation7 + $0x738] sm:$0xf0]  ;;  %v9880_v59 = vld [vmem:[#allocation8 + $0xb4] sm:$0xf] }
 0x34f   :  { %5507 = vmatpush.bf16.msrb.mxu2 %v8673_v56  ;;  %v8897_v44 = vor.u32 %v9855_v52, %v8894_v37  ;;  %v8973_v56 = vor.u32 %v9877_v40, %v8972_v14  ;;  %v9017_v15 = vor.u32 %v9886_v27, %v9014_v11  ;;  %v9006_v37 = vld [vmem:[#allocation8 + $0xd8] sm:$0xf0]  ;;  %v9831_v41 = vld [vmem:[#allocation7 + $0x72c] sm:$0xf]  ;;  %v9874_v27 = vld [vmem:[#allocation8 + $0x84] sm:$0xf] }
 0x350   :  { %5941 = vmatpush.bf16.msra.mxu1 %v9013_v55  ;;  %v5291_v21 = vpop.f32.mrf.mxu1  ;;  %v8801_v14 = vor.u32 %v9831_v41, %v8798_v34  ;;  %v9827_v40 = vld [vmem:[#allocation7 + $0x70c] sm:$0xf]  ;;  %v8990_v60 = vld [vmem:[#allocation8 + $0xb8] sm:$0xf0]  ;;  %v9052_v41 = vld [vmem:[#allocation8 + $0x130] sm:$0xf] }
 0x351   :  { %5467 = vmatpush.bf16.msra.mxu3 %v8305_v6  ;;  %v9025_v6 = vor.u32 %v9888_v26, %v9022_v3  ;;  %v5199_v21 = vadd.f32 %v10345_v33, %v10333_v49  ;;  %v8993_v62 = vor.u32 %v9880_v59, %v8990_v60  ;;  %v9876_v3 = vld [vmem:[#allocation8 + $0x94] sm:$0xf]  ;;  %v9897_v34 = vld [vmem:[#allocation8 + $0x134] sm:$0xf0]  ;;  %v9902_v59 = vld [vmem:[#allocation8 + $0x164] sm:$0xf] }
 0x352   :  { %5929 = vmatpush.bf16.msra.mxu0 %v8941_v7  ;;  %v8958_v7 = vld [vmem:[#allocation8 + $0x78] sm:$0xf0]  ;;  %v5252_v10 = vpop.f32.mrf.mxu2  ;;  %v9078_v60 = vld [vmem:[#allocation8 + $0x168] sm:$0xf0] }
 0x353   :  { %5508 = vmatpush.bf16.msrb.mxu2 %v8657_v22  ;;  %v8961_v50 = vor.u32 %v9872_v42, %v8958_v7  ;;  %v8934_v22 = vld [vmem:[#allocation8 + $0x48] sm:$0xf0]  ;;  %v9009_v7 = vor.u32 %v9884_v31, %v9006_v37 }
 0x354   :  { %5942 = vmatpush.bf16.msra.mxu1 %v9005_v1  ;;  %v9866_v1 = vld [vmem:[#allocation8 + $0x44] sm:$0xf]  ;;  %v8918_v42 = vld [vmem:[#allocation8 + $0x28] sm:$0xf0] }
 0x355   :  { %5468 = vmatpush.bf16.msra.mxu3 %v8289_v18  ;;  %v8937_v20 = vor.u32 %v9866_v1, %v8934_v22  ;;  %v8974_v1 = vld [vmem:[#allocation8 + $0x98] sm:$0xf0] }
 0x356   :  { %5930 = vmatpush.bf16.msra.mxu0 %v8933_v0  ;;  %5509 = vmatmul.bf16.vlgmr.msrb.gmra.mxu2 %v10306_v28  ;;  %v8950_v28 = vld [vmem:[#allocation8 + $0x68] sm:$0xf0]  ;;  %v8881_v0 = vor.u32 %v9851_v19, %v8878_v48  ;;  %v9882_v19 = vld [vmem:[#allocation8 + $0xc4] sm:$0xf]  ;;  %v9860_v48 = vld [vmem:[#allocation8 + $0x14] sm:$0xf]  ;;  %v8977_v22 = vor.u32 %v9876_v3, %v8974_v1 }
 0x357   :  { %v8953_v55 = vor.u32 %v9870_v25, %v8950_v28  ;;  %v9898_v3 = vld [vmem:[#allocation8 + $0x144] sm:$0xf]  ;;  %v9062_v1 = vld [vmem:[#allocation8 + $0x148] sm:$0xf0] }
 0x358   :  { %5943 = vmatpush.bf16.msra.mxu1 %v8997_v13  ;;  %v8926_v13 = vld [vmem:[#allocation8 + $0x38] sm:$0xf0] }
 0x359   :  { %5469 = vmatpush.bf16.msra.mxu3 %v8273_v32  ;;  %v8929_v58 = vor.u32 %v9864_v24, %v8926_v13  ;;  %v8966_v24 = vld [vmem:[#allocation8 + $0x88] sm:$0xf0] }
 0x35a   :  { %5931 = vmatpush.bf16.msra.mxu0 %v8925_v36  ;;  %v8846_v36 = vld [vmem:[#allocation7 + $0x798] sm:$0xf0]  ;;  %v10355_v51 = vpop.f32.mrf.mxu2  ;;  %v8969_v13 = vor.u32 %v9874_v27, %v8966_v24  ;;  %v9046_v24 = vld [vmem:[#allocation8 + $0x128] sm:$0xf0] }
 0x35c   :  { %5944 = vmatpush.bf16.msra.mxu1 %v8989_v39  ;;  %5470 = vmatmul.bf16.vlgmr.msra.gmra.mxu3 %v10261_v9  ;;  %v8849_v9 = vor.u32 %v9843_v61, %v8846_v36  ;;  %v9862_v39 = vld [vmem:[#allocation8 + $0x24] sm:$0xf]  ;;  %v8902_v61 = vld [vmem:[#allocation8 + $0x8] sm:$0xf0] }
 0x35d   :  { %5514 = vmatpush.bf16.msrb.mxu3 %v8897_v44  ;;  %v5211_v8 = vpop.f32.mrf.mxu3  ;;  %v8921_v33 = vor.u32 %v9862_v39, %v8918_v42  ;;  %v8982_v36 = vld [vmem:[#allocation8 + $0xa8] sm:$0xf0]  ;;  %v9899_v39 = vld [vmem:[#allocation8 + $0x144] sm:$0xf0] }
 0x35e   :  { %5932 = vmatpush.bf16.msra.mxu0 %v8917_v29  ;;  %v8830_v29 = vld [vmem:[#allocation7 + $0x778] sm:$0xf0]  ;;  %v5212_v32 = vadd.f32 %v5211_v8, %v5199_v21  ;;  %v8985_v26 = vor.u32 %v9878_v4, %v8982_v36  ;;  %v9060_v8 = vld [vmem:[#allocation8 + $0x140] sm:$0xf] }
 0x35f   :  { %v8833_v16 = vor.u32 %v9839_v23, %v8830_v29  ;;  %v9084_v29 = vld [vmem:[#allocation8 + $0x170] sm:$0xf]  ;;  %v9070_v4 = vld [vmem:[#allocation8 + $0x158] sm:$0xf0] }
 0x360   :  { %5945 = vmatpush.bf16.msra.mxu1 %v8981_v53  ;;  %vm5527_vm8 = vcmp.gt.f32.partialorder %v5212_v32, 0.0  ;;  %v5531_v49 = vmul.f32 0.2, %v5212_v32  ;;  %v8998_v53 = vld [vmem:[#allocation8 + $0xc8] sm:$0xf0] }
 0x361   :  { %5515 = vmatpush.bf16.msrb.mxu3 %v8881_v0  ;;  %v9001_v28 = vor.u32 %v9882_v19, %v8998_v53  ;;  %v9044_v19 = vld [vmem:[#allocation8 + $0x120] sm:$0xf] }
 0x362   :  { %5933 = vmatpush.bf16.msra.mxu0 %v8909_v54  ;;  %v8814_v54 = vld [vmem:[#allocation7 + $0x758] sm:$0xf0]  ;;  %v5304_v44 = vpop.f32.mrf.mxu2  ;;  %v5535_v25 = vsel %vm5527_vm8, %v5212_v32, %v5531_v49 }
 0x363   :  { %v5539_v10 = vpack.c.bf16 %v5535_v25, %v5535_v25  ;;  %v9036_v25 = vld [vmem:[#allocation8 + $0x110] sm:$0xf] }
 0x364   :  { %5946 = vmatpush.bf16.msra.mxu1 %v8973_v56  ;;  %v9858_v56 = vld [vmem:[#allocation8 + $0x4] sm:$0xf] }
 0x365   :  { %5516 = vmatpush.bf16.msrb.mxu3 %v8865_v5  ;;  %v5213_v5 = vpop.f32.mrf.mxu3 }
 0x366   :  { %5934 = vmatpush.bf16.msra.mxu0 %v8901_v45  ;;  %v5328_v18 = vpop.f32.mrf.mxu0  ;;  %v8817_v45 = vor.u32 %v9835_v47, %v8814_v54  ;;  %v9903_v47 = vld [vmem:[#allocation8 + $0x164] sm:$0xf0]  ;;  %v9901_v54 = vld [vmem:[#allocation8 + $0x154] sm:$0xf0]  ;;  %v9081_v5 = vor.u32 %v9902_v59, %v9078_v60  ;;  %v9100_v59 = vld [vmem:[#allocation8 + $0x190] sm:$0xf] }
 0x367   :  { %v9909_v60 = vld [vmem:[#allocation8 + $0x194] sm:$0xf0] }
 0x368   :  { %5947 = vmatpush.bf16.msra.mxu1 %v8965_v43  ;;  %v5341_v52 = vpop.f32.mrf.mxu1  ;;  %v8905_v43 = vor.u32 %v9858_v56, %v8902_v61 }
 0x369   :  { %5517 = vmatpush.bf16.msrb.mxu3 %v8849_v9  ;;  %v10359_v38 = vadd.f32 %v5341_v52, %v5328_v18  ;;  %5935 = vmatmul.bf16.vlgmr.msra.gmra.mxu0 %v5539_v10  ;;  %v5251_v9 = vadd.f32 %v10351_v17, %v10339_v30  ;;  %v9068_v52 = vld [vmem:[#allocation8 + $0x150] sm:$0xf] }
 0x36a   :  { %5979 = vmatpush.bf16.msrb.mxu0 %v8961_v50  ;;  %v8910_v50 = vld [vmem:[#allocation8 + $0x18] sm:$0xf0]  ;;  %v9069_v31 = vor.u32 %v9901_v54, %v9068_v52  ;;  %v9030_v52 = vld [vmem:[#allocation8 + $0x108] sm:$0xf0] }
 0x36c   :  { %5992 = vmatpush.bf16.msrb.mxu1 %v9025_v6 }
 0x36d   :  { %5518 = vmatpush.bf16.msrb.mxu3 %v8833_v16  ;;  %v5263_v6 = vpop.f32.mrf.mxu3  ;;  %v9076_v16 = vld [vmem:[#allocation8 + $0x160] sm:$0xf] }
 0x36e   :  { %5980 = vmatpush.bf16.msrb.mxu0 %v8953_v55  ;;  %v5330_v0 = vpop.f32.mrf.mxu0  ;;  %v8913_v55 = vor.u32 %v9860_v48, %v8910_v50  ;;  %v5264_v23 = vadd.f32 %v5263_v6, %v5251_v9  ;;  %v9077_v30 = vor.u32 %v9903_v47, %v9076_v16  ;;  %v9895_v48 = vld [vmem:[#allocation8 + $0x124] sm:$0xf0]  ;;  %v9065_v6 = vor.u32 %v9898_v3, %v9062_v1  ;;  %v9892_v16 = vld [vmem:[#allocation8 + $0x114] sm:$0xf]  ;;  %v9038_v47 = vld [vmem:[#allocation8 + $0x118] sm:$0xf0] }
 0x36f   :  { %v9045_v53 = vor.u32 %v9895_v48, %v9044_v19  ;;  %v9028_v0 = vld [vmem:[#allocation8 + $0x100] sm:$0xf]  ;;  %v9918_v3 = vld [vmem:[#allocation8 + $0x1e4] sm:$0xf]  ;;  %v9142_v1 = vld [vmem:[#allocation8 + $0x1e8] sm:$0xf0] }
 0x370   :  { %5993 = vmatpush.bf16.msrb.mxu1 %v9017_v15  ;;  %v5343_v35 = vpop.f32.mrf.mxu1  ;;  %v5277_v18 = vadd.f32 %v10347_v57, %v5264_v23  ;;  %v9896_v23 = vld [vmem:[#allocation8 + $0x134] sm:$0xf]  ;;  %v9124_v19 = vld [vmem:[#allocation8 + $0x1c0] sm:$0xf] }
 0x371   :  { %5519 = vmatpush.bf16.msrb.mxu3 %v8817_v45  ;;  %v9086_v35 = vld [vmem:[#allocation8 + $0x178] sm:$0xf0] }
 0x372   :  { %5981 = vmatpush.bf16.msrb.mxu0 %v8945_v2  ;;  %v8785_v2 = vor.u32 %v9827_v40, %v8782_v12  ;;  %v10364_v15 = vpop.f32.mrf.mxu2  ;;  %v5290_v17 = vadd.f32 %v10349_v63, %v5277_v18  ;;  %v9904_v12 = vld [vmem:[#allocation8 + $0x174] sm:$0xf] }
 0x374   :  { %5994 = vmatpush.bf16.msrb.mxu1 %v9009_v7  ;;  %v5303_v57 = vadd.f32 %v10355_v51, %v5290_v17  ;;  %v9061_v7 = vor.u32 %v9899_v39, %v9060_v8  ;;  %v9890_v17 = vld [vmem:[#allocation8 + $0x104] sm:$0xf] }
 0x375   :  { %5520 = vmatpush.bf16.msrb.mxu3 %v8801_v14  ;;  %v5265_v21 = vpop.f32.mrf.mxu3  ;;  %v9891_v14 = vld [vmem:[#allocation8 + $0x104] sm:$0xf0] }
 0x376   :  { %5982 = vmatpush.bf16.msrb.mxu0 %v8937_v20  ;;  %v9905_v20 = vld [vmem:[#allocation8 + $0x174] sm:$0xf0]  ;;  %v9029_v40 = vor.u32 %v9891_v14, %v9028_v0  ;;  %v9041_v21 = vor.u32 %v9892_v16, %v9038_v47  ;;  %v9118_v16 = vld [vmem:[#allocation8 + $0x1b8] sm:$0xf0] }
 0x377   :  { %v9085_v11 = vor.u32 %v9905_v20, %v9084_v29  ;;  %v9054_v29 = vld [vmem:[#allocation8 + $0x138] sm:$0xf0] }
 0x378   :  { %5995 = vmatpush.bf16.msrb.mxu1 %v9001_v28  ;;  %v9893_v28 = vld [vmem:[#allocation8 + $0x114] sm:$0xf0]  ;;  %v9057_v27 = vor.u32 %v9896_v23, %v9054_v29  ;;  %v9134_v23 = vld [vmem:[#allocation8 + $0x1d8] sm:$0xf0] }
 0x379   :  { %5521 = vmatpush.bf16.msrb.mxu3 %v8785_v2  ;;  %5953 = vmatpush.bf16.msra.mxu2 %v9085_v11  ;;  %v9894_v11 = vld [vmem:[#allocation8 + $0x124] sm:$0xf] }
 0x37a   :  { %5983 = vmatpush.bf16.msrb.mxu0 %v8929_v58  ;;  %v5356_v37 = vpop.f32.mrf.mxu2 }
 0x37b   :  { %v9148_v37 = vld [vmem:[#allocation8 + $0x1f0] sm:$0xf] }
 0x37c   :  { %5996 = vmatpush.bf16.msrb.mxu1 %v8993_v62  ;;  %5522 = vmatmul.bf16.vlgmr.msrb.gmra.mxu3 %v10320_v46  ;;  %v9900_v62 = vld [vmem:[#allocation8 + $0x154] sm:$0xf] }
 0x37d   :  { %5954 = vmatpush.bf16.msra.mxu2 %v9077_v30  ;;  %v9073_v2 = vor.u32 %v9900_v62, %v9070_v4  ;;  %v5355_v30 = vadd.f32 %v10364_v15, %v10359_v38  ;;  %v9132_v15 = vld [vmem:[#allocation8 + $0x1d0] sm:$0xf]  ;;  %v9907_v62 = vld [vmem:[#allocation8 + $0x184] sm:$0xf0]  ;;  %v9920_v4 = vld [vmem:[#allocation8 + $0x1f4] sm:$0xf] }
 0x37e   :  { %5984 = vmatpush.bf16.msrb.mxu0 %v8921_v33  ;;  %v9053_v33 = vor.u32 %v9897_v34, %v9052_v41  ;;  %v9917_v41 = vld [vmem:[#allocation8 + $0x1d4] sm:$0xf0] }
 0x37f   :  { %v5315_v42 = vpop.f32.mrf.mxu3  ;;  %v9133_v34 = vor.u32 %v9917_v41, %v9132_v15 }
 0x380   :  { %5997 = vmatpush.bf16.msrb.mxu1 %v8985_v26  ;;  %v5316_v32 = vadd.f32 %v5315_v42, %v5303_v57  ;;  %v9921_v57 = vld [vmem:[#allocation8 + $0x1f4] sm:$0xf0] }
 0x381   :  { %5955 = vmatpush.bf16.msra.mxu2 %v9069_v31  ;;  %v9033_v31 = vor.u32 %v9890_v17, %v9030_v52  ;;  %v9149_v8 = vor.u32 %v9921_v57, %v9148_v37 }
 0x382   :  { %5985 = vmatpush.bf16.msrb.mxu0 %v8913_v55  ;;  %vm5528_vm9 = vcmp.gt.f32.partialorder %v5316_v32, 0.0  ;;  %v5532_v44 = vmul.f32 0.2, %v5316_v32  ;;  %v9089_v55 = vor.u32 %v9904_v12, %v9086_v35  ;;  %v9911_v12 = vld [vmem:[#allocation8 + $0x1a4] sm:$0xf0] }
 0x383   :  { %5966 = vmatpush.bf16.msra.mxu3 %v9149_v8 }
 0x384   :  { %5998 = vmatpush.bf16.msrb.mxu1 %v8977_v22  ;;  %v5536_v49 = vsel %vm5528_vm9, %v5316_v32, %v5532_v44  ;;  %v9919_v32 = vld [vmem:[#allocation8 + $0x1e4] sm:$0xf0] }
 0x385   :  { %5956 = vmatpush.bf16.msra.mxu2 %v9061_v7  ;;  %v5540_v50 = vpack.c.bf16 %v5536_v49, %v5536_v49  ;;  %v9140_v7 = vld [vmem:[#allocation8 + $0x1e0] sm:$0xf] }
 0x386   :  { %5986 = vmatpush.bf16.msrb.mxu0 %v8905_v43  ;;  %v10367_v46 = vpop.f32.mrf.mxu0  ;;  %v9141_v44 = vor.u32 %v9919_v32, %v9140_v7  ;;  %v9094_v7 = vld [vmem:[#allocation8 + $0x188] sm:$0xf0] }
 0x387   :  { %v5317_v51 = vpop.f32.mrf.mxu3  ;;  %5948 = vmatmul.bf16.vlgmr.msra.gmra.mxu1 %v5540_v50 }
 0x388   :  { %5999 = vmatpush.bf16.msrb.mxu1 %v8969_v13  ;;  %v10370_v58 = vpop.f32.mrf.mxu1  ;;  %v9049_v13 = vor.u32 %v9894_v11, %v9046_v24  ;;  %5967 = vmatpush.bf16.msra.mxu3 %v9141_v44  ;;  %v9126_v11 = vld [vmem:[#allocation8 + $0x1c8] sm:$0xf0] }
 0x389   :  { %5987 = vmatmul.bf16.vlgmr.msrb.gmra.mxu0 %v5539_v10  ;;  %5957 = vmatpush.bf16.msra.mxu2 %v9053_v33  ;;  %v9037_v10 = vor.u32 %v9893_v28, %v9036_v25  ;;  %v9116_v28 = vld [vmem:[#allocation8 + $0x1b0] sm:$0xf] }
 0x38c   :  { %5968 = vmatpush.bf16.msra.mxu3 %v9133_v34 }
 0x38d   :  { %5958 = vmatpush.bf16.msra.mxu2 %v9045_v53 }
 0x38e   :  { %v5382_v45 = vpop.f32.mrf.mxu0 }
 0x390   :  { %v5395_v63 = vpop.f32.mrf.mxu1 }
 0x391   :  { %5959 = vmatpush.bf16.msra.mxu2 %v9037_v10 }
 0x394   :  { %v5406_v56 = vpop.f32.mrf.mxu2 }
 0x395   :  { %5960 = vmatpush.bf16.msra.mxu2 %v9029_v40  ;;  %v9108_v40 = vld [vmem:[#allocation8 + $0x1a0] sm:$0xf] }
 0x397   :  { %6000 = vmatmul.bf16.vlgmr.msrb.gmra.mxu1 %v5540_v50 }
 0x399   :  { %6005 = vmatpush.bf16.msrb.mxu2 %v9089_v55  ;;  %v9109_v55 = vor.u32 %v9911_v12, %v9108_v40 }
 0x39c   :  { %v5408_v26 = vpop.f32.mrf.mxu2 }
 0x39d   :  { %6006 = vmatpush.bf16.msrb.mxu2 %v9081_v5  ;;  %v9101_v5 = vor.u32 %v9909_v60, %v9100_v59  ;;  %v6037_v60 = vld [vmem:[#allocation10] sm:$0x3] }
 0x39f   :  { %v5367_v22 = vpop.f32.mrf.mxu3 }
 0x3a0   :  { %v5368_v54 = vadd.f32 %v5367_v22, %v5355_v30  ;;  %v9110_v30 = vld [vmem:[#allocation8 + $0x1a8] sm:$0xf0] }
 0x3a1   :  { %6007 = vmatpush.bf16.msrb.mxu2 %v9073_v2 }
 0x3a2   :  { %v5381_v39 = vadd.f32 %v10367_v46, %v5368_v54  ;;  %v9915_v46 = vld [vmem:[#allocation8 + $0x1c4] sm:$0xf0]  ;;  %v9908_v54 = vld [vmem:[#allocation8 + $0x194] sm:$0xf] }
 0x3a3   :  { %v9125_v50 = vor.u32 %v9915_v46, %v9124_v19 }
 0x3a4   :  { %v5394_v38 = vadd.f32 %v10370_v58, %v5381_v39  ;;  %v9913_v58 = vld [vmem:[#allocation8 + $0x1b4] sm:$0xf0]  ;;  %v9906_v39 = vld [vmem:[#allocation8 + $0x184] sm:$0xf] }
 0x3a5   :  { %6008 = vmatpush.bf16.msrb.mxu2 %v9065_v6  ;;  %5969 = vmatpush.bf16.msra.mxu3 %v9125_v50  ;;  %v9117_v14 = vor.u32 %v9913_v58, %v9116_v28  ;;  %v9145_v6 = vor.u32 %v9918_v3, %v9142_v1  ;;  %v9097_v44 = vor.u32 %v9906_v39, %v9094_v7 }
 0x3a6   :  { %v5432_v61 = vpop.f32.mrf.mxu0  ;;  %v5407_v49 = vadd.f32 %v5406_v56, %v5394_v38 }
 0x3a7   :  { %v5369_v18 = vpop.f32.mrf.mxu3 }
 0x3a8   :  { %v5445_v36 = vpop.f32.mrf.mxu1  ;;  %v9912_v18 = vld [vmem:[#allocation8 + $0x1b4] sm:$0xf] }
 0x3a9   :  { %v10373_v43 = vadd.f32 %v5445_v36, %v5432_v61  ;;  %6009 = vmatpush.bf16.msrb.mxu2 %v9057_v27  ;;  %5970 = vmatpush.bf16.msra.mxu3 %v9117_v14  ;;  %v9092_v61 = vld [vmem:[#allocation8 + $0x180] sm:$0xf]  ;;  %v9150_v36 = vld [vmem:[#allocation8 + $0x1f8] sm:$0xf0]  ;;  %v9914_v27 = vld [vmem:[#allocation8 + $0x1c4] sm:$0xf]  ;;  %v9121_v47 = vor.u32 %v9912_v18, %v9118_v16 }
 0x3aa   :  { %v9093_v2 = vor.u32 %v9907_v62, %v9092_v61  ;;  %v9153_v26 = vor.u32 %v9920_v4, %v9150_v36  ;;  %v6039_v62 = vperm.slane %v6037_v60, 0  ;;  %v6040_v4 = vperm.slane %v6037_v60, 1 }
 0x3ad   :  { %6010 = vmatpush.bf16.msrb.mxu2 %v9049_v13  ;;  %5971 = vmatpush.bf16.msra.mxu3 %v9109_v55  ;;  %v9129_v13 = vor.u32 %v9914_v27, %v9126_v11 }
 0x3ae   :  { %v5434_v9 = vpop.f32.mrf.mxu0 }
 0x3af   :  { %v9916_v9 = vld [vmem:[#allocation8 + $0x1d4] sm:$0xf] }
 0x3b0   :  { %v5447_v20 = vpop.f32.mrf.mxu1  ;;  %v9137_v29 = vor.u32 %v9916_v9, %v9134_v23  ;;  %v6049_v9 = vstv %s10400_s5 }
 0x3b1   :  { %6011 = vmatpush.bf16.msrb.mxu2 %v9041_v21  ;;  %5972 = vmatpush.bf16.msra.mxu3 %v9101_v5  ;;  %v9910_v21 = vld [vmem:[#allocation8 + $0x1a4] sm:$0xf] }
 0x3b2   :  { %v9113_v17 = vor.u32 %v9910_v21, %v9110_v30 }
 0x3b5   :  { %6012 = vmatpush.bf16.msrb.mxu2 %v9033_v31  ;;  %5973 = vmatpush.bf16.msra.mxu3 %v9093_v2  ;;  %v9102_v31 = vld [vmem:[#allocation8 + $0x198] sm:$0xf0] }
 0x3b6   :  { %v9105_v37 = vor.u32 %v9908_v54, %v9102_v31 }
 0x3b9   :  { %v10378_v42 = vpop.f32.mrf.mxu2  ;;  %6018 = vmatpush.bf16.msrb.mxu3 %v9153_v26 }
 0x3ba   :  { %v5459_v57 = vadd.f32 %v10378_v42, %v10373_v43 }
 0x3bd   :  { %6019 = vmatpush.bf16.msrb.mxu3 %v9145_v6 }
 0x3bf   :  { %v5419_v48 = vpop.f32.mrf.mxu3 }
 0x3c0   :  { %v5420_v53 = vadd.f32 %v5419_v48, %v5407_v49 }
 0x3c1   :  { %v5460_v33 = vpop.f32.mrf.mxu2  ;;  %6020 = vmatpush.bf16.msrb.mxu3 %v9137_v29 }
 0x3c2   :  { %vm5529_vm10 = vcmp.gt.f32.partialorder %v5420_v53, 0.0  ;;  %v5533_v51 = vmul.f32 0.2, %v5420_v53 }
 0x3c4   :  { %v5537_v0 = vsel %vm5529_vm10, %v5420_v53, %v5533_v51 }
 0x3c5   :  { %v5541_v35 = vpack.c.bf16 %v5537_v0, %v5537_v0  ;;  %6021 = vmatpush.bf16.msrb.mxu3 %v9129_v13 }
 0x3c6   :  { %v10380_v45 = vpop.f32.mrf.mxu0 }
 0x3c7   :  { %v5421_v56 = vpop.f32.mrf.mxu3  ;;  %5961 = vmatmul.bf16.vlgmr.msra.gmra.mxu2 %v5541_v35 }
 0x3c8   :  { %v10383_v63 = vpop.f32.mrf.mxu1 }
 0x3c9   :  { %6022 = vmatpush.bf16.msrb.mxu3 %v9121_v47 }
 0x3cd   :  { %6023 = vmatpush.bf16.msrb.mxu3 %v9113_v17 }
 0x3ce   :  { %v5486_v25 = vpop.f32.mrf.mxu0 }
 0x3d0   :  { %v5499_v10 = vpop.f32.mrf.mxu1 }
 0x3d1   :  { %6024 = vmatpush.bf16.msrb.mxu3 %v9105_v37 }
 0x3d5   :  { %6025 = vmatpush.bf16.msrb.mxu3 %v9097_v44 }
 0x3d7   :  { %6013 = vmatmul.bf16.vlgmr.msrb.gmra.mxu2 %v5541_v35 }
 0x3d9   :  { %v5510_v22 = vpop.f32.mrf.mxu2 }
 0x3df   :  { %v5471_v24 = vpop.f32.mrf.mxu3 }
 0x3e0   :  { %v5472_v32 = vadd.f32 %v5471_v24, %v5459_v57 }
 0x3e1   :  { %v5512_v20 = vpop.f32.mrf.mxu2 }
 0x3e2   :  { %v5485_v38 = vadd.f32 %v10380_v45, %v5472_v32 }
 0x3e4   :  { %v5498_v41 = vadd.f32 %v10383_v63, %v5485_v38 }
 0x3e6   :  { %v5936_v8 = vpop.f32.mrf.mxu0  ;;  %v5511_v34 = vadd.f32 %v5510_v22, %v5498_v41 }
 0x3e7   :  { %v5473_v52 = vpop.f32.mrf.mxu3 }
 0x3ee   :  { %v5938_v15 = vpop.f32.mrf.mxu0 }
 0x3ff   :  { %v5523_v49 = vpop.f32.mrf.mxu3 }
 0x400   :  { %v5524_v33 = vadd.f32 %v5523_v49, %v5511_v34 }
 0x402   :  { %vm5530_vm11 = vcmp.gt.f32.partialorder %v5524_v33, 0.0  ;;  %v5534_v46 = vmul.f32 0.2, %v5524_v33 }
 0x404   :  { %v5538_v48 = vsel %vm5530_vm11, %v5524_v33, %v5534_v46  ;;  %v5949_v53 = vpop.f32.mrf.mxu1 }
 0x405   :  { %v5542_v43 = vpack.c.bf16 %v5538_v48, %v5538_v48  ;;  %v5950_v51 = vadd.f32 %v5949_v53, %v5936_v8 }
 0x406   :  { %v5988_v19 = vpop.f32.mrf.mxu0 }
 0x407   :  { %v5525_v42 = vpop.f32.mrf.mxu3  ;;  %5974 = vmatmul.bf16.vlgmr.msra.gmra.mxu3 %v5542_v43 }
 0x40c   :  { %v5951_v25 = vpop.f32.mrf.mxu1 }
 0x40e   :  { %v5990_v50 = vpop.f32.mrf.mxu0 }
 0x414   :  { %v6001_v28 = vpop.f32.mrf.mxu1 }
 0x415   :  { %v6002_v45 = vadd.f32 %v6001_v28, %v5988_v19 }
 0x417   :  { %6026 = vmatmul.bf16.vlgmr.msrb.gmra.mxu3 %v5542_v43 }
 0x41c   :  { %v6003_v10 = vpop.f32.mrf.mxu1 }
 0x44a   :  { %v5962_v58 = vpop.f32.mrf.mxu2 }
 0x44b   :  { %v5963_v63 = vadd.f32 %v5962_v58, %v5950_v51 }
 0x452   :  { %v5964_v0 = vpop.f32.mrf.mxu2 }
 0x45a   :  { %v6014_v14 = vpop.f32.mrf.mxu2 }
 0x45b   :  { %v6015_v56 = vadd.f32 %v6014_v14, %v6002_v45 }
 0x462   :  { %v6016_v40 = vpop.f32.mrf.mxu2 }
 0x48a   :  { %v5975_v12 = vpop.f32.mrf.mxu3 }
 0x48b   :  { %v5976_v55 = vadd.f32 %v5975_v12, %v5963_v63 }
 0x48d   :  { %v6033_v59 = vmul.f32 0.2, %v5976_v55  ;;  %vm6031_vm12 = vcmp.gt.f32.partialorder %v5976_v55, 0.0 }
 0x48f   :  { %v6035_v2 = vsel %vm6031_vm12, %v5976_v55, %v6033_v59 }
 0x490   :  { %v6043_v3 = vmul.f32 %v6039_v62, %v6035_v2 }
 0x492   :  { %v5977_v35 = vpop.f32.mrf.mxu3 }
 0x49a   :  { %v6027_v5 = vpop.f32.mrf.mxu3 }
 0x49b   :  { %v6028_v61 = vadd.f32 %v6027_v5, %v6015_v56 }
 0x49d   :  { %vm6032_vm13 = vcmp.gt.f32.partialorder %v6028_v61, 0.0  ;;  %v6034_v36 = vmul.f32 0.2, %v6028_v61 }
 0x49f   :  { %v6036_v26 = vsel %vm6032_vm13, %v6028_v61, %v6034_v36 }
 0x4a0   :  { %v6044_v1 = vmul.f32 %v6040_v4, %v6036_v26 }
 0x4a2   :  { %v6029_v22 = vpop.f32.mrf.mxu3  ;;  %v6045_v6 = vadd.f32 %v6044_v1, %v6043_v3 }
 0x4a4   :  { %6046 = vadd.xlane.f32.xlu0 %v6045_v6 }
 0x517   :  { %v6047_v23 = vpop.xlane.xlu0 %6046 }
 0x518   :  { %v6050_v29 = vadd.f32 %v6049_v9, %v6047_v23 }
 0x51a   :  { %v6051_v20 = vand.u32 2147483647, %v6050_v29  ;;  %vm6055_vm1 = vcmp.ge.f32.partialorder %v6050_v29, 0.0 }
 0x51c   :  { %v6052_v27 = vsub.f32 0.0, %v6051_v20 }
 0x51e   :  { %v6053_v11 = vmul.f32 1.442695, %v6052_v27 }
 0x520   :  { %9933 = vpow2.f32 %v6053_v11 }
 0x526   :  { %v9934_v24 = vpop.eup %9933 }
 0x527   :  { %v6057_v13 = vadd.f32 1.0, %v9934_v24  ;;  %v6056_v37 = vsel %vm6055_vm1, 1.0, %v9934_v24 }
 0x529   :  { %9935 = vrcp.f32 %v6057_v13  ;;  %v6069_v21 = vand.u32 2147483648, %v6057_v13  ;;  %v6067_v17 = vand.u32 2147483647, %v6057_v13  ;;  %vm6063_vm15 = vweird.f32 %v6057_v13 }
 0x52b   :  { %v6070_v54 = vor.u32 1.1754944e-38, %v6069_v21  ;;  %vm6068_vm2 = vcmp.eq.f32.partialorder %v6067_v17, 8.507059e+37 }
 0x52f   :  { %v9936_v18 = vpop.eup %9935 }
 0x530   :  { %v6059_v16 = vmul.f32 %v9936_v18, %v6057_v13  ;;  %vm6064_vm14 = vweird.f32 %v9936_v18 }
 0x531   :  { %vm6065_vm0 = vmor %vm6063_vm15, %vm6064_vm14 }
 0x532   :  { %v6060_v47 = vsub.f32 1.0, %v6059_v16 }
 0x534   :  { %v6061_v30 = vmul.f32 %v9936_v18, %v6060_v47 }
 0x536   :  { %v6062_v52 = vadd.f32 %v9936_v18, %v6061_v30 }
 0x538   :  { %v6066_v31 = vsel %vm6065_vm0, %v9936_v18, %v6062_v52 }
 0x539   :  { %v6071_v57 = vsel %vm6068_vm2, %v6070_v54, %v6066_v31 }
 0x53a   :  { %v6072_v8 = vmul.f32 %v6071_v57, %v6056_v37 }
 0x53c   :  { %6074 = vst.msk [vmem:[%s10401_s6] sm:$0xff] %vm6073_vm3, %v6072_v8 }
 0x53d   :  { %6079 = vsyncpa [#allocation4], 1 }
 0x53e   :  { %6080 = vsyncpa [#allocation6], 1 }
 0x53f   :  { %6081 = vsyncpa [#allocation9], 1 }

</bundles_post_ra>
